<compile_context>
chip_gen: v5e
topology: v5e:2x2
jax: 0.10.0
libtpu: 0.0.40
codegen_flags: <defaults>
</compile_context>

<pallas_src>
import jax
import jax.numpy as jnp
from jax.experimental import pallas as pl
from jax.experimental.pallas import tpu as pltpu

_OUT_LANES = 128        # packed output: lanes [0:3]=delta_pos, [3:7]=quat, [7:8]=gripper
_QUAT_EPS = 1e-12


def _qrh_kernel(
    x_ref, proprio_ref,
    w1_ref, w1_scale_ref, b1_ref,
    w2_ref, b2_ref,
    w3_ref, b3_ref,
    grip_w_ref, grip_b_ref,
    out_ref,
    emb_ref,
):
    f32 = jnp.float32
    bf16 = jnp.bfloat16
    k = pl.program_id(0)                       # 0 = pos branch, 1 = ori branch

    # ---- this branch's layer 1 + layer 2 (w1/w2 chunks are streamed per grid step) ----
    x = x_ref[...]                             # (B, 2048) bf16
    w1 = w1_ref[...]                           # (2048, 512) int8 or bf16
    if w1.dtype != bf16:                       # weight-only int8: |q| <= 127 is exact in bf16
        w1 = w1.astype(f32).astype(bf16)
    h = jnp.dot(x, w1, preferred_element_type=f32)            # (B, 512), f32 accumulate
    h = h * w1_scale_ref[...] + b1_ref[...]    # per-channel dequant scale folded post-matmul
    h = jnp.maximum(h, 0.0).astype(bf16)
    emb = jnp.dot(h, w2_ref[...], preferred_element_type=f32) + b2_ref[...]
    emb_ref[k] = jnp.maximum(emb, 0.0).astype(bf16)            # outer torch.relu, (B, 256)

    # ---- last grid step: fused layer 3 (block-diag), gripper, quat-normalize, store ----
    @pl.when(k == pl.num_programs(0) - 1)
    def _():
        pe = jnp.concatenate([emb_ref[0], emb_ref[1]], axis=-1)              # (B, 512)
        out = jnp.dot(pe, w3_ref[...], preferred_element_type=f32) + b3_ref[...]  # (B, 128)

        # gripper: Linear(1024, 1) -> numerically stable sigmoid
        grip = (jnp.dot(proprio_ref[...], grip_w_ref[...], preferred_element_type=f32)
                + grip_b_ref[...])                                           # (B, 1)
        nonneg = grip >= 0.0
        z = jnp.exp(jnp.where(nonneg, -grip, grip))                          # exp(non-pos)
        grip = jnp.where(nonneg, 1.0 / (1.0 + z), z / (1.0 + z))

        # per-row quaternion normalization on lanes 3:7, gripper into lane 7,
        # single lane-dense (B, 128) store
        lane = jax.lax.broadcasted_iota(jnp.int32, out.shape, 1)
        is_quat = jnp.logical_and(lane >= 3, lane < 7)
        quat = jnp.where(is_quat, out, 0.0)
        inv_norm = jax.lax.rsqrt(jnp.sum(quat * quat, axis=-1, keepdims=True) + _QUAT_EPS)
        out = jnp.where(is_quat, out * inv_norm, out)
        out = jnp.where(lane == 7, grip, out)
        out_ref[...] = out


def pack_params(params, *, quantize_w1=True):
    """One-time repack into the fused / streaming kernel layout (keep off the hot path).

    quantize_w1=True stores the dominant 4 MiB layer-1 weight as int8 with per-output-
    channel scales (recommended on v5e/v6e); pass False to keep bf16 (e.g. on v7x).
    """
    bf16, f32 = jnp.bfloat16, jnp.float32
    in_dim, hidden = params["pos_w1"].shape           # (2048, 512)
    final_dim = params["pos_w2"].shape[1]              # 256

    # layer 1 of both branches, one contiguous (2048, 512) chunk per branch / grid step
    w1 = jnp.concatenate([params["pos_w1"], params["ori_w1"]], axis=1)     # (2048, 1024)
    if quantize_w1:
        scale = jnp.maximum(jnp.max(jnp.abs(w1), axis=0, keepdims=True), 1e-8) / 127.0
        w1_c = jnp.clip(jnp.round(w1 / scale), -127.0, 127.0).astype(jnp.int8)
        w1_scale = scale.astype(f32)                                        # (1, 1024)
    else:
        w1_c = w1.astype(bf16)
        w1_scale = jnp.ones((1, 2 * hidden), f32)
    w1_c = w1_c.reshape(in_dim, 2, hidden).transpose(1, 0, 2)               # (2, 2048, 512)
    b1 = jnp.concatenate([params["pos_b1"], params["ori_b1"]], axis=1).astype(f32)

    # layer 2 stacked per branch (streamed with its branch's grid step)
    w2 = jnp.stack([params["pos_w2"], params["ori_w2"]], axis=0).astype(bf16)   # (2,512,256)
    b2 = jnp.stack([params["pos_b2"], params["ori_b2"]], axis=0).astype(f32)    # (2,1,256)

    # layer 3: block-diagonal, lane-padded to one (512, 128) matrix
    w3 = jnp.zeros((2 * final_dim, _OUT_LANES), f32)
    w3 = w3.at[:final_dim, 0:3].set(params["pos_w3"])
    w3 = w3.at[final_dim:, 3:7].set(params["ori_w3"])
    b3 = jnp.zeros((1, _OUT_LANES), f32)
    b3 = b3.at[:, 0:3].set(params["pos_b3"])
    b3 = b3.at[:, 3:7].set(params["ori_b3"])

    return {
        "w1": w1_c, "w1_scale": w1_scale, "b1": b1,
        "w2": w2, "b2": b2,
        "w3": w3.astype(bf16), "b3": b3,
        "grip_w": params["grip_w"].astype(bf16), "grip_b": params["grip_b"].astype(f32),
    }


def query_regression_head(x, proprio_task_emb, packed):
    B = x.shape[0]
    bf16 = jnp.bfloat16
    n_branch, in_dim, hidden = packed["w1"].shape       # (2, 2048, 512)
    final_dim = packed["w2"].shape[2]                    # 256
    assert n_branch == 2

    # accept bf16 producers directly; cast is a no-op then
    x = x if x.dtype == bf16 else x.astype(bf16)
    proprio = (proprio_task_emb if proprio_task_emb.dtype == bf16
               else proprio_task_emb.astype(bf16))

    args = (
        x, proprio,
        packed["w1"], packed["w1_scale"], packed["b1"],
        packed["w2"], packed["b2"],
        packed["w3"], packed["b3"],
        packed["grip_w"], packed["grip_b"],
    )

    vmem = pl.BlockSpec(memory_space=pltpu.MemorySpace.VMEM)     # whole array, VMEM-resident
    in_specs = [
        vmem,                                                        # x
        vmem,                                                        # proprio
        pl.BlockSpec((None, in_dim, hidden), lambda k: (k, 0, 0)),   # w1 chunk per branch
        pl.BlockSpec((1, hidden), lambda k: (0, k)),                 # w1_scale chunk
        pl.BlockSpec((1, hidden), lambda k: (0, k)),                 # b1 chunk
        pl.BlockSpec((None, hidden, final_dim), lambda k: (k, 0, 0)),  # w2 chunk per branch
        pl.BlockSpec((None, 1, final_dim), lambda k: (k, 0, 0)),       # b2 chunk
        vmem, vmem,                                                  # w3, b3
        vmem, vmem,                                                  # grip_w, grip_b
    ]
    # resident output block (written only on the last step -> one writeback DMA)
    out_spec = pl.BlockSpec((B, _OUT_LANES), lambda k: (0, 0))

    flops = 2 * B * (n_branch * in_dim * hidden            # layer 1 (both branches)
                     + n_branch * hidden * final_dim       # layer 2
                     + 2 * final_dim * _OUT_LANES          # layer 3 (block-diag, padded)
                     + packed["grip_w"].shape[0])          # gripper
    bytes_accessed = sum(int(a.size) * a.dtype.itemsize for a in args) + B * _OUT_LANES * 4

    out = pl.pallas_call(
        _qrh_kernel,
        out_shape=jax.ShapeDtypeStruct((B, _OUT_LANES), jnp.float32),
        grid_spec=pltpu.PrefetchScalarGridSpec(
            num_scalar_prefetch=0,
            grid=(n_branch,),
            in_specs=in_specs,
            out_specs=out_spec,
            scratch_shapes=[pltpu.VMEM((n_branch, B, final_dim), bf16)],   # per-branch emb
        ),
        compiler_params=pltpu.CompilerParams(
            # emb scratch + resident output are carried across the branch axis -> arbitrary
            dimension_semantics=("arbitrary",),
            # working set (incl. int8->bf16 dequant temporaries) < ~9 MiB; 16 MiB leaves
            # scheduling headroom on v7x (64 MiB physical VMEM) vs the 32 MiB default.
            vmem_limit_bytes=16 * 1024 * 1024,
        ),
        cost_estimate=pl.CostEstimate(
            flops=flops, transcendentals=2 * B, bytes_accessed=bytes_accessed),
    )(*args)
    return out[:, 0:3], out[:, 3:7], out[:, 7:8]   # delta_ee_pos, abs_ee_ori, gripper


# ----------------------------- references & harness -----------------------------

def _linear_init(key, fan_in, fan_out):
    """Deterministic init mimicking torch.nn.Linear (uniform(-1/sqrt(fan_in), ...))."""
    kw, kb = jax.random.split(key)
    lim = 1.0 / jnp.sqrt(jnp.float32(fan_in))
    w = jax.random.uniform(kw, (fan_in, fan_out), jnp.float32, -lim, lim)
    b = jax.random.uniform(kb, (1, fan_out), jnp.float32, -lim, lim)
    return w, b


def init_params(key):
    in_dim = 512 + 512 + 1024   # 2048
    hidden = 512
    final_dim = 256
    keys = jax.random.split(key, 7)
    p = {}
    p["pos_w1"], p["pos_b1"] = _linear_init(keys[0], in_dim, hidden)
    p["pos_w2"], p["pos_b2"] = _linear_init(keys[1], hidden, final_dim)
    p["pos_w3"], p["pos_b3"] = _linear_init(keys[2], final_dim, 3)
    p["ori_w1"], p["ori_b1"] = _linear_init(keys[3], in_dim, hidden)
    p["ori_w2"], p["ori_b2"] = _linear_init(keys[4], hidden, final_dim)
    p["ori_w3"], p["ori_b3"] = _linear_init(keys[5], final_dim, 4)
    p["grip_w"], p["grip_b"] = _linear_init(keys[6], 1024, 1)
    return p


def reference_forward(x, proprio, packed):
    """Pure-JAX mirror of the kernel math (bf16 operands, f32 accum, post-matmul scale)."""
    f32, bf16 = jnp.float32, jnp.bfloat16
    xb = x.astype(bf16)
    hidden = packed["w2"].shape[1]
    embs = []
    for k in range(2):
        w1k = packed["w1"][k]
        if w1k.dtype != bf16:
            w1k = w1k.astype(f32).astype(bf16)
        h = jnp.dot(xb, w1k, preferred_element_type=f32)
        h = (h * packed["w1_scale"][:, k * hidden:(k + 1) * hidden]
             + packed["b1"][:, k * hidden:(k + 1) * hidden])
        h = jnp.maximum(h, 0.0).astype(bf16)
        e = jnp.dot(h, packed["w2"][k], preferred_element_type=f32) + packed["b2"][k]
        embs.append(jnp.maximum(e, 0.0).astype(bf16))
    pe = jnp.concatenate(embs, axis=-1)
    out = jnp.dot(pe, packed["w3"], preferred_element_type=f32) + packed["b3"]
    pos = out[:, 0:3]
    quat = out[:, 3:7]
    quat = quat * jax.lax.rsqrt(jnp.sum(quat * quat, axis=-1, keepdims=True) + _QUAT_EPS)
    grip = jax.nn.sigmoid(
        jnp.dot(proprio.astype(bf16), packed["grip_w"], preferred_element_type=f32)
        + packed["grip_b"])
    return pos, quat, grip


def full_precision_reference(x, proprio, params):
    """f32 reference of the original module (intended per-row quaternion normalization)."""
    def lin(v, w, b):
        return jnp.dot(v, w) + b
    h = jnp.maximum(lin(x, params["pos_w1"], params["pos_b1"]), 0.0)
    pos_emb = jnp.maximum(lin(h, params["pos_w2"], params["pos_b2"]), 0.0)
    pos = lin(pos_emb, params["pos_w3"], params["pos_b3"])
    h = jnp.maximum(lin(x, params["ori_w1"], params["ori_b1"]), 0.0)
    ori_emb = jnp.maximum(lin(h, params["ori_w2"], params["ori_b2"]), 0.0)
    ori = lin(ori_emb, params["ori_w3"], params["ori_b3"])
    ori = ori / jnp.linalg.norm(ori, axis=-1, keepdims=True)
    grip = jax.nn.sigmoid(lin(proprio, params["grip_w"], params["grip_b"]))
    return pos, ori, grip


if __name__ == "__main__":
    key = jax.random.PRNGKey(0)
    k_param, k_x, k_p = jax.random.split(key, 3)

    # B >= 16 amortises the weight stream and exactly fills a bf16 (16,128) sublane tile
    B = 16
    x = jax.random.normal(k_x, (B, 2048), jnp.float32)               # fused feature emb
    proprio_task_emb = jax.random.normal(k_p, (B, 1024), jnp.float32)

    params = init_params(k_param)
    fp_pos, fp_ori, fp_grip = full_precision_reference(x, proprio_task_emb, params)

    # exercise both the int8 weight-only path (v5e/v6e) and the bf16 path (v7x default)
    for quantize in (True, False):
        packed = pack_params(params, quantize_w1=quantize)            # one-time repack
        delta_ee_pos, abs_ee_ori, gripper = jax.block_until_ready(
            query_regression_head(x, proprio_task_emb, packed))

        assert delta_ee_pos.shape == (B, 3)
        assert abs_ee_ori.shape == (B, 4)
        assert gripper.shape == (B, 1)

        # kernel matches its own (bf16 / int8-dequant) math tightly ...
        r_pos, r_ori, r_grip = reference_forward(x, proprio_task_emb, packed)
        assert jnp.allclose(delta_ee_pos, r_pos, atol=2e-2, rtol=2e-2)
        assert jnp.allclose(abs_ee_ori, r_ori, atol=2e-2, rtol=2e-2)
        assert jnp.allclose(gripper, r_grip, atol=2e-2, rtol=2e-2)
        # ... and stays close to the full-precision module semantics.
        assert jnp.allclose(delta_ee_pos, fp_pos, atol=5e-2, rtol=5e-2)
        assert jnp.allclose(abs_ee_ori, fp_ori, atol=5e-2, rtol=5e-2)
        assert jnp.allclose(gripper, fp_grip, atol=5e-2, rtol=5e-2)

    print("KERNEL_OK")
</pallas_src>

<mosaic_0001>
module attributes {stable_mosaic.version = 11 : i64} {
  func.func @_qrh_kernel(%arg0: i32, %arg1: memref<16x2048xbf16, #tpu.memory_space<vmem>>, %arg2: memref<16x1024xbf16, #tpu.memory_space<vmem>>, %arg3: memref<1x2048x512xi8, #tpu.memory_space<vmem>>, %arg4: memref<1x512xf32, #tpu.memory_space<vmem>>, %arg5: memref<1x512xf32, #tpu.memory_space<vmem>>, %arg6: memref<1x512x256xbf16, #tpu.memory_space<vmem>>, %arg7: memref<1x1x256xf32, #tpu.memory_space<vmem>>, %arg8: memref<512x128xbf16, #tpu.memory_space<vmem>>, %arg9: memref<1x128xf32, #tpu.memory_space<vmem>>, %arg10: memref<1024x1xbf16, #tpu.memory_space<vmem>>, %arg11: memref<1x1xf32, #tpu.memory_space<vmem>>, %arg12: memref<16x128xf32, #tpu.memory_space<vmem>>, %arg13: memref<2x16x256xbf16, #tpu.memory_space<vmem>>) attributes {dimension_semantics = [#tpu.dimension_semantics<arbitrary>], iteration_bounds = array<i64: 2>, scalar_prefetch = 0 : i64, scratch_operands = 1 : i64, tpu.core_type = #tpu.core_type<tc>, window_params = [{pipeline_mode = #tpu.pipeline_mode<synchronous>, transform_indices = @transform_0, window_bounds = array<i64: 16, 2048>}, {pipeline_mode = #tpu.pipeline_mode<synchronous>, transform_indices = @transform_1, window_bounds = array<i64: 16, 1024>}, {transform_indices = @transform_2, window_bounds = array<i64: 1, 2048, 512>}, {transform_indices = @transform_3, window_bounds = array<i64: 1, 512>}, {transform_indices = @transform_4, window_bounds = array<i64: 1, 512>}, {transform_indices = @transform_5, window_bounds = array<i64: 1, 512, 256>}, {transform_indices = @transform_6, window_bounds = array<i64: 1, 1, 256>}, {pipeline_mode = #tpu.pipeline_mode<synchronous>, transform_indices = @transform_7, window_bounds = array<i64: 512, 128>}, {pipeline_mode = #tpu.pipeline_mode<synchronous>, transform_indices = @transform_8, window_bounds = array<i64: 1, 128>}, {pipeline_mode = #tpu.pipeline_mode<synchronous>, transform_indices = @transform_9, window_bounds = array<i64: 1024, 1>}, {pipeline_mode = #tpu.pipeline_mode<synchronous>, transform_indices = @transform_10, window_bounds = array<i64: 1, 1>}, {pipeline_mode = #tpu.pipeline_mode<synchronous>, transform_indices = @transform_11, window_bounds = array<i64: 16, 128>}]} {
    %c0 = arith.constant 0 : index
    %c0_0 = arith.constant 0 : index
    %0 = vector.load %arg1[%c0, %c0_0] : memref<16x2048xbf16, #tpu.memory_space<vmem>>, vector<16x2048xbf16>
    %c0_1 = arith.constant 0 : index
    %c0_2 = arith.constant 0 : index
    %c0_3 = arith.constant 0 : index
    %1 = vector.load %arg3[%c0_1, %c0_2, %c0_3] : memref<1x2048x512xi8, #tpu.memory_space<vmem>>, vector<1x2048x512xi8>
    %2 = vector.shape_cast %1 : vector<1x2048x512xi8> to vector<2048x512xi8>
    %3 = arith.sitofp %2 : vector<2048x512xi8> to vector<2048x512xf32>
    %4 = arith.truncf %3 : vector<2048x512xf32> to vector<2048x512xbf16>
    %cst = arith.constant dense<0.000000e+00> : vector<16x512xf32>
    %5 = tpu.matmul %0, %4, %cst {dimension_numbers = #tpu.dot_dimension_numbers<[1], [0], [0], [1], [0, 0, 1, 1], [], []>} : vector<16x2048xbf16>, vector<2048x512xbf16>, vector<16x512xf32> -> vector<16x512xf32>
    %c0_4 = arith.constant 0 : index
    %c0_5 = arith.constant 0 : index
    %6 = vector.load %arg4[%c0_4, %c0_5] : memref<1x512xf32, #tpu.memory_space<vmem>>, vector<1x512xf32>
    %7 = vector.broadcast %6 : vector<1x512xf32> to vector<16x512xf32>
    %8 = arith.mulf %5, %7 : vector<16x512xf32>
    %c0_6 = arith.constant 0 : index
    %c0_7 = arith.constant 0 : index
    %9 = vector.load %arg5[%c0_6, %c0_7] : memref<1x512xf32, #tpu.memory_space<vmem>>, vector<1x512xf32>
    %10 = vector.broadcast %9 : vector<1x512xf32> to vector<16x512xf32>
    %11 = arith.addf %8, %10 : vector<16x512xf32>
    %cst_8 = arith.constant 0.000000e+00 : f32
    %12 = vector.broadcast %cst_8 : f32 to vector<16x512xf32>
    %13 = arith.maximumf %11, %12 : vector<16x512xf32>
    %14 = arith.truncf %13 : vector<16x512xf32> to vector<16x512xbf16>
    %c0_9 = arith.constant 0 : index
    %c0_10 = arith.constant 0 : index
    %c0_11 = arith.constant 0 : index
    %15 = vector.load %arg6[%c0_9, %c0_10, %c0_11] : memref<1x512x256xbf16, #tpu.memory_space<vmem>>, vector<1x512x256xbf16>
    %16 = vector.shape_cast %15 : vector<1x512x256xbf16> to vector<512x256xbf16>
    %cst_12 = arith.constant dense<0.000000e+00> : vector<16x256xf32>
    %17 = tpu.matmul %14, %16, %cst_12 {dimension_numbers = #tpu.dot_dimension_numbers<[1], [0], [0], [1], [0, 0, 1, 1], [], []>} : vector<16x512xbf16>, vector<512x256xbf16>, vector<16x256xf32> -> vector<16x256xf32>
    %c0_13 = arith.constant 0 : index
    %c0_14 = arith.constant 0 : index
    %c0_15 = arith.constant 0 : index
    %18 = vector.load %arg7[%c0_13, %c0_14, %c0_15] : memref<1x1x256xf32, #tpu.memory_space<vmem>>, vector<1x1x256xf32>
    %19 = vector.shape_cast %18 : vector<1x1x256xf32> to vector<1x256xf32>
    %20 = vector.broadcast %19 : vector<1x256xf32> to vector<16x256xf32>
    %21 = arith.addf %17, %20 : vector<16x256xf32>
    %cst_16 = arith.constant 0.000000e+00 : f32
    %22 = vector.broadcast %cst_16 : f32 to vector<16x256xf32>
    %23 = arith.maximumf %21, %22 : vector<16x256xf32>
    %24 = arith.truncf %23 : vector<16x256xf32> to vector<16x256xbf16>
    %25 = arith.index_cast %arg0 : i32 to index
    %c0_17 = arith.constant 0 : index
    %c0_18 = arith.constant 0 : index
    %26 = vector.load %arg13[%25, %c0_17, %c0_18] : memref<2x16x256xbf16, #tpu.memory_space<vmem>>, vector<1x16x256xbf16>
    %27 = vector.shape_cast %26 : vector<1x16x256xbf16> to vector<16x256xbf16>
    %28 = vector.shape_cast %24 : vector<16x256xbf16> to vector<1x16x256xbf16>
    tpu.vector_store %arg13[%25, %c0_17, %c0_18], %28 {strides = array<i32>} : memref<2x16x256xbf16, #tpu.memory_space<vmem>>, vector<1x16x256xbf16>,
    %c1_i32 = arith.constant 1 : i32
    %29 = arith.cmpi eq, %arg0, %c1_i32 : i32
    %30 = arith.extui %29 : i1 to i32
    %c0_i32 = arith.constant 0 : i32
    %31 = arith.cmpi ne, %30, %c0_i32 : i32
    scf.if %31 {
      %c0_19 = arith.constant 0 : index
      %c0_20 = arith.constant 0 : index
      %c0_21 = arith.constant 0 : index
      %32 = vector.load %arg13[%c0_19, %c0_20, %c0_21] : memref<2x16x256xbf16, #tpu.memory_space<vmem>>, vector<1x16x256xbf16>
      %33 = vector.shape_cast %32 : vector<1x16x256xbf16> to vector<16x256xbf16>
      %c1 = arith.constant 1 : index
      %c0_22 = arith.constant 0 : index
      %c0_23 = arith.constant 0 : index
      %34 = vector.load %arg13[%c1, %c0_22, %c0_23] : memref<2x16x256xbf16, #tpu.memory_space<vmem>>, vector<1x16x256xbf16>
      %35 = vector.shape_cast %34 : vector<1x16x256xbf16> to vector<16x256xbf16>
      %36 = tpu.concatenate %33, %35 in 1 : vector<16x256xbf16>, vector<16x256xbf16> -> vector<16x512xbf16>
      %c0_24 = arith.constant 0 : index
      %c0_25 = arith.constant 0 : index
      %37 = vector.load %arg8[%c0_24, %c0_25] : memref<512x128xbf16, #tpu.memory_space<vmem>>, vector<512x128xbf16>
      %cst_26 = arith.constant dense<0.000000e+00> : vector<16x128xf32>
      %38 = tpu.matmul %36, %37, %cst_26 {dimension_numbers = #tpu.dot_dimension_numbers<[1], [0], [0], [1], [0, 0, 1, 1], [], []>} : vector<16x512xbf16>, vector<512x128xbf16>, vector<16x128xf32> -> vector<16x128xf32>
      %c0_27 = arith.constant 0 : index
      %c0_28 = arith.constant 0 : index
      %39 = vector.load %arg9[%c0_27, %c0_28] : memref<1x128xf32, #tpu.memory_space<vmem>>, vector<1x128xf32>
      %40 = vector.broadcast %39 : vector<1x128xf32> to vector<16x128xf32>
      %41 = arith.addf %38, %40 : vector<16x128xf32>
      %c0_29 = arith.constant 0 : index
      %c0_30 = arith.constant 0 : index
      %42 = vector.load %arg2[%c0_29, %c0_30] : memref<16x1024xbf16, #tpu.memory_space<vmem>>, vector<16x1024xbf16>
      %c0_31 = arith.constant 0 : index
      %c0_32 = arith.constant 0 : index
      %43 = vector.load %arg10[%c0_31, %c0_32] : memref<1024x1xbf16, #tpu.memory_space<vmem>>, vector<1024x1xbf16>
      %cst_33 = arith.constant dense<0.000000e+00> : vector<16x1xf32>
      %44 = tpu.matmul %42, %43, %cst_33 {dimension_numbers = #tpu.dot_dimension_numbers<[1], [0], [0], [1], [0, 0, 1, 1], [], []>} : vector<16x1024xbf16>, vector<1024x1xbf16>, vector<16x1xf32> -> vector<16x1xf32>
      %c0_34 = arith.constant 0 : index
      %c0_35 = arith.constant 0 : index
      %45 = vector.load %arg11[%c0_34, %c0_35] : memref<1x1xf32, #tpu.memory_space<vmem>>, vector<1x1xf32>
      %46 = vector.broadcast %45 : vector<1x1xf32> to vector<16x1xf32>
      %47 = arith.addf %44, %46 : vector<16x1xf32>
      %cst_36 = arith.constant 0.000000e+00 : f32
      %48 = vector.broadcast %cst_36 : f32 to vector<16x1xf32>
      %49 = arith.cmpf oge, %47, %48 : vector<16x1xf32>
      %cst_37 = arith.constant 0.000000e+00 : f32
      %50 = vector.broadcast %cst_37 : f32 to vector<16x1xf32>
      %51 = arith.subf %50, %47 : vector<16x1xf32>
      %52 = arith.select %49, %51, %47 : vector<16x1xi1>, vector<16x1xf32>
      %53 = math.exp %52 : vector<16x1xf32>
      %cst_38 = arith.constant 1.000000e+00 : f32
      %54 = vector.broadcast %cst_38 : f32 to vector<16x1xf32>
      %55 = arith.addf %54, %53 : vector<16x1xf32>
      %cst_39 = arith.constant 1.000000e+00 : f32
      %56 = vector.broadcast %cst_39 : f32 to vector<16x1xf32>
      %57 = arith.divf %56, %55 : vector<16x1xf32>
      %cst_40 = arith.constant 1.000000e+00 : f32
      %58 = vector.broadcast %cst_40 : f32 to vector<16x1xf32>
      %59 = arith.addf %58, %53 : vector<16x1xf32>
      %60 = arith.divf %53, %59 : vector<16x1xf32>
      %61 = arith.select %49, %57, %60 : vector<16x1xi1>, vector<16x1xf32>
      %62 = tpu.iota {dimensions = array<i32: 1>} : vector<16x128xi32>
      %c3_i32 = arith.constant 3 : i32
      %63 = vector.broadcast %c3_i32 : i32 to vector<16x128xi32>
      %64 = arith.cmpi sge, %62, %63 : vector<16x128xi32>
      %c7_i32 = arith.constant 7 : i32
      %65 = vector.broadcast %c7_i32 : i32 to vector<16x128xi32>
      %66 = arith.cmpi slt, %62, %65 : vector<16x128xi32>
      %67 = arith.andi %64, %66 : vector<16x128xi1>
      %cst_41 = arith.constant 0.000000e+00 : f32
      %68 = vector.broadcast %cst_41 : f32 to vector<16x128xf32>
      %69 = arith.select %67, %41, %68 : vector<16x128xi1>, vector<16x128xf32>
      %70 = arith.mulf %69, %69 : vector<16x128xf32>
      %cst_42 = arith.constant dense<0.000000e+00> : vector<16xf32>
      %71 = vector.multi_reduction <add>, %70, %cst_42 [1] : vector<16x128xf32> to vector<16xf32>
      %72 = vector.shape_cast %71 : vector<16xf32> to vector<16x1xf32>
      %cst_43 = arith.constant 9.99999996E-13 : f32
      %73 = vector.broadcast %cst_43 : f32 to vector<16x1xf32>
      %74 = arith.addf %72, %73 : vector<16x1xf32>
      %75 = math.rsqrt %74 : vector<16x1xf32>
      %76 = vector.broadcast %75 : vector<16x1xf32> to vector<16x128xf32>
      %77 = arith.mulf %41, %76 : vector<16x128xf32>
      %78 = arith.select %67, %77, %41 : vector<16x128xi1>, vector<16x128xf32>
      %c7_i32_44 = arith.constant 7 : i32
      %79 = vector.broadcast %c7_i32_44 : i32 to vector<16x128xi32>
      %80 = arith.cmpi eq, %62, %79 : vector<16x128xi32>
      %81 = vector.shape_cast %61 : vector<16x1xf32> to vector<16x1xf32>
      %82 = vector.broadcast %81 : vector<16x1xf32> to vector<16x128xf32>
      %83 = arith.select %80, %82, %78 : vector<16x128xi1>, vector<16x128xf32>
      %c0_45 = arith.constant 0 : index
      %c0_46 = arith.constant 0 : index
      %84 = vector.load %arg12[%c0_45, %c0_46] : memref<16x128xf32, #tpu.memory_space<vmem>>, vector<16x128xf32>
      tpu.vector_store %arg12[%c0_45, %c0_46], %83 {strides = array<i32>} : memref<16x128xf32, #tpu.memory_space<vmem>>, vector<16x128xf32>,
    } else {
    }
    return
  }
  func.func @transform_0(%arg0: i32) -> (i32, i32) {
    %c0_i32 = arith.constant 0 : i32
    %c0_i32_0 = arith.constant 0 : i32
    %c0_i32_1 = arith.constant 0 : i32
    return %c0_i32, %c0_i32_0 : i32, i32
  }
  func.func @transform_1(%arg0: i32) -> (i32, i32) {
    %c0_i32 = arith.constant 0 : i32
    %c0_i32_0 = arith.constant 0 : i32
    %c0_i32_1 = arith.constant 0 : i32
    return %c0_i32, %c0_i32_0 : i32, i32
  }
  func.func @transform_2(%arg0: i32) -> (i32, i32, i32) {
    %c0_i32 = arith.constant 0 : i32
    %c0_i32_0 = arith.constant 0 : i32
    %c0_i32_1 = arith.constant 0 : i32
    return %arg0, %c0_i32, %c0_i32_0 : i32, i32, i32
  }
  func.func @transform_3(%arg0: i32) -> (i32, i32) {
    %c0_i32 = arith.constant 0 : i32
    %c0_i32_0 = arith.constant 0 : i32
    return %c0_i32, %arg0 : i32, i32
  }
  func.func @transform_4(%arg0: i32) -> (i32, i32) {
    %c0_i32 = arith.constant 0 : i32
    %c0_i32_0 = arith.constant 0 : i32
    return %c0_i32, %arg0 : i32, i32
  }
  func.func @transform_5(%arg0: i32) -> (i32, i32, i32) {
    %c0_i32 = arith.constant 0 : i32
    %c0_i32_0 = arith.constant 0 : i32
    %c0_i32_1 = arith.constant 0 : i32
    return %arg0, %c0_i32, %c0_i32_0 : i32, i32, i32
  }
  func.func @transform_6(%arg0: i32) -> (i32, i32, i32) {
    %c0_i32 = arith.constant 0 : i32
    %c0_i32_0 = arith.constant 0 : i32
    %c0_i32_1 = arith.constant 0 : i32
    return %arg0, %c0_i32, %c0_i32_0 : i32, i32, i32
  }
  func.func @transform_7(%arg0: i32) -> (i32, i32) {
    %c0_i32 = arith.constant 0 : i32
    %c0_i32_0 = arith.constant 0 : i32
    %c0_i32_1 = arith.constant 0 : i32
    return %c0_i32, %c0_i32_0 : i32, i32
  }
  func.func @transform_8(%arg0: i32) -> (i32, i32) {
    %c0_i32 = arith.constant 0 : i32
    %c0_i32_0 = arith.constant 0 : i32
    %c0_i32_1 = arith.constant 0 : i32
    return %c0_i32, %c0_i32_0 : i32, i32
  }
  func.func @transform_9(%arg0: i32) -> (i32, i32) {
    %c0_i32 = arith.constant 0 : i32
    %c0_i32_0 = arith.constant 0 : i32
    %c0_i32_1 = arith.constant 0 : i32
    return %c0_i32, %c0_i32_0 : i32, i32
  }
  func.func @transform_10(%arg0: i32) -> (i32, i32) {
    %c0_i32 = arith.constant 0 : i32
    %c0_i32_0 = arith.constant 0 : i32
    %c0_i32_1 = arith.constant 0 : i32
    return %c0_i32, %c0_i32_0 : i32, i32
  }
  func.func @transform_11(%arg0: i32) -> (i32, i32) {
    %c0_i32 = arith.constant 0 : i32
    %c0_i32_0 = arith.constant 0 : i32
    %c0_i32_1 = arith.constant 0 : i32
    return %c0_i32, %c0_i32_0 : i32, i32
  }
}

</mosaic_0001>

<bundles_post_ra>
// kernel: tpu_custom_call.1
= control target key start
LH: loop header
LB: loop body
LE: loop exit
PB: predicated region body
PF: predicated region fallthrough
CT: control target
= control target key end

     0   :  { %s9093_s0 = inlined_call_operand.hbm [shape: bf16[16,2048], index: 0, kind: input, shape index: {}]   ;;  %s9094_s1 = inlined_call_operand.hbm [shape: bf16[16,1024], index: 1, kind: input, shape index: {}]   ;;  %s9095_s2 = inlined_call_operand.hbm [shape: s8[2,2048,512], index: 2, kind: input, shape index: {}]   ;;  %s9096_s3 = inlined_call_operand.hbm [shape: f32[1,1024], index: 3, kind: input, shape index: {}]   ;;  %s9097_s4 = inlined_call_operand.hbm [shape: f32[1,1024], index: 4, kind: input, shape index: {}]   ;;  %s9098_s5 = inlined_call_operand.hbm [shape: bf16[2,512,256], index: 5, kind: input, shape index: {}]   ;;  %s9099_s6 = inlined_call_operand.hbm [shape: f32[2,1,256], index: 6, kind: input, shape index: {}]   ;;  %s9100_s7 = inlined_call_operand.hbm [shape: bf16[512,128], index: 7, kind: input, shape index: {}]   ;;  %s9101_s8 = inlined_call_operand.hbm [shape: f32[1,128], index: 8, kind: input, shape index: {}]   ;;  %s9102_s9 = inlined_call_operand.vmem [shape: bf16[1024,1], index: 9, kind: input, shape index: {}]   ;;  %s9103_s10 = inlined_call_operand.<no memory space> [shape: f32[1,1], index: 10, kind: input, shape index: {}]   ;;  %s9104_s11 = inlined_call_operand.hbm [shape: f32[16,128], index: 11, kind: output, shape index: {}]  }
   0x1   :  { %9114 = sst [smem:[#allocation29_spill]] %s9093_s0  ;;  %v16_v0 = vstv %s9103_s10 }
   0x2   :  { %9115 = sst [smem:[#allocation30_spill]] %s9094_s1  ;;  %17 = vst [vmem:[#allocation3] sm:$0x1] %v16_v0 }
   0x3   :  { %9116 = sst [smem:[#allocation31_spill]] %s9095_s2 }
   0x4   :  { %9117 = sst [smem:[#allocation32_spill]] %s9102_s9 }
   0x5   :  { %9118 = sst [smem:[#allocation33_spill]] %s9104_s11 }
   0x6   :  { %18 = vsyncpa [#allocation5], 0 }
   0x7   :  { %19 = vsyncpa [#allocation8], 0 }
   0x8   :  { %20 = vsyncpa [#allocation16], 0 }
   0x9   :  { %21 = vsyncpa [#allocation6], 0  ;;  %s7825_s19 = smov 0   ;;  %s7827_s20 = smov 0  }
   0xa   :  { %s7829_s21 = smov 0   ;;  %s7831_s22 = smov 0  }
   0xb LB: > { %9119 = sst [smem:[#allocation24_spill]] %s7737_s20  ;;  %s7844_s10 = sadd.s32 4294967295, %s7745_s22   ;;  %s7745_s22 = sphi %s7831_s22, %s9141_s22   ;;  %s7741_s21 = sphi %s7829_s21, %s9144_s21   ;;  %s7737_s20 = sphi %s7827_s20, %s9143_s20   ;;  %s7733_s19 = sphi %s7825_s19, %s9142_s19  }
   0xc   : > { %9120 = sst [smem:[#allocation25_spill]] %s7741_s21  ;;  %s7847_s23 = sadd.s32 1, %s7745_s22  }
   0xd   : > { %9121 = sst [smem:[#allocation26_spill]] %s7847_s23  ;;  %s73_s24 = ssub.s32 %s7745_s22, %s7847_s23 }
   0xe   : > { %s76_s25 = sadd.s32 1, %s7741_s21  ;;  %p74_p0 = scmp.eq.s32.totalorder %s73_s24, 0 }
   0xf   : > { %p83_p1 = scmp.ne.s32.totalorder %s7741_s21, %s7737_s20  ;;  %p84_p2 = scmp.eq.s32.totalorder %s7745_s22, 0 }
  0x10   : > { %p89_p3 = scmp.ne.s32.totalorder %s7737_s20, %s7733_s19  ;;  %p90_p5 = scmp.eq.s32.totalorder %s7844_s10, 0 }
  0x11   : > { %s7857_s26 = scalar_select %p74_p0, %s7741_s21, %s76_s25  }
  0x12   : > { %p7859_p4 = por %p84_p2, %p83_p1  ;;  %p6280_p6 = scmp.ge.s32.totalorder %s7745_s22, 1 }
  0x13   : > { %9122 = sst [smem:[#allocation27_spill]] %s7857_s26  ;;  %p309_p7 = scmp.lt.s32.totalorder %s7745_s22, 3 }
  0x14   : > { %p7868_p8 = por %p90_p5, %p89_p3  ;;  %s9127_s0 = sld [smem:[#allocation29_spill]] }
  0x15   : > { %p7872_p9 = pnand %p6280_p6, %p309_p7  ;;  %s7747_s14 = smov [#allocation4]  }
  0x16   : > { %s9124_s28 = scalar_select %p7868_p8, 1, 0 }
  0x17   : > { %p7288_p10 = pneg %p7872_p9  ;;  %s322_s15 = sshll.u32 %s7747_s14, 4  ;;  %s323_s15 = int_to_ptr.vmem [resolvable:$true] %s322_s15 }
  0x18   : > { %9125 = sst [smem:[#allocation28_spill]] %s9124_s28  ;;  %s7748_s17 = smov 1024  }
  0x19   : > { %p7883_p11 = pnand %p7288_p10, %p90_p5  ;;  %s9107_s18 = smov 64  }
  0x1a   : > { %s320_s13 = sshll.u32 %s9127_s0, 4  ;;  %p7321_p12 = scmp.lt.s32.totalorder %s7745_s22, 2  ;;  %s321_s13 = int_to_ptr.hbm [resolvable:$true] %s320_s13 }
  0x1b   : > { %7291 = dma.hbm_to_vmem [thread:$0]  (!%p7883_p11), %s321_s13, 2048, %s323_s15, [#allocation5], %s7748_s17, %s7748_s17, %s9107_s18  }
  0x1c   : > { %s382_s19 = sand.u32 1, %s7745_s22   ;;  %s7893_s24 = sand.u32 1, %s7741_s21  }
  0x1d   : > { %s6286_s25 = sshll.u32 %s7893_s24, 11  ;;  %s7067_s30 = sshll.u32 %s7745_s22, 11 }
  0x1e   : > { %s9129_s2 = sld [smem:[#allocation31_spill]]  ;;  %s386_s23 = scalar_lea.vmem [#allocation9], %s6286_s25 }
  0x1f   : > { %s394_s11 = sshll.u32 %s386_s23, 4  ;;  %p7902_p13 = pnand %p7321_p12, %p7859_p4  ;;  %s395_s11 = int_to_ptr.vmem [resolvable:$true] %s394_s11 }
  0x20   : > { %s6289_s15 = sshll.u32 %s7893_s24, 2  ;;  %s9110_s17 = sshll.u32 %s7745_s22, 2 }
  0x21   : > { %s412_s9 = scalar_lea.hbm %s9096_s3, %s9110_s17  ;;  %s7913_s12 = scalar_lea.sflag [#allocation5], %s382_s19 }
  0x22   : > { %p7917_p1 = pneg %p7902_p13 }
  0x24   : > { %s391_s0 = scalar_lea.hbm %s9129_s2, %s7067_s30  ;;  %s7430_s21 = scalar_lea.hbm %s9129_s2, 4096 }
  0x25   : > { %s392_s26 = sshll.u32 %s391_s0, 4  ;;  %s393_s26 = int_to_ptr.hbm [resolvable:$true] %s392_s26 }
  0x26   : > { %s7423_s0 = sshra.s32 %s393_s26, 4  ;;  %s7424_s0 = int_to_ptr.hbm [resolvable:$true] %s7423_s0 }
  0x27   : > { %s7425_s23 = scalar_lea.hbm %s7424_s0, 2048  ;;  %p7431_p4 = scmp.lt.s32.totalorder %s7424_s0, %s9129_s2 }
  0x28   : > { %p7426_p0 = scmp.ne.s32.totalorder %s7424_s0, %s7425_s23  ;;  %p7432_p6 = scmp.lt.s32.totalorder %s7430_s21, %s7425_s23 }
  0x2a   : > { %p7428_p2 = pnand %p7917_p1, %p7426_p0  ;;  %p7433_p7 = por %p7432_p6, %p7431_p4 }
  0x2c   : > { %p7429_p3 = pneg %p7428_p2 }
  0x2e   : > { %p7434_p10 = pnand %p7433_p7, %p7429_p3 }
  0x30   : > { %7437 = shalt.err (!%p7434_p10)
}
  0x31   : > { %s7750_s14 = smov 512   ;;  %s7751_s17 = smov 32  }
  0x32   : > { %7304 = dma.hbm_to_vmem [thread:$0]  (!%p7902_p13), %s393_s26, 32768, %s395_s11, %s7913_s12, %s7750_s14, %s7750_s14, %s7751_s17  }
  0x33   : > { %s414_s25 = sshll.u32 %s412_s9, 4  ;;  %s408_s30 = scalar_lea.vmem [#allocation10], %s6289_s15  ;;  %s415_s25 = int_to_ptr.hbm [resolvable:$true] %s414_s25 }
  0x34   : > { %s416_s18 = sshll.u32 %s408_s30, 4  ;;  %s7453_s0 = sshra.s32 %s415_s25, 4  ;;  %s417_s18 = int_to_ptr.vmem [resolvable:$true] %s416_s18  ;;  %s7454_s0 = int_to_ptr.hbm [resolvable:$true] %s7453_s0 }
  0x35   : > { %s7455_s23 = scalar_lea.hbm %s7454_s0, 4  ;;  %s7460_s2 = scalar_lea.hbm %s9096_s3, 8 }
  0x36   : > { %p7456_p12 = scmp.ne.s32.totalorder %s7454_s0, %s7455_s23  ;;  %p7461_p3 = scmp.lt.s32.totalorder %s7454_s0, %s9096_s3 }
  0x37   : > { %p7462_p4 = scmp.lt.s32.totalorder %s7460_s2, %s7455_s23 }
  0x38   : > { %p7458_p0 = pnand %p7456_p12, %p7917_p1 }
  0x39   : > { %p7463_p6 = por %p7462_p4, %p7461_p3 }
  0x3a   : > { %p7459_p2 = pneg %p7458_p0 }
  0x3c   : > { %p7464_p7 = pnand %p7463_p6, %p7459_p2 }
  0x3e   : > { %7467 = shalt.err (!%p7464_p7)
}
  0x3f   : > { %7307 = dma.hbm_to_vmem [thread:$0]  (!%p7902_p13), %s415_s25, 64, %s417_s18, %s7913_s12  }
  0x40   : > { %s9132_s9 = sshll.u32 %s7745_s22, 2  ;;  %s427_s20 = scalar_lea.vmem [#allocation11], %s6289_s15 }
  0x41   : > { %s431_s30 = scalar_lea.hbm %s9097_s4, %s9132_s9  ;;  %s435_s28 = sshll.u32 %s427_s20, 4  ;;  %s436_s28 = int_to_ptr.vmem [resolvable:$true] %s435_s28 }
  0x42   : > { %s433_s21 = sshll.u32 %s431_s30, 4  ;;  %s7490_s18 = scalar_lea.hbm %s9097_s4, 8  ;;  %s434_s21 = int_to_ptr.hbm [resolvable:$true] %s433_s21 }
  0x43   : > { %s7483_s2 = sshra.s32 %s434_s21, 4  ;;  %s7484_s2 = int_to_ptr.hbm [resolvable:$true] %s7483_s2 }
  0x44   : > { %s7485_s0 = scalar_lea.hbm %s7484_s2, 4  ;;  %p7491_p2 = scmp.lt.s32.totalorder %s7484_s2, %s9097_s4 }
  0x45   : > { %p7486_p10 = scmp.ne.s32.totalorder %s7484_s2, %s7485_s0  ;;  %p7492_p3 = scmp.lt.s32.totalorder %s7490_s18, %s7485_s0 }
  0x47   : > { %p7488_p12 = pnand %p7486_p10, %p7917_p1  ;;  %p7493_p4 = por %p7492_p3, %p7491_p2 }
  0x49   : > { %p7489_p0 = pneg %p7488_p12 }
  0x4b   : > { %p7494_p6 = pnand %p7493_p4, %p7489_p0 }
  0x4d   : > { %7497 = shalt.err (!%p7494_p6)
}
  0x4e   : > { %7310 = dma.hbm_to_vmem [thread:$0]  (!%p7902_p13), %s434_s21, 64, %s436_s28, %s7913_s12  }
  0x4f   : > { %s9133_s1 = sld [smem:[#allocation30_spill]]  ;;  %s7752_s30 = smov [#allocation7]  }
  0x50   : > { %s336_s20 = sshll.u32 %s7752_s30, 4  ;;  %s6293_s2 = sshll.u32 %s7893_s24, 9  ;;  %s337_s20 = int_to_ptr.vmem [resolvable:$true] %s336_s20 }
  0x51   : > { %s7068_s0 = sshll.u32 %s7745_s22, 9  ;;  %s446_s28 = scalar_lea.vmem [#allocation12], %s6293_s2 }
  0x52   : > { %s451_s21 = scalar_lea.hbm %s9098_s5, %s7068_s0  ;;  %s454_s18 = sshll.u32 %s446_s28, 4  ;;  %s455_s18 = int_to_ptr.vmem [resolvable:$true] %s454_s18 }
  0x53   : > { %s452_s19 = sshll.u32 %s451_s21, 4  ;;  %s348_s9 = sshll.u32 %s9100_s7, 4  ;;  %s453_s19 = int_to_ptr.hbm [resolvable:$true] %s452_s19  ;;  %s349_s9 = int_to_ptr.hbm [resolvable:$true] %s348_s9 }
  0x54   : > { %s7543_s30 = sshra.s32 %s453_s19, 4  ;;  %s7544_s30 = int_to_ptr.hbm [resolvable:$true] %s7543_s30 }
  0x55   : > { %s334_s26 = sshll.u32 %s9133_s1, 4  ;;  %s7545_s1 = scalar_lea.hbm %s7544_s30, 512  ;;  %s335_s26 = int_to_ptr.hbm [resolvable:$true] %s334_s26 }
  0x56   : > { %7294 = dma.hbm_to_vmem [thread:$0]  (!%p7883_p11), %s335_s26, 1024, %s337_s20, [#allocation8], %s7750_s14, %s7750_s14, %s7751_s17  }
  0x57   : > { %p7546_p7 = scmp.ne.s32.totalorder %s7544_s30, %s7545_s1  ;;  %s7550_s26 = scalar_lea.hbm %s9098_s5, 1024 }
  0x58   : > { %p7551_p0 = scmp.lt.s32.totalorder %s7544_s30, %s9098_s5  ;;  %p7552_p2 = scmp.lt.s32.totalorder %s7550_s26, %s7545_s1 }
  0x59   : > { %p7548_p10 = pnand %p7546_p7, %p7917_p1 }
  0x5a   : > { %p7553_p3 = por %p7552_p2, %p7551_p0 }
  0x5b   : > { %p7549_p12 = pneg %p7548_p10 }
  0x5d   : > { %p7554_p4 = pnand %p7553_p3, %p7549_p12 }
  0x5f   : > { %7557 = shalt.err (!%p7554_p4)
}
  0x60   : > { %s7753_s0 = smov 128   ;;  %s7754_s23 = smov 8  }
  0x61   : > { %7313 = dma.hbm_to_vmem [thread:$0]  (!%p7902_p13), %s453_s19, 8192, %s455_s18, %s7913_s12, %s7753_s0, %s7753_s0, %s7754_s23  }
  0x62   : > { %s7755_s25 = smov [#allocation14]   ;;  %s363_s1 = sshll.u32 %s9101_s8, 4  ;;  %s364_s1 = int_to_ptr.hbm [resolvable:$true] %s363_s1 }
  0x63   : > { %s350_s21 = sshll.u32 %s7755_s25, 4  ;;  %s7756_s15 = smov 4   ;;  %s351_s21 = int_to_ptr.vmem [resolvable:$true] %s350_s21 }
  0x64   : > { %s9134_s30 = smov 64   ;;  %s7757_s17 = smov [#allocation15]  }
  0x65   : > { %7297 = dma.hbm_to_vmem [thread:$0]  (!%p7883_p11), %s349_s9, 4096, %s351_s21, [#allocation8], %s9134_s30, %s9134_s30, %s7756_s15  }
  0x66   : > { %s365_s14 = sshll.u32 %s7757_s17, 4  ;;  %s6296_s26 = sshll.u32 %s7893_s24, 1  ;;  %s366_s14 = int_to_ptr.vmem [resolvable:$true] %s365_s14 }
  0x67   : > { %7300 = dma.hbm_to_vmem [thread:$0]  (!%p7883_p11), %s364_s1, 16, %s366_s14, [#allocation16]  }
  0x68   : > { %s6297_s18 = sshll.u32 %s7745_s22, 1  ;;  %s468_s19 = scalar_lea.vmem [#allocation13], %s6296_s26 }
  0x69   : > { %s476_s20 = sshll.u32 %s468_s19, 4  ;;  %s472_s23 = scalar_lea.hbm %s9099_s6, %s6297_s18  ;;  %s477_s20 = int_to_ptr.vmem [resolvable:$true] %s476_s20 }
  0x6a   : > { %s474_s25 = sshll.u32 %s472_s23, 4  ;;  %s7640_s22 = scalar_lea.hbm %s9099_s6, 4  ;;  %s475_s25 = int_to_ptr.hbm [resolvable:$true] %s474_s25 }
  0x6b   : > { %s7633_s28 = sshra.s32 %s475_s25, 4  ;;  %s7634_s28 = int_to_ptr.hbm [resolvable:$true] %s7633_s28 }
  0x6c   : > { %s7635_s9 = scalar_lea.hbm %s7634_s28, 2  ;;  %p7641_p11 = scmp.lt.s32.totalorder %s7634_s28, %s9099_s6 }
  0x6d   : > { %p7636_p6 = scmp.ne.s32.totalorder %s7634_s28, %s7635_s9  ;;  %p7642_p12 = scmp.lt.s32.totalorder %s7640_s22, %s7635_s9 }
  0x6f   : > { %p7638_p7 = pnand %p7636_p6, %p7917_p1  ;;  %p7643_p0 = por %p7642_p12, %p7641_p11 }
  0x71   : > { %p7639_p10 = pneg %p7638_p7 }
  0x73   : > { %p7644_p2 = pnand %p7643_p0, %p7639_p10 }
  0x75   : > { %7647 = shalt.err (!%p7644_p2)
}
  0x76   : > { %7316 = dma.hbm_to_vmem [thread:$0]  (!%p7902_p13), %s475_s25, 32, %s477_s20, %s7913_s12  }
  0x77   : > { %485 = sbr.rel (%p7872_p9) target bundleno = 1534 (0x5fe), region = 64 }
  0x7c   : > { %7708 = dma.done.wait (%p90_p5), [#allocation5], 2048  }
  0x7d   : > { %7710 = vsyncadd (%p90_p5), [#allocation5], 4294965248 }
  0x7e   : > { %7712 = dma.done.wait (%p90_p5), [#allocation8], 1024  }
  0x7f   : > { %7714 = vsyncadd (%p90_p5), [#allocation8], 4294966272  ;;  %s9135_s27 = sld [smem:[#allocation24_spill]]  ;;  %s497_s1 = sand.u32 1, %s7844_s10  }
  0x80   : > { %s498_s29 = scalar_lea.sflag [#allocation5], %s497_s1 }
  0x85   : > { %s499_s12 = sand.u32 1, %s9135_s27  }
  0x86   : > { %s6301_s15 = sshll.u32 %s499_s12, 11 }
  0x87   : > { %s8030_s30 = scalar_lea.vmem [#allocation9], %s6301_s15 }
  0x88   : > { %7716 = dma.done.wait (%p7868_p8), %s498_s29, 41120  }
  0x89   : > { %7718 = vsyncadd (%p7868_p8), %s498_s29, 4294926176  ;;  %s6302_s17 = sshll.u32 %s499_s12, 2  ;;  %s6304_s14 = sshll.u32 %s499_s12, 9 }
  0x8a   : > { %s6305_s26 = sshll.u32 %s499_s12, 1  ;;  %s8036_s18 = scalar_lea.vmem [#allocation10], %s6302_s17 }
  0x8b   : > { %s8038_s19 = scalar_lea.vmem [#allocation11], %s6302_s17  ;;  %s8040_s20 = scalar_lea.vmem [#allocation12], %s6304_s14 }
  0x8c   : > { %s8042_s2 = scalar_lea.vmem [#allocation13], %s6305_s26 }
  0x8d   : > { %7720 = dma.done.wait (%p90_p5), [#allocation8], 4096  }
  0x8e   : > { %7722 = vsyncadd (%p90_p5), [#allocation8], 4294963200 }
  0x8f   : > { %7724 = dma.done.wait (%p90_p5), [#allocation16], 16  }
  0x90   : > { %7726 = vsyncadd (%p90_p5), [#allocation16], 4294967280  ;;  %v636_v1 = vld [vmem:[%s8030_s30 + $0x60] sm:$0xff]  ;;  %s7149_s0 = sshll.u32 %s7844_s10, 4  ;;  %p6630_p5 = scmp.ne.s32.totalorder %s7844_s10, 1 }
  0x91   : > { %v652_v2 = vld [vmem:[%s8030_s30 + $0xe0] sm:$0xff]  ;;  %v936_v4 = vunpack.c.2.s8 %v636_v1  ;;  %v940_v5 = vunpack.c.3.s8 %v636_v1  ;;  %v928_v23 = vunpack.c.0.s8 %v636_v1  ;;  %v932_v24 = vunpack.c.1.s8 %v636_v1  ;;  %s4974_s23 = scalar_lea.vmem [#allocation2], %s7149_s0  ;;  %s9137_s9 = sld [smem:[#allocation32_spill]] (!%p6630_p5) }
  0x92   : > { %v668_v3 = vld [vmem:[%s8030_s30 + $0x160] sm:$0xff]  ;;  %v1000_v6 = vunpack.c.2.s8 %v652_v2  ;;  %v1004_v7 = vunpack.c.3.s8 %v652_v2  ;;  %v992_v27 = vunpack.c.0.s8 %v652_v2  ;;  %v996_v28 = vunpack.c.1.s8 %v652_v2 }
  0x93   : > { %v684_v8 = vld [vmem:[%s8030_s30 + $0x1e0] sm:$0xff]  ;;  %v1064_v9 = vunpack.c.2.s8 %v668_v3  ;;  %v1068_v10 = vunpack.c.3.s8 %v668_v3  ;;  %v1960_v13 = vcvt.s32.f32 %v936_v4  ;;  %v1964_v14 = vcvt.s32.f32 %v940_v5 }
  0x94   : > { %v1128_v11 = vunpack.c.2.s8 %v684_v8  ;;  %v1132_v12 = vunpack.c.3.s8 %v684_v8  ;;  %v2024_v15 = vcvt.s32.f32 %v1000_v6  ;;  %v2028_v16 = vcvt.s32.f32 %v1004_v7  ;;  %v632_v29 = vld [vmem:[%s8030_s30 + $0x40] sm:$0xff] }
  0x95   : > { %v2088_v17 = vcvt.s32.f32 %v1064_v9  ;;  %v2092_v18 = vcvt.s32.f32 %v1068_v10  ;;  %v2956_v21 = vpack.c.bf16 %v1964_v14, %v1960_v13  ;;  %v1952_v30 = vcvt.s32.f32 %v928_v23  ;;  %v648_v38 = vld [vmem:[%s8030_s30 + $0xc0] sm:$0xff] }
  0x96   : > { %v2152_v19 = vcvt.s32.f32 %v1128_v11  ;;  %v2156_v20 = vcvt.s32.f32 %v1132_v12  ;;  %v2988_v22 = vpack.c.bf16 %v2028_v16, %v2024_v15  ;;  %v1956_v31 = vcvt.s32.f32 %v932_v24  ;;  %v664_v43 = vld [vmem:[%s8030_s30 + $0x140] sm:$0xff] }
  0x97   : > { %v3020_v25 = vpack.c.bf16 %v2092_v18, %v2088_v17  ;;  %3520 = vmatpush.bf16.msra.mxu0 %v2956_v21  ;;  %v1056_v32 = vunpack.c.0.s8 %v668_v3  ;;  %v1060_v33 = vunpack.c.1.s8 %v668_v3  ;;  %v2016_v34 = vcvt.s32.f32 %v992_v27  ;;  %v680_v48 = vld [vmem:[%s8030_s30 + $0x1c0] sm:$0xff] }
  0x98   : > { %v3052_v26 = vpack.c.bf16 %v2156_v20, %v2152_v19  ;;  %3534 = vmatpush.bf16.msra.mxu1 %v2988_v22  ;;  %v2020_v35 = vcvt.s32.f32 %v996_v28  ;;  %v1120_v36 = vunpack.c.0.s8 %v684_v8  ;;  %v1124_v37 = vunpack.c.1.s8 %v684_v8  ;;  %v628_v9 = vld [vmem:[%s8030_s30 + $0x20] sm:$0xff] }
  0x99   : > { %3548 = vmatpush.bf16.msra.mxu2 %v3020_v25  ;;  %v2952_v39 = vpack.c.bf16 %v1956_v31, %v1952_v30  ;;  %v2080_v40 = vcvt.s32.f32 %v1056_v32  ;;  %v2084_v41 = vcvt.s32.f32 %v1060_v33  ;;  %v920_v42 = vunpack.c.2.s8 %v632_v29  ;;  %v644_v18 = vld [vmem:[%s8030_s30 + $0xa0] sm:$0xff] }
  0x9a   : > { %3562 = vmatpush.bf16.msra.mxu3 %v3052_v26  ;;  %v2984_v44 = vpack.c.bf16 %v2020_v35, %v2016_v34  ;;  %v2144_v45 = vcvt.s32.f32 %v1120_v36  ;;  %v2148_v46 = vcvt.s32.f32 %v1124_v37  ;;  %v924_v47 = vunpack.c.3.s8 %v632_v29  ;;  %v660_v23 = vld [vmem:[%s8030_s30 + $0x120] sm:$0xff] }
  0x9b   : > { %3521 = vmatpush.bf16.msra.mxu0 %v2952_v39  ;;  %v3016_v49 = vpack.c.bf16 %v2084_v41, %v2080_v40  ;;  %v1944_v50 = vcvt.s32.f32 %v920_v42  ;;  %v984_v51 = vunpack.c.2.s8 %v648_v38  ;;  %v988_v52 = vunpack.c.3.s8 %v648_v38  ;;  %v676_v28 = vld [vmem:[%s8030_s30 + $0x1a0] sm:$0xff] }
  0x9c   : > { %3535 = vmatpush.bf16.msra.mxu1 %v2984_v44  ;;  %v3048_v53 = vpack.c.bf16 %v2148_v46, %v2144_v45  ;;  %v1948_v54 = vcvt.s32.f32 %v924_v47  ;;  %v1048_v55 = vunpack.c.2.s8 %v664_v43  ;;  %v1052_v56 = vunpack.c.3.s8 %v664_v43 }
  0x9d   : > { %3549 = vmatpush.bf16.msra.mxu2 %v3016_v49  ;;  %v2008_v57 = vcvt.s32.f32 %v984_v51  ;;  %v2012_v58 = vcvt.s32.f32 %v988_v52  ;;  %v1112_v59 = vunpack.c.2.s8 %v680_v48  ;;  %v1116_v60 = vunpack.c.3.s8 %v680_v48 }
  0x9e   : > { %3563 = vmatpush.bf16.msra.mxu3 %v3048_v53  ;;  %v2948_v61 = vpack.c.bf16 %v1948_v54, %v1944_v50  ;;  %v2072_v62 = vcvt.s32.f32 %v1048_v55  ;;  %v2076_v63 = vcvt.s32.f32 %v1052_v56  ;;  %v912_v0 = vunpack.c.0.s8 %v632_v29  ;;  %v624_v53 = vld [vmem:[%s8030_s30] sm:$0xff] }
  0x9f   : > { %v2980_v1 = vpack.c.bf16 %v2012_v58, %v2008_v57  ;;  %v2136_v2 = vcvt.s32.f32 %v1112_v59  ;;  %v2140_v3 = vcvt.s32.f32 %v1116_v60  ;;  %v916_v4 = vunpack.c.1.s8 %v632_v29 }
  0xa0   : > { %3522 = vmatpush.bf16.msra.mxu0 %v2948_v61  ;;  %v3012_v5 = vpack.c.bf16 %v2076_v63, %v2072_v62  ;;  %v1936_v6 = vcvt.s32.f32 %v912_v0  ;;  %v976_v7 = vunpack.c.0.s8 %v648_v38  ;;  %v980_v8 = vunpack.c.1.s8 %v648_v38  ;;  %v640_v62 = vld [vmem:[%s8030_s30 + $0x80] sm:$0xff] }
  0xa1   : > { %3536 = vmatpush.bf16.msra.mxu1 %v2980_v1  ;;  %v3044_v10 = vpack.c.bf16 %v2140_v3, %v2136_v2  ;;  %v1940_v11 = vcvt.s32.f32 %v916_v4  ;;  %v1040_v12 = vunpack.c.0.s8 %v664_v43  ;;  %v1044_v13 = vunpack.c.1.s8 %v664_v43  ;;  %v656_v3 = vld [vmem:[%s8030_s30 + $0x100] sm:$0xff] }
  0xa2   : > { %3550 = vmatpush.bf16.msra.mxu2 %v3012_v5  ;;  %v2000_v14 = vcvt.s32.f32 %v976_v7  ;;  %v2004_v15 = vcvt.s32.f32 %v980_v8  ;;  %v1104_v16 = vunpack.c.0.s8 %v680_v48  ;;  %v1108_v17 = vunpack.c.1.s8 %v680_v48  ;;  %v672_v8 = vld [vmem:[%s8030_s30 + $0x180] sm:$0xff] }
  0xa3   : > { %3564 = vmatpush.bf16.msra.mxu3 %v3044_v10  ;;  %v2944_v19 = vpack.c.bf16 %v1940_v11, %v1936_v6  ;;  %v2064_v20 = vcvt.s32.f32 %v1040_v12  ;;  %v2068_v21 = vcvt.s32.f32 %v1044_v13  ;;  %v904_v22 = vunpack.c.2.s8 %v628_v9 }
  0xa4   : > { %v2976_v24 = vpack.c.bf16 %v2004_v15, %v2000_v14  ;;  %v2128_v25 = vcvt.s32.f32 %v1104_v16  ;;  %v2132_v26 = vcvt.s32.f32 %v1108_v17  ;;  %v908_v27 = vunpack.c.3.s8 %v628_v9 }
  0xa5   : > { %3523 = vmatpush.bf16.msra.mxu0 %v2944_v19  ;;  %v3008_v29 = vpack.c.bf16 %v2068_v21, %v2064_v20  ;;  %v1928_v30 = vcvt.s32.f32 %v904_v22  ;;  %v968_v31 = vunpack.c.2.s8 %v644_v18  ;;  %v972_v32 = vunpack.c.3.s8 %v644_v18 }
  0xa6   : > { %3537 = vmatpush.bf16.msra.mxu1 %v2976_v24  ;;  %v3040_v33 = vpack.c.bf16 %v2132_v26, %v2128_v25  ;;  %v1932_v34 = vcvt.s32.f32 %v908_v27  ;;  %v1032_v35 = vunpack.c.2.s8 %v660_v23  ;;  %v1036_v36 = vunpack.c.3.s8 %v660_v23 }
  0xa7   : > { %3551 = vmatpush.bf16.msra.mxu2 %v3008_v29  ;;  %v1992_v37 = vcvt.s32.f32 %v968_v31  ;;  %v1996_v38 = vcvt.s32.f32 %v972_v32  ;;  %v1096_v39 = vunpack.c.2.s8 %v676_v28  ;;  %v1100_v40 = vunpack.c.3.s8 %v676_v28 }
  0xa8   : > { %3565 = vmatpush.bf16.msra.mxu3 %v3040_v33  ;;  %v2940_v41 = vpack.c.bf16 %v1932_v34, %v1928_v30  ;;  %v2056_v42 = vcvt.s32.f32 %v1032_v35  ;;  %v2060_v43 = vcvt.s32.f32 %v1036_v36  ;;  %v896_v44 = vunpack.c.0.s8 %v628_v9  ;;  %v700_v33 = vld [vmem:[%s8030_s30 + $0x260] sm:$0xff] }
  0xa9   : > { %v2972_v45 = vpack.c.bf16 %v1996_v38, %v1992_v37  ;;  %v2120_v46 = vcvt.s32.f32 %v1096_v39  ;;  %v2124_v47 = vcvt.s32.f32 %v1100_v40  ;;  %v900_v48 = vunpack.c.1.s8 %v628_v9 }
  0xaa   : > { %3524 = vmatpush.bf16.msra.mxu0 %v2940_v41  ;;  %v3004_v49 = vpack.c.bf16 %v2060_v43, %v2056_v42  ;;  %v1920_v50 = vcvt.s32.f32 %v896_v44  ;;  %v960_v51 = vunpack.c.0.s8 %v644_v18  ;;  %v964_v52 = vunpack.c.1.s8 %v644_v18  ;;  %v716_v42 = vld [vmem:[%s8030_s30 + $0x2e0] sm:$0xff] }
  0xab   : > { %3538 = vmatpush.bf16.msra.mxu1 %v2972_v45  ;;  %v3036_v54 = vpack.c.bf16 %v2124_v47, %v2120_v46  ;;  %v1924_v55 = vcvt.s32.f32 %v900_v48  ;;  %v1024_v56 = vunpack.c.0.s8 %v660_v23  ;;  %v1028_v57 = vunpack.c.1.s8 %v660_v23  ;;  %v732_v47 = vld [vmem:[%s8030_s30 + $0x360] sm:$0xff] }
  0xac   : > { %3552 = vmatpush.bf16.msra.mxu2 %v3004_v49  ;;  %v1984_v58 = vcvt.s32.f32 %v960_v51  ;;  %v1988_v59 = vcvt.s32.f32 %v964_v52  ;;  %v1088_v60 = vunpack.c.0.s8 %v676_v28  ;;  %v1092_v61 = vunpack.c.1.s8 %v676_v28  ;;  %v748_v52 = vld [vmem:[%s8030_s30 + $0x3e0] sm:$0xff] }
  0xad   : > { %3566 = vmatpush.bf16.msra.mxu3 %v3036_v54  ;;  %v2936_v63 = vpack.c.bf16 %v1924_v55, %v1920_v50  ;;  %v2048_v0 = vcvt.s32.f32 %v1024_v56  ;;  %v2052_v1 = vcvt.s32.f32 %v1028_v57  ;;  %v888_v2 = vunpack.c.2.s8 %v624_v53 }
  0xae   : > { %v2968_v4 = vpack.c.bf16 %v1988_v59, %v1984_v58  ;;  %v2112_v5 = vcvt.s32.f32 %v1088_v60  ;;  %v2116_v6 = vcvt.s32.f32 %v1092_v61  ;;  %v892_v7 = vunpack.c.3.s8 %v624_v53 }
  0xaf   : > { %3525 = vmatpush.bf16.msra.mxu0 %v2936_v63  ;;  %v3000_v9 = vpack.c.bf16 %v2052_v1, %v2048_v0  ;;  %v1912_v10 = vcvt.s32.f32 %v888_v2  ;;  %v952_v11 = vunpack.c.2.s8 %v640_v62  ;;  %v956_v12 = vunpack.c.3.s8 %v640_v62 }
  0xb0   : > { %3539 = vmatpush.bf16.msra.mxu1 %v2968_v4  ;;  %v3032_v13 = vpack.c.bf16 %v2116_v6, %v2112_v5  ;;  %v1916_v14 = vcvt.s32.f32 %v892_v7  ;;  %v1016_v15 = vunpack.c.2.s8 %v656_v3  ;;  %v1020_v16 = vunpack.c.3.s8 %v656_v3 }
  0xb1   : > { %3553 = vmatpush.bf16.msra.mxu2 %v3000_v9  ;;  %v1976_v17 = vcvt.s32.f32 %v952_v11  ;;  %v1980_v18 = vcvt.s32.f32 %v956_v12  ;;  %v1080_v19 = vunpack.c.2.s8 %v672_v8  ;;  %v1084_v20 = vunpack.c.3.s8 %v672_v8 }
  0xb2   : > { %3567 = vmatpush.bf16.msra.mxu3 %v3032_v13  ;;  %v2932_v21 = vpack.c.bf16 %v1916_v14, %v1912_v10  ;;  %v2040_v22 = vcvt.s32.f32 %v1016_v15  ;;  %v2044_v23 = vcvt.s32.f32 %v1020_v16  ;;  %v880_v24 = vunpack.c.0.s8 %v624_v53  ;;  %v696_v13 = vld [vmem:[%s8030_s30 + $0x240] sm:$0xff] }
  0xb3   : > { %v2964_v25 = vpack.c.bf16 %v1980_v18, %v1976_v17  ;;  %v2104_v26 = vcvt.s32.f32 %v1080_v19  ;;  %v2108_v27 = vcvt.s32.f32 %v1084_v20  ;;  %v884_v28 = vunpack.c.1.s8 %v624_v53 }
  0xb4   : > { %3526 = vmatpush.bf16.msra.mxu0 %v2932_v21  ;;  %v2996_v29 = vpack.c.bf16 %v2044_v23, %v2040_v22  ;;  %v1904_v30 = vcvt.s32.f32 %v880_v24  ;;  %v944_v31 = vunpack.c.0.s8 %v640_v62  ;;  %v948_v32 = vunpack.c.1.s8 %v640_v62  ;;  %v712_v22 = vld [vmem:[%s8030_s30 + $0x2c0] sm:$0xff] }
  0xb5   : > { %3540 = vmatpush.bf16.msra.mxu1 %v2964_v25  ;;  %v3028_v34 = vpack.c.bf16 %v2108_v27, %v2104_v26  ;;  %v1908_v35 = vcvt.s32.f32 %v884_v28  ;;  %v1008_v36 = vunpack.c.0.s8 %v656_v3  ;;  %v1012_v37 = vunpack.c.1.s8 %v656_v3  ;;  %v728_v27 = vld [vmem:[%s8030_s30 + $0x340] sm:$0xff] }
  0xb6   : > { %3554 = vmatpush.bf16.msra.mxu2 %v2996_v29  ;;  %v1968_v38 = vcvt.s32.f32 %v944_v31  ;;  %v1972_v39 = vcvt.s32.f32 %v948_v32  ;;  %v1072_v40 = vunpack.c.0.s8 %v672_v8  ;;  %v1076_v41 = vunpack.c.1.s8 %v672_v8  ;;  %v744_v32 = vld [vmem:[%s8030_s30 + $0x3c0] sm:$0xff] }
  0xb7   : > { %3568 = vmatpush.bf16.msra.mxu3 %v3028_v34  ;;  %v2928_v43 = vpack.c.bf16 %v1908_v35, %v1904_v30  ;;  %v2032_v44 = vcvt.s32.f32 %v1008_v36  ;;  %v2036_v45 = vcvt.s32.f32 %v1012_v37  ;;  %v1192_v46 = vunpack.c.2.s8 %v700_v33 }
  0xb8   : > { %v2960_v48 = vpack.c.bf16 %v1972_v39, %v1968_v38  ;;  %v2096_v49 = vcvt.s32.f32 %v1072_v40  ;;  %v2100_v50 = vcvt.s32.f32 %v1076_v41  ;;  %v1196_v51 = vunpack.c.3.s8 %v700_v33 }
  0xb9   : > { %3527 = vmatpush.bf16.msra.mxu0 %v2928_v43  ;;  %v2992_v53 = vpack.c.bf16 %v2036_v45, %v2032_v44  ;;  %v2216_v54 = vcvt.s32.f32 %v1192_v46  ;;  %v1256_v55 = vunpack.c.2.s8 %v716_v42  ;;  %v1260_v56 = vunpack.c.3.s8 %v716_v42 }
  0xba   : > { %3541 = vmatpush.bf16.msra.mxu1 %v2960_v48  ;;  %v3024_v57 = vpack.c.bf16 %v2100_v50, %v2096_v49  ;;  %v2220_v58 = vcvt.s32.f32 %v1196_v51  ;;  %v1320_v59 = vunpack.c.2.s8 %v732_v47  ;;  %v1324_v60 = vunpack.c.3.s8 %v732_v47 }
  0xbb   : > { %3555 = vmatpush.bf16.msra.mxu2 %v2992_v53  ;;  %v2280_v61 = vcvt.s32.f32 %v1256_v55  ;;  %v2284_v62 = vcvt.s32.f32 %v1260_v56  ;;  %v1384_v63 = vunpack.c.2.s8 %v748_v52  ;;  %v1388_v0 = vunpack.c.3.s8 %v748_v52 }
  0xbc   : > { %3569 = vmatpush.bf16.msra.mxu3 %v3024_v57  ;;  %v3084_v1 = vpack.c.bf16 %v2220_v58, %v2216_v54  ;;  %v2344_v2 = vcvt.s32.f32 %v1320_v59  ;;  %v2348_v3 = vcvt.s32.f32 %v1324_v60  ;;  %v1184_v4 = vunpack.c.0.s8 %v700_v33  ;;  %v6310_v57 = vld [vmem:[#allocation4] sm:$0xf] }
  0xbd   : > { %v3116_v5 = vpack.c.bf16 %v2284_v62, %v2280_v61  ;;  %v2408_v6 = vcvt.s32.f32 %v1384_v63  ;;  %v2412_v7 = vcvt.s32.f32 %v1388_v0  ;;  %v1188_v8 = vunpack.c.1.s8 %v700_v33  ;;  %v7077_v58 = vld [vmem:[#allocation4 + $0x3c] sm:$0xf0]  ;;  %v6318_v63 = vld [vmem:[#allocation4 + $0x8] sm:$0xf] }
  0xbe   : > { %3576 = vmatpush.bf16.msrb.mxu0 %v3084_v1  ;;  %v3148_v9 = vpack.c.bf16 %v2348_v3, %v2344_v2  ;;  %v2208_v10 = vcvt.s32.f32 %v1184_v4  ;;  %v1248_v11 = vunpack.c.0.s8 %v716_v42  ;;  %v1252_v12 = vunpack.c.1.s8 %v716_v42  ;;  %v7078_v0 = vld [vmem:[#allocation4 + $0x44] sm:$0xf0] }
  0xbf   : > { %3590 = vmatpush.bf16.msrb.mxu1 %v3116_v5  ;;  %v3180_v14 = vpack.c.bf16 %v2412_v7, %v2408_v6  ;;  %v2212_v15 = vcvt.s32.f32 %v1188_v8  ;;  %v1312_v16 = vunpack.c.0.s8 %v732_v47  ;;  %v1316_v17 = vunpack.c.1.s8 %v732_v47  ;;  %v692_v5 = vld [vmem:[%s8030_s30 + $0x220] sm:$0xff] }
  0xc0   : > { %3604 = vmatpush.bf16.msrb.mxu2 %v3148_v9  ;;  %v2272_v18 = vcvt.s32.f32 %v1248_v11  ;;  %v2276_v19 = vcvt.s32.f32 %v1252_v12  ;;  %v1376_v20 = vunpack.c.0.s8 %v748_v52  ;;  %v1380_v21 = vunpack.c.1.s8 %v748_v52  ;;  %v8078_v6 = vld [vmem:[%s8030_s30 + $0x2a0] sm:$0xff] }
  0xc1   : > { %3618 = vmatpush.bf16.msrb.mxu3 %v3180_v14  ;;  %v3080_v23 = vpack.c.bf16 %v2212_v15, %v2208_v10  ;;  %v2336_v24 = vcvt.s32.f32 %v1312_v16  ;;  %v2340_v25 = vcvt.s32.f32 %v1316_v17  ;;  %v1176_v26 = vunpack.c.2.s8 %v696_v13  ;;  %v724_v11 = vld [vmem:[%s8030_s30 + $0x320] sm:$0xff] }
  0xc2   : > { %v3112_v28 = vpack.c.bf16 %v2276_v19, %v2272_v18  ;;  %v2400_v29 = vcvt.s32.f32 %v1376_v20  ;;  %v2404_v30 = vcvt.s32.f32 %v1380_v21  ;;  %v1180_v31 = vunpack.c.3.s8 %v696_v13  ;;  %v8086_v16 = vld [vmem:[%s8030_s30 + $0x3a0] sm:$0xff] }
  0xc3   : > { %3577 = vmatpush.bf16.msrb.mxu0 %v3080_v23  ;;  %v3144_v33 = vpack.c.bf16 %v2340_v25, %v2336_v24  ;;  %v2200_v34 = vcvt.s32.f32 %v1176_v26  ;;  %v1240_v35 = vunpack.c.2.s8 %v712_v22  ;;  %v1244_v36 = vunpack.c.3.s8 %v712_v22  ;;  %v7069_v21 = vld [vmem:[#allocation4 + $0x4] sm:$0xf] }
  0xc4   : > { %3591 = vmatpush.bf16.msrb.mxu1 %v3112_v28  ;;  %v3176_v37 = vpack.c.bf16 %v2404_v30, %v2400_v29  ;;  %v2204_v38 = vcvt.s32.f32 %v1180_v31  ;;  %v1304_v39 = vunpack.c.2.s8 %v728_v27  ;;  %v1308_v40 = vunpack.c.3.s8 %v728_v27  ;;  %v6312_v26 = vld [vmem:[#allocation4 + $0x40] sm:$0xf0]  ;;  %v6320_v28 = vld [vmem:[#allocation4 + $0x48] sm:$0xf0] }
  0xc5   : > { %3605 = vmatpush.bf16.msrb.mxu2 %v3144_v33  ;;  %v2264_v41 = vcvt.s32.f32 %v1240_v35  ;;  %v2268_v42 = vcvt.s32.f32 %v1244_v36  ;;  %v1368_v43 = vunpack.c.2.s8 %v744_v32  ;;  %v1372_v44 = vunpack.c.3.s8 %v744_v32 }
  0xc6   : > { %3619 = vmatpush.bf16.msrb.mxu3 %v3176_v37  ;;  %v3076_v45 = vpack.c.bf16 %v2204_v38, %v2200_v34  ;;  %v2328_v46 = vcvt.s32.f32 %v1304_v39  ;;  %v2332_v47 = vcvt.s32.f32 %v1308_v40  ;;  %v1168_v48 = vunpack.c.0.s8 %v696_v13 }
  0xc7   : > { %v3108_v49 = vpack.c.bf16 %v2268_v42, %v2264_v41  ;;  %v2392_v50 = vcvt.s32.f32 %v1368_v43  ;;  %v2396_v51 = vcvt.s32.f32 %v1372_v44  ;;  %v1172_v52 = vunpack.c.1.s8 %v696_v13 }
  0xc8   : > { %3578 = vmatpush.bf16.msrb.mxu0 %v3076_v45  ;;  %v3140_v53 = vpack.c.bf16 %v2332_v47, %v2328_v46  ;;  %v2192_v54 = vcvt.s32.f32 %v1168_v48  ;;  %v1232_v55 = vunpack.c.0.s8 %v712_v22  ;;  %v1236_v56 = vunpack.c.1.s8 %v712_v22 }
  0xc9   : > { %3592 = vmatpush.bf16.msrb.mxu1 %v3108_v49  ;;  %v3172_v59 = vpack.c.bf16 %v2396_v51, %v2392_v50  ;;  %v2196_v60 = vcvt.s32.f32 %v1172_v52  ;;  %v1296_v61 = vunpack.c.0.s8 %v728_v27  ;;  %v1300_v62 = vunpack.c.1.s8 %v728_v27  ;;  %v7070_v27 = vld [vmem:[#allocation4 + $0xc] sm:$0xf]  ;;  %v688_v49 = vld [vmem:[%s8030_s30 + $0x200] sm:$0xff] }
  0xca   : > { %3606 = vmatpush.bf16.msrb.mxu2 %v3140_v53  ;;  %v2256_v1 = vcvt.s32.f32 %v1232_v55  ;;  %v2260_v2 = vcvt.s32.f32 %v1236_v56  ;;  %v1360_v3 = vunpack.c.0.s8 %v744_v32  ;;  %v1364_v4 = vunpack.c.1.s8 %v744_v32 }
  0xcb   : > { %3620 = vmatpush.bf16.msrb.mxu3 %v3172_v59  ;;  %v3072_v7 = vpack.c.bf16 %v2196_v60, %v2192_v54  ;;  %v2320_v8 = vcvt.s32.f32 %v1296_v61  ;;  %v2324_v9 = vcvt.s32.f32 %v1300_v62  ;;  %v8080_v10 = vor.u32 %v7077_v58, %v6310_v57  ;;  %v704_v54 = vld [vmem:[%s8030_s30 + $0x280] sm:$0xff] }
  0xcc   : > { %v3104_v12 = vpack.c.bf16 %v2260_v2, %v2256_v1  ;;  %v2384_v13 = vcvt.s32.f32 %v1360_v3  ;;  %v2388_v14 = vcvt.s32.f32 %v1364_v4  ;;  %v8083_v15 = vor.u32 %v7078_v0, %v6318_v63  ;;  %v720_v63 = vld [vmem:[%s8030_s30 + $0x300] sm:$0xff] }
  0xcd   : > { %3579 = vmatpush.bf16.msrb.mxu0 %v3072_v7  ;;  %v3136_v17 = vpack.c.bf16 %v2324_v9, %v2320_v8  ;;  %v1160_v18 = vunpack.c.2.s8 %v692_v5  ;;  %v1164_v19 = vunpack.c.3.s8 %v692_v5  ;;  %v1224_v20 = vunpack.c.2.s8 %v8078_v6  ;;  %v736_v4 = vld [vmem:[%s8030_s30 + $0x380] sm:$0xff] }
  0xce   : > { %3593 = vmatpush.bf16.msrb.mxu1 %v3104_v12  ;;  %v3168_v22 = vpack.c.bf16 %v2388_v14, %v2384_v13  ;;  %3528 = vmatmul.bf16.vlgmr.msra.gmra.mxu0 %v8080_v10  ;;  %v1228_v23 = vunpack.c.3.s8 %v8078_v6  ;;  %v1288_v24 = vunpack.c.2.s8 %v724_v11  ;;  %v1292_v25 = vunpack.c.3.s8 %v724_v11 }
  0xcf   : > { %3607 = vmatpush.bf16.msrb.mxu2 %v3136_v17  ;;  %v2184_v29 = vcvt.s32.f32 %v1160_v18  ;;  %v2188_v30 = vcvt.s32.f32 %v1164_v19  ;;  %v2248_v31 = vcvt.s32.f32 %v1224_v20  ;;  %v1352_v32 = vunpack.c.2.s8 %v8086_v16 }
  0xd0   : > { %3621 = vmatpush.bf16.msrb.mxu3 %v3168_v22  ;;  %3556 = vmatmul.bf16.vlgmr.msra.gmra.mxu2 %v8083_v15  ;;  %v2252_v33 = vcvt.s32.f32 %v1228_v23  ;;  %v2312_v34 = vcvt.s32.f32 %v1288_v24  ;;  %v2316_v35 = vcvt.s32.f32 %v1292_v25  ;;  %v1356_v36 = vunpack.c.3.s8 %v8086_v16 }
  0xd1   : > { %v3068_v37 = vpack.c.bf16 %v2188_v30, %v2184_v29  ;;  %v2376_v38 = vcvt.s32.f32 %v1352_v32  ;;  %v8094_v39 = vor.u32 %v7069_v21, %v6312_v26  ;;  %v8096_v40 = vor.u32 %v7070_v27, %v6320_v28 }
  0xd2   : > { %v3100_v41 = vpack.c.bf16 %v2252_v33, %v2248_v31  ;;  %v3132_v42 = vpack.c.bf16 %v2316_v35, %v2312_v34  ;;  %v2380_v43 = vcvt.s32.f32 %v1356_v36  ;;  %v1152_v44 = vunpack.c.0.s8 %v692_v5  ;;  %v8109_v31 = vld [vmem:[%s8030_s30 + $0x460] sm:$0xff] }
  0xd3   : > { %3580 = vmatpush.bf16.msrb.mxu0 %v3068_v37  ;;  %3542 = vmatmul.bf16.vlgmr.msra.gmra.mxu1 %v8094_v39  ;;  %v1156_v45 = vunpack.c.1.s8 %v692_v5  ;;  %v1216_v46 = vunpack.c.0.s8 %v8078_v6  ;;  %v1220_v47 = vunpack.c.1.s8 %v8078_v6  ;;  %v1280_v48 = vunpack.c.0.s8 %v724_v11 }
  0xd4   : > { %3594 = vmatpush.bf16.msrb.mxu1 %v3100_v41  ;;  %3608 = vmatpush.bf16.msrb.mxu2 %v3132_v42  ;;  %v3164_v50 = vpack.c.bf16 %v2380_v43, %v2376_v38  ;;  %v2176_v51 = vcvt.s32.f32 %v1152_v44  ;;  %v1284_v52 = vunpack.c.1.s8 %v724_v11  ;;  %v1344_v53 = vunpack.c.0.s8 %v8086_v16  ;;  %v8112_v42 = vld [vmem:[%s8030_s30 + $0x4e0] sm:$0xff] }
  0xd5   : > { %3570 = vmatmul.bf16.vlgmr.msra.gmra.mxu3 %v8096_v40  ;;  %v2180_v55 = vcvt.s32.f32 %v1156_v45  ;;  %v2240_v56 = vcvt.s32.f32 %v1216_v46  ;;  %v2244_v57 = vcvt.s32.f32 %v1220_v47  ;;  %v2304_v58 = vcvt.s32.f32 %v1280_v48  ;;  %v8116_v47 = vld [vmem:[%s8030_s30 + $0x560] sm:$0xff] }
  0xd6   : > { %3622 = vmatpush.bf16.msrb.mxu3 %v3164_v50  ;;  %v2308_v59 = vcvt.s32.f32 %v1284_v52  ;;  %v1348_v60 = vunpack.c.1.s8 %v8086_v16  ;;  %v2368_v61 = vcvt.s32.f32 %v1344_v53  ;;  %v1144_v62 = vunpack.c.2.s8 %v688_v49  ;;  %v8120_v52 = vld [vmem:[%s8030_s30 + $0x5e0] sm:$0xff] }
  0xd7   : > { %v3064_v0 = vpack.c.bf16 %v2180_v55, %v2176_v51  ;;  %v3096_v1 = vpack.c.bf16 %v2244_v57, %v2240_v56  ;;  %v1148_v2 = vunpack.c.3.s8 %v688_v49  ;;  %v1208_v3 = vunpack.c.2.s8 %v704_v54  ;;  %v6326_v57 = vld [vmem:[#allocation4 + $0x10] sm:$0xf] }
  0xd8   : > { %v3128_v5 = vpack.c.bf16 %v2308_v59, %v2304_v58  ;;  %v2372_v6 = vcvt.s32.f32 %v1348_v60  ;;  %v2168_v7 = vcvt.s32.f32 %v1144_v62  ;;  %v1212_v8 = vunpack.c.3.s8 %v704_v54  ;;  %v7079_v58 = vld [vmem:[#allocation4 + $0x4c] sm:$0xf0] }
  0xd9   : > { %3581 = vmatpush.bf16.msrb.mxu0 %v3064_v0  ;;  %3595 = vmatpush.bf16.msrb.mxu1 %v3096_v1  ;;  %v2172_v9 = vcvt.s32.f32 %v1148_v2  ;;  %v2232_v11 = vcvt.s32.f32 %v1208_v3  ;;  %v1272_v12 = vunpack.c.2.s8 %v720_v63  ;;  %v1276_v13 = vunpack.c.3.s8 %v720_v63  ;;  %v7080_v0 = vld [vmem:[#allocation4 + $0x54] sm:$0xf0]  ;;  %v7071_v1 = vld [vmem:[#allocation4 + $0x14] sm:$0xf] }
  0xda   : > { %3609 = vmatpush.bf16.msrb.mxu2 %v3128_v5  ;;  %v3160_v14 = vpack.c.bf16 %v2372_v6, %v2368_v61  ;;  %v2236_v16 = vcvt.s32.f32 %v1212_v8  ;;  %v1336_v17 = vunpack.c.2.s8 %v736_v4  ;;  %v1340_v18 = vunpack.c.3.s8 %v736_v4  ;;  %v6328_v6 = vld [vmem:[#allocation4 + $0x50] sm:$0xf0]  ;;  %v6336_v8 = vld [vmem:[#allocation4 + $0x58] sm:$0xf0] }
  0xdb   : > { %v3060_v19 = vpack.c.bf16 %v2172_v9, %v2168_v7  ;;  %v2296_v20 = vcvt.s32.f32 %v1272_v12  ;;  %v2300_v21 = vcvt.s32.f32 %v1276_v13  ;;  %v1136_v22 = vunpack.c.0.s8 %v688_v49  ;;  %v7072_v7 = vld [vmem:[#allocation4 + $0x1c] sm:$0xf] }
  0xdc   : > { %3623 = vmatpush.bf16.msrb.mxu3 %v3160_v14  ;;  %v3092_v23 = vpack.c.bf16 %v2236_v16, %v2232_v11  ;;  %v2360_v24 = vcvt.s32.f32 %v1336_v17  ;;  %v2364_v25 = vcvt.s32.f32 %v1340_v18  ;;  %v1140_v26 = vunpack.c.1.s8 %v688_v49 }
  0xdd   : > { %3582 = vmatpush.bf16.msrb.mxu0 %v3060_v19  ;;  %v3124_v27 = vpack.c.bf16 %v2300_v21, %v2296_v20  ;;  %v2160_v28 = vcvt.s32.f32 %v1136_v22  ;;  %v1200_v29 = vunpack.c.0.s8 %v704_v54  ;;  %v1204_v30 = vunpack.c.1.s8 %v704_v54 }
  0xde   : > { %3596 = vmatpush.bf16.msrb.mxu1 %v3092_v23  ;;  %v3156_v32 = vpack.c.bf16 %v2364_v25, %v2360_v24  ;;  %v2164_v33 = vcvt.s32.f32 %v1140_v26  ;;  %v1264_v34 = vunpack.c.0.s8 %v720_v63  ;;  %v1268_v35 = vunpack.c.1.s8 %v720_v63  ;;  %v6334_v63 = vld [vmem:[#allocation4 + $0x18] sm:$0xf] }
  0xdf   : > { %3610 = vmatpush.bf16.msrb.mxu2 %v3124_v27  ;;  %v2224_v36 = vcvt.s32.f32 %v1200_v29  ;;  %v2228_v37 = vcvt.s32.f32 %v1204_v30  ;;  %v1328_v38 = vunpack.c.0.s8 %v736_v4  ;;  %v1332_v41 = vunpack.c.1.s8 %v736_v4  ;;  %v760_v27 = vld [vmem:[%s8030_s30 + $0x440] sm:$0xff] }
  0xe0   : > { %3624 = vmatpush.bf16.msrb.mxu3 %v3156_v32  ;;  %v3056_v43 = vpack.c.bf16 %v2164_v33, %v2160_v28  ;;  %v2288_v44 = vcvt.s32.f32 %v1264_v34  ;;  %v2292_v45 = vcvt.s32.f32 %v1268_v35  ;;  %v1448_v46 = vunpack.c.2.s8 %v8109_v31 }
  0xe1   : > { %v3088_v48 = vpack.c.bf16 %v2228_v37, %v2224_v36  ;;  %v2352_v49 = vcvt.s32.f32 %v1328_v38  ;;  %v2356_v50 = vcvt.s32.f32 %v1332_v41  ;;  %v1452_v51 = vunpack.c.3.s8 %v8109_v31  ;;  %v776_v36 = vld [vmem:[%s8030_s30 + $0x4c0] sm:$0xff] }
  0xe2   : > { %3583 = vmatpush.bf16.msrb.mxu0 %v3056_v43  ;;  %v3120_v53 = vpack.c.bf16 %v2292_v45, %v2288_v44  ;;  %v2472_v54 = vcvt.s32.f32 %v1448_v46  ;;  %v1512_v55 = vunpack.c.2.s8 %v8112_v42  ;;  %v1516_v56 = vunpack.c.3.s8 %v8112_v42  ;;  %v792_v43 = vld [vmem:[%s8030_s30 + $0x540] sm:$0xff] }
  0xe3   : > { %3597 = vmatpush.bf16.msrb.mxu1 %v3088_v48  ;;  %v3152_v59 = vpack.c.bf16 %v2356_v50, %v2352_v49  ;;  %v2476_v60 = vcvt.s32.f32 %v1452_v51  ;;  %v1576_v61 = vunpack.c.2.s8 %v8116_v47  ;;  %v1580_v62 = vunpack.c.3.s8 %v8116_v47  ;;  %v808_v48 = vld [vmem:[%s8030_s30 + $0x5c0] sm:$0xff] }
  0xe4   : > { %3611 = vmatpush.bf16.msrb.mxu2 %v3120_v53  ;;  %v2536_v2 = vcvt.s32.f32 %v1512_v55  ;;  %v2540_v3 = vcvt.s32.f32 %v1516_v56  ;;  %v1640_v4 = vunpack.c.2.s8 %v8120_v52  ;;  %v1644_v5 = vunpack.c.3.s8 %v8120_v52 }
  0xe5   : > { %3625 = vmatpush.bf16.msrb.mxu3 %v3152_v59  ;;  %v3212_v9 = vpack.c.bf16 %v2476_v60, %v2472_v54  ;;  %v2600_v11 = vcvt.s32.f32 %v1576_v61  ;;  %v2604_v12 = vcvt.s32.f32 %v1580_v62  ;;  %v8128_v13 = vor.u32 %v7079_v58, %v6326_v57 }
  0xe6   : > { %v3244_v14 = vpack.c.bf16 %v2540_v3, %v2536_v2  ;;  %v2664_v16 = vcvt.s32.f32 %v1640_v4  ;;  %v2668_v17 = vcvt.s32.f32 %v1644_v5  ;;  %v8130_v18 = vor.u32 %v7080_v0, %v6334_v63 }
  0xe7   : > { %3632 = vmatpush.bf16.msra.mxu0 %v3212_v9  ;;  %v3276_v19 = vpack.c.bf16 %v2604_v12, %v2600_v11  ;;  %v8132_v20 = vor.u32 %v7071_v1, %v6328_v6  ;;  %v8134_v21 = vor.u32 %v7072_v7, %v6336_v8  ;;  %v1440_v22 = vunpack.c.0.s8 %v8109_v31  ;;  %v756_v9 = vld [vmem:[%s8030_s30 + $0x420] sm:$0xff] }
  0xe8   : > { %3646 = vmatpush.bf16.msra.mxu1 %v3244_v14  ;;  %v3308_v23 = vpack.c.bf16 %v2668_v17, %v2664_v16  ;;  %3584 = vmatmul.bf16.vlgmr.msrb.gmra.mxu0 %v8128_v13  ;;  %v1444_v24 = vunpack.c.1.s8 %v8109_v31  ;;  %v1504_v25 = vunpack.c.0.s8 %v8112_v42  ;;  %v1508_v26 = vunpack.c.1.s8 %v8112_v42 }
  0xe9   : > { %3660 = vmatpush.bf16.msra.mxu2 %v3276_v19  ;;  %3598 = vmatmul.bf16.vlgmr.msrb.gmra.mxu1 %v8132_v20  ;;  %v2464_v28 = vcvt.s32.f32 %v1440_v22  ;;  %v1568_v29 = vunpack.c.0.s8 %v8116_v47  ;;  %v1572_v30 = vunpack.c.1.s8 %v8116_v47  ;;  %v1632_v32 = vunpack.c.0.s8 %v8120_v52 }
  0xea   : > { %3674 = vmatpush.bf16.msra.mxu3 %v3308_v23  ;;  %3612 = vmatmul.bf16.vlgmr.msrb.gmra.mxu2 %v8130_v18  ;;  %v2468_v31 = vcvt.s32.f32 %v1444_v24  ;;  %v2528_v33 = vcvt.s32.f32 %v1504_v25  ;;  %v2532_v34 = vcvt.s32.f32 %v1508_v26  ;;  %v1636_v35 = vunpack.c.1.s8 %v8120_v52  ;;  %v772_v24 = vld [vmem:[%s8030_s30 + $0x4a0] sm:$0xff] }
  0xeb   : > { %3626 = vmatmul.bf16.vlgmr.msrb.gmra.mxu3 %v8134_v21  ;;  %v2592_v37 = vcvt.s32.f32 %v1568_v29  ;;  %v2596_v38 = vcvt.s32.f32 %v1572_v30  ;;  %v2656_v41 = vcvt.s32.f32 %v1632_v32  ;;  %v1432_v42 = vunpack.c.2.s8 %v760_v27  ;;  %v788_v29 = vld [vmem:[%s8030_s30 + $0x520] sm:$0xff] }
  0xec   : > { %v3208_v44 = vpack.c.bf16 %v2468_v31, %v2464_v28  ;;  %v3240_v45 = vpack.c.bf16 %v2532_v34, %v2528_v33  ;;  %v2660_v46 = vcvt.s32.f32 %v1636_v35  ;;  %v1436_v47 = vunpack.c.3.s8 %v760_v27  ;;  %v804_v34 = vld [vmem:[%s8030_s30 + $0x5a0] sm:$0xff] }
  0xed   : > { %v3272_v49 = vpack.c.bf16 %v2596_v38, %v2592_v37  ;;  %v2456_v50 = vcvt.s32.f32 %v1432_v42  ;;  %v1496_v51 = vunpack.c.2.s8 %v776_v36  ;;  %v1500_v53 = vunpack.c.3.s8 %v776_v36 }
  0xee   : > { %3633 = vmatpush.bf16.msra.mxu0 %v3208_v44  ;;  %3647 = vmatpush.bf16.msra.mxu1 %v3240_v45  ;;  %v3304_v52 = vpack.c.bf16 %v2660_v46, %v2656_v41  ;;  %v2460_v54 = vcvt.s32.f32 %v1436_v47  ;;  %v1560_v55 = vunpack.c.2.s8 %v792_v43  ;;  %v1564_v56 = vunpack.c.3.s8 %v792_v43 }
  0xef   : > { %3661 = vmatpush.bf16.msra.mxu2 %v3272_v49  ;;  %v2520_v57 = vcvt.s32.f32 %v1496_v51  ;;  %v2524_v58 = vcvt.s32.f32 %v1500_v53  ;;  %v1624_v59 = vunpack.c.2.s8 %v808_v48  ;;  %v1628_v60 = vunpack.c.3.s8 %v808_v48 }
  0xf0   : > { %3675 = vmatpush.bf16.msra.mxu3 %v3304_v52  ;;  %v3204_v61 = vpack.c.bf16 %v2460_v54, %v2456_v50  ;;  %v2584_v62 = vcvt.s32.f32 %v1560_v55  ;;  %v2588_v63 = vcvt.s32.f32 %v1564_v56  ;;  %v1424_v0 = vunpack.c.0.s8 %v760_v27 }
  0xf1   : > { %v3236_v1 = vpack.c.bf16 %v2524_v58, %v2520_v57  ;;  %v2648_v2 = vcvt.s32.f32 %v1624_v59  ;;  %v2652_v3 = vcvt.s32.f32 %v1628_v60  ;;  %v1428_v4 = vunpack.c.1.s8 %v760_v27 }
  0xf2   : > { %3634 = vmatpush.bf16.msra.mxu0 %v3204_v61  ;;  %v3268_v5 = vpack.c.bf16 %v2588_v63, %v2584_v62  ;;  %v2448_v6 = vcvt.s32.f32 %v1424_v0  ;;  %v1488_v7 = vunpack.c.0.s8 %v776_v36  ;;  %v1492_v8 = vunpack.c.1.s8 %v776_v36  ;;  %v752_v61 = vld [vmem:[%s8030_s30 + $0x400] sm:$0xff] }
  0xf3   : > { %3648 = vmatpush.bf16.msra.mxu1 %v3236_v1  ;;  %v3300_v11 = vpack.c.bf16 %v2652_v3, %v2648_v2  ;;  %v2452_v12 = vcvt.s32.f32 %v1428_v4  ;;  %v1552_v14 = vunpack.c.0.s8 %v792_v43  ;;  %v1556_v16 = vunpack.c.1.s8 %v792_v43 }
  0xf4   : > { %3662 = vmatpush.bf16.msra.mxu2 %v3268_v5  ;;  %v2512_v17 = vcvt.s32.f32 %v1488_v7  ;;  %v2516_v19 = vcvt.s32.f32 %v1492_v8  ;;  %v1616_v22 = vunpack.c.0.s8 %v808_v48  ;;  %v1620_v23 = vunpack.c.1.s8 %v808_v48 }
  0xf5   : > { %3676 = vmatpush.bf16.msra.mxu3 %v3300_v11  ;;  %v3200_v25 = vpack.c.bf16 %v2452_v12, %v2448_v6  ;;  %v2576_v26 = vcvt.s32.f32 %v1552_v14  ;;  %v2580_v27 = vcvt.s32.f32 %v1556_v16  ;;  %v1416_v28 = vunpack.c.2.s8 %v756_v9  ;;  %v768_v6 = vld [vmem:[%s8030_s30 + $0x480] sm:$0xff] }
  0xf6   : > { %v3232_v30 = vpack.c.bf16 %v2516_v19, %v2512_v17  ;;  %v2640_v32 = vcvt.s32.f32 %v1616_v22  ;;  %v2644_v31 = vcvt.s32.f32 %v1620_v23  ;;  %v1420_v33 = vunpack.c.3.s8 %v756_v9  ;;  %v784_v12 = vld [vmem:[%s8030_s30 + $0x500] sm:$0xff] }
  0xf7   : > { %3635 = vmatpush.bf16.msra.mxu0 %v3200_v25  ;;  %v3264_v35 = vpack.c.bf16 %v2580_v27, %v2576_v26  ;;  %v2440_v36 = vcvt.s32.f32 %v1416_v28  ;;  %v1480_v37 = vunpack.c.2.s8 %v772_v24  ;;  %v1484_v38 = vunpack.c.3.s8 %v772_v24  ;;  %v800_v22 = vld [vmem:[%s8030_s30 + $0x580] sm:$0xff] }
  0xf8   : > { %3649 = vmatpush.bf16.msra.mxu1 %v3232_v30  ;;  %v3296_v41 = vpack.c.bf16 %v2644_v31, %v2640_v32  ;;  %v2444_v42 = vcvt.s32.f32 %v1420_v33  ;;  %v1544_v43 = vunpack.c.2.s8 %v788_v29  ;;  %v1548_v44 = vunpack.c.3.s8 %v788_v29 }
  0xf9   : > { %3663 = vmatpush.bf16.msra.mxu2 %v3264_v35  ;;  %v2504_v45 = vcvt.s32.f32 %v1480_v37  ;;  %v2508_v46 = vcvt.s32.f32 %v1484_v38  ;;  %v1608_v47 = vunpack.c.2.s8 %v804_v34  ;;  %v1612_v48 = vunpack.c.3.s8 %v804_v34 }
  0xfa   : > { %3677 = vmatpush.bf16.msra.mxu3 %v3296_v41  ;;  %v3196_v49 = vpack.c.bf16 %v2444_v42, %v2440_v36  ;;  %v2568_v50 = vcvt.s32.f32 %v1544_v43  ;;  %v2572_v51 = vcvt.s32.f32 %v1548_v44  ;;  %v1408_v53 = vunpack.c.0.s8 %v756_v9 }
  0xfb   : > { %v3228_v52 = vpack.c.bf16 %v2508_v46, %v2504_v45  ;;  %v2632_v54 = vcvt.s32.f32 %v1608_v47  ;;  %v2636_v55 = vcvt.s32.f32 %v1612_v48  ;;  %v1412_v56 = vunpack.c.1.s8 %v756_v9 }
  0xfc   : > { %3636 = vmatpush.bf16.msra.mxu0 %v3196_v49  ;;  %v3260_v57 = vpack.c.bf16 %v2572_v51, %v2568_v50  ;;  %v2432_v58 = vcvt.s32.f32 %v1408_v53  ;;  %v1472_v59 = vunpack.c.0.s8 %v772_v24  ;;  %v1476_v60 = vunpack.c.1.s8 %v772_v24  ;;  %v8161_v49 = vld [vmem:[%s8030_s30 + $0x660] sm:$0xff] }
  0xfd   : > { %3650 = vmatpush.bf16.msra.mxu1 %v3228_v52  ;;  %v3292_v62 = vpack.c.bf16 %v2636_v55, %v2632_v54  ;;  %v2436_v63 = vcvt.s32.f32 %v1412_v56  ;;  %v1536_v0 = vunpack.c.0.s8 %v788_v29  ;;  %v1540_v1 = vunpack.c.1.s8 %v788_v29 }
  0xfe   : > { %3664 = vmatpush.bf16.msra.mxu2 %v3260_v57  ;;  %v2496_v2 = vcvt.s32.f32 %v1472_v59  ;;  %v2500_v3 = vcvt.s32.f32 %v1476_v60  ;;  %v1600_v4 = vunpack.c.0.s8 %v804_v34  ;;  %v1604_v5 = vunpack.c.1.s8 %v804_v34 }
  0xff   : > { %3678 = vmatpush.bf16.msra.mxu3 %v3292_v62  ;;  %v3192_v7 = vpack.c.bf16 %v2436_v63, %v2432_v58  ;;  %v2560_v8 = vcvt.s32.f32 %v1536_v0  ;;  %v2564_v9 = vcvt.s32.f32 %v1540_v1  ;;  %v1400_v11 = vunpack.c.2.s8 %v752_v61  ;;  %v8164_v58 = vld [vmem:[%s8030_s30 + $0x6e0] sm:$0xff] }
 0x100   : > { %v3224_v14 = vpack.c.bf16 %v2500_v3, %v2496_v2  ;;  %v2624_v16 = vcvt.s32.f32 %v1600_v4  ;;  %v2628_v17 = vcvt.s32.f32 %v1604_v5  ;;  %v1404_v19 = vunpack.c.3.s8 %v752_v61  ;;  %v8168_v63 = vld [vmem:[%s8030_s30 + $0x760] sm:$0xff] }
 0x101   : > { %3637 = vmatpush.bf16.msra.mxu0 %v3192_v7  ;;  %v3256_v23 = vpack.c.bf16 %v2564_v9, %v2560_v8  ;;  %v2424_v24 = vcvt.s32.f32 %v1400_v11  ;;  %v1464_v25 = vunpack.c.2.s8 %v768_v6  ;;  %v1468_v26 = vunpack.c.3.s8 %v768_v6  ;;  %v8172_v4 = vld [vmem:[%s8030_s30 + $0x7e0] sm:$0xff] }
 0x102   : > { %3651 = vmatpush.bf16.msra.mxu1 %v3224_v14  ;;  %v3288_v27 = vpack.c.bf16 %v2628_v17, %v2624_v16  ;;  %v2428_v28 = vcvt.s32.f32 %v1404_v19  ;;  %v1528_v29 = vunpack.c.2.s8 %v784_v12  ;;  %v1532_v30 = vunpack.c.3.s8 %v784_v12  ;;  %v6342_v9 = vld [vmem:[#allocation4 + $0x20] sm:$0xf]  ;;  %v6350_v19 = vld [vmem:[#allocation4 + $0x28] sm:$0xf] }
 0x103   : > { %3665 = vmatpush.bf16.msra.mxu2 %v3256_v23  ;;  %v2488_v32 = vcvt.s32.f32 %v1464_v25  ;;  %v2492_v31 = vcvt.s32.f32 %v1468_v26  ;;  %v1592_v33 = vunpack.c.2.s8 %v800_v22  ;;  %v1596_v34 = vunpack.c.3.s8 %v800_v22  ;;  %v7081_v11 = vld [vmem:[#allocation4 + $0x5c] sm:$0xf0]  ;;  %v7073_v23 = vld [vmem:[#allocation4 + $0x24] sm:$0xf] }
 0x104   : > { %3679 = vmatpush.bf16.msra.mxu3 %v3288_v27  ;;  %v3188_v35 = vpack.c.bf16 %v2428_v28, %v2424_v24  ;;  %v2552_v36 = vcvt.s32.f32 %v1528_v29  ;;  %v2556_v37 = vcvt.s32.f32 %v1532_v30  ;;  %v1392_v38 = vunpack.c.0.s8 %v752_v61  ;;  %v6344_v28 = vld [vmem:[#allocation4 + $0x60] sm:$0xf0]  ;;  %v7074_v29 = vld [vmem:[#allocation4 + $0x2c] sm:$0xf] }
 0x105   : > { %v3220_v41 = vpack.c.bf16 %v2492_v31, %v2488_v32  ;;  %v2616_v42 = vcvt.s32.f32 %v1592_v33  ;;  %v2620_v43 = vcvt.s32.f32 %v1596_v34  ;;  %v1396_v44 = vunpack.c.1.s8 %v752_v61  ;;  %v6352_v30 = vld [vmem:[#allocation4 + $0x68] sm:$0xf0] }
 0x106   : > { %3638 = vmatpush.bf16.msra.mxu0 %v3188_v35  ;;  %v3252_v45 = vpack.c.bf16 %v2556_v37, %v2552_v36  ;;  %v2416_v46 = vcvt.s32.f32 %v1392_v38  ;;  %v1456_v47 = vunpack.c.0.s8 %v768_v6  ;;  %v1460_v48 = vunpack.c.1.s8 %v768_v6 }
 0x107   : > { %3652 = vmatpush.bf16.msra.mxu1 %v3220_v41  ;;  %v3284_v50 = vpack.c.bf16 %v2620_v43, %v2616_v42  ;;  %v2420_v51 = vcvt.s32.f32 %v1396_v44  ;;  %v1520_v53 = vunpack.c.0.s8 %v784_v12  ;;  %v1524_v52 = vunpack.c.1.s8 %v784_v12 }
 0x108   : > { %3666 = vmatpush.bf16.msra.mxu2 %v3252_v45  ;;  %v2480_v54 = vcvt.s32.f32 %v1456_v47  ;;  %v2484_v55 = vcvt.s32.f32 %v1460_v48  ;;  %v1584_v56 = vunpack.c.0.s8 %v800_v22  ;;  %v1588_v57 = vunpack.c.1.s8 %v800_v22  ;;  %v7082_v22 = vld [vmem:[#allocation4 + $0x64] sm:$0xf0] }
 0x109   : > { %3680 = vmatpush.bf16.msra.mxu3 %v3284_v50  ;;  %v3184_v59 = vpack.c.bf16 %v2420_v51, %v2416_v46  ;;  %v2544_v60 = vcvt.s32.f32 %v1520_v53  ;;  %v2548_v61 = vcvt.s32.f32 %v1524_v52  ;;  %v1704_v62 = vunpack.c.2.s8 %v8161_v49  ;;  %v824_v50 = vld [vmem:[%s8030_s30 + $0x640] sm:$0xff] }
 0x10a   : > { %v3216_v0 = vpack.c.bf16 %v2484_v55, %v2480_v54  ;;  %v2608_v1 = vcvt.s32.f32 %v1584_v56  ;;  %v2612_v2 = vcvt.s32.f32 %v1588_v57  ;;  %v1708_v3 = vunpack.c.3.s8 %v8161_v49 }
 0x10b   : > { %3639 = vmatpush.bf16.msra.mxu0 %v3184_v59  ;;  %v3248_v5 = vpack.c.bf16 %v2548_v61, %v2544_v60  ;;  %v2728_v6 = vcvt.s32.f32 %v1704_v62  ;;  %v1768_v7 = vunpack.c.2.s8 %v8164_v58  ;;  %v1772_v8 = vunpack.c.3.s8 %v8164_v58 }
 0x10c   : > { %3653 = vmatpush.bf16.msra.mxu1 %v3216_v0  ;;  %v3280_v12 = vpack.c.bf16 %v2612_v2, %v2608_v1  ;;  %v2732_v14 = vcvt.s32.f32 %v1708_v3  ;;  %v1832_v16 = vunpack.c.2.s8 %v8168_v63  ;;  %v1836_v17 = vunpack.c.3.s8 %v8168_v63  ;;  %v856_v0 = vld [vmem:[%s8030_s30 + $0x740] sm:$0xff] }
 0x10d   : > { %3667 = vmatpush.bf16.msra.mxu2 %v3248_v5  ;;  %v2792_v24 = vcvt.s32.f32 %v1768_v7  ;;  %v2796_v25 = vcvt.s32.f32 %v1772_v8  ;;  %v1896_v26 = vunpack.c.2.s8 %v8172_v4  ;;  %v1900_v27 = vunpack.c.3.s8 %v8172_v4  ;;  %v872_v5 = vld [vmem:[%s8030_s30 + $0x7c0] sm:$0xff] }
 0x10e   : > { %3681 = vmatpush.bf16.msra.mxu3 %v3280_v12  ;;  %v3340_v32 = vpack.c.bf16 %v2732_v14, %v2728_v6  ;;  %v2856_v31 = vcvt.s32.f32 %v1832_v16  ;;  %v2860_v33 = vcvt.s32.f32 %v1836_v17  ;;  %v8180_v34 = vor.u32 %v7081_v11, %v6342_v9 }
 0x10f   : > { %v3372_v35 = vpack.c.bf16 %v2796_v25, %v2792_v24  ;;  %v2920_v36 = vcvt.s32.f32 %v1896_v26  ;;  %v2924_v37 = vcvt.s32.f32 %v1900_v27  ;;  %v8182_v38 = vor.u32 %v7082_v22, %v6350_v19 }
 0x110   : > { %3688 = vmatpush.bf16.msrb.mxu0 %v3340_v32  ;;  %v3404_v41 = vpack.c.bf16 %v2860_v33, %v2856_v31  ;;  %v8184_v42 = vor.u32 %v7073_v23, %v6344_v28  ;;  %v8186_v43 = vor.u32 %v7074_v29, %v6352_v30  ;;  %v1696_v44 = vunpack.c.0.s8 %v8161_v49 }
 0x111   : > { %3702 = vmatpush.bf16.msrb.mxu1 %v3372_v35  ;;  %v3436_v45 = vpack.c.bf16 %v2924_v37, %v2920_v36  ;;  %3640 = vmatmul.bf16.vlgmr.msra.gmra.mxu0 %v8180_v34  ;;  %v1700_v46 = vunpack.c.1.s8 %v8161_v49  ;;  %v1760_v47 = vunpack.c.0.s8 %v8164_v58  ;;  %v1764_v48 = vunpack.c.1.s8 %v8164_v58  ;;  %v840_v58 = vld [vmem:[%s8030_s30 + $0x6c0] sm:$0xff] }
 0x112   : > { %3716 = vmatpush.bf16.msrb.mxu2 %v3404_v41  ;;  %3654 = vmatmul.bf16.vlgmr.msra.gmra.mxu1 %v8184_v42  ;;  %v2720_v51 = vcvt.s32.f32 %v1696_v44  ;;  %v1824_v53 = vunpack.c.0.s8 %v8168_v63  ;;  %v1828_v52 = vunpack.c.1.s8 %v8168_v63  ;;  %v1888_v54 = vunpack.c.0.s8 %v8172_v4  ;;  %v820_v36 = vld [vmem:[%s8030_s30 + $0x620] sm:$0xff] }
 0x113   : > { %3730 = vmatpush.bf16.msrb.mxu3 %v3436_v45  ;;  %3668 = vmatmul.bf16.vlgmr.msra.gmra.mxu2 %v8182_v38  ;;  %v2724_v49 = vcvt.s32.f32 %v1700_v46  ;;  %v2784_v55 = vcvt.s32.f32 %v1760_v47  ;;  %v2788_v56 = vcvt.s32.f32 %v1764_v48  ;;  %v1892_v57 = vunpack.c.1.s8 %v8172_v4 }
 0x114   : > { %3682 = vmatmul.bf16.vlgmr.msra.gmra.mxu3 %v8186_v43  ;;  %v2848_v59 = vcvt.s32.f32 %v1824_v53  ;;  %v2852_v60 = vcvt.s32.f32 %v1828_v52  ;;  %v2912_v61 = vcvt.s32.f32 %v1888_v54  ;;  %v1688_v62 = vunpack.c.2.s8 %v824_v50 }
 0x115   : > { %v3336_v63 = vpack.c.bf16 %v2724_v49, %v2720_v51  ;;  %v3368_v1 = vpack.c.bf16 %v2788_v56, %v2784_v55  ;;  %v2916_v2 = vcvt.s32.f32 %v1892_v57  ;;  %v1692_v3 = vunpack.c.3.s8 %v824_v50  ;;  %v852_v55 = vld [vmem:[%s8030_s30 + $0x720] sm:$0xff] }
 0x116   : > { %v3400_v6 = vpack.c.bf16 %v2852_v60, %v2848_v59  ;;  %v2712_v7 = vcvt.s32.f32 %v1688_v62  ;;  %v1752_v8 = vunpack.c.2.s8 %v840_v58  ;;  %v1756_v9 = vunpack.c.3.s8 %v840_v58  ;;  %v868_v60 = vld [vmem:[%s8030_s30 + $0x7a0] sm:$0xff] }
 0x117   : > { %3689 = vmatpush.bf16.msrb.mxu0 %v3336_v63  ;;  %3703 = vmatpush.bf16.msrb.mxu1 %v3368_v1  ;;  %v3432_v4 = vpack.c.bf16 %v2916_v2, %v2912_v61  ;;  %v2716_v11 = vcvt.s32.f32 %v1692_v3  ;;  %v1816_v12 = vunpack.c.2.s8 %v856_v0  ;;  %v1820_v14 = vunpack.c.3.s8 %v856_v0 }
 0x118   : > { %3717 = vmatpush.bf16.msrb.mxu2 %v3400_v6  ;;  %v2776_v16 = vcvt.s32.f32 %v1752_v8  ;;  %v2780_v17 = vcvt.s32.f32 %v1756_v9  ;;  %v1880_v19 = vunpack.c.2.s8 %v872_v5  ;;  %v1884_v22 = vunpack.c.3.s8 %v872_v5 }
 0x119   : > { %3731 = vmatpush.bf16.msrb.mxu3 %v3432_v4  ;;  %v3332_v23 = vpack.c.bf16 %v2716_v11, %v2712_v7  ;;  %v2840_v24 = vcvt.s32.f32 %v1816_v12  ;;  %v2844_v25 = vcvt.s32.f32 %v1820_v14  ;;  %v1680_v26 = vunpack.c.0.s8 %v824_v50 }
 0x11a   : > { %v3364_v27 = vpack.c.bf16 %v2780_v17, %v2776_v16  ;;  %v2904_v28 = vcvt.s32.f32 %v1880_v19  ;;  %v2908_v29 = vcvt.s32.f32 %v1884_v22  ;;  %v1684_v30 = vunpack.c.1.s8 %v824_v50  ;;  %v836_v50 = vld [vmem:[%s8030_s30 + $0x6a0] sm:$0xff] }
 0x11b   : > { %3690 = vmatpush.bf16.msrb.mxu0 %v3332_v23  ;;  %v3396_v32 = vpack.c.bf16 %v2844_v25, %v2840_v24  ;;  %v2704_v31 = vcvt.s32.f32 %v1680_v26  ;;  %v1744_v33 = vunpack.c.0.s8 %v840_v58  ;;  %v1748_v35 = vunpack.c.1.s8 %v840_v58 }
 0x11c   : > { %3704 = vmatpush.bf16.msrb.mxu1 %v3364_v27  ;;  %v3428_v37 = vpack.c.bf16 %v2908_v29, %v2904_v28  ;;  %v2708_v41 = vcvt.s32.f32 %v1684_v30  ;;  %v1808_v44 = vunpack.c.0.s8 %v856_v0  ;;  %v1812_v45 = vunpack.c.1.s8 %v856_v0  ;;  %v816_v27 = vld [vmem:[%s8030_s30 + $0x600] sm:$0xff] }
 0x11d   : > { %3718 = vmatpush.bf16.msrb.mxu2 %v3396_v32  ;;  %v2768_v46 = vcvt.s32.f32 %v1744_v33  ;;  %v2772_v47 = vcvt.s32.f32 %v1748_v35  ;;  %v1872_v48 = vunpack.c.0.s8 %v872_v5  ;;  %v1876_v51 = vunpack.c.1.s8 %v872_v5 }
 0x11e   : > { %3732 = vmatpush.bf16.msrb.mxu3 %v3428_v37  ;;  %v3328_v53 = vpack.c.bf16 %v2708_v41, %v2704_v31  ;;  %v2832_v52 = vcvt.s32.f32 %v1808_v44  ;;  %v2836_v54 = vcvt.s32.f32 %v1812_v45  ;;  %v1672_v49 = vunpack.c.2.s8 %v820_v36 }
 0x11f   : > { %v3360_v56 = vpack.c.bf16 %v2772_v47, %v2768_v46  ;;  %v2896_v57 = vcvt.s32.f32 %v1872_v48  ;;  %v2900_v58 = vcvt.s32.f32 %v1876_v51  ;;  %v1676_v59 = vunpack.c.3.s8 %v820_v36  ;;  %v848_v47 = vld [vmem:[%s8030_s30 + $0x700] sm:$0xff] }
 0x120   : > { %3691 = vmatpush.bf16.msrb.mxu0 %v3328_v53  ;;  %v3392_v61 = vpack.c.bf16 %v2836_v54, %v2832_v52  ;;  %v2696_v62 = vcvt.s32.f32 %v1672_v49  ;;  %v1736_v0 = vunpack.c.2.s8 %v836_v50  ;;  %v1740_v63 = vunpack.c.3.s8 %v836_v50  ;;  %v864_v52 = vld [vmem:[%s8030_s30 + $0x780] sm:$0xff] }
 0x121   : > { %3705 = vmatpush.bf16.msrb.mxu1 %v3360_v56  ;;  %v3424_v1 = vpack.c.bf16 %v2900_v58, %v2896_v57  ;;  %v2700_v2 = vcvt.s32.f32 %v1676_v59  ;;  %v1800_v3 = vunpack.c.2.s8 %v852_v55  ;;  %v1804_v5 = vunpack.c.3.s8 %v852_v55 }
 0x122   : > { %3719 = vmatpush.bf16.msrb.mxu2 %v3392_v61  ;;  %v2760_v6 = vcvt.s32.f32 %v1736_v0  ;;  %v2764_v7 = vcvt.s32.f32 %v1740_v63  ;;  %v1864_v8 = vunpack.c.2.s8 %v868_v60  ;;  %v1868_v9 = vunpack.c.3.s8 %v868_v60 }
 0x123   : > { %3733 = vmatpush.bf16.msrb.mxu3 %v3424_v1  ;;  %v3324_v4 = vpack.c.bf16 %v2700_v2, %v2696_v62  ;;  %v2824_v11 = vcvt.s32.f32 %v1800_v3  ;;  %v2828_v12 = vcvt.s32.f32 %v1804_v5  ;;  %v1664_v14 = vunpack.c.0.s8 %v820_v36 }
 0x124   : > { %v3356_v16 = vpack.c.bf16 %v2764_v7, %v2760_v6  ;;  %v2888_v17 = vcvt.s32.f32 %v1864_v8  ;;  %v2892_v19 = vcvt.s32.f32 %v1868_v9  ;;  %v1668_v22 = vunpack.c.1.s8 %v820_v36  ;;  %v832_v36 = vld [vmem:[%s8030_s30 + $0x680] sm:$0xff] }
 0x125   : > { %3692 = vmatpush.bf16.msrb.mxu0 %v3324_v4  ;;  %v3388_v23 = vpack.c.bf16 %v2828_v12, %v2824_v11  ;;  %v2688_v24 = vcvt.s32.f32 %v1664_v14  ;;  %v1728_v25 = vunpack.c.0.s8 %v836_v50  ;;  %v1732_v26 = vunpack.c.1.s8 %v836_v50 }
 0x126   : > { %3706 = vmatpush.bf16.msrb.mxu1 %v3356_v16  ;;  %v3420_v28 = vpack.c.bf16 %v2892_v19, %v2888_v17  ;;  %v2692_v29 = vcvt.s32.f32 %v1668_v22  ;;  %v1792_v30 = vunpack.c.0.s8 %v852_v55  ;;  %v1796_v32 = vunpack.c.1.s8 %v852_v55  ;;  %v8213_v16 = vld [vmem:[%s8030_s30 + $0x68] sm:$0xff] }
 0x127   : > { %3720 = vmatpush.bf16.msrb.mxu2 %v3388_v23  ;;  %v2752_v31 = vcvt.s32.f32 %v1728_v25  ;;  %v2756_v33 = vcvt.s32.f32 %v1732_v26  ;;  %v1856_v35 = vunpack.c.0.s8 %v868_v60  ;;  %v1860_v37 = vunpack.c.1.s8 %v868_v60 }
 0x128   : > { %3734 = vmatpush.bf16.msrb.mxu3 %v3420_v28  ;;  %v3320_v41 = vpack.c.bf16 %v2692_v29, %v2688_v24  ;;  %v2816_v44 = vcvt.s32.f32 %v1792_v30  ;;  %v2820_v45 = vcvt.s32.f32 %v1796_v32  ;;  %v1656_v46 = vunpack.c.2.s8 %v816_v27  ;;  %v8216_v28 = vld [vmem:[%s8030_s30 + $0xe8] sm:$0xff] }
 0x129   : > { %v3352_v48 = vpack.c.bf16 %v2756_v33, %v2752_v31  ;;  %v2880_v51 = vcvt.s32.f32 %v1856_v35  ;;  %v2884_v50 = vcvt.s32.f32 %v1860_v37  ;;  %v1660_v53 = vunpack.c.3.s8 %v816_v27  ;;  %v8220_v33 = vld [vmem:[%s8030_s30 + $0x168] sm:$0xff] }
 0x12a   : > { %3693 = vmatpush.bf16.msrb.mxu0 %v3320_v41  ;;  %v3384_v54 = vpack.c.bf16 %v2820_v45, %v2816_v44  ;;  %v2680_v49 = vcvt.s32.f32 %v1656_v46  ;;  %v1720_v55 = vunpack.c.2.s8 %v832_v36  ;;  %v1724_v56 = vunpack.c.3.s8 %v832_v36  ;;  %v8224_v44 = vld [vmem:[%s8030_s30 + $0x1e8] sm:$0xff] }
 0x12b   : > { %3707 = vmatpush.bf16.msrb.mxu1 %v3352_v48  ;;  %v3416_v57 = vpack.c.bf16 %v2884_v50, %v2880_v51  ;;  %v2684_v58 = vcvt.s32.f32 %v1660_v53  ;;  %v1784_v59 = vunpack.c.2.s8 %v848_v47  ;;  %v1788_v60 = vunpack.c.3.s8 %v848_v47  ;;  %v6358_v51 = vld [vmem:[#allocation4 + $0x30] sm:$0xf] }
 0x12c   : > { %3721 = vmatpush.bf16.msrb.mxu2 %v3384_v54  ;;  %v2744_v61 = vcvt.s32.f32 %v1720_v55  ;;  %v2748_v62 = vcvt.s32.f32 %v1724_v56  ;;  %v1848_v0 = vunpack.c.2.s8 %v864_v52  ;;  %v1852_v63 = vunpack.c.3.s8 %v864_v52  ;;  %v7083_v50 = vld [vmem:[#allocation4 + $0x6c] sm:$0xf0]  ;;  %v6366_v55 = vld [vmem:[#allocation4 + $0x38] sm:$0xf] }
 0x12d   : > { %3735 = vmatpush.bf16.msrb.mxu3 %v3416_v57  ;;  %v3316_v1 = vpack.c.bf16 %v2684_v58, %v2680_v49  ;;  %v2808_v2 = vcvt.s32.f32 %v1784_v59  ;;  %v2812_v3 = vcvt.s32.f32 %v1788_v60  ;;  %v1648_v5 = vunpack.c.0.s8 %v816_v27  ;;  %v7084_v56 = vld [vmem:[#allocation4 + $0x74] sm:$0xf0]  ;;  %v7075_v57 = vld [vmem:[#allocation4 + $0x34] sm:$0xf] }
 0x12e   : > { %v3348_v6 = vpack.c.bf16 %v2748_v62, %v2744_v61  ;;  %v2872_v7 = vcvt.s32.f32 %v1848_v0  ;;  %v2876_v8 = vcvt.s32.f32 %v1852_v63  ;;  %v1652_v9 = vunpack.c.1.s8 %v816_v27  ;;  %v6360_v62 = vld [vmem:[#allocation4 + $0x70] sm:$0xf0]  ;;  %v7076_v0 = vld [vmem:[#allocation4 + $0x3c] sm:$0xf] }
 0x12f   : > { %3694 = vmatpush.bf16.msrb.mxu0 %v3316_v1  ;;  %v3380_v4 = vpack.c.bf16 %v2812_v3, %v2808_v2  ;;  %v2672_v11 = vcvt.s32.f32 %v1648_v5  ;;  %v1712_v12 = vunpack.c.0.s8 %v832_v36  ;;  %v1716_v14 = vunpack.c.1.s8 %v832_v36  ;;  %v6368_v63 = vld [vmem:[#allocation4 + $0x78] sm:$0xf0] }
 0x130   : > { %3708 = vmatpush.bf16.msrb.mxu1 %v3348_v6  ;;  %v3412_v17 = vpack.c.bf16 %v2876_v8, %v2872_v7  ;;  %v2676_v19 = vcvt.s32.f32 %v1652_v9  ;;  %v1776_v22 = vunpack.c.0.s8 %v848_v47  ;;  %v1780_v23 = vunpack.c.1.s8 %v848_v47 }
 0x131   : > { %3722 = vmatpush.bf16.msrb.mxu2 %v3380_v4  ;;  %v2736_v24 = vcvt.s32.f32 %v1712_v12  ;;  %v2740_v25 = vcvt.s32.f32 %v1716_v14  ;;  %v1840_v26 = vunpack.c.0.s8 %v864_v52  ;;  %v1844_v27 = vunpack.c.1.s8 %v864_v52 }
 0x132   : > { %3736 = vmatpush.bf16.msrb.mxu3 %v3412_v17  ;;  %v3312_v29 = vpack.c.bf16 %v2676_v19, %v2672_v11  ;;  %v2800_v30 = vcvt.s32.f32 %v1776_v22  ;;  %v2804_v32 = vcvt.s32.f32 %v1780_v23  ;;  %v937_v31 = vunpack.c.2.s8 %v8213_v16 }
 0x133   : > { %v3344_v35 = vpack.c.bf16 %v2740_v25, %v2736_v24  ;;  %v2864_v37 = vcvt.s32.f32 %v1840_v26  ;;  %v2868_v36 = vcvt.s32.f32 %v1844_v27  ;;  %v941_v41 = vunpack.c.3.s8 %v8213_v16  ;;  %v633_v24 = vld [vmem:[%s8030_s30 + $0x48] sm:$0xff] }
 0x134   : > { %3695 = vmatpush.bf16.msrb.mxu0 %v3312_v29  ;;  %v3376_v45 = vpack.c.bf16 %v2804_v32, %v2800_v30  ;;  %v1961_v46 = vcvt.s32.f32 %v937_v31  ;;  %v1001_v47 = vunpack.c.2.s8 %v8216_v28  ;;  %v1005_v48 = vunpack.c.3.s8 %v8216_v28  ;;  %v649_v31 = vld [vmem:[%s8030_s30 + $0xc8] sm:$0xff] }
 0x135   : > { %3709 = vmatpush.bf16.msrb.mxu1 %v3344_v35  ;;  %v3408_v53 = vpack.c.bf16 %v2868_v36, %v2864_v37  ;;  %v1965_v52 = vcvt.s32.f32 %v941_v41  ;;  %v1065_v54 = vunpack.c.2.s8 %v8220_v33  ;;  %v1069_v49 = vunpack.c.3.s8 %v8220_v33 }
 0x136   : > { %3723 = vmatpush.bf16.msrb.mxu2 %v3376_v45  ;;  %v2025_v58 = vcvt.s32.f32 %v1001_v47  ;;  %v2029_v59 = vcvt.s32.f32 %v1005_v48  ;;  %v1129_v60 = vunpack.c.2.s8 %v8224_v44  ;;  %v1133_v61 = vunpack.c.3.s8 %v8224_v44  ;;  %v665_v45 = vld [vmem:[%s8030_s30 + $0x148] sm:$0xff] }
 0x137   : > { %3737 = vmatpush.bf16.msrb.mxu3 %v3408_v53  ;;  %v2957_v1 = vpack.c.bf16 %v1965_v52, %v1961_v46  ;;  %v2089_v2 = vcvt.s32.f32 %v1065_v54  ;;  %v2093_v3 = vcvt.s32.f32 %v1069_v49  ;;  %v8232_v5 = vor.u32 %v7083_v50, %v6358_v51  ;;  %v681_v51 = vld [vmem:[%s8030_s30 + $0x1c8] sm:$0xff] }
 0x138   : > { %v2989_v6 = vpack.c.bf16 %v2029_v59, %v2025_v58  ;;  %v2153_v7 = vcvt.s32.f32 %v1129_v60  ;;  %v2157_v8 = vcvt.s32.f32 %v1133_v61  ;;  %v8234_v9 = vor.u32 %v7084_v56, %v6366_v55 }
 0x139   : > { %3744 = vmatpush.bf16.msra.mxu0 %v2957_v1  ;;  %v3021_v4 = vpack.c.bf16 %v2093_v3, %v2089_v2  ;;  %v8236_v11 = vor.u32 %v7075_v57, %v6360_v62  ;;  %v8238_v12 = vor.u32 %v7076_v0, %v6368_v63  ;;  %v929_v14 = vunpack.c.0.s8 %v8213_v16 }
 0x13a   : > { %3758 = vmatpush.bf16.msra.mxu1 %v2989_v6  ;;  %v3053_v17 = vpack.c.bf16 %v2157_v8, %v2153_v7  ;;  %3696 = vmatmul.bf16.vlgmr.msrb.gmra.mxu0 %v8232_v5  ;;  %v933_v19 = vunpack.c.1.s8 %v8213_v16  ;;  %v993_v22 = vunpack.c.0.s8 %v8216_v28  ;;  %v997_v23 = vunpack.c.1.s8 %v8216_v28 }
 0x13b   : > { %3772 = vmatpush.bf16.msra.mxu2 %v3021_v4  ;;  %3710 = vmatmul.bf16.vlgmr.msrb.gmra.mxu1 %v8236_v11  ;;  %v1953_v25 = vcvt.s32.f32 %v929_v14  ;;  %v1057_v26 = vunpack.c.0.s8 %v8220_v33  ;;  %v1061_v27 = vunpack.c.1.s8 %v8220_v33  ;;  %v1121_v29 = vunpack.c.0.s8 %v8224_v44 }
 0x13c   : > { %3786 = vmatpush.bf16.msra.mxu3 %v3053_v17  ;;  %3724 = vmatmul.bf16.vlgmr.msrb.gmra.mxu2 %v8234_v9  ;;  %v1957_v16 = vcvt.s32.f32 %v933_v19  ;;  %v2017_v30 = vcvt.s32.f32 %v993_v22  ;;  %v2021_v32 = vcvt.s32.f32 %v997_v23  ;;  %v1125_v28 = vunpack.c.1.s8 %v8224_v44  ;;  %v629_v17 = vld [vmem:[%s8030_s30 + $0x28] sm:$0xff] }
 0x13d   : > { %3738 = vmatmul.bf16.vlgmr.msrb.gmra.mxu3 %v8238_v12  ;;  %v2081_v35 = vcvt.s32.f32 %v1057_v26  ;;  %v2085_v37 = vcvt.s32.f32 %v1061_v27  ;;  %v2145_v36 = vcvt.s32.f32 %v1121_v29  ;;  %v921_v41 = vunpack.c.2.s8 %v633_v24 }
 0x13e   : > { %v2953_v33 = vpack.c.bf16 %v1957_v16, %v1953_v25  ;;  %v2985_v46 = vpack.c.bf16 %v2021_v32, %v2017_v30  ;;  %v2149_v47 = vcvt.s32.f32 %v1125_v28  ;;  %v925_v48 = vunpack.c.3.s8 %v633_v24 }
 0x13f   : > { %v3017_v50 = vpack.c.bf16 %v2085_v37, %v2081_v35  ;;  %v1945_v53 = vcvt.s32.f32 %v921_v41  ;;  %v985_v52 = vunpack.c.2.s8 %v649_v31  ;;  %v989_v54 = vunpack.c.3.s8 %v649_v31 }
 0x140   : > { %3745 = vmatpush.bf16.msra.mxu0 %v2953_v33  ;;  %3759 = vmatpush.bf16.msra.mxu1 %v2985_v46  ;;  %v3049_v44 = vpack.c.bf16 %v2149_v47, %v2145_v36  ;;  %v1949_v49 = vcvt.s32.f32 %v925_v48  ;;  %v1049_v55 = vunpack.c.2.s8 %v665_v45  ;;  %v1053_v56 = vunpack.c.3.s8 %v665_v45  ;;  %v677_v46 = vld [vmem:[%s8030_s30 + $0x1a8] sm:$0xff] }
 0x141   : > { %3773 = vmatpush.bf16.msra.mxu2 %v3017_v50  ;;  %v2009_v57 = vcvt.s32.f32 %v985_v52  ;;  %v2013_v58 = vcvt.s32.f32 %v989_v54  ;;  %v1113_v59 = vunpack.c.2.s8 %v681_v51  ;;  %v1117_v60 = vunpack.c.3.s8 %v681_v51 }
 0x142   : > { %3787 = vmatpush.bf16.msra.mxu3 %v3049_v44  ;;  %v2949_v61 = vpack.c.bf16 %v1949_v49, %v1945_v53  ;;  %v2073_v62 = vcvt.s32.f32 %v1049_v55  ;;  %v2077_v0 = vcvt.s32.f32 %v1053_v56  ;;  %v913_v63 = vunpack.c.0.s8 %v633_v24 }
 0x143   : > { %v2981_v1 = vpack.c.bf16 %v2013_v58, %v2009_v57  ;;  %v2137_v2 = vcvt.s32.f32 %v1113_v59  ;;  %v2141_v3 = vcvt.s32.f32 %v1117_v60  ;;  %v917_v6 = vunpack.c.1.s8 %v633_v24  ;;  %v645_v24 = vld [vmem:[%s8030_s30 + $0xa8] sm:$0xff] }
 0x144   : > { %3746 = vmatpush.bf16.msra.mxu0 %v2949_v61  ;;  %v3013_v7 = vpack.c.bf16 %v2077_v0, %v2073_v62  ;;  %v1937_v8 = vcvt.s32.f32 %v913_v63  ;;  %v977_v4 = vunpack.c.0.s8 %v649_v31  ;;  %v981_v14 = vunpack.c.1.s8 %v649_v31  ;;  %v661_v31 = vld [vmem:[%s8030_s30 + $0x128] sm:$0xff] }
 0x145   : > { %3760 = vmatpush.bf16.msra.mxu1 %v2981_v1  ;;  %v3045_v19 = vpack.c.bf16 %v2141_v3, %v2137_v2  ;;  %v1941_v22 = vcvt.s32.f32 %v917_v6  ;;  %v1041_v23 = vunpack.c.0.s8 %v665_v45  ;;  %v1045_v25 = vunpack.c.1.s8 %v665_v45 }
 0x146   : > { %3774 = vmatpush.bf16.msra.mxu2 %v3013_v7  ;;  %v2001_v26 = vcvt.s32.f32 %v977_v4  ;;  %v2005_v27 = vcvt.s32.f32 %v981_v14  ;;  %v1105_v29 = vunpack.c.0.s8 %v681_v51  ;;  %v1109_v16 = vunpack.c.1.s8 %v681_v51  ;;  %v625_v7 = vld [vmem:[%s8030_s30 + $0x8] sm:$0xff] }
 0x147   : > { %3788 = vmatpush.bf16.msra.mxu3 %v3045_v19  ;;  %v2945_v30 = vpack.c.bf16 %v1941_v22, %v1937_v8  ;;  %v2065_v32 = vcvt.s32.f32 %v1041_v23  ;;  %v2069_v28 = vcvt.s32.f32 %v1045_v25  ;;  %v905_v35 = vunpack.c.2.s8 %v629_v17 }
 0x148   : > { %v2977_v37 = vpack.c.bf16 %v2005_v27, %v2001_v26  ;;  %v2129_v36 = vcvt.s32.f32 %v1105_v29  ;;  %v2133_v41 = vcvt.s32.f32 %v1109_v16  ;;  %v909_v33 = vunpack.c.3.s8 %v629_v17 }
 0x149   : > { %3747 = vmatpush.bf16.msra.mxu0 %v2945_v30  ;;  %v3009_v45 = vpack.c.bf16 %v2069_v28, %v2065_v32  ;;  %v1929_v47 = vcvt.s32.f32 %v905_v35  ;;  %v969_v48 = vunpack.c.2.s8 %v645_v24  ;;  %v973_v50 = vunpack.c.3.s8 %v645_v24 }
 0x14a   : > { %3761 = vmatpush.bf16.msra.mxu1 %v2977_v37  ;;  %v3041_v53 = vpack.c.bf16 %v2133_v41, %v2129_v36  ;;  %v1933_v51 = vcvt.s32.f32 %v909_v33  ;;  %v1033_v52 = vunpack.c.2.s8 %v661_v31  ;;  %v1037_v54 = vunpack.c.3.s8 %v661_v31  ;;  %v673_v36 = vld [vmem:[%s8030_s30 + $0x188] sm:$0xff] }
 0x14b   : > { %3775 = vmatpush.bf16.msra.mxu2 %v3009_v45  ;;  %v1993_v44 = vcvt.s32.f32 %v969_v48  ;;  %v1997_v49 = vcvt.s32.f32 %v973_v50  ;;  %v1097_v55 = vunpack.c.2.s8 %v677_v46  ;;  %v1101_v56 = vunpack.c.3.s8 %v677_v46 }
 0x14c   : > { %3789 = vmatpush.bf16.msra.mxu3 %v3041_v53  ;;  %v2941_v57 = vpack.c.bf16 %v1933_v51, %v1929_v47  ;;  %v2057_v58 = vcvt.s32.f32 %v1033_v52  ;;  %v2061_v59 = vcvt.s32.f32 %v1037_v54  ;;  %v897_v60 = vunpack.c.0.s8 %v629_v17 }
 0x14d   : > { %v2973_v61 = vpack.c.bf16 %v1997_v49, %v1993_v44  ;;  %v2121_v62 = vcvt.s32.f32 %v1097_v55  ;;  %v2125_v0 = vcvt.s32.f32 %v1101_v56  ;;  %v901_v63 = vunpack.c.1.s8 %v629_v17  ;;  %v641_v17 = vld [vmem:[%s8030_s30 + $0x88] sm:$0xff] }
 0x14e   : > { %3748 = vmatpush.bf16.msra.mxu0 %v2941_v57  ;;  %v3005_v1 = vpack.c.bf16 %v2061_v59, %v2057_v58  ;;  %v1921_v2 = vcvt.s32.f32 %v897_v60  ;;  %v961_v3 = vunpack.c.0.s8 %v645_v24  ;;  %v965_v6 = vunpack.c.1.s8 %v645_v24  ;;  %v657_v24 = vld [vmem:[%s8030_s30 + $0x108] sm:$0xff] }
 0x14f   : > { %3762 = vmatpush.bf16.msra.mxu1 %v2973_v61  ;;  %v3037_v8 = vpack.c.bf16 %v2125_v0, %v2121_v62  ;;  %v1925_v4 = vcvt.s32.f32 %v901_v63  ;;  %v1025_v14 = vunpack.c.0.s8 %v661_v31  ;;  %v1029_v19 = vunpack.c.1.s8 %v661_v31 }
 0x150   : > { %3776 = vmatpush.bf16.msra.mxu2 %v3005_v1  ;;  %v1985_v22 = vcvt.s32.f32 %v961_v3  ;;  %v1989_v23 = vcvt.s32.f32 %v965_v6  ;;  %v1089_v25 = vunpack.c.0.s8 %v677_v46  ;;  %v1093_v26 = vunpack.c.1.s8 %v677_v46  ;;  %v701_v1 = vld [vmem:[%s8030_s30 + $0x268] sm:$0xff] }
 0x151   : > { %3790 = vmatpush.bf16.msra.mxu3 %v3037_v8  ;;  %v2937_v27 = vpack.c.bf16 %v1925_v4, %v1921_v2  ;;  %v2049_v29 = vcvt.s32.f32 %v1025_v14  ;;  %v2053_v16 = vcvt.s32.f32 %v1029_v19  ;;  %v889_v30 = vunpack.c.2.s8 %v625_v7 }
 0x152   : > { %v2969_v32 = vpack.c.bf16 %v1989_v23, %v1985_v22  ;;  %v2113_v28 = vcvt.s32.f32 %v1089_v25  ;;  %v2117_v35 = vcvt.s32.f32 %v1093_v26  ;;  %v893_v37 = vunpack.c.3.s8 %v625_v7 }
 0x153   : > { %3749 = vmatpush.bf16.msra.mxu0 %v2937_v27  ;;  %v3001_v31 = vpack.c.bf16 %v2053_v16, %v2049_v29  ;;  %v1913_v41 = vcvt.s32.f32 %v889_v30  ;;  %v953_v33 = vunpack.c.2.s8 %v641_v17  ;;  %v957_v45 = vunpack.c.3.s8 %v641_v17 }
 0x154   : > { %3763 = vmatpush.bf16.msra.mxu1 %v2969_v32  ;;  %v3033_v47 = vpack.c.bf16 %v2117_v35, %v2113_v28  ;;  %v1917_v46 = vcvt.s32.f32 %v893_v37  ;;  %v1017_v48 = vunpack.c.2.s8 %v657_v24  ;;  %v1021_v50 = vunpack.c.3.s8 %v657_v24  ;;  %v749_v28 = vld [vmem:[%s8030_s30 + $0x3e8] sm:$0xff] }
 0x155   : > { %3777 = vmatpush.bf16.msra.mxu2 %v3001_v31  ;;  %v1977_v53 = vcvt.s32.f32 %v953_v33  ;;  %v1981_v51 = vcvt.s32.f32 %v957_v45  ;;  %v1081_v52 = vunpack.c.2.s8 %v673_v36  ;;  %v1085_v54 = vunpack.c.3.s8 %v673_v36 }
 0x156   : > { %3791 = vmatpush.bf16.msra.mxu3 %v3033_v47  ;;  %v2933_v44 = vpack.c.bf16 %v1917_v46, %v1913_v41  ;;  %v2041_v49 = vcvt.s32.f32 %v1017_v48  ;;  %v2045_v55 = vcvt.s32.f32 %v1021_v50  ;;  %v881_v56 = vunpack.c.0.s8 %v625_v7 }
 0x157   : > { %v2965_v57 = vpack.c.bf16 %v1981_v51, %v1977_v53  ;;  %v2105_v58 = vcvt.s32.f32 %v1081_v52  ;;  %v2109_v59 = vcvt.s32.f32 %v1085_v54  ;;  %v885_v60 = vunpack.c.1.s8 %v625_v7  ;;  %v717_v7 = vld [vmem:[%s8030_s30 + $0x2e8] sm:$0xff] }
 0x158   : > { %3750 = vmatpush.bf16.msra.mxu0 %v2933_v44  ;;  %v2997_v61 = vpack.c.bf16 %v2045_v55, %v2041_v49  ;;  %v1905_v62 = vcvt.s32.f32 %v881_v56  ;;  %v945_v0 = vunpack.c.0.s8 %v641_v17  ;;  %v949_v63 = vunpack.c.1.s8 %v641_v17  ;;  %v733_v17 = vld [vmem:[%s8030_s30 + $0x368] sm:$0xff] }
 0x159   : > { %3764 = vmatpush.bf16.msra.mxu1 %v2965_v57  ;;  %v3029_v2 = vpack.c.bf16 %v2109_v59, %v2105_v58  ;;  %v1909_v3 = vcvt.s32.f32 %v885_v60  ;;  %v1009_v6 = vunpack.c.0.s8 %v657_v24  ;;  %v1013_v8 = vunpack.c.1.s8 %v657_v24 }
 0x15a   : > { %3778 = vmatpush.bf16.msra.mxu2 %v2997_v61  ;;  %v1969_v4 = vcvt.s32.f32 %v945_v0  ;;  %v1973_v14 = vcvt.s32.f32 %v949_v63  ;;  %v1073_v19 = vunpack.c.0.s8 %v673_v36  ;;  %v1077_v22 = vunpack.c.1.s8 %v673_v36  ;;  %v697_v61 = vld [vmem:[%s8030_s30 + $0x248] sm:$0xff] }
 0x15b   : > { %3792 = vmatpush.bf16.msra.mxu3 %v3029_v2  ;;  %v2929_v23 = vpack.c.bf16 %v1909_v3, %v1905_v62  ;;  %v2033_v25 = vcvt.s32.f32 %v1009_v6  ;;  %v2037_v26 = vcvt.s32.f32 %v1013_v8  ;;  %v1193_v27 = vunpack.c.2.s8 %v701_v1 }
 0x15c   : > { %v2961_v29 = vpack.c.bf16 %v1973_v14, %v1969_v4  ;;  %v2097_v16 = vcvt.s32.f32 %v1073_v19  ;;  %v2101_v30 = vcvt.s32.f32 %v1077_v22  ;;  %v1197_v32 = vunpack.c.3.s8 %v701_v1  ;;  %v713_v4 = vld [vmem:[%s8030_s30 + $0x2c8] sm:$0xff] }
 0x15d   : > { %3751 = vmatpush.bf16.msra.mxu0 %v2929_v23  ;;  %v2993_v24 = vpack.c.bf16 %v2037_v26, %v2033_v25  ;;  %v2217_v35 = vcvt.s32.f32 %v1193_v27  ;;  %v1257_v37 = vunpack.c.2.s8 %v717_v7  ;;  %v1261_v31 = vunpack.c.3.s8 %v717_v7  ;;  %v729_v23 = vld [vmem:[%s8030_s30 + $0x348] sm:$0xff] }
 0x15e   : > { %3765 = vmatpush.bf16.msra.mxu1 %v2961_v29  ;;  %v3025_v41 = vpack.c.bf16 %v2101_v30, %v2097_v16  ;;  %v2221_v36 = vcvt.s32.f32 %v1197_v32  ;;  %v1321_v33 = vunpack.c.2.s8 %v733_v17  ;;  %v1325_v45 = vunpack.c.3.s8 %v733_v17 }
 0x15f   : > { %3779 = vmatpush.bf16.msra.mxu2 %v2993_v24  ;;  %v2281_v47 = vcvt.s32.f32 %v1257_v37  ;;  %v2285_v46 = vcvt.s32.f32 %v1261_v31  ;;  %v1385_v48 = vunpack.c.2.s8 %v749_v28  ;;  %v1389_v50 = vunpack.c.3.s8 %v749_v28 }
 0x160   : > { %3793 = vmatpush.bf16.msra.mxu3 %v3025_v41  ;;  %v3085_v53 = vpack.c.bf16 %v2221_v36, %v2217_v35  ;;  %v2345_v51 = vcvt.s32.f32 %v1321_v33  ;;  %v2349_v52 = vcvt.s32.f32 %v1325_v45  ;;  %v1185_v54 = vunpack.c.0.s8 %v701_v1  ;;  %3752 = vmatmul.bf16.vlgmr.msra.gmra.mxu0 %v8080_v10 }
 0x161   : > { %v3117_v44 = vpack.c.bf16 %v2285_v46, %v2281_v47  ;;  %v2409_v49 = vcvt.s32.f32 %v1385_v48  ;;  %v2413_v55 = vcvt.s32.f32 %v1389_v50  ;;  %v1189_v56 = vunpack.c.1.s8 %v701_v1  ;;  %3766 = vmatmul.bf16.vlgmr.msra.gmra.mxu1 %v8094_v39 }
 0x162   : > { %3800 = vmatpush.bf16.msrb.mxu0 %v3085_v53  ;;  %v3149_v57 = vpack.c.bf16 %v2349_v52, %v2345_v51  ;;  %v2209_v58 = vcvt.s32.f32 %v1185_v54  ;;  %v1249_v59 = vunpack.c.0.s8 %v717_v7  ;;  %v1253_v60 = vunpack.c.1.s8 %v717_v7  ;;  %3780 = vmatmul.bf16.vlgmr.msra.gmra.mxu2 %v8083_v15 }
 0x163   : > { %3814 = vmatpush.bf16.msrb.mxu1 %v3117_v44  ;;  %v3181_v62 = vpack.c.bf16 %v2413_v55, %v2409_v49  ;;  %v2213_v0 = vcvt.s32.f32 %v1189_v56  ;;  %v1313_v63 = vunpack.c.0.s8 %v733_v17  ;;  %v1317_v2 = vunpack.c.1.s8 %v733_v17  ;;  %3794 = vmatmul.bf16.vlgmr.msra.gmra.mxu3 %v8096_v40  ;;  %v745_v17 = vld [vmem:[%s8030_s30 + $0x3c8] sm:$0xff] }
 0x164   : > { %3828 = vmatpush.bf16.msrb.mxu2 %v3149_v57  ;;  %v2273_v1 = vcvt.s32.f32 %v1249_v59  ;;  %v2277_v3 = vcvt.s32.f32 %v1253_v60  ;;  %v1377_v6 = vunpack.c.0.s8 %v749_v28  ;;  %v1381_v8 = vunpack.c.1.s8 %v749_v28  ;;  %v693_v57 = vld [vmem:[%s8030_s30 + $0x228] sm:$0xff] }
 0x165   : > { %3842 = vmatpush.bf16.msrb.mxu3 %v3181_v62  ;;  %v3081_v14 = vpack.c.bf16 %v2213_v0, %v2209_v58  ;;  %v2337_v19 = vcvt.s32.f32 %v1313_v63  ;;  %v2341_v22 = vcvt.s32.f32 %v1317_v2  ;;  %v1177_v7 = vunpack.c.2.s8 %v697_v61 }
 0x166   : > { %v3113_v25 = vpack.c.bf16 %v2277_v3, %v2273_v1  ;;  %v2401_v26 = vcvt.s32.f32 %v1377_v6  ;;  %v2405_v27 = vcvt.s32.f32 %v1381_v8  ;;  %v1181_v29 = vunpack.c.3.s8 %v697_v61 }
 0x167   : > { %3801 = vmatpush.bf16.msrb.mxu0 %v3081_v14  ;;  %v3145_v16 = vpack.c.bf16 %v2341_v22, %v2337_v19  ;;  %v2201_v30 = vcvt.s32.f32 %v1177_v7  ;;  %v1241_v32 = vunpack.c.2.s8 %v713_v4  ;;  %v1245_v24 = vunpack.c.3.s8 %v713_v4 }
 0x168   : > { %3815 = vmatpush.bf16.msrb.mxu1 %v3113_v25  ;;  %v3177_v35 = vpack.c.bf16 %v2405_v27, %v2401_v26  ;;  %v2205_v28 = vcvt.s32.f32 %v1181_v29  ;;  %v1305_v37 = vunpack.c.2.s8 %v729_v23  ;;  %v1309_v31 = vunpack.c.3.s8 %v729_v23  ;;  %v741_v26 = vld [vmem:[%s8030_s30 + $0x3a8] sm:$0xff] }
 0x169   : > { %3829 = vmatpush.bf16.msrb.mxu2 %v3145_v16  ;;  %v2265_v41 = vcvt.s32.f32 %v1241_v32  ;;  %v2269_v36 = vcvt.s32.f32 %v1245_v24  ;;  %v1369_v33 = vunpack.c.2.s8 %v745_v17  ;;  %v1373_v45 = vunpack.c.3.s8 %v745_v17 }
 0x16a   : > { %3843 = vmatpush.bf16.msrb.mxu3 %v3177_v35  ;;  %v3077_v47 = vpack.c.bf16 %v2205_v28, %v2201_v30  ;;  %v2329_v46 = vcvt.s32.f32 %v1305_v37  ;;  %v2333_v48 = vcvt.s32.f32 %v1309_v31  ;;  %v1169_v50 = vunpack.c.0.s8 %v697_v61 }
 0x16b   : > { %v3109_v53 = vpack.c.bf16 %v2269_v36, %v2265_v41  ;;  %v2393_v51 = vcvt.s32.f32 %v1369_v33  ;;  %v2397_v52 = vcvt.s32.f32 %v1373_v45  ;;  %v1173_v54 = vunpack.c.1.s8 %v697_v61  ;;  %v709_v61 = vld [vmem:[%s8030_s30 + $0x2a8] sm:$0xff] }
 0x16c   : > { %3802 = vmatpush.bf16.msrb.mxu0 %v3077_v47  ;;  %v3141_v44 = vpack.c.bf16 %v2333_v48, %v2329_v46  ;;  %v2193_v49 = vcvt.s32.f32 %v1169_v50  ;;  %v1233_v55 = vunpack.c.0.s8 %v713_v4  ;;  %v1237_v56 = vunpack.c.1.s8 %v713_v4  ;;  %v725_v4 = vld [vmem:[%s8030_s30 + $0x328] sm:$0xff] }
 0x16d   : > { %3816 = vmatpush.bf16.msrb.mxu1 %v3109_v53  ;;  %v3173_v58 = vpack.c.bf16 %v2397_v52, %v2393_v51  ;;  %v2197_v59 = vcvt.s32.f32 %v1173_v54  ;;  %v1297_v60 = vunpack.c.0.s8 %v729_v23  ;;  %v1301_v62 = vunpack.c.1.s8 %v729_v23 }
 0x16e   : > { %3830 = vmatpush.bf16.msrb.mxu2 %v3141_v44  ;;  %v2257_v0 = vcvt.s32.f32 %v1233_v55  ;;  %v2261_v63 = vcvt.s32.f32 %v1237_v56  ;;  %v1361_v2 = vunpack.c.0.s8 %v745_v17  ;;  %v1365_v1 = vunpack.c.1.s8 %v745_v17  ;;  %v689_v44 = vld [vmem:[%s8030_s30 + $0x208] sm:$0xff] }
 0x16f   : > { %3844 = vmatpush.bf16.msrb.mxu3 %v3173_v58  ;;  %v3073_v3 = vpack.c.bf16 %v2197_v59, %v2193_v49  ;;  %v2321_v6 = vcvt.s32.f32 %v1297_v60  ;;  %v2325_v8 = vcvt.s32.f32 %v1301_v62  ;;  %v1161_v14 = vunpack.c.2.s8 %v693_v57 }
 0x170   : > { %v3105_v19 = vpack.c.bf16 %v2261_v63, %v2257_v0  ;;  %v2385_v22 = vcvt.s32.f32 %v1361_v2  ;;  %v2389_v7 = vcvt.s32.f32 %v1365_v1  ;;  %v1165_v25 = vunpack.c.3.s8 %v693_v57 }
 0x171   : > { %3803 = vmatpush.bf16.msrb.mxu0 %v3073_v3  ;;  %v3137_v23 = vpack.c.bf16 %v2325_v8, %v2321_v6  ;;  %v2185_v27 = vcvt.s32.f32 %v1161_v14  ;;  %v1225_v29 = vunpack.c.2.s8 %v709_v61  ;;  %v1229_v16 = vunpack.c.3.s8 %v709_v61 }
 0x172   : > { %3817 = vmatpush.bf16.msrb.mxu1 %v3105_v19  ;;  %v3169_v30 = vpack.c.bf16 %v2389_v7, %v2385_v22  ;;  %v2189_v17 = vcvt.s32.f32 %v1165_v25  ;;  %v1289_v32 = vunpack.c.2.s8 %v725_v4  ;;  %v1293_v24 = vunpack.c.3.s8 %v725_v4  ;;  %v737_v22 = vld [vmem:[%s8030_s30 + $0x388] sm:$0xff] }
 0x173   : > { %3831 = vmatpush.bf16.msrb.mxu2 %v3137_v23  ;;  %v2249_v35 = vcvt.s32.f32 %v1225_v29  ;;  %v2253_v28 = vcvt.s32.f32 %v1229_v16  ;;  %v1353_v37 = vunpack.c.2.s8 %v741_v26  ;;  %v1357_v31 = vunpack.c.3.s8 %v741_v26 }
 0x174   : > { %3845 = vmatpush.bf16.msrb.mxu3 %v3169_v30  ;;  %v3069_v41 = vpack.c.bf16 %v2189_v17, %v2185_v27  ;;  %v2313_v36 = vcvt.s32.f32 %v1289_v32  ;;  %v2317_v33 = vcvt.s32.f32 %v1293_v24  ;;  %v1153_v45 = vunpack.c.0.s8 %v693_v57  ;;  %v3529_v30 = vpop.f32.mrf.mxu0 }
 0x175   : > { %v3101_v47 = vpack.c.bf16 %v2253_v28, %v2249_v35  ;;  %v2377_v46 = vcvt.s32.f32 %v1353_v37  ;;  %v2381_v48 = vcvt.s32.f32 %v1357_v31  ;;  %v1157_v50 = vunpack.c.1.s8 %v693_v57  ;;  %v705_v57 = vld [vmem:[%s8030_s30 + $0x288] sm:$0xff]  ;;  %v3543_v28 = vpop.f32.mrf.mxu1 }
 0x176   : > { %3804 = vmatpush.bf16.msrb.mxu0 %v3069_v41  ;;  %v3133_v53 = vpack.c.bf16 %v2317_v33, %v2313_v36  ;;  %v2177_v51 = vcvt.s32.f32 %v1153_v45  ;;  %v1217_v52 = vunpack.c.0.s8 %v709_v61  ;;  %v1221_v54 = vunpack.c.1.s8 %v709_v61  ;;  %v721_v61 = vld [vmem:[%s8030_s30 + $0x308] sm:$0xff] }
 0x177   : > { %3818 = vmatpush.bf16.msrb.mxu1 %v3101_v47  ;;  %v3165_v49 = vpack.c.bf16 %v2381_v48, %v2377_v46  ;;  %v2181_v55 = vcvt.s32.f32 %v1157_v50  ;;  %v1281_v56 = vunpack.c.0.s8 %v725_v4  ;;  %v1285_v58 = vunpack.c.1.s8 %v725_v4 }
 0x178   : > { %3832 = vmatpush.bf16.msrb.mxu2 %v3133_v53  ;;  %v2241_v59 = vcvt.s32.f32 %v1217_v52  ;;  %v2245_v60 = vcvt.s32.f32 %v1221_v54  ;;  %v1345_v62 = vunpack.c.0.s8 %v741_v26  ;;  %v1349_v0 = vunpack.c.1.s8 %v741_v26  ;;  %v8285_v52 = vld [vmem:[%s8030_s30 + $0x468] sm:$0xff] }
 0x179   : > { %3846 = vmatpush.bf16.msrb.mxu3 %v3165_v49  ;;  %v3065_v63 = vpack.c.bf16 %v2181_v55, %v2177_v51  ;;  %v2305_v2 = vcvt.s32.f32 %v1281_v56  ;;  %v2309_v1 = vcvt.s32.f32 %v1285_v58  ;;  %v1145_v3 = vunpack.c.2.s8 %v689_v44 }
 0x17a   : > { %v3097_v6 = vpack.c.bf16 %v2245_v60, %v2241_v59  ;;  %v2369_v8 = vcvt.s32.f32 %v1345_v62  ;;  %v2373_v14 = vcvt.s32.f32 %v1349_v0  ;;  %v1149_v19 = vunpack.c.3.s8 %v689_v44  ;;  %v781_v0 = vld [vmem:[%s8030_s30 + $0x4e8] sm:$0xff] }
 0x17b   : > { %3805 = vmatpush.bf16.msrb.mxu0 %v3065_v63  ;;  %v3129_v4 = vpack.c.bf16 %v2309_v1, %v2305_v2  ;;  %v2169_v7 = vcvt.s32.f32 %v1145_v3  ;;  %v1209_v25 = vunpack.c.2.s8 %v705_v57  ;;  %v1213_v23 = vunpack.c.3.s8 %v705_v57  ;;  %v797_v1 = vld [vmem:[%s8030_s30 + $0x568] sm:$0xff] }
 0x17c   : > { %3819 = vmatpush.bf16.msrb.mxu1 %v3097_v6  ;;  %v3161_v27 = vpack.c.bf16 %v2373_v14, %v2369_v8  ;;  %v2173_v26 = vcvt.s32.f32 %v1149_v19  ;;  %v1273_v29 = vunpack.c.2.s8 %v721_v61  ;;  %v1277_v16 = vunpack.c.3.s8 %v721_v61 }
 0x17d   : > { %3833 = vmatpush.bf16.msrb.mxu2 %v3129_v4  ;;  %v2233_v17 = vcvt.s32.f32 %v1209_v25  ;;  %v2237_v32 = vcvt.s32.f32 %v1213_v23  ;;  %v1337_v24 = vunpack.c.2.s8 %v737_v22  ;;  %v1341_v35 = vunpack.c.3.s8 %v737_v22 }
 0x17e   : > { %3847 = vmatpush.bf16.msrb.mxu3 %v3161_v27  ;;  %v3061_v37 = vpack.c.bf16 %v2173_v26, %v2169_v7  ;;  %v2297_v31 = vcvt.s32.f32 %v1273_v29  ;;  %v2301_v41 = vcvt.s32.f32 %v1277_v16  ;;  %v3544_v36 = vadd.f32 %v3543_v28, %v3529_v30 }
 0x17f   : > { %v3093_v33 = vpack.c.bf16 %v2237_v32, %v2233_v17  ;;  %v2361_v45 = vcvt.s32.f32 %v1337_v24  ;;  %v2365_v47 = vcvt.s32.f32 %v1341_v35  ;;  %v1137_v46 = vunpack.c.0.s8 %v689_v44 }
 0x180   : > { %3806 = vmatpush.bf16.msrb.mxu0 %v3061_v37  ;;  %v3125_v48 = vpack.c.bf16 %v2301_v41, %v2297_v31  ;;  %v1141_v50 = vunpack.c.1.s8 %v689_v44  ;;  %v1201_v53 = vunpack.c.0.s8 %v705_v57  ;;  %v1205_v51 = vunpack.c.1.s8 %v705_v57  ;;  %v3557_v37 = vpop.f32.mrf.mxu2 }
 0x181   : > { %3820 = vmatpush.bf16.msrb.mxu1 %v3093_v33  ;;  %v3157_v54 = vpack.c.bf16 %v2365_v47, %v2361_v45  ;;  %v2161_v49 = vcvt.s32.f32 %v1137_v46  ;;  %v1265_v55 = vunpack.c.0.s8 %v721_v61  ;;  %v1269_v56 = vunpack.c.1.s8 %v721_v61  ;;  %v813_v61 = vld [vmem:[%s8030_s30 + $0x5e8] sm:$0xff]  ;;  %v8293_v45 = vpop.f32.mrf.mxu0 }
 0x182   : > { %3834 = vmatpush.bf16.msrb.mxu2 %v3125_v48  ;;  %v2165_v58 = vcvt.s32.f32 %v1141_v50  ;;  %v2225_v59 = vcvt.s32.f32 %v1201_v53  ;;  %v2229_v60 = vcvt.s32.f32 %v1205_v51  ;;  %v1329_v62 = vunpack.c.0.s8 %v737_v22  ;;  %v3571_v50 = vpop.f32.mrf.mxu3 }
 0x183   : > { %3848 = vmatpush.bf16.msrb.mxu3 %v3157_v54  ;;  %v2289_v63 = vcvt.s32.f32 %v1265_v55  ;;  %v2293_v44 = vcvt.s32.f32 %v1269_v56  ;;  %v1333_v2 = vunpack.c.1.s8 %v737_v22  ;;  %v1449_v57 = vunpack.c.2.s8 %v8285_v52  ;;  %v761_v56 = vld [vmem:[%s8030_s30 + $0x448] sm:$0xff] }
 0x184   : > { %v3057_v3 = vpack.c.bf16 %v2165_v58, %v2161_v49  ;;  %v3089_v6 = vpack.c.bf16 %v2229_v60, %v2225_v59  ;;  %v2353_v8 = vcvt.s32.f32 %v1329_v62  ;;  %v1453_v14 = vunpack.c.3.s8 %v8285_v52 }
 0x185   : > { %v3121_v19 = vpack.c.bf16 %v2293_v44, %v2289_v63  ;;  %v2357_v4 = vcvt.s32.f32 %v1333_v2  ;;  %v2473_v7 = vcvt.s32.f32 %v1449_v57  ;;  %v1513_v25 = vunpack.c.2.s8 %v781_v0  ;;  %v777_v2 = vld [vmem:[%s8030_s30 + $0x4c8] sm:$0xff] }
 0x186   : > { %3807 = vmatpush.bf16.msrb.mxu0 %v3057_v3  ;;  %3821 = vmatpush.bf16.msrb.mxu1 %v3089_v6  ;;  %v2477_v23 = vcvt.s32.f32 %v1453_v14  ;;  %v1517_v27 = vunpack.c.3.s8 %v781_v0  ;;  %v1577_v26 = vunpack.c.2.s8 %v797_v1  ;;  %v1581_v29 = vunpack.c.3.s8 %v797_v1  ;;  %v793_v14 = vld [vmem:[%s8030_s30 + $0x548] sm:$0xff] }
 0x187   : > { %3835 = vmatpush.bf16.msrb.mxu2 %v3121_v19  ;;  %v3153_v22 = vpack.c.bf16 %v2357_v4, %v2353_v8  ;;  %v2537_v16 = vcvt.s32.f32 %v1513_v25  ;;  %v1641_v30 = vunpack.c.2.s8 %v813_v61  ;;  %v1645_v17 = vunpack.c.3.s8 %v813_v61 }
 0x188   : > { %v3213_v32 = vpack.c.bf16 %v2477_v23, %v2473_v7  ;;  %v2541_v24 = vcvt.s32.f32 %v1517_v27  ;;  %v2601_v35 = vcvt.s32.f32 %v1577_v26  ;;  %v2605_v28 = vcvt.s32.f32 %v1581_v29 }
 0x189   : > { %3849 = vmatpush.bf16.msrb.mxu3 %v3153_v22  ;;  %v2665_v31 = vcvt.s32.f32 %v1641_v30  ;;  %v2669_v41 = vcvt.s32.f32 %v1645_v17  ;;  %v3558_v33 = vadd.f32 %v3557_v37, %v3544_v36  ;;  %3808 = vmatmul.bf16.vlgmr.msrb.gmra.mxu0 %v8128_v13  ;;  %v1441_v47 = vunpack.c.0.s8 %v8285_v52 }
 0x18a   : > { %3856 = vmatpush.bf16.msra.mxu0 %v3213_v32  ;;  %v3245_v46 = vpack.c.bf16 %v2541_v24, %v2537_v16  ;;  %v3277_v48 = vpack.c.bf16 %v2605_v28, %v2601_v35  ;;  %3836 = vmatmul.bf16.vlgmr.msrb.gmra.mxu2 %v8130_v18  ;;  %v1445_v53 = vunpack.c.1.s8 %v8285_v52  ;;  %v1505_v51 = vunpack.c.0.s8 %v781_v0 }
 0x18b   : > { %v3309_v54 = vpack.c.bf16 %v2669_v41, %v2665_v31  ;;  %v3572_v49 = vadd.f32 %v3571_v50, %v3558_v33  ;;  %3822 = vmatmul.bf16.vlgmr.msrb.gmra.mxu1 %v8132_v20  ;;  %v2465_v36 = vcvt.s32.f32 %v1441_v47  ;;  %v1509_v55 = vunpack.c.1.s8 %v781_v0  ;;  %v8302_v0 = vpop.f32.mrf.mxu1  ;;  %v8306_v41 = vpop.f32.mrf.mxu2 }
 0x18c   : > { %3870 = vmatpush.bf16.msra.mxu1 %v3245_v46  ;;  %3884 = vmatpush.bf16.msra.mxu2 %v3277_v48  ;;  %v2469_v58 = vcvt.s32.f32 %v1445_v53  ;;  %v2529_v59 = vcvt.s32.f32 %v1505_v51  ;;  %v1569_v60 = vunpack.c.0.s8 %v797_v1  ;;  %v1573_v62 = vunpack.c.1.s8 %v797_v1  ;;  %v809_v1 = vld [vmem:[%s8030_s30 + $0x5c8] sm:$0xff]  ;;  %v3585_v33 = vpop.f32.mrf.mxu0  ;;  %v8308_v51 = vpop.f32.mrf.mxu3 }
 0x18d   : > { %3898 = vmatpush.bf16.msra.mxu3 %v3309_v54  ;;  %v2533_v63 = vcvt.s32.f32 %v1509_v55  ;;  %v1633_v52 = vunpack.c.0.s8 %v813_v61  ;;  %v1637_v44 = vunpack.c.1.s8 %v813_v61  ;;  %v1433_v8 = vunpack.c.2.s8 %v761_v56 }
 0x18e   : > { %3850 = vmatmul.bf16.vlgmr.msrb.gmra.mxu3 %v8134_v21  ;;  %v3209_v57 = vpack.c.bf16 %v2469_v58, %v2465_v36  ;;  %v2593_v3 = vcvt.s32.f32 %v1569_v60  ;;  %v2597_v6 = vcvt.s32.f32 %v1573_v62  ;;  %v1437_v25 = vunpack.c.3.s8 %v761_v56 }
 0x18f   : > { %v3241_v19 = vpack.c.bf16 %v2533_v63, %v2529_v59  ;;  %v2657_v4 = vcvt.s32.f32 %v1633_v52  ;;  %v2661_v7 = vcvt.s32.f32 %v1637_v44  ;;  %v2457_v27 = vcvt.s32.f32 %v1433_v8 }
 0x190   : > { %3857 = vmatpush.bf16.msra.mxu0 %v3209_v57  ;;  %v3273_v23 = vpack.c.bf16 %v2597_v6, %v2593_v3  ;;  %v1497_v26 = vunpack.c.2.s8 %v777_v2  ;;  %v1501_v61 = vunpack.c.3.s8 %v777_v2  ;;  %v2461_v22 = vcvt.s32.f32 %v1437_v25 }
 0x191   : > { %3871 = vmatpush.bf16.msra.mxu1 %v3241_v19  ;;  %v3305_v29 = vpack.c.bf16 %v2661_v7, %v2657_v4  ;;  %v1561_v16 = vunpack.c.2.s8 %v793_v14  ;;  %v1565_v30 = vunpack.c.3.s8 %v793_v14  ;;  %v1625_v24 = vunpack.c.2.s8 %v809_v1  ;;  %v773_v19 = vld [vmem:[%s8030_s30 + $0x4a8] sm:$0xff] }
 0x192   : > { %3885 = vmatpush.bf16.msra.mxu2 %v3273_v23  ;;  %v2521_v17 = vcvt.s32.f32 %v1497_v26  ;;  %v2525_v32 = vcvt.s32.f32 %v1501_v61  ;;  %v1629_v35 = vunpack.c.3.s8 %v809_v1  ;;  %v3205_v28 = vpack.c.bf16 %v2461_v22, %v2457_v27  ;;  %v789_v4 = vld [vmem:[%s8030_s30 + $0x528] sm:$0xff] }
 0x193   : > { %3899 = vmatpush.bf16.msra.mxu3 %v3305_v29  ;;  %v2585_v37 = vcvt.s32.f32 %v1561_v16  ;;  %v2589_v31 = vcvt.s32.f32 %v1565_v30  ;;  %v2649_v46 = vcvt.s32.f32 %v1625_v24  ;;  %v3586_v50 = vadd.f32 %v3585_v33, %v3572_v49  ;;  %v757_v49 = vld [vmem:[%s8030_s30 + $0x428] sm:$0xff] }
 0x194   : > { %v3237_v47 = vpack.c.bf16 %v2525_v32, %v2521_v17  ;;  %v2653_v48 = vcvt.s32.f32 %v1629_v35  ;;  %3858 = vmatpush.bf16.msra.mxu0 %v3205_v28  ;;  %v1425_v54 = vunpack.c.0.s8 %v761_v56  ;;  %v1429_v36 = vunpack.c.1.s8 %v761_v56  ;;  %v3599_v56 = vpop.f32.mrf.mxu1 }
 0x195   : > { %v3269_v53 = vpack.c.bf16 %v2589_v31, %v2585_v37  ;;  %v1489_v58 = vunpack.c.0.s8 %v777_v2  ;;  %v1493_v59 = vunpack.c.1.s8 %v777_v2  ;;  %v1553_v60 = vunpack.c.0.s8 %v793_v14 }
 0x196   : > { %3872 = vmatpush.bf16.msra.mxu1 %v3237_v47  ;;  %v3301_v55 = vpack.c.bf16 %v2653_v48, %v2649_v46  ;;  %v2449_v62 = vcvt.s32.f32 %v1425_v54  ;;  %v2453_v63 = vcvt.s32.f32 %v1429_v36  ;;  %v1557_v52 = vunpack.c.1.s8 %v793_v14  ;;  %v805_v14 = vld [vmem:[%s8030_s30 + $0x5a8] sm:$0xff]  ;;  %v3613_v47 = vpop.f32.mrf.mxu2 }
 0x197   : > { %3886 = vmatpush.bf16.msra.mxu2 %v3269_v53  ;;  %v1617_v44 = vunpack.c.0.s8 %v809_v1  ;;  %v2513_v57 = vcvt.s32.f32 %v1489_v58  ;;  %v2517_v3 = vcvt.s32.f32 %v1493_v59  ;;  %v2577_v6 = vcvt.s32.f32 %v1553_v60 }
 0x198   : > { %3900 = vmatpush.bf16.msra.mxu3 %v3301_v55  ;;  %v1621_v8 = vunpack.c.1.s8 %v809_v1  ;;  %v3201_v7 = vpack.c.bf16 %v2453_v63, %v2449_v62  ;;  %v2581_v25 = vcvt.s32.f32 %v1557_v52  ;;  %v3600_v2 = vadd.f32 %v3599_v56, %v3586_v50  ;;  %v3627_v55 = vpop.f32.mrf.mxu3 }
 0x199   : > { %v2641_v23 = vcvt.s32.f32 %v1617_v44  ;;  %v3233_v27 = vpack.c.bf16 %v2517_v3, %v2513_v57  ;;  %v1417_v61 = vunpack.c.2.s8 %v757_v49  ;;  %v1421_v29 = vunpack.c.3.s8 %v757_v49 }
 0x19a   : > { %v2645_v26 = vcvt.s32.f32 %v1621_v8  ;;  %3859 = vmatpush.bf16.msra.mxu0 %v3201_v7  ;;  %v3265_v22 = vpack.c.bf16 %v2581_v25, %v2577_v6  ;;  %v1481_v16 = vunpack.c.2.s8 %v773_v19  ;;  %v1485_v30 = vunpack.c.3.s8 %v773_v19  ;;  %v753_v25 = vld [vmem:[%s8030_s30 + $0x408] sm:$0xff] }
 0x19b   : > { %v1545_v17 = vunpack.c.2.s8 %v789_v4  ;;  %3873 = vmatpush.bf16.msra.mxu1 %v3233_v27  ;;  %v2441_v1 = vcvt.s32.f32 %v1417_v61  ;;  %v2445_v24 = vcvt.s32.f32 %v1421_v29  ;;  %v1549_v35 = vunpack.c.3.s8 %v789_v4  ;;  %v769_v61 = vld [vmem:[%s8030_s30 + $0x488] sm:$0xff] }
 0x19c   : > { %v3297_v32 = vpack.c.bf16 %v2645_v26, %v2641_v23  ;;  %3887 = vmatpush.bf16.msra.mxu2 %v3265_v22  ;;  %v2505_v28 = vcvt.s32.f32 %v1481_v16  ;;  %v2509_v37 = vcvt.s32.f32 %v1485_v30  ;;  %v1609_v33 = vunpack.c.2.s8 %v805_v14 }
 0x19d   : > { %v2569_v31 = vcvt.s32.f32 %v1545_v17  ;;  %v3197_v46 = vpack.c.bf16 %v2445_v24, %v2441_v1  ;;  %v2573_v48 = vcvt.s32.f32 %v1549_v35  ;;  %v1613_v50 = vunpack.c.3.s8 %v805_v14  ;;  %v801_v1 = vld [vmem:[%s8030_s30 + $0x588] sm:$0xff] }
 0x19e   : > { %3901 = vmatpush.bf16.msra.mxu3 %v3297_v32  ;;  %v3614_v53 = vadd.f32 %v3613_v47, %v3600_v2  ;;  %v3229_v54 = vpack.c.bf16 %v2509_v37, %v2505_v28  ;;  %v2633_v36 = vcvt.s32.f32 %v1609_v33  ;;  %v1409_v58 = vunpack.c.0.s8 %v757_v49 }
 0x19f   : > { %3860 = vmatpush.bf16.msra.mxu0 %v3197_v46  ;;  %v3261_v59 = vpack.c.bf16 %v2573_v48, %v2569_v31  ;;  %v2637_v60 = vcvt.s32.f32 %v1613_v50  ;;  %v1413_v63 = vunpack.c.1.s8 %v757_v49  ;;  %v1473_v44 = vunpack.c.0.s8 %v773_v19  ;;  %v785_v49 = vld [vmem:[%s8030_s30 + $0x508] sm:$0xff] }
 0x1a0   : > { %v8314_v62 = vadd.f32 %v3627_v55, %v3614_v53  ;;  %3874 = vmatpush.bf16.msra.mxu1 %v3229_v54  ;;  %v2433_v52 = vcvt.s32.f32 %v1409_v58  ;;  %v1477_v57 = vunpack.c.1.s8 %v773_v19  ;;  %v1537_v3 = vunpack.c.0.s8 %v789_v4 }
 0x1a1   : > { %3888 = vmatpush.bf16.msra.mxu2 %v3261_v59  ;;  %v3293_v6 = vpack.c.bf16 %v2637_v60, %v2633_v36  ;;  %v2437_v8 = vcvt.s32.f32 %v1413_v63  ;;  %v1541_v56 = vunpack.c.1.s8 %v789_v4  ;;  %v1601_v7 = vunpack.c.0.s8 %v805_v14 }
 0x1a2   : > { %v2497_v23 = vcvt.s32.f32 %v1473_v44  ;;  %v2501_v2 = vcvt.s32.f32 %v1477_v57  ;;  %v2561_v27 = vcvt.s32.f32 %v1537_v3  ;;  %v1605_v26 = vunpack.c.1.s8 %v805_v14 }
 0x1a3   : > { %3902 = vmatpush.bf16.msra.mxu3 %v3293_v6  ;;  %v3193_v29 = vpack.c.bf16 %v2437_v8, %v2433_v52  ;;  %v2565_v22 = vcvt.s32.f32 %v1541_v56  ;;  %v2625_v16 = vcvt.s32.f32 %v1601_v7  ;;  %v1401_v17 = vunpack.c.2.s8 %v753_v25  ;;  %v829_v56 = vld [vmem:[%s8030_s30 + $0x668] sm:$0xff] }
 0x1a4   : > { %v3225_v30 = vpack.c.bf16 %v2501_v2, %v2497_v23  ;;  %v2629_v19 = vcvt.s32.f32 %v1605_v26  ;;  %v1405_v32 = vunpack.c.3.s8 %v753_v25  ;;  %v1465_v24 = vunpack.c.2.s8 %v769_v61  ;;  %v845_v26 = vld [vmem:[%s8030_s30 + $0x6e8] sm:$0xff] }
 0x1a5   : > { %3861 = vmatpush.bf16.msra.mxu0 %v3193_v29  ;;  %v3257_v4 = vpack.c.bf16 %v2565_v22, %v2561_v27  ;;  %v1469_v35 = vunpack.c.3.s8 %v769_v61  ;;  %v1529_v28 = vunpack.c.2.s8 %v785_v49  ;;  %v2425_v31 = vcvt.s32.f32 %v1401_v17 }
 0x1a6   : > { %3875 = vmatpush.bf16.msra.mxu1 %v3225_v30  ;;  %v3289_v37 = vpack.c.bf16 %v2629_v19, %v2625_v16  ;;  %v2429_v14 = vcvt.s32.f32 %v1405_v32  ;;  %v1533_v33 = vunpack.c.3.s8 %v785_v49  ;;  %v2489_v47 = vcvt.s32.f32 %v1465_v24  ;;  %v861_v30 = vld [vmem:[%s8030_s30 + $0x768] sm:$0xff] }
 0x1a7   : > { %3889 = vmatpush.bf16.msra.mxu2 %v3257_v4  ;;  %v2493_v46 = vcvt.s32.f32 %v1469_v35  ;;  %v2553_v48 = vcvt.s32.f32 %v1529_v28  ;;  %v1593_v50 = vunpack.c.2.s8 %v801_v1  ;;  %v1597_v36 = vunpack.c.3.s8 %v801_v1 }
 0x1a8   : > { %3903 = vmatpush.bf16.msra.mxu3 %v3289_v37  ;;  %v3189_v53 = vpack.c.bf16 %v2429_v14, %v2425_v31  ;;  %v2557_v54 = vcvt.s32.f32 %v1533_v33  ;;  %v1393_v59 = vunpack.c.0.s8 %v753_v25  ;;  %v1397_v60 = vunpack.c.1.s8 %v753_v25  ;;  %v877_v37 = vld [vmem:[%s8030_s30 + $0x7e8] sm:$0xff] }
 0x1a9   : > { %v3221_v55 = vpack.c.bf16 %v2493_v46, %v2489_v47  ;;  %v2617_v58 = vcvt.s32.f32 %v1593_v50  ;;  %v2621_v52 = vcvt.s32.f32 %v1597_v36  ;;  %v1457_v44 = vunpack.c.0.s8 %v769_v61  ;;  %v8324_v50 = vpop.f32.mrf.mxu0 }
 0x1aa   : > { %3862 = vmatpush.bf16.msra.mxu0 %v3189_v53  ;;  %v3253_v63 = vpack.c.bf16 %v2557_v54, %v2553_v48  ;;  %v2417_v57 = vcvt.s32.f32 %v1393_v59  ;;  %v2421_v3 = vcvt.s32.f32 %v1397_v60  ;;  %v1461_v6 = vunpack.c.1.s8 %v769_v61 }
 0x1ab   : > { %3876 = vmatpush.bf16.msra.mxu1 %v3221_v55  ;;  %v1521_v8 = vunpack.c.0.s8 %v785_v49  ;;  %v3285_v7 = vpack.c.bf16 %v2621_v52, %v2617_v58  ;;  %v2481_v23 = vcvt.s32.f32 %v1457_v44  ;;  %v1525_v2 = vunpack.c.1.s8 %v785_v49 }
 0x1ac   : > { %3890 = vmatpush.bf16.msra.mxu2 %v3253_v63  ;;  %v1585_v27 = vunpack.c.0.s8 %v801_v1  ;;  %v3185_v25 = vpack.c.bf16 %v2421_v3, %v2417_v57  ;;  %v2485_v29 = vcvt.s32.f32 %v1461_v6  ;;  %v1589_v16 = vunpack.c.1.s8 %v801_v1 }
 0x1ad   : > { %v2545_v22 = vcvt.s32.f32 %v1521_v8  ;;  %3904 = vmatpush.bf16.msra.mxu3 %v3285_v7  ;;  %v2549_v19 = vcvt.s32.f32 %v1525_v2  ;;  %v1705_v32 = vunpack.c.2.s8 %v829_v56  ;;  %v1709_v4 = vunpack.c.3.s8 %v829_v56  ;;  %v825_v2 = vld [vmem:[%s8030_s30 + $0x648] sm:$0xff] }
 0x1ae   : > { %v2609_v17 = vcvt.s32.f32 %v1585_v27  ;;  %3863 = vmatpush.bf16.msra.mxu0 %v3185_v25  ;;  %v3217_v61 = vpack.c.bf16 %v2485_v29, %v2481_v23  ;;  %v2613_v24 = vcvt.s32.f32 %v1589_v16  ;;  %v1769_v35 = vunpack.c.2.s8 %v845_v26  ;;  %v8332_v16 = vpop.f32.mrf.mxu1 }
 0x1af   : > { %v1773_v28 = vunpack.c.3.s8 %v845_v26  ;;  %v3249_v49 = vpack.c.bf16 %v2549_v19, %v2545_v22  ;;  %v2729_v31 = vcvt.s32.f32 %v1705_v32  ;;  %v2733_v14 = vcvt.s32.f32 %v1709_v4  ;;  %v841_v22 = vld [vmem:[%s8030_s30 + $0x6c8] sm:$0xff] }
 0x1b0   : > { %v1833_v33 = vunpack.c.2.s8 %v861_v30  ;;  %3877 = vmatpush.bf16.msra.mxu1 %v3217_v61  ;;  %v3281_v47 = vpack.c.bf16 %v2613_v24, %v2609_v17  ;;  %v2793_v46 = vcvt.s32.f32 %v1769_v35  ;;  %v1837_v48 = vunpack.c.3.s8 %v861_v30  ;;  %v857_v4 = vld [vmem:[%s8030_s30 + $0x748] sm:$0xff] }
 0x1b1   : > { %v2797_v1 = vcvt.s32.f32 %v1773_v28  ;;  %3891 = vmatpush.bf16.msra.mxu2 %v3249_v49  ;;  %v3341_v53 = vpack.c.bf16 %v2733_v14, %v2729_v31  ;;  %v1897_v36 = vunpack.c.2.s8 %v877_v37  ;;  %v1901_v55 = vunpack.c.3.s8 %v877_v37  ;;  %3864 = vmatmul.bf16.vlgmr.msra.gmra.mxu0 %v8180_v34 }
 0x1b2   : > { %v2857_v54 = vcvt.s32.f32 %v1833_v33  ;;  %3905 = vmatpush.bf16.msra.mxu3 %v3281_v47  ;;  %v2861_v59 = vcvt.s32.f32 %v1837_v48  ;;  %v1697_v60 = vunpack.c.0.s8 %v829_v56  ;;  %v1701_v63 = vunpack.c.1.s8 %v829_v56  ;;  %v873_v33 = vld [vmem:[%s8030_s30 + $0x7c8] sm:$0xff] }
 0x1b3   : > { %v3373_v58 = vpack.c.bf16 %v2797_v1, %v2793_v46  ;;  %3912 = vmatpush.bf16.msrb.mxu0 %v3341_v53  ;;  %v2921_v52 = vcvt.s32.f32 %v1897_v36  ;;  %v2925_v44 = vcvt.s32.f32 %v1901_v55  ;;  %3878 = vmatmul.bf16.vlgmr.msra.gmra.mxu1 %v8184_v42  ;;  %v1761_v57 = vunpack.c.0.s8 %v845_v26  ;;  %v3641_v53 = vpop.f32.mrf.mxu0 }
 0x1b4   : > { %v1765_v3 = vunpack.c.1.s8 %v845_v26  ;;  %v3405_v6 = vpack.c.bf16 %v2861_v59, %v2857_v54  ;;  %3892 = vmatmul.bf16.vlgmr.msra.gmra.mxu2 %v8182_v38  ;;  %v2721_v8 = vcvt.s32.f32 %v1697_v60  ;;  %v2725_v7 = vcvt.s32.f32 %v1701_v63 }
 0x1b5   : > { %3926 = vmatpush.bf16.msrb.mxu1 %v3373_v58  ;;  %v1825_v23 = vunpack.c.0.s8 %v861_v30  ;;  %v3437_v27 = vpack.c.bf16 %v2925_v44, %v2921_v52  ;;  %3906 = vmatmul.bf16.vlgmr.msra.gmra.mxu3 %v8186_v43  ;;  %v2785_v56 = vcvt.s32.f32 %v1761_v57  ;;  %v1829_v29 = vunpack.c.1.s8 %v861_v30  ;;  %v8336_v58 = vpop.f32.mrf.mxu2 }
 0x1b6   : > { %v2789_v25 = vcvt.s32.f32 %v1765_v3  ;;  %3940 = vmatpush.bf16.msrb.mxu2 %v3405_v6  ;;  %v3337_v26 = vpack.c.bf16 %v2725_v7, %v2721_v8  ;;  %v1889_v17 = vunpack.c.0.s8 %v877_v37  ;;  %v1893_v32 = vunpack.c.1.s8 %v877_v37  ;;  %v8339_v8 = vpop.f32.mrf.mxu3 }
 0x1b7   : > { %v2849_v19 = vcvt.s32.f32 %v1825_v23  ;;  %3954 = vmatpush.bf16.msrb.mxu3 %v3437_v27  ;;  %v2853_v24 = vcvt.s32.f32 %v1829_v29  ;;  %v1689_v35 = vunpack.c.2.s8 %v825_v2  ;;  %v1693_v28 = vunpack.c.3.s8 %v825_v2 }
 0x1b8   : > { %v3369_v61 = vpack.c.bf16 %v2789_v25, %v2785_v56  ;;  %3913 = vmatpush.bf16.msrb.mxu0 %v3337_v26  ;;  %v2913_v49 = vcvt.s32.f32 %v1889_v17  ;;  %v2917_v31 = vcvt.s32.f32 %v1893_v32  ;;  %v1753_v14 = vunpack.c.2.s8 %v841_v22  ;;  %v3655_v17 = vpop.f32.mrf.mxu1  ;;  %v821_v32 = vld [vmem:[%s8030_s30 + $0x628] sm:$0xff] }
 0x1b9   : > { %v1757_v30 = vunpack.c.3.s8 %v841_v22  ;;  %v3401_v47 = vpack.c.bf16 %v2853_v24, %v2849_v19  ;;  %v2713_v46 = vcvt.s32.f32 %v1689_v35  ;;  %v2717_v1 = vcvt.s32.f32 %v1693_v28 }
 0x1ba   : > { %3927 = vmatpush.bf16.msrb.mxu1 %v3369_v61  ;;  %v1817_v48 = vunpack.c.2.s8 %v857_v4  ;;  %v3433_v54 = vpack.c.bf16 %v2917_v31, %v2913_v49  ;;  %v2777_v37 = vcvt.s32.f32 %v1753_v14  ;;  %v1821_v55 = vunpack.c.3.s8 %v857_v4  ;;  %v837_v14 = vld [vmem:[%s8030_s30 + $0x6a8] sm:$0xff] }
 0x1bb   : > { %v2781_v36 = vcvt.s32.f32 %v1757_v30  ;;  %3941 = vmatpush.bf16.msrb.mxu2 %v3401_v47  ;;  %v3333_v59 = vpack.c.bf16 %v2717_v1, %v2713_v46  ;;  %v1881_v63 = vunpack.c.2.s8 %v873_v33  ;;  %v1885_v52 = vunpack.c.3.s8 %v873_v33  ;;  %v853_v1 = vld [vmem:[%s8030_s30 + $0x728] sm:$0xff] }
 0x1bc   : > { %v2841_v60 = vcvt.s32.f32 %v1817_v48  ;;  %3955 = vmatpush.bf16.msrb.mxu3 %v3433_v54  ;;  %v2845_v57 = vcvt.s32.f32 %v1821_v55  ;;  %v3642_v3 = vadd.f32 %v3641_v53, %v8314_v62  ;;  %v1681_v6 = vunpack.c.0.s8 %v825_v2 }
 0x1bd   : > { %v3365_v44 = vpack.c.bf16 %v2781_v36, %v2777_v37  ;;  %3914 = vmatpush.bf16.msrb.mxu0 %v3333_v59  ;;  %v2905_v7 = vcvt.s32.f32 %v1881_v63  ;;  %v2909_v23 = vcvt.s32.f32 %v1885_v52  ;;  %v1685_v27 = vunpack.c.1.s8 %v825_v2  ;;  %v869_v36 = vld [vmem:[%s8030_s30 + $0x7a8] sm:$0xff]  ;;  %v3669_v63 = vpop.f32.mrf.mxu2 }
 0x1be   : > { %v1745_v56 = vunpack.c.0.s8 %v841_v22  ;;  %v3397_v25 = vpack.c.bf16 %v2845_v57, %v2841_v60  ;;  %v2705_v29 = vcvt.s32.f32 %v1681_v6  ;;  %v1749_v26 = vunpack.c.1.s8 %v841_v22 }
 0x1bf   : > { %3928 = vmatpush.bf16.msrb.mxu1 %v3365_v44  ;;  %v1809_v19 = vunpack.c.0.s8 %v857_v4  ;;  %v3429_v61 = vpack.c.bf16 %v2909_v23, %v2905_v7  ;;  %v2709_v24 = vcvt.s32.f32 %v1685_v27  ;;  %v1813_v35 = vunpack.c.1.s8 %v857_v4  ;;  %v3683_v27 = vpop.f32.mrf.mxu3 }
 0x1c0   : > { %v2769_v62 = vcvt.s32.f32 %v1745_v56  ;;  %3942 = vmatpush.bf16.msrb.mxu2 %v3397_v25  ;;  %v2773_v28 = vcvt.s32.f32 %v1749_v26  ;;  %v1873_v31 = vunpack.c.0.s8 %v873_v33  ;;  %v1877_v2 = vunpack.c.1.s8 %v873_v33 }
 0x1c1   : > { %v2833_v49 = vcvt.s32.f32 %v1809_v19  ;;  %3956 = vmatpush.bf16.msrb.mxu3 %v3429_v61  ;;  %v3329_v30 = vpack.c.bf16 %v2709_v24, %v2705_v29  ;;  %v2837_v47 = vcvt.s32.f32 %v1813_v35  ;;  %v3656_v46 = vadd.f32 %v3655_v17, %v3642_v3 }
 0x1c2   : > { %v1673_v22 = vunpack.c.2.s8 %v821_v32  ;;  %v3361_v48 = vpack.c.bf16 %v2773_v28, %v2769_v62  ;;  %v2897_v53 = vcvt.s32.f32 %v1873_v31  ;;  %v2901_v54 = vcvt.s32.f32 %v1877_v2 }
 0x1c3   : > { %v1677_v37 = vunpack.c.3.s8 %v821_v32  ;;  %3915 = vmatpush.bf16.msrb.mxu0 %v3329_v30  ;;  %v3393_v4 = vpack.c.bf16 %v2837_v47, %v2833_v49  ;;  %v1737_v59 = vunpack.c.2.s8 %v837_v14  ;;  %v1741_v60 = vunpack.c.3.s8 %v837_v14 }
 0x1c4   : > { %v2697_v55 = vcvt.s32.f32 %v1673_v22  ;;  %3929 = vmatpush.bf16.msrb.mxu1 %v3361_v48  ;;  %v3425_v33 = vpack.c.bf16 %v2901_v54, %v2897_v53  ;;  %v1801_v44 = vunpack.c.2.s8 %v853_v1  ;;  %v1805_v57 = vunpack.c.3.s8 %v853_v1  ;;  %v817_v53 = vld [vmem:[%s8030_s30 + $0x608] sm:$0xff] }
 0x1c5   : > { %v2701_v52 = vcvt.s32.f32 %v1677_v37  ;;  %3943 = vmatpush.bf16.msrb.mxu2 %v3393_v4  ;;  %v2761_v3 = vcvt.s32.f32 %v1737_v59  ;;  %v2765_v6 = vcvt.s32.f32 %v1741_v60  ;;  %v1865_v7 = vunpack.c.2.s8 %v869_v36  ;;  %v849_v59 = vld [vmem:[%s8030_s30 + $0x708] sm:$0xff] }
 0x1c6   : > { %v1869_v23 = vunpack.c.3.s8 %v869_v36  ;;  %3957 = vmatpush.bf16.msrb.mxu3 %v3425_v33  ;;  %v2825_v25 = vcvt.s32.f32 %v1801_v44  ;;  %v2829_v29 = vcvt.s32.f32 %v1805_v57  ;;  %v3670_v26 = vadd.f32 %v3669_v63, %v3656_v46 }
 0x1c7   : > { %v3325_v56 = vpack.c.bf16 %v2701_v52, %v2697_v55  ;;  %v3357_v19 = vpack.c.bf16 %v2765_v6, %v2761_v3  ;;  %v2889_v17 = vcvt.s32.f32 %v1865_v7  ;;  %v1665_v35 = vunpack.c.0.s8 %v821_v32  ;;  %v865_v3 = vld [vmem:[%s8030_s30 + $0x788] sm:$0xff] }
 0x1c8   : > { %v2893_v61 = vcvt.s32.f32 %v1869_v23  ;;  %v3389_v24 = vpack.c.bf16 %v2829_v29, %v2825_v25  ;;  %v8345_v62 = vadd.f32 %v3683_v27, %v3670_v26  ;;  %v1669_v28 = vunpack.c.1.s8 %v821_v32  ;;  %v833_v32 = vld [vmem:[%s8030_s30 + $0x688] sm:$0xff] }
 0x1c9   : > { %3916 = vmatpush.bf16.msrb.mxu0 %v3325_v56  ;;  %3930 = vmatpush.bf16.msrb.mxu1 %v3357_v19  ;;  %v1729_v31 = vunpack.c.0.s8 %v837_v14  ;;  %v1733_v2 = vunpack.c.1.s8 %v837_v14  ;;  %v1793_v30 = vunpack.c.0.s8 %v853_v1  ;;  %v2689_v47 = vcvt.s32.f32 %v1665_v35 }
 0x1ca   : > { %v3421_v49 = vpack.c.bf16 %v2893_v61, %v2889_v17  ;;  %3944 = vmatpush.bf16.msrb.mxu2 %v3389_v24  ;;  %v2693_v46 = vcvt.s32.f32 %v1669_v28  ;;  %v1797_v22 = vunpack.c.1.s8 %v853_v1  ;;  %v1857_v48 = vunpack.c.0.s8 %v869_v36 }
 0x1cb   : > { %v2753_v54 = vcvt.s32.f32 %v1729_v31  ;;  %v2757_v37 = vcvt.s32.f32 %v1733_v2  ;;  %v2817_v4 = vcvt.s32.f32 %v1793_v30  ;;  %v1861_v55 = vunpack.c.1.s8 %v869_v36 }
 0x1cc   : > { %3958 = vmatpush.bf16.msrb.mxu3 %v3421_v49  ;;  %v3321_v60 = vpack.c.bf16 %v2693_v46, %v2689_v47  ;;  %v2821_v63 = vcvt.s32.f32 %v1797_v22  ;;  %v2881_v33 = vcvt.s32.f32 %v1857_v48  ;;  %v1657_v44 = vunpack.c.2.s8 %v817_v53 }
 0x1cd   : > { %v3353_v52 = vpack.c.bf16 %v2757_v37, %v2753_v54  ;;  %v2885_v14 = vcvt.s32.f32 %v1861_v55  ;;  %v1661_v57 = vunpack.c.3.s8 %v817_v53  ;;  %v1721_v6 = vunpack.c.2.s8 %v833_v32  ;;  %v638_v55 = vld [vmem:[%s8030_s30 + $0x70] sm:$0xff] }
 0x1ce   : > { %3917 = vmatpush.bf16.msrb.mxu0 %v3321_v60  ;;  %v3385_v1 = vpack.c.bf16 %v2821_v63, %v2817_v4  ;;  %v1725_v7 = vunpack.c.3.s8 %v833_v32  ;;  %v1785_v23 = vunpack.c.2.s8 %v849_v59  ;;  %v2681_v56 = vcvt.s32.f32 %v1657_v44 }
 0x1cf   : > { %3931 = vmatpush.bf16.msrb.mxu1 %v3353_v52  ;;  %v3417_v27 = vpack.c.bf16 %v2885_v14, %v2881_v33  ;;  %v2685_v25 = vcvt.s32.f32 %v1661_v57  ;;  %v1789_v36 = vunpack.c.3.s8 %v849_v59  ;;  %v2745_v29 = vcvt.s32.f32 %v1721_v6  ;;  %v654_v52 = vld [vmem:[%s8030_s30 + $0xf0] sm:$0xff] }
 0x1d0   : > { %3945 = vmatpush.bf16.msrb.mxu2 %v3385_v1  ;;  %v2749_v26 = vcvt.s32.f32 %v1725_v7  ;;  %v2809_v19 = vcvt.s32.f32 %v1785_v23  ;;  %v1849_v17 = vunpack.c.2.s8 %v865_v3  ;;  %v1853_v35 = vunpack.c.3.s8 %v865_v3  ;;  %v670_v57 = vld [vmem:[%s8030_s30 + $0x170] sm:$0xff] }
 0x1d1   : > { %3959 = vmatpush.bf16.msrb.mxu3 %v3417_v27  ;;  %v3317_v61 = vpack.c.bf16 %v2685_v25, %v2681_v56  ;;  %v2813_v24 = vcvt.s32.f32 %v1789_v36  ;;  %v1649_v31 = vunpack.c.0.s8 %v817_v53  ;;  %v1653_v2 = vunpack.c.1.s8 %v817_v53  ;;  %v686_v36 = vld [vmem:[%s8030_s30 + $0x1f0] sm:$0xff] }
 0x1d2   : > { %v3349_v28 = vpack.c.bf16 %v2749_v26, %v2745_v29  ;;  %v2873_v49 = vcvt.s32.f32 %v1849_v17  ;;  %v8353_v30 = vadd.f32 %v8302_v0, %v8293_v45  ;;  %v2877_v46 = vcvt.s32.f32 %v1853_v35  ;;  %v8359_v35 = vpop.f32.mrf.mxu0 }
 0x1d3   : > { %3918 = vmatpush.bf16.msrb.mxu0 %v3317_v61  ;;  %v3381_v47 = vpack.c.bf16 %v2813_v24, %v2809_v19  ;;  %v1713_v22 = vunpack.c.0.s8 %v833_v32  ;;  %v2673_v48 = vcvt.s32.f32 %v1649_v31  ;;  %v2677_v54 = vcvt.s32.f32 %v1653_v2 }
 0x1d4   : > { %3932 = vmatpush.bf16.msrb.mxu1 %v3349_v28  ;;  %v1717_v37 = vunpack.c.1.s8 %v833_v32  ;;  %v1777_v4 = vunpack.c.0.s8 %v849_v59  ;;  %v3413_v60 = vpack.c.bf16 %v2877_v46, %v2873_v49  ;;  %v1781_v53 = vunpack.c.1.s8 %v849_v59 }
 0x1d5   : > { %3946 = vmatpush.bf16.msrb.mxu2 %v3381_v47  ;;  %v2737_v63 = vcvt.s32.f32 %v1713_v22  ;;  %v1841_v33 = vunpack.c.0.s8 %v865_v3  ;;  %v3313_v45 = vpack.c.bf16 %v2677_v54, %v2673_v48  ;;  %v1845_v44 = vunpack.c.1.s8 %v865_v3 }
 0x1d6   : > { %v2741_v0 = vcvt.s32.f32 %v1717_v37  ;;  %v2801_v14 = vcvt.s32.f32 %v1777_v4  ;;  %3960 = vmatpush.bf16.msrb.mxu3 %v3413_v60  ;;  %v2805_v1 = vcvt.s32.f32 %v1781_v53  ;;  %v938_v7 = vunpack.c.2.s8 %v638_v55 }
 0x1d7   : > { %v2865_v6 = vcvt.s32.f32 %v1841_v33  ;;  %v942_v23 = vunpack.c.3.s8 %v638_v55  ;;  %3919 = vmatpush.bf16.msrb.mxu0 %v3313_v45  ;;  %v2869_v27 = vcvt.s32.f32 %v1845_v44  ;;  %v1002_v56 = vunpack.c.2.s8 %v654_v52 }
 0x1d8   : > { %v3345_v32 = vpack.c.bf16 %v2741_v0, %v2737_v63  ;;  %v1006_v25 = vunpack.c.3.s8 %v654_v52  ;;  %v3377_v59 = vpack.c.bf16 %v2805_v1, %v2801_v14  ;;  %v1962_v29 = vcvt.s32.f32 %v938_v7  ;;  %v634_v0 = vld [vmem:[%s8030_s30 + $0x50] sm:$0xff]  ;;  %v8367_v7 = vpop.f32.mrf.mxu1 }
 0x1d9   : > { %v1966_v26 = vcvt.s32.f32 %v942_v23  ;;  %v1066_v19 = vunpack.c.2.s8 %v670_v57  ;;  %v3409_v17 = vpack.c.bf16 %v2869_v27, %v2865_v6  ;;  %v2026_v61 = vcvt.s32.f32 %v1002_v56  ;;  %v650_v6 = vld [vmem:[%s8030_s30 + $0xd0] sm:$0xff] }
 0x1da   : > { %3933 = vmatpush.bf16.msrb.mxu1 %v3345_v32  ;;  %v2030_v3 = vcvt.s32.f32 %v1006_v25  ;;  %v1070_v24 = vunpack.c.3.s8 %v670_v57  ;;  %3947 = vmatpush.bf16.msrb.mxu2 %v3377_v59  ;;  %v1130_v31 = vunpack.c.2.s8 %v686_v36  ;;  %v1134_v2 = vunpack.c.3.s8 %v686_v36  ;;  %v666_v56 = vld [vmem:[%s8030_s30 + $0x150] sm:$0xff] }
 0x1db   : > { %v2958_v28 = vpack.c.bf16 %v1966_v26, %v1962_v29  ;;  %v2090_v49 = vcvt.s32.f32 %v1066_v19  ;;  %3920 = vmatmul.bf16.vlgmr.msrb.gmra.mxu0 %v8232_v5  ;;  %3961 = vmatpush.bf16.msrb.mxu3 %v3409_v17  ;;  %v930_v22 = vunpack.c.0.s8 %v638_v55  ;;  %v934_v48 = vunpack.c.1.s8 %v638_v55 }
 0x1dc   : > { %v2990_v47 = vpack.c.bf16 %v2030_v3, %v2026_v61  ;;  %v2094_v46 = vcvt.s32.f32 %v1070_v24  ;;  %v2154_v54 = vcvt.s32.f32 %v1130_v31  ;;  %v2158_v37 = vcvt.s32.f32 %v1134_v2  ;;  %v682_v3 = vld [vmem:[%s8030_s30 + $0x1d0] sm:$0xff]  ;;  %v3697_v2 = vpop.f32.mrf.mxu0 }
 0x1dd   : > { %3968 = vmatpush.bf16.msra.mxu0 %v2958_v28  ;;  %3934 = vmatmul.bf16.vlgmr.msrb.gmra.mxu1 %v8236_v11  ;;  %v994_v4 = vunpack.c.0.s8 %v654_v52  ;;  %v998_v60 = vunpack.c.1.s8 %v654_v52  ;;  %v1954_v53 = vcvt.s32.f32 %v930_v22  ;;  %v1958_v33 = vcvt.s32.f32 %v934_v48  ;;  %v8371_v48 = vpop.f32.mrf.mxu2 }
 0x1de   : > { %3982 = vmatpush.bf16.msra.mxu1 %v2990_v47  ;;  %v3022_v63 = vpack.c.bf16 %v2094_v46, %v2090_v49  ;;  %3948 = vmatmul.bf16.vlgmr.msrb.gmra.mxu2 %v8234_v9  ;;  %v1058_v45 = vunpack.c.0.s8 %v670_v57  ;;  %v3054_v14 = vpack.c.bf16 %v2158_v37, %v2154_v54  ;;  %v1062_v1 = vunpack.c.1.s8 %v670_v57 }
 0x1df   : > { %3962 = vmatmul.bf16.vlgmr.msrb.gmra.mxu3 %v8238_v12  ;;  %v2018_v55 = vcvt.s32.f32 %v994_v4  ;;  %v2022_v44 = vcvt.s32.f32 %v998_v60  ;;  %v2954_v52 = vpack.c.bf16 %v1958_v33, %v1954_v53  ;;  %v1122_v32 = vunpack.c.0.s8 %v686_v36 }
 0x1e0   : > { %3996 = vmatpush.bf16.msra.mxu2 %v3022_v63  ;;  %v2082_v23 = vcvt.s32.f32 %v1058_v45  ;;  %v1126_v27 = vunpack.c.1.s8 %v686_v36  ;;  %4010 = vmatpush.bf16.msra.mxu3 %v3054_v14  ;;  %v2086_v59 = vcvt.s32.f32 %v1062_v1  ;;  %v922_v29 = vunpack.c.2.s8 %v634_v0  ;;  %v8374_v14 = vpop.f32.mrf.mxu3 }
 0x1e1   : > { %v2986_v25 = vpack.c.bf16 %v2022_v44, %v2018_v55  ;;  %v926_v26 = vunpack.c.3.s8 %v634_v0  ;;  %3969 = vmatpush.bf16.msra.mxu0 %v2954_v52  ;;  %v2146_v19 = vcvt.s32.f32 %v1122_v32  ;;  %v986_v61 = vunpack.c.2.s8 %v650_v6 }
 0x1e2   : > { %v2150_v17 = vcvt.s32.f32 %v1126_v27  ;;  %v990_v57 = vunpack.c.3.s8 %v650_v6  ;;  %v3018_v24 = vpack.c.bf16 %v2086_v59, %v2082_v23  ;;  %v1946_v28 = vcvt.s32.f32 %v922_v29  ;;  %v3711_v59 = vpop.f32.mrf.mxu1  ;;  %v630_v29 = vld [vmem:[%s8030_s30 + $0x30] sm:$0xff] }
 0x1e3   : > { %3983 = vmatpush.bf16.msra.mxu1 %v2986_v25  ;;  %v1950_v49 = vcvt.s32.f32 %v926_v26  ;;  %v1050_v31 = vunpack.c.2.s8 %v666_v56  ;;  %v2010_v36 = vcvt.s32.f32 %v986_v61  ;;  %v1054_v22 = vunpack.c.3.s8 %v666_v56 }
 0x1e4   : > { %v3050_v47 = vpack.c.bf16 %v2150_v17, %v2146_v19  ;;  %v2014_v46 = vcvt.s32.f32 %v990_v57  ;;  %3997 = vmatpush.bf16.msra.mxu2 %v3018_v24  ;;  %v1114_v4 = vunpack.c.2.s8 %v682_v3  ;;  %v1118_v60 = vunpack.c.3.s8 %v682_v3 }
 0x1e5   : > { %v2950_v54 = vpack.c.bf16 %v1950_v49, %v1946_v28  ;;  %v2074_v37 = vcvt.s32.f32 %v1050_v31  ;;  %v2078_v53 = vcvt.s32.f32 %v1054_v22  ;;  %v3698_v33 = vadd.f32 %v3697_v2, %v8345_v62  ;;  %v646_v28 = vld [vmem:[%s8030_s30 + $0xb0] sm:$0xff] }
 0x1e6   : > { %4011 = vmatpush.bf16.msra.mxu3 %v3050_v47  ;;  %v2982_v63 = vpack.c.bf16 %v2014_v46, %v2010_v36  ;;  %v914_v45 = vunpack.c.0.s8 %v634_v0  ;;  %v2138_v55 = vcvt.s32.f32 %v1114_v4  ;;  %v2142_v44 = vcvt.s32.f32 %v1118_v60  ;;  %v662_v47 = vld [vmem:[%s8030_s30 + $0x130] sm:$0xff] }
 0x1e7   : > { %3970 = vmatpush.bf16.msra.mxu0 %v2950_v54  ;;  %v918_v1 = vunpack.c.1.s8 %v634_v0  ;;  %v978_v52 = vunpack.c.0.s8 %v650_v6  ;;  %v3014_v23 = vpack.c.bf16 %v2078_v53, %v2074_v37  ;;  %v982_v27 = vunpack.c.1.s8 %v650_v6  ;;  %v678_v37 = vld [vmem:[%s8030_s30 + $0x1b0] sm:$0xff]  ;;  %v3725_v53 = vpop.f32.mrf.mxu2 }
 0x1e8   : > { %3984 = vmatpush.bf16.msra.mxu1 %v2982_v63  ;;  %v1938_v32 = vcvt.s32.f32 %v914_v45  ;;  %v1042_v25 = vunpack.c.0.s8 %v666_v56  ;;  %v3046_v26 = vpack.c.bf16 %v2142_v44, %v2138_v55  ;;  %v1046_v17 = vunpack.c.1.s8 %v666_v56 }
 0x1e9   : > { %v1942_v19 = vcvt.s32.f32 %v918_v1  ;;  %v2002_v62 = vcvt.s32.f32 %v978_v52  ;;  %3998 = vmatpush.bf16.msra.mxu2 %v3014_v23  ;;  %v2006_v61 = vcvt.s32.f32 %v982_v27  ;;  %v1106_v24 = vunpack.c.0.s8 %v682_v3 }
 0x1ea   : > { %v2066_v57 = vcvt.s32.f32 %v1042_v25  ;;  %v1110_v0 = vunpack.c.1.s8 %v682_v3  ;;  %4012 = vmatpush.bf16.msra.mxu3 %v3046_v26  ;;  %v2070_v31 = vcvt.s32.f32 %v1046_v17  ;;  %v3712_v2 = vadd.f32 %v3711_v59, %v3698_v33 }
 0x1eb   : > { %v2946_v49 = vpack.c.bf16 %v1942_v19, %v1938_v32  ;;  %v906_v6 = vunpack.c.2.s8 %v630_v29  ;;  %v2978_v36 = vpack.c.bf16 %v2006_v61, %v2002_v62  ;;  %v2130_v46 = vcvt.s32.f32 %v1106_v24  ;;  %v3739_v32 = vpop.f32.mrf.mxu3 }
 0x1ec   : > { %v2134_v22 = vcvt.s32.f32 %v1110_v0  ;;  %v910_v54 = vunpack.c.3.s8 %v630_v29  ;;  %v3010_v56 = vpack.c.bf16 %v2070_v31, %v2066_v57  ;;  %v970_v60 = vunpack.c.2.s8 %v646_v28 }
 0x1ed   : > { %3971 = vmatpush.bf16.msra.mxu0 %v2946_v49  ;;  %v1930_v4 = vcvt.s32.f32 %v906_v6  ;;  %v974_v63 = vunpack.c.3.s8 %v646_v28  ;;  %3985 = vmatpush.bf16.msra.mxu1 %v2978_v36  ;;  %v1034_v55 = vunpack.c.2.s8 %v662_v47  ;;  %v1038_v44 = vunpack.c.3.s8 %v662_v47 }
 0x1ee   : > { %v3042_v3 = vpack.c.bf16 %v2134_v22, %v2130_v46  ;;  %v1934_v45 = vcvt.s32.f32 %v910_v54  ;;  %3999 = vmatpush.bf16.msra.mxu2 %v3010_v56  ;;  %v1994_v33 = vcvt.s32.f32 %v970_v60  ;;  %v1098_v52 = vunpack.c.2.s8 %v678_v37  ;;  %v626_v60 = vld [vmem:[%s8030_s30 + $0x10] sm:$0xff] }
 0x1ef   : > { %v1998_v1 = vcvt.s32.f32 %v974_v63  ;;  %v1102_v23 = vunpack.c.3.s8 %v678_v37  ;;  %v2058_v25 = vcvt.s32.f32 %v1034_v55  ;;  %v2062_v59 = vcvt.s32.f32 %v1038_v44 }
 0x1f0   : > { %4013 = vmatpush.bf16.msra.mxu3 %v3042_v3  ;;  %v2942_v27 = vpack.c.bf16 %v1934_v45, %v1930_v4  ;;  %v3726_v26 = vadd.f32 %v3725_v53, %v3712_v2  ;;  %v2122_v62 = vcvt.s32.f32 %v1098_v52  ;;  %v898_v0 = vunpack.c.0.s8 %v630_v29  ;;  %v642_v3 = vld [vmem:[%s8030_s30 + $0x90] sm:$0xff] }
 0x1f1   : > { %v2974_v19 = vpack.c.bf16 %v1998_v1, %v1994_v33  ;;  %v2126_v17 = vcvt.s32.f32 %v1102_v23  ;;  %v3006_v61 = vpack.c.bf16 %v2062_v59, %v2058_v25  ;;  %v902_v49 = vunpack.c.1.s8 %v630_v29 }
 0x1f2   : > { %3972 = vmatpush.bf16.msra.mxu0 %v2942_v27  ;;  %v8380_v57 = vadd.f32 %v3739_v32, %v3726_v26  ;;  %v962_v31 = vunpack.c.0.s8 %v646_v28  ;;  %v3560_v6 = vadd.f32 %v8306_v41, %v8353_v30  ;;  %v966_v36 = vunpack.c.1.s8 %v646_v28  ;;  %v658_v41 = vld [vmem:[%s8030_s30 + $0x110] sm:$0xff] }
 0x1f3   : > { %3986 = vmatpush.bf16.msra.mxu1 %v2974_v19  ;;  %v3038_v24 = vpack.c.bf16 %v2126_v17, %v2122_v62  ;;  %4000 = vmatpush.bf16.msra.mxu2 %v3006_v61  ;;  %v1026_v2 = vunpack.c.0.s8 %v662_v47  ;;  %v1030_v46 = vunpack.c.1.s8 %v662_v47  ;;  %v1922_v22 = vcvt.s32.f32 %v898_v0  ;;  %v674_v30 = vld [vmem:[%s8030_s30 + $0x190] sm:$0xff] }
 0x1f4   : > { %v1926_v54 = vcvt.s32.f32 %v902_v49  ;;  %v1986_v56 = vcvt.s32.f32 %v962_v31  ;;  %v1090_v4 = vunpack.c.0.s8 %v678_v37  ;;  %v1990_v63 = vcvt.s32.f32 %v966_v36 }
 0x1f5   : > { %4014 = vmatpush.bf16.msra.mxu3 %v3038_v24  ;;  %v2050_v53 = vcvt.s32.f32 %v1026_v2  ;;  %v2054_v29 = vcvt.s32.f32 %v1030_v46  ;;  %v1094_v55 = vunpack.c.1.s8 %v678_v37  ;;  %v3574_v28 = vadd.f32 %v8308_v51, %v3560_v6 }
 0x1f6   : > { %v2938_v45 = vpack.c.bf16 %v1926_v54, %v1922_v22  ;;  %v2114_v44 = vcvt.s32.f32 %v1090_v4  ;;  %v2970_v33 = vpack.c.bf16 %v1990_v63, %v1986_v56  ;;  %v890_v47 = vunpack.c.2.s8 %v626_v60 }
 0x1f7   : > { %v3002_v1 = vpack.c.bf16 %v2054_v29, %v2050_v53  ;;  %v2118_v52 = vcvt.s32.f32 %v1094_v55  ;;  %v894_v23 = vunpack.c.3.s8 %v626_v60  ;;  %v954_v32 = vunpack.c.2.s8 %v642_v3  ;;  %v702_v29 = vld [vmem:[%s8030_s30 + $0x270] sm:$0xff] }
 0x1f8   : > { %3973 = vmatpush.bf16.msra.mxu0 %v2938_v45  ;;  %v958_v27 = vunpack.c.3.s8 %v642_v3  ;;  %3987 = vmatpush.bf16.msra.mxu1 %v2970_v33  ;;  %v1914_v25 = vcvt.s32.f32 %v890_v47  ;;  %v1018_v59 = vunpack.c.2.s8 %v658_v41  ;;  %v1022_v26 = vunpack.c.3.s8 %v658_v41  ;;  %v718_v47 = vld [vmem:[%s8030_s30 + $0x2f0] sm:$0xff] }
 0x1f9   : > { %4001 = vmatpush.bf16.msra.mxu2 %v3002_v1  ;;  %v1082_v19 = vunpack.c.2.s8 %v674_v30  ;;  %v3034_v37 = vpack.c.bf16 %v2118_v52, %v2114_v44  ;;  %v1918_v62 = vcvt.s32.f32 %v894_v23  ;;  %v1978_v17 = vcvt.s32.f32 %v954_v32 }
 0x1fa   : > { %v1982_v61 = vcvt.s32.f32 %v958_v27  ;;  %v2042_v24 = vcvt.s32.f32 %v1018_v59  ;;  %v2046_v51 = vcvt.s32.f32 %v1022_v26  ;;  %v1086_v0 = vunpack.c.3.s8 %v674_v30  ;;  %v734_v27 = vld [vmem:[%s8030_s30 + $0x370] sm:$0xff] }
 0x1fb   : > { %v2106_v49 = vcvt.s32.f32 %v1082_v19  ;;  %v3588_v31 = vadd.f32 %v8324_v50, %v3574_v28  ;;  %4015 = vmatpush.bf16.msra.mxu3 %v3034_v37  ;;  %v2934_v6 = vpack.c.bf16 %v1918_v62, %v1914_v25  ;;  %v882_v2 = vunpack.c.0.s8 %v626_v60  ;;  %v750_v37 = vld [vmem:[%s8030_s30 + $0x3f0] sm:$0xff] }
 0x1fc   : > { %v2966_v36 = vpack.c.bf16 %v1982_v61, %v1978_v17  ;;  %v2998_v46 = vpack.c.bf16 %v2046_v51, %v2042_v24  ;;  %v2110_v22 = vcvt.s32.f32 %v1086_v0  ;;  %v886_v54 = vunpack.c.1.s8 %v626_v60 }
 0x1fd   : > { %v946_v56 = vunpack.c.0.s8 %v642_v3  ;;  %3974 = vmatpush.bf16.msra.mxu0 %v2934_v6  ;;  %v1906_v4 = vcvt.s32.f32 %v882_v2  ;;  %v950_v63 = vunpack.c.1.s8 %v642_v3  ;;  %v1010_v53 = vunpack.c.0.s8 %v658_v41 }
 0x1fe   : > { %3988 = vmatpush.bf16.msra.mxu1 %v2966_v36  ;;  %4002 = vmatpush.bf16.msra.mxu2 %v2998_v46  ;;  %v3030_v45 = vpack.c.bf16 %v2110_v22, %v2106_v49  ;;  %v1910_v55 = vcvt.s32.f32 %v886_v54  ;;  %v1014_v44 = vunpack.c.1.s8 %v658_v41  ;;  %v3602_v28 = vadd.f32 %v8332_v16, %v3588_v31 }
 0x1ff   : > { %v1970_v50 = vcvt.s32.f32 %v946_v56  ;;  %v1974_v33 = vcvt.s32.f32 %v950_v63  ;;  %v2034_v1 = vcvt.s32.f32 %v1010_v53  ;;  %v1074_v60 = vunpack.c.0.s8 %v674_v30 }
 0x200   : > { %4016 = vmatpush.bf16.msra.mxu3 %v3030_v45  ;;  %v2930_v52 = vpack.c.bf16 %v1910_v55, %v1906_v4  ;;  %v2038_v23 = vcvt.s32.f32 %v1014_v44  ;;  %v1078_v32 = vunpack.c.1.s8 %v674_v30  ;;  %v1194_v3 = vunpack.c.2.s8 %v702_v29 }
 0x201   : > { %v3616_v25 = vadd.f32 %v8336_v58, %v3602_v28  ;;  %v2962_v59 = vpack.c.bf16 %v1974_v33, %v1970_v50  ;;  %v2098_v26 = vcvt.s32.f32 %v1074_v60  ;;  %v1198_v19 = vunpack.c.3.s8 %v702_v29  ;;  %v698_v28 = vld [vmem:[%s8030_s30 + $0x250] sm:$0xff] }
 0x202   : > { %3975 = vmatpush.bf16.msra.mxu0 %v2930_v52  ;;  %v2994_v41 = vpack.c.bf16 %v2038_v23, %v2034_v1  ;;  %v2102_v62 = vcvt.s32.f32 %v1078_v32  ;;  %v2218_v16 = vcvt.s32.f32 %v1194_v3  ;;  %v1258_v17 = vunpack.c.2.s8 %v718_v47  ;;  %v714_v23 = vld [vmem:[%s8030_s30 + $0x2d0] sm:$0xff] }
 0x203   : > { %3989 = vmatpush.bf16.msra.mxu1 %v2962_v59  ;;  %v2222_v61 = vcvt.s32.f32 %v1198_v19  ;;  %v1262_v24 = vunpack.c.3.s8 %v718_v47  ;;  %v1322_v51 = vunpack.c.2.s8 %v734_v27  ;;  %v1326_v49 = vunpack.c.3.s8 %v734_v27 }
 0x204   : > { %4003 = vmatpush.bf16.msra.mxu2 %v2994_v41  ;;  %v3026_v0 = vpack.c.bf16 %v2102_v62, %v2098_v26  ;;  %v2282_v30 = vcvt.s32.f32 %v1258_v17  ;;  %v1386_v31 = vunpack.c.2.s8 %v750_v37  ;;  %v8397_v58 = vadd.f32 %v8339_v8, %v3616_v25  ;;  %v730_v25 = vld [vmem:[%s8030_s30 + $0x350] sm:$0xff] }
 0x205   : > { %v3086_v6 = vpack.c.bf16 %v2222_v61, %v2218_v16  ;;  %v2286_v36 = vcvt.s32.f32 %v1262_v24  ;;  %v2346_v2 = vcvt.s32.f32 %v1322_v51  ;;  %3976 = vmatmul.bf16.vlgmr.msra.gmra.mxu0 %v8080_v10  ;;  %v2350_v46 = vcvt.s32.f32 %v1326_v49 }
 0x206   : > { %4017 = vmatpush.bf16.msra.mxu3 %v3026_v0  ;;  %v1390_v22 = vunpack.c.3.s8 %v750_v37  ;;  %v2410_v54 = vcvt.s32.f32 %v1386_v31  ;;  %v1186_v56 = vunpack.c.0.s8 %v702_v29  ;;  %3990 = vmatmul.bf16.vlgmr.msra.gmra.mxu1 %v8094_v39  ;;  %v1190_v63 = vunpack.c.1.s8 %v702_v29 }
 0x207   : > { %4024 = vmatpush.bf16.msrb.mxu0 %v3086_v6  ;;  %v3118_v4 = vpack.c.bf16 %v2286_v36, %v2282_v30  ;;  %v1250_v53 = vunpack.c.0.s8 %v718_v47  ;;  %v1254_v8 = vunpack.c.1.s8 %v718_v47  ;;  %4004 = vmatmul.bf16.vlgmr.msra.gmra.mxu2 %v8083_v15  ;;  %v3150_v45 = vpack.c.bf16 %v2350_v46, %v2346_v2 }
 0x208   : > { %v2414_v55 = vcvt.s32.f32 %v1390_v22  ;;  %v2210_v50 = vcvt.s32.f32 %v1186_v56  ;;  %v1314_v44 = vunpack.c.0.s8 %v734_v27  ;;  %v2214_v33 = vcvt.s32.f32 %v1190_v63 }
 0x209   : > { %4038 = vmatpush.bf16.msrb.mxu1 %v3118_v4  ;;  %v2274_v1 = vcvt.s32.f32 %v1250_v53  ;;  %v2278_v60 = vcvt.s32.f32 %v1254_v8  ;;  %v1318_v52 = vunpack.c.1.s8 %v734_v27  ;;  %4018 = vmatmul.bf16.vlgmr.msra.gmra.mxu3 %v8096_v40  ;;  %v1378_v32 = vunpack.c.0.s8 %v750_v37  ;;  %v746_v27 = vld [vmem:[%s8030_s30 + $0x3d0] sm:$0xff] }
 0x20a   : > { %4052 = vmatpush.bf16.msrb.mxu2 %v3150_v45  ;;  %v3182_v29 = vpack.c.bf16 %v2414_v55, %v2410_v54  ;;  %v2338_v47 = vcvt.s32.f32 %v1314_v44  ;;  %v1382_v3 = vunpack.c.1.s8 %v750_v37  ;;  %v3082_v59 = vpack.c.bf16 %v2214_v33, %v2210_v50 }
 0x20b   : > { %v3114_v26 = vpack.c.bf16 %v2278_v60, %v2274_v1  ;;  %v2342_v19 = vcvt.s32.f32 %v1318_v52  ;;  %v1178_v41 = vunpack.c.2.s8 %v698_v28  ;;  %v2402_v62 = vcvt.s32.f32 %v1378_v32  ;;  %v694_v60 = vld [vmem:[%s8030_s30 + $0x230] sm:$0xff] }
 0x20c   : > { %4066 = vmatpush.bf16.msrb.mxu3 %v3182_v29  ;;  %v2406_v16 = vcvt.s32.f32 %v1382_v3  ;;  %v1182_v17 = vunpack.c.3.s8 %v698_v28  ;;  %v1242_v61 = vunpack.c.2.s8 %v714_v23  ;;  %4025 = vmatpush.bf16.msrb.mxu0 %v3082_v59  ;;  %v1246_v0 = vunpack.c.3.s8 %v714_v23  ;;  %v710_v3 = vld [vmem:[%s8030_s30 + $0x2b0] sm:$0xff] }
 0x20d   : > { %4039 = vmatpush.bf16.msrb.mxu1 %v3114_v26  ;;  %v3146_v24 = vpack.c.bf16 %v2342_v19, %v2338_v47  ;;  %v2202_v51 = vcvt.s32.f32 %v1178_v41  ;;  %v1306_v30 = vunpack.c.2.s8 %v730_v25  ;;  %v1310_v6 = vunpack.c.3.s8 %v730_v25 }
 0x20e   : > { %v3178_v49 = vpack.c.bf16 %v2406_v16, %v2402_v62  ;;  %v2206_v31 = vcvt.s32.f32 %v1182_v17  ;;  %v2266_v37 = vcvt.s32.f32 %v1242_v61  ;;  %v2270_v36 = vcvt.s32.f32 %v1246_v0 }
 0x20f   : > { %4053 = vmatpush.bf16.msrb.mxu2 %v3146_v24  ;;  %v2330_v2 = vcvt.s32.f32 %v1306_v30  ;;  %v1370_v46 = vunpack.c.2.s8 %v746_v27  ;;  %v1374_v22 = vunpack.c.3.s8 %v746_v27  ;;  %v2334_v56 = vcvt.s32.f32 %v1310_v6  ;;  %v742_v30 = vld [vmem:[%s8030_s30 + $0x3b0] sm:$0xff] }
 0x210   : > { %4067 = vmatpush.bf16.msrb.mxu3 %v3178_v49  ;;  %v3078_v54 = vpack.c.bf16 %v2206_v31, %v2202_v51  ;;  %v1170_v4 = vunpack.c.0.s8 %v698_v28  ;;  %v1174_v63 = vunpack.c.1.s8 %v698_v28  ;;  %v3110_v53 = vpack.c.bf16 %v2270_v36, %v2266_v37 }
 0x211   : > { %v2394_v8 = vcvt.s32.f32 %v1370_v46  ;;  %v2398_v45 = vcvt.s32.f32 %v1374_v22  ;;  %v1234_v55 = vunpack.c.0.s8 %v714_v23  ;;  %v3142_v50 = vpack.c.bf16 %v2334_v56, %v2330_v2 }
 0x212   : > { %4026 = vmatpush.bf16.msrb.mxu0 %v3078_v54  ;;  %v2194_v44 = vcvt.s32.f32 %v1170_v4  ;;  %v2198_v33 = vcvt.s32.f32 %v1174_v63  ;;  %v1238_v1 = vunpack.c.1.s8 %v714_v23  ;;  %4040 = vmatpush.bf16.msrb.mxu1 %v3110_v53  ;;  %v1298_v47 = vunpack.c.0.s8 %v730_v25  ;;  %v726_v23 = vld [vmem:[%s8030_s30 + $0x330] sm:$0xff] }
 0x213   : > { %v3174_v52 = vpack.c.bf16 %v2398_v45, %v2394_v8  ;;  %v2258_v29 = vcvt.s32.f32 %v1234_v55  ;;  %v1302_v32 = vunpack.c.1.s8 %v730_v25  ;;  %4054 = vmatpush.bf16.msrb.mxu2 %v3142_v50  ;;  %v1362_v26 = vunpack.c.0.s8 %v746_v27  ;;  %v8411_v45 = vpop.f32.mrf.mxu0  ;;  %v8413_v55 = vpop.f32.mrf.mxu1 }
 0x214   : > { %v3074_v28 = vpack.c.bf16 %v2198_v33, %v2194_v44  ;;  %v2262_v59 = vcvt.s32.f32 %v1238_v1  ;;  %v1366_v19 = vunpack.c.1.s8 %v746_v27  ;;  %v2322_v41 = vcvt.s32.f32 %v1298_v47 }
 0x215   : > { %4068 = vmatpush.bf16.msrb.mxu3 %v3174_v52  ;;  %v2326_v62 = vcvt.s32.f32 %v1302_v32  ;;  %v1162_v16 = vunpack.c.2.s8 %v694_v60  ;;  %v1166_v17 = vunpack.c.3.s8 %v694_v60  ;;  %v2386_v24 = vcvt.s32.f32 %v1362_v26 }
 0x216   : > { %4027 = vmatpush.bf16.msrb.mxu0 %v3074_v28  ;;  %v3106_v61 = vpack.c.bf16 %v2262_v59, %v2258_v29  ;;  %v2390_v51 = vcvt.s32.f32 %v1366_v19  ;;  %v1226_v0 = vunpack.c.2.s8 %v710_v3  ;;  %v1230_v37 = vunpack.c.3.s8 %v710_v3  ;;  %v690_v28 = vld [vmem:[%s8030_s30 + $0x210] sm:$0xff] }
 0x217   : > { %v3138_v25 = vpack.c.bf16 %v2326_v62, %v2322_v41  ;;  %v2186_v49 = vcvt.s32.f32 %v1162_v16  ;;  %v2190_v31 = vcvt.s32.f32 %v1166_v17  ;;  %v1290_v27 = vunpack.c.2.s8 %v726_v23  ;;  %v706_v41 = vld [vmem:[%s8030_s30 + $0x290] sm:$0xff] }
 0x218   : > { %4041 = vmatpush.bf16.msrb.mxu1 %v3106_v61  ;;  %v3170_v6 = vpack.c.bf16 %v2390_v51, %v2386_v24  ;;  %v2250_v36 = vcvt.s32.f32 %v1226_v0  ;;  %v1294_v2 = vunpack.c.3.s8 %v726_v23  ;;  %v2254_v22 = vcvt.s32.f32 %v1230_v37 }
 0x219   : > { %4055 = vmatpush.bf16.msrb.mxu2 %v3138_v25  ;;  %v3070_v46 = vpack.c.bf16 %v2190_v31, %v2186_v49  ;;  %v1354_v54 = vunpack.c.2.s8 %v742_v30  ;;  %v1358_v56 = vunpack.c.3.s8 %v742_v30  ;;  %v2314_v4 = vcvt.s32.f32 %v1290_v27 }
 0x21a   : > { %4069 = vmatpush.bf16.msrb.mxu3 %v3170_v6  ;;  %v2318_v63 = vcvt.s32.f32 %v1294_v2  ;;  %v1154_v53 = vunpack.c.0.s8 %v694_v60  ;;  %v1158_v8 = vunpack.c.1.s8 %v694_v60  ;;  %v3102_v50 = vpack.c.bf16 %v2254_v22, %v2250_v36  ;;  %v738_v36 = vld [vmem:[%s8030_s30 + $0x390] sm:$0xff] }
 0x21b   : > { %4028 = vmatpush.bf16.msrb.mxu0 %v3070_v46  ;;  %v2378_v44 = vcvt.s32.f32 %v1354_v54  ;;  %v2382_v33 = vcvt.s32.f32 %v1358_v56  ;;  %v1218_v1 = vunpack.c.0.s8 %v710_v3  ;;  %v1222_v32 = vunpack.c.1.s8 %v710_v3  ;;  %v722_v3 = vld [vmem:[%s8030_s30 + $0x310] sm:$0xff] }
 0x21c   : > { %v3134_v52 = vpack.c.bf16 %v2318_v63, %v2314_v4  ;;  %v2178_v29 = vcvt.s32.f32 %v1154_v53  ;;  %v2182_v47 = vcvt.s32.f32 %v1158_v8  ;;  %4042 = vmatpush.bf16.msrb.mxu1 %v3102_v50  ;;  %v1282_v60 = vunpack.c.0.s8 %v726_v23  ;;  %v3753_v4 = vpop.f32.mrf.mxu0 }
 0x21d   : > { %v3166_v59 = vpack.c.bf16 %v2382_v33, %v2378_v44  ;;  %v2242_v26 = vcvt.s32.f32 %v1218_v1  ;;  %v1286_v19 = vunpack.c.1.s8 %v726_v23  ;;  %v2246_v16 = vcvt.s32.f32 %v1222_v32  ;;  %v3767_v44 = vpop.f32.mrf.mxu1 }
 0x21e   : > { %4056 = vmatpush.bf16.msrb.mxu2 %v3134_v52  ;;  %v3066_v62 = vpack.c.bf16 %v2182_v47, %v2178_v29  ;;  %v1346_v17 = vunpack.c.0.s8 %v742_v30  ;;  %v1350_v61 = vunpack.c.1.s8 %v742_v30  ;;  %v2306_v24 = vcvt.s32.f32 %v1282_v60  ;;  %v8419_v47 = vpop.f32.mrf.mxu2 }
 0x21f   : > { %4070 = vmatpush.bf16.msrb.mxu3 %v3166_v59  ;;  %v2310_v51 = vcvt.s32.f32 %v1286_v19  ;;  %v1146_v0 = vunpack.c.2.s8 %v690_v28  ;;  %v1150_v25 = vunpack.c.3.s8 %v690_v28  ;;  %v3098_v49 = vpack.c.bf16 %v2246_v16, %v2242_v26 }
 0x220   : > { %4029 = vmatpush.bf16.msrb.mxu0 %v3066_v62  ;;  %v2370_v31 = vcvt.s32.f32 %v1346_v17  ;;  %v2374_v37 = vcvt.s32.f32 %v1350_v61  ;;  %v1210_v6 = vunpack.c.2.s8 %v706_v41  ;;  %v1214_v46 = vunpack.c.3.s8 %v706_v41  ;;  %v8422_v61 = vld [vmem:[%s8030_s30 + $0x470] sm:$0xff] }
 0x221   : > { %v3130_v23 = vpack.c.bf16 %v2310_v51, %v2306_v24  ;;  %v2170_v27 = vcvt.s32.f32 %v1146_v0  ;;  %v2174_v2 = vcvt.s32.f32 %v1150_v25  ;;  %4043 = vmatpush.bf16.msrb.mxu1 %v3098_v49  ;;  %v1274_v30 = vunpack.c.2.s8 %v722_v3  ;;  %v8424_v24 = vpop.f32.mrf.mxu3 }
 0x222   : > { %v3162_v22 = vpack.c.bf16 %v2374_v37, %v2370_v31  ;;  %v2234_v54 = vcvt.s32.f32 %v1210_v6  ;;  %v1278_v56 = vunpack.c.3.s8 %v722_v3  ;;  %v2238_v53 = vcvt.s32.f32 %v1214_v46 }
 0x223   : > { %4057 = vmatpush.bf16.msrb.mxu2 %v3130_v23  ;;  %v3062_v63 = vpack.c.bf16 %v2174_v2, %v2170_v27  ;;  %v1338_v8 = vunpack.c.2.s8 %v738_v36  ;;  %v1342_v50 = vunpack.c.3.s8 %v738_v36  ;;  %v2298_v33 = vcvt.s32.f32 %v1274_v30  ;;  %v782_v23 = vld [vmem:[%s8030_s30 + $0x4f0] sm:$0xff] }
 0x224   : > { %4071 = vmatpush.bf16.msrb.mxu3 %v3162_v22  ;;  %v2302_v1 = vcvt.s32.f32 %v1278_v56  ;;  %v3768_v52 = vadd.f32 %v3767_v44, %v3753_v4  ;;  %v1138_v29 = vunpack.c.0.s8 %v690_v28  ;;  %v3094_v32 = vpack.c.bf16 %v2238_v53, %v2234_v54  ;;  %v798_v22 = vld [vmem:[%s8030_s30 + $0x570] sm:$0xff] }
 0x225   : > { %4030 = vmatpush.bf16.msrb.mxu0 %v3062_v63  ;;  %v2362_v59 = vcvt.s32.f32 %v1338_v8  ;;  %v2366_v26 = vcvt.s32.f32 %v1342_v50  ;;  %v1142_v60 = vunpack.c.1.s8 %v690_v28  ;;  %v1202_v16 = vunpack.c.0.s8 %v706_v41 }
 0x226   : > { %v3126_v19 = vpack.c.bf16 %v2302_v1, %v2298_v33  ;;  %v2162_v62 = vcvt.s32.f32 %v1138_v29  ;;  %v1206_v17 = vunpack.c.1.s8 %v706_v41  ;;  %4044 = vmatpush.bf16.msrb.mxu1 %v3094_v32  ;;  %v1266_v25 = vunpack.c.0.s8 %v722_v3 }
 0x227   : > { %v3158_v51 = vpack.c.bf16 %v2366_v26, %v2362_v59  ;;  %v2166_v0 = vcvt.s32.f32 %v1142_v60  ;;  %v1270_v49 = vunpack.c.1.s8 %v722_v3  ;;  %v2226_v31 = vcvt.s32.f32 %v1202_v16  ;;  %v814_v3 = vld [vmem:[%s8030_s30 + $0x5f0] sm:$0xff]  ;;  %v3781_v60 = vpop.f32.mrf.mxu2 }
 0x228   : > { %4058 = vmatpush.bf16.msrb.mxu2 %v3126_v19  ;;  %v2230_v37 = vcvt.s32.f32 %v1206_v17  ;;  %v1330_v28 = vunpack.c.0.s8 %v738_v36  ;;  %v1334_v6 = vunpack.c.1.s8 %v738_v36  ;;  %v2290_v41 = vcvt.s32.f32 %v1266_v25  ;;  %v3755_v19 = vpop.f32.mrf.mxu0 }
 0x229   : > { %4072 = vmatpush.bf16.msrb.mxu3 %v3158_v51  ;;  %v3058_v27 = vpack.c.bf16 %v2166_v0, %v2162_v62  ;;  %v2294_v2 = vcvt.s32.f32 %v1270_v49  ;;  %v1450_v46 = vunpack.c.2.s8 %v8422_v61  ;;  %v1454_v4 = vunpack.c.3.s8 %v8422_v61 }
 0x22a   : > { %v3090_v54 = vpack.c.bf16 %v2230_v37, %v2226_v31  ;;  %v2354_v30 = vcvt.s32.f32 %v1330_v28  ;;  %v2358_v56 = vcvt.s32.f32 %v1334_v6  ;;  %v1514_v8 = vunpack.c.2.s8 %v782_v23  ;;  %v3795_v31 = vpop.f32.mrf.mxu3 }
 0x22b   : > { %4031 = vmatpush.bf16.msrb.mxu0 %v3058_v27  ;;  %v3122_v63 = vpack.c.bf16 %v2294_v2, %v2290_v41  ;;  %v2474_v53 = vcvt.s32.f32 %v1450_v46  ;;  %v1518_v50 = vunpack.c.3.s8 %v782_v23  ;;  %v2478_v44 = vcvt.s32.f32 %v1454_v4 }
 0x22c   : > { %4045 = vmatpush.bf16.msrb.mxu1 %v3090_v54  ;;  %v3154_v36 = vpack.c.bf16 %v2358_v56, %v2354_v30  ;;  %v1578_v33 = vunpack.c.2.s8 %v798_v22  ;;  %v1582_v1 = vunpack.c.3.s8 %v798_v22  ;;  %v2538_v29 = vcvt.s32.f32 %v1514_v8  ;;  %v8438_v30 = vld [vmem:[%s8030_s30 + $0x450] sm:$0xff]  ;;  %v3769_v8 = vpop.f32.mrf.mxu1 }
 0x22d   : > { %4059 = vmatpush.bf16.msrb.mxu2 %v3122_v63  ;;  %v2542_v32 = vcvt.s32.f32 %v1518_v50  ;;  %v1642_v59 = vunpack.c.2.s8 %v814_v3  ;;  %v1646_v26 = vunpack.c.3.s8 %v814_v3  ;;  %v3214_v62 = vpack.c.bf16 %v2478_v44, %v2474_v53  ;;  %v778_v50 = vld [vmem:[%s8030_s30 + $0x4d0] sm:$0xff] }
 0x22e   : > { %4073 = vmatpush.bf16.msrb.mxu3 %v3154_v36  ;;  %v2602_v16 = vcvt.s32.f32 %v1578_v33  ;;  %v2606_v17 = vcvt.s32.f32 %v1582_v1  ;;  %v3782_v51 = vadd.f32 %v3781_v60, %v3768_v52  ;;  %4032 = vmatmul.bf16.vlgmr.msrb.gmra.mxu0 %v8128_v13  ;;  %v1442_v37 = vunpack.c.0.s8 %v8422_v61  ;;  %v794_v1 = vld [vmem:[%s8030_s30 + $0x550] sm:$0xff] }
 0x22f   : > { %v3246_v0 = vpack.c.bf16 %v2542_v32, %v2538_v29  ;;  %v2666_v25 = vcvt.s32.f32 %v1642_v59  ;;  %v2670_v49 = vcvt.s32.f32 %v1646_v26  ;;  %4046 = vmatmul.bf16.vlgmr.msrb.gmra.mxu1 %v8132_v20  ;;  %4080 = vmatpush.bf16.msra.mxu0 %v3214_v62  ;;  %v1446_v27 = vunpack.c.1.s8 %v8422_v61 }
 0x230   : > { %v3278_v28 = vpack.c.bf16 %v2606_v17, %v2602_v16  ;;  %4060 = vmatmul.bf16.vlgmr.msrb.gmra.mxu2 %v8130_v18  ;;  %v3796_v6 = vadd.f32 %v3795_v31, %v3782_v51  ;;  %v1506_v52 = vunpack.c.0.s8 %v782_v23  ;;  %v2466_v2 = vcvt.s32.f32 %v1442_v37  ;;  %v810_v16 = vld [vmem:[%s8030_s30 + $0x5d0] sm:$0xff]  ;;  %v3809_v37 = vpop.f32.mrf.mxu0 }
 0x231   : > { %4094 = vmatpush.bf16.msra.mxu1 %v3246_v0  ;;  %v3310_v41 = vpack.c.bf16 %v2670_v49, %v2666_v25  ;;  %4074 = vmatmul.bf16.vlgmr.msrb.gmra.mxu3 %v8134_v21  ;;  %v1510_v46 = vunpack.c.1.s8 %v782_v23  ;;  %v1570_v54 = vunpack.c.0.s8 %v798_v22  ;;  %v2470_v56 = vcvt.s32.f32 %v1446_v27 }
 0x232   : > { %4108 = vmatpush.bf16.msra.mxu2 %v3278_v28  ;;  %v2530_v4 = vcvt.s32.f32 %v1506_v52  ;;  %v1574_v63 = vunpack.c.1.s8 %v798_v22  ;;  %v1634_v53 = vunpack.c.0.s8 %v814_v3  ;;  %v1638_v44 = vunpack.c.1.s8 %v814_v3 }
 0x233   : > { %4122 = vmatpush.bf16.msra.mxu3 %v3310_v41  ;;  %v2534_v61 = vcvt.s32.f32 %v1510_v46  ;;  %v2594_v36 = vcvt.s32.f32 %v1570_v54  ;;  %v3770_v33 = vadd.f32 %v3769_v8, %v3755_v19  ;;  %v3210_v29 = vpack.c.bf16 %v2470_v56, %v2466_v2  ;;  %v3783_v2 = vpop.f32.mrf.mxu2 }
 0x234   : > { %v2598_v32 = vcvt.s32.f32 %v1574_v63  ;;  %v2658_v23 = vcvt.s32.f32 %v1634_v53  ;;  %v1434_v59 = vunpack.c.2.s8 %v8438_v30  ;;  %v2662_v60 = vcvt.s32.f32 %v1638_v44 }
 0x235   : > { %v3242_v26 = vpack.c.bf16 %v2534_v61, %v2530_v4  ;;  %v1438_v62 = vunpack.c.3.s8 %v8438_v30  ;;  %v1498_v22 = vunpack.c.2.s8 %v778_v50  ;;  %4081 = vmatpush.bf16.msra.mxu0 %v3210_v29  ;;  %v1502_v0 = vunpack.c.3.s8 %v778_v50  ;;  %v3797_v61 = vpop.f32.mrf.mxu3 }
 0x236   : > { %v3274_v17 = vpack.c.bf16 %v2598_v32, %v2594_v36  ;;  %v2458_v51 = vcvt.s32.f32 %v1434_v59  ;;  %v1562_v25 = vunpack.c.2.s8 %v794_v1  ;;  %v3306_v3 = vpack.c.bf16 %v2662_v60, %v2658_v23  ;;  %v3823_v60 = vpop.f32.mrf.mxu1 }
 0x237   : > { %4095 = vmatpush.bf16.msra.mxu1 %v3242_v26  ;;  %v2462_v19 = vcvt.s32.f32 %v1438_v62  ;;  %v2522_v49 = vcvt.s32.f32 %v1498_v22  ;;  %v1566_v31 = vunpack.c.3.s8 %v794_v1  ;;  %v2526_v28 = vcvt.s32.f32 %v1502_v0  ;;  %v758_v62 = vld [vmem:[%s8030_s30 + $0x430] sm:$0xff] }
 0x238   : > { %4109 = vmatpush.bf16.msra.mxu2 %v3274_v17  ;;  %v2586_v27 = vcvt.s32.f32 %v1562_v25  ;;  %v1626_v52 = vunpack.c.2.s8 %v810_v16  ;;  %v1630_v41 = vunpack.c.3.s8 %v810_v16  ;;  %4123 = vmatpush.bf16.msra.mxu3 %v3306_v3  ;;  %v3784_v56 = vadd.f32 %v3783_v2, %v3770_v33  ;;  %v774_v25 = vld [vmem:[%s8030_s30 + $0x4b0] sm:$0xff] }
 0x239   : > { %v3206_v46 = vpack.c.bf16 %v2462_v19, %v2458_v51  ;;  %v2590_v54 = vcvt.s32.f32 %v1566_v31  ;;  %v3810_v4 = vadd.f32 %v3809_v37, %v3796_v6  ;;  %v3238_v63 = vpack.c.bf16 %v2526_v28, %v2522_v49  ;;  %v790_v31 = vld [vmem:[%s8030_s30 + $0x530] sm:$0xff] }
 0x23a   : > { %v2650_v53 = vcvt.s32.f32 %v1626_v52  ;;  %v2654_v8 = vcvt.s32.f32 %v1630_v41  ;;  %v1426_v36 = vunpack.c.0.s8 %v8438_v30  ;;  %v3798_v29 = vadd.f32 %v3797_v61, %v3784_v56 }
 0x23b   : > { %4082 = vmatpush.bf16.msra.mxu0 %v3206_v46  ;;  %v3270_v44 = vpack.c.bf16 %v2590_v54, %v2586_v27  ;;  %v1430_v32 = vunpack.c.1.s8 %v8438_v30  ;;  %v1490_v23 = vunpack.c.0.s8 %v778_v50  ;;  %4096 = vmatpush.bf16.msra.mxu1 %v3238_v63  ;;  %v1494_v33 = vunpack.c.1.s8 %v778_v50  ;;  %v806_v54 = vld [vmem:[%s8030_s30 + $0x5b0] sm:$0xff] }
 0x23c   : > { %v3302_v59 = vpack.c.bf16 %v2654_v8, %v2650_v53  ;;  %v2450_v26 = vcvt.s32.f32 %v1426_v36  ;;  %v1554_v6 = vunpack.c.0.s8 %v794_v1  ;;  %v1558_v51 = vunpack.c.1.s8 %v794_v1  ;;  %v3811_v8 = vpop.f32.mrf.mxu0 }
 0x23d   : > { %4110 = vmatpush.bf16.msra.mxu2 %v3270_v44  ;;  %v2454_v22 = vcvt.s32.f32 %v1430_v32  ;;  %v2514_v17 = vcvt.s32.f32 %v1490_v23  ;;  %v1618_v0 = vunpack.c.0.s8 %v810_v16  ;;  %v2518_v3 = vcvt.s32.f32 %v1494_v33  ;;  %v3837_v44 = vpop.f32.mrf.mxu2 }
 0x23e   : > { %4124 = vmatpush.bf16.msra.mxu3 %v3302_v59  ;;  %v2578_v19 = vcvt.s32.f32 %v1554_v6  ;;  %v1622_v30 = vunpack.c.1.s8 %v810_v16  ;;  %v3824_v49 = vadd.f32 %v3823_v60, %v3810_v4  ;;  %v2582_v28 = vcvt.s32.f32 %v1558_v51 }
 0x23f   : > { %v3202_v37 = vpack.c.bf16 %v2454_v22, %v2450_v26  ;;  %v2642_v27 = vcvt.s32.f32 %v1618_v0  ;;  %v1418_v50 = vunpack.c.2.s8 %v758_v62  ;;  %v3234_v52 = vpack.c.bf16 %v2518_v3, %v2514_v17  ;;  %v3851_v17 = vpop.f32.mrf.mxu3 }
 0x240   : > { %v2646_v41 = vcvt.s32.f32 %v1622_v30  ;;  %v1422_v2 = vunpack.c.3.s8 %v758_v62  ;;  %v1482_v46 = vunpack.c.2.s8 %v774_v25  ;;  %v3266_v1 = vpack.c.bf16 %v2582_v28, %v2578_v19 }
 0x241   : > { %4083 = vmatpush.bf16.msra.mxu0 %v3202_v37  ;;  %v2442_v56 = vcvt.s32.f32 %v1418_v50  ;;  %v1486_v63 = vunpack.c.3.s8 %v774_v25  ;;  %v1546_v53 = vunpack.c.2.s8 %v790_v31  ;;  %4097 = vmatpush.bf16.msra.mxu1 %v3234_v52  ;;  %v1550_v36 = vunpack.c.3.s8 %v790_v31  ;;  %v3825_v50 = vpop.f32.mrf.mxu1 }
 0x242   : > { %v3298_v61 = vpack.c.bf16 %v2646_v41, %v2642_v27  ;;  %v2446_v16 = vcvt.s32.f32 %v1422_v2  ;;  %v2506_v4 = vcvt.s32.f32 %v1482_v46  ;;  %4111 = vmatpush.bf16.msra.mxu2 %v3266_v1  ;;  %v1610_v59 = vunpack.c.2.s8 %v806_v54  ;;  %v754_v2 = vld [vmem:[%s8030_s30 + $0x410] sm:$0xff] }
 0x243   : > { %v2510_v32 = vcvt.s32.f32 %v1486_v63  ;;  %v2570_v23 = vcvt.s32.f32 %v1546_v53  ;;  %v1614_v26 = vunpack.c.3.s8 %v806_v54  ;;  %v2574_v6 = vcvt.s32.f32 %v1550_v36  ;;  %v770_v53 = vld [vmem:[%s8030_s30 + $0x490] sm:$0xff] }
 0x244   : > { %4125 = vmatpush.bf16.msra.mxu3 %v3298_v61  ;;  %v3198_v33 = vpack.c.bf16 %v2446_v16, %v2442_v56  ;;  %v3838_v60 = vadd.f32 %v3837_v44, %v3824_v49  ;;  %v3812_v22 = vadd.f32 %v3811_v8, %v3798_v29  ;;  %v2634_v0 = vcvt.s32.f32 %v1610_v59 }
 0x245   : > { %v3230_v51 = vpack.c.bf16 %v2510_v32, %v2506_v4  ;;  %v2638_v3 = vcvt.s32.f32 %v1614_v26  ;;  %v1410_v19 = vunpack.c.0.s8 %v758_v62  ;;  %v3262_v30 = vpack.c.bf16 %v2574_v6, %v2570_v23  ;;  %v786_v4 = vld [vmem:[%s8030_s30 + $0x510] sm:$0xff] }
 0x246   : > { %4084 = vmatpush.bf16.msra.mxu0 %v3198_v33  ;;  %v8451_v37 = vadd.f32 %v3851_v17, %v3838_v60  ;;  %v1414_v28 = vunpack.c.1.s8 %v758_v62  ;;  %v1474_v27 = vunpack.c.0.s8 %v774_v25  ;;  %v1478_v49 = vunpack.c.1.s8 %v774_v25  ;;  %v802_v6 = vld [vmem:[%s8030_s30 + $0x590] sm:$0xff] }
 0x247   : > { %4098 = vmatpush.bf16.msra.mxu1 %v3230_v51  ;;  %v3294_v52 = vpack.c.bf16 %v2638_v3, %v2634_v0  ;;  %v2434_v41 = vcvt.s32.f32 %v1410_v19  ;;  %v1538_v29 = vunpack.c.0.s8 %v790_v31  ;;  %4112 = vmatpush.bf16.msra.mxu2 %v3262_v30  ;;  %v1542_v56 = vunpack.c.1.s8 %v790_v31  ;;  %v3839_v0 = vpop.f32.mrf.mxu2 }
 0x248   : > { %v2438_v46 = vcvt.s32.f32 %v1414_v28  ;;  %v2498_v1 = vcvt.s32.f32 %v1474_v27  ;;  %v1602_v63 = vunpack.c.0.s8 %v806_v54  ;;  %v2502_v8 = vcvt.s32.f32 %v1478_v49 }
 0x249   : > { %4126 = vmatpush.bf16.msra.mxu3 %v3294_v52  ;;  %v2562_v61 = vcvt.s32.f32 %v1538_v29  ;;  %v1606_v62 = vunpack.c.1.s8 %v806_v54  ;;  %v3826_v16 = vadd.f32 %v3825_v50, %v3812_v22  ;;  %v2566_v44 = vcvt.s32.f32 %v1542_v56  ;;  %v3853_v52 = vpop.f32.mrf.mxu3 }
 0x24a   : > { %v3194_v36 = vpack.c.bf16 %v2438_v46, %v2434_v41  ;;  %v2626_v32 = vcvt.s32.f32 %v1602_v63  ;;  %v1402_v23 = vunpack.c.2.s8 %v754_v2  ;;  %v3226_v25 = vpack.c.bf16 %v2502_v8, %v2498_v1 }
 0x24b   : > { %v2630_v59 = vcvt.s32.f32 %v1606_v62  ;;  %v1406_v26 = vunpack.c.3.s8 %v754_v2  ;;  %v1466_v33 = vunpack.c.2.s8 %v770_v53  ;;  %v3258_v31 = vpack.c.bf16 %v2566_v44, %v2562_v61 }
 0x24c   : > { %4085 = vmatpush.bf16.msra.mxu0 %v3194_v36  ;;  %v2426_v60 = vcvt.s32.f32 %v1402_v23  ;;  %v1470_v17 = vunpack.c.3.s8 %v770_v53  ;;  %v1530_v51 = vunpack.c.2.s8 %v786_v4  ;;  %4099 = vmatpush.bf16.msra.mxu1 %v3226_v25  ;;  %v1534_v19 = vunpack.c.3.s8 %v786_v4 }
 0x24d   : > { %v3290_v3 = vpack.c.bf16 %v2630_v59, %v2626_v32  ;;  %v2430_v54 = vcvt.s32.f32 %v1406_v26  ;;  %v2490_v22 = vcvt.s32.f32 %v1466_v33  ;;  %4113 = vmatpush.bf16.msra.mxu2 %v3258_v31  ;;  %v1594_v27 = vunpack.c.2.s8 %v802_v6  ;;  %v830_v32 = vld [vmem:[%s8030_s30 + $0x670] sm:$0xff] }
 0x24e   : > { %v2494_v30 = vcvt.s32.f32 %v1470_v17  ;;  %v2554_v28 = vcvt.s32.f32 %v1530_v51  ;;  %v1598_v50 = vunpack.c.3.s8 %v802_v6  ;;  %v2558_v49 = vcvt.s32.f32 %v1534_v19 }
 0x24f   : > { %4127 = vmatpush.bf16.msra.mxu3 %v3290_v3  ;;  %v3190_v41 = vpack.c.bf16 %v2430_v54, %v2426_v60  ;;  %v3840_v29 = vadd.f32 %v3839_v0, %v3826_v16  ;;  %v1394_v46 = vunpack.c.0.s8 %v754_v2  ;;  %v2618_v56 = vcvt.s32.f32 %v1594_v27  ;;  %v846_v60 = vld [vmem:[%s8030_s30 + $0x6f0] sm:$0xff] }
 0x250   : > { %v3222_v1 = vpack.c.bf16 %v2494_v30, %v2490_v22  ;;  %v2622_v63 = vcvt.s32.f32 %v1598_v50  ;;  %v1398_v8 = vunpack.c.1.s8 %v754_v2  ;;  %v3254_v61 = vpack.c.bf16 %v2558_v49, %v2554_v28  ;;  %v862_v54 = vld [vmem:[%s8030_s30 + $0x770] sm:$0xff] }
 0x251   : > { %4086 = vmatpush.bf16.msra.mxu0 %v3190_v41  ;;  %v8457_v62 = vadd.f32 %v3853_v52, %v3840_v29  ;;  %v2418_v36 = vcvt.s32.f32 %v1394_v46  ;;  %v1458_v44 = vunpack.c.0.s8 %v770_v53  ;;  %v1462_v59 = vunpack.c.1.s8 %v770_v53  ;;  %v878_v27 = vld [vmem:[%s8030_s30 + $0x7f0] sm:$0xff] }
 0x252   : > { %4100 = vmatpush.bf16.msra.mxu1 %v3222_v1  ;;  %v3286_v23 = vpack.c.bf16 %v2622_v63, %v2618_v56  ;;  %v2422_v25 = vcvt.s32.f32 %v1398_v8  ;;  %v1522_v26 = vunpack.c.0.s8 %v786_v4  ;;  %4114 = vmatpush.bf16.msra.mxu2 %v3254_v61  ;;  %v1526_v33 = vunpack.c.1.s8 %v786_v4 }
 0x253   : > { %v2482_v16 = vcvt.s32.f32 %v1458_v44  ;;  %v1586_v31 = vunpack.c.0.s8 %v802_v6  ;;  %v1590_v2 = vunpack.c.1.s8 %v802_v6  ;;  %v2486_v51 = vcvt.s32.f32 %v1462_v59 }
 0x254   : > { %4128 = vmatpush.bf16.msra.mxu3 %v3286_v23  ;;  %v3186_v17 = vpack.c.bf16 %v2422_v25, %v2418_v36  ;;  %v2546_v0 = vcvt.s32.f32 %v1522_v26  ;;  %v1706_v3 = vunpack.c.2.s8 %v830_v32  ;;  %v2550_v22 = vcvt.s32.f32 %v1526_v33 }
 0x255   : > { %v2610_v19 = vcvt.s32.f32 %v1586_v31  ;;  %v2614_v30 = vcvt.s32.f32 %v1590_v2  ;;  %v1710_v28 = vunpack.c.3.s8 %v830_v32  ;;  %v3218_v53 = vpack.c.bf16 %v2486_v51, %v2482_v16 }
 0x256   : > { %4087 = vmatpush.bf16.msra.mxu0 %v3186_v17  ;;  %v2730_v50 = vcvt.s32.f32 %v1706_v3  ;;  %v1770_v52 = vunpack.c.2.s8 %v846_v60  ;;  %v1774_v41 = vunpack.c.3.s8 %v846_v60  ;;  %v3250_v4 = vpack.c.bf16 %v2550_v22, %v2546_v0  ;;  %v826_v22 = vld [vmem:[%s8030_s30 + $0x650] sm:$0xff] }
 0x257   : > { %v3282_v49 = vpack.c.bf16 %v2614_v30, %v2610_v19  ;;  %v2734_v6 = vcvt.s32.f32 %v1710_v28  ;;  %v1834_v29 = vunpack.c.2.s8 %v862_v54  ;;  %4101 = vmatpush.bf16.msra.mxu1 %v3218_v53  ;;  %v1838_v56 = vunpack.c.3.s8 %v862_v54  ;;  %v842_v53 = vld [vmem:[%s8030_s30 + $0x6d0] sm:$0xff] }
 0x258   : > { %v2794_v46 = vcvt.s32.f32 %v1770_v52  ;;  %v2798_v1 = vcvt.s32.f32 %v1774_v41  ;;  %v1898_v63 = vunpack.c.2.s8 %v878_v27  ;;  %4115 = vmatpush.bf16.msra.mxu2 %v3250_v4  ;;  %v1902_v36 = vunpack.c.3.s8 %v878_v27  ;;  %v858_v4 = vld [vmem:[%s8030_s30 + $0x750] sm:$0xff] }
 0x259   : > { %4129 = vmatpush.bf16.msra.mxu3 %v3282_v49  ;;  %v3342_v8 = vpack.c.bf16 %v2734_v6, %v2730_v50  ;;  %v2858_v61 = vcvt.s32.f32 %v1834_v29  ;;  %v1698_v44 = vunpack.c.0.s8 %v830_v32  ;;  %v2862_v25 = vcvt.s32.f32 %v1838_v56  ;;  %4088 = vmatmul.bf16.vlgmr.msra.gmra.mxu0 %v8180_v34 }
 0x25a   : > { %v3374_v23 = vpack.c.bf16 %v2798_v1, %v2794_v46  ;;  %v2922_v59 = vcvt.s32.f32 %v1898_v63  ;;  %v1702_v26 = vunpack.c.1.s8 %v830_v32  ;;  %v2926_v16 = vcvt.s32.f32 %v1902_v36  ;;  %4102 = vmatmul.bf16.vlgmr.msra.gmra.mxu1 %v8184_v42  ;;  %v874_v46 = vld [vmem:[%s8030_s30 + $0x7d0] sm:$0xff] }
 0x25b   : > { %4136 = vmatpush.bf16.msrb.mxu0 %v3342_v8  ;;  %v2722_v33 = vcvt.s32.f32 %v1698_v44  ;;  %v1762_v31 = vunpack.c.0.s8 %v846_v60  ;;  %v1766_v2 = vunpack.c.1.s8 %v846_v60  ;;  %v3406_v17 = vpack.c.bf16 %v2862_v25, %v2858_v61  ;;  %4116 = vmatmul.bf16.vlgmr.msra.gmra.mxu2 %v8182_v38  ;;  %v3865_v25 = vpop.f32.mrf.mxu0 }
 0x25c   : > { %4150 = vmatpush.bf16.msrb.mxu1 %v3374_v23  ;;  %v2726_v51 = vcvt.s32.f32 %v1702_v26  ;;  %v1826_v0 = vunpack.c.0.s8 %v862_v54  ;;  %v1830_v3 = vunpack.c.1.s8 %v862_v54  ;;  %v3438_v19 = vpack.c.bf16 %v2926_v16, %v2922_v59  ;;  %4130 = vmatmul.bf16.vlgmr.msra.gmra.mxu3 %v8186_v43 }
 0x25d   : > { %v2786_v32 = vcvt.s32.f32 %v1762_v31  ;;  %v2790_v30 = vcvt.s32.f32 %v1766_v2  ;;  %v1890_v28 = vunpack.c.0.s8 %v878_v27  ;;  %4164 = vmatpush.bf16.msrb.mxu2 %v3406_v17  ;;  %v1894_v41 = vunpack.c.1.s8 %v878_v27 }
 0x25e   : > { %v3338_v50 = vpack.c.bf16 %v2726_v51, %v2722_v33  ;;  %v2850_v60 = vcvt.s32.f32 %v1826_v0  ;;  %v2854_v52 = vcvt.s32.f32 %v1830_v3  ;;  %4178 = vmatpush.bf16.msrb.mxu3 %v3438_v19  ;;  %v1690_v29 = vunpack.c.2.s8 %v826_v22 }
 0x25f   : > { %v3370_v49 = vpack.c.bf16 %v2790_v30, %v2786_v32  ;;  %v2914_v6 = vcvt.s32.f32 %v1890_v28  ;;  %v1694_v54 = vunpack.c.3.s8 %v826_v22  ;;  %v2918_v56 = vcvt.s32.f32 %v1894_v41 }
 0x260   : > { %4137 = vmatpush.bf16.msrb.mxu0 %v3338_v50  ;;  %v3402_v1 = vpack.c.bf16 %v2854_v52, %v2850_v60  ;;  %v1754_v63 = vunpack.c.2.s8 %v842_v53  ;;  %v1758_v8 = vunpack.c.3.s8 %v842_v53  ;;  %v2714_v61 = vcvt.s32.f32 %v1690_v29  ;;  %v822_v29 = vld [vmem:[%s8030_s30 + $0x630] sm:$0xff] }
 0x261   : > { %4151 = vmatpush.bf16.msrb.mxu1 %v3370_v49  ;;  %v2718_v36 = vcvt.s32.f32 %v1694_v54  ;;  %v1818_v44 = vunpack.c.2.s8 %v858_v4  ;;  %v1822_v23 = vunpack.c.3.s8 %v858_v4  ;;  %v3434_v27 = vpack.c.bf16 %v2918_v56, %v2914_v6  ;;  %v3879_v6 = vpop.f32.mrf.mxu1 }
 0x262   : > { %4165 = vmatpush.bf16.msrb.mxu2 %v3402_v1  ;;  %v2778_v59 = vcvt.s32.f32 %v1754_v63  ;;  %v2782_v26 = vcvt.s32.f32 %v1758_v8  ;;  %v1882_v16 = vunpack.c.2.s8 %v874_v46  ;;  %v1886_v17 = vunpack.c.3.s8 %v874_v46 }
 0x263   : > { %v3334_v33 = vpack.c.bf16 %v2718_v36, %v2714_v61  ;;  %v2842_v31 = vcvt.s32.f32 %v1818_v44  ;;  %v2846_v2 = vcvt.s32.f32 %v1822_v23  ;;  %4179 = vmatpush.bf16.msrb.mxu3 %v3434_v27  ;;  %v3866_v3 = vadd.f32 %v3865_v25, %v8451_v37  ;;  %v838_v36 = vld [vmem:[%s8030_s30 + $0x6b0] sm:$0xff] }
 0x264   : > { %v3366_v51 = vpack.c.bf16 %v2782_v26, %v2778_v59  ;;  %v2906_v0 = vcvt.s32.f32 %v1882_v16  ;;  %v1682_v19 = vunpack.c.0.s8 %v826_v22  ;;  %v2910_v30 = vcvt.s32.f32 %v1886_v17  ;;  %v8475_v44 = vld [vmem:[%s8030_s30 + $0x730] sm:$0xff] }
 0x265   : > { %4138 = vmatpush.bf16.msrb.mxu0 %v3334_v33  ;;  %v3398_v32 = vpack.c.bf16 %v2846_v2, %v2842_v31  ;;  %v1686_v28 = vunpack.c.1.s8 %v826_v22  ;;  %v1746_v50 = vunpack.c.0.s8 %v842_v53  ;;  %v1750_v52 = vunpack.c.1.s8 %v842_v53  ;;  %v870_v27 = vld [vmem:[%s8030_s30 + $0x7b0] sm:$0xff] }
 0x266   : > { %4152 = vmatpush.bf16.msrb.mxu1 %v3366_v51  ;;  %v2706_v60 = vcvt.s32.f32 %v1682_v19  ;;  %v1810_v41 = vunpack.c.0.s8 %v858_v4  ;;  %v1814_v49 = vunpack.c.1.s8 %v858_v4  ;;  %v3430_v54 = vpack.c.bf16 %v2910_v30, %v2906_v0  ;;  %v3867_v30 = vpop.f32.mrf.mxu0 }
 0x267   : > { %4166 = vmatpush.bf16.msrb.mxu2 %v3398_v32  ;;  %v2710_v1 = vcvt.s32.f32 %v1686_v28  ;;  %v2770_v37 = vcvt.s32.f32 %v1746_v50  ;;  %v1874_v56 = vunpack.c.0.s8 %v874_v46  ;;  %v2774_v63 = vcvt.s32.f32 %v1750_v52 }
 0x268   : > { %v2834_v8 = vcvt.s32.f32 %v1810_v41  ;;  %v2838_v61 = vcvt.s32.f32 %v1814_v49  ;;  %v1878_v22 = vunpack.c.1.s8 %v874_v46  ;;  %4180 = vmatpush.bf16.msrb.mxu3 %v3430_v54  ;;  %v3880_v25 = vadd.f32 %v3879_v6, %v3866_v3  ;;  %v3893_v46 = vpop.f32.mrf.mxu2  ;;  %v3907_v41 = vpop.f32.mrf.mxu3 }
 0x269   : > { %v3330_v23 = vpack.c.bf16 %v2710_v1, %v2706_v60  ;;  %v2898_v53 = vcvt.s32.f32 %v1874_v56  ;;  %v1674_v4 = vunpack.c.2.s8 %v822_v29  ;;  %v3362_v59 = vpack.c.bf16 %v2774_v63, %v2770_v37 }
 0x26a   : > { %v3394_v26 = vpack.c.bf16 %v2838_v61, %v2834_v8  ;;  %v2902_v16 = vcvt.s32.f32 %v1878_v22  ;;  %v1678_v33 = vunpack.c.3.s8 %v822_v29  ;;  %v1738_v2 = vunpack.c.2.s8 %v838_v36 }
 0x26b   : > { %4139 = vmatpush.bf16.msrb.mxu0 %v3330_v23  ;;  %v2698_v31 = vcvt.s32.f32 %v1674_v4  ;;  %v1742_v17 = vunpack.c.3.s8 %v838_v36  ;;  %v1802_v51 = vunpack.c.2.s8 %v8475_v44  ;;  %4153 = vmatpush.bf16.msrb.mxu1 %v3362_v59  ;;  %v1806_v32 = vunpack.c.3.s8 %v8475_v44  ;;  %v3881_v4 = vpop.f32.mrf.mxu1 }
 0x26c   : > { %4167 = vmatpush.bf16.msrb.mxu2 %v3394_v26  ;;  %v3426_v0 = vpack.c.bf16 %v2902_v16, %v2898_v53  ;;  %v2702_v19 = vcvt.s32.f32 %v1678_v33  ;;  %v1866_v3 = vunpack.c.2.s8 %v870_v27  ;;  %v2762_v28 = vcvt.s32.f32 %v1738_v2  ;;  %v818_v33 = vld [vmem:[%s8030_s30 + $0x610] sm:$0xff] }
 0x26d   : > { %v2766_v50 = vcvt.s32.f32 %v1742_v17  ;;  %v2826_v60 = vcvt.s32.f32 %v1802_v51  ;;  %v1870_v52 = vunpack.c.3.s8 %v870_v27  ;;  %v2830_v6 = vcvt.s32.f32 %v1806_v32  ;;  %v834_v51 = vld [vmem:[%s8030_s30 + $0x690] sm:$0xff] }
 0x26e   : > { %4181 = vmatpush.bf16.msrb.mxu3 %v3426_v0  ;;  %v3326_v49 = vpack.c.bf16 %v2702_v19, %v2698_v31  ;;  %v2890_v54 = vcvt.s32.f32 %v1866_v3  ;;  %v3894_v1 = vadd.f32 %v3893_v46, %v3880_v25  ;;  %v3868_v63 = vadd.f32 %v3867_v30, %v8457_v62  ;;  %v850_v32 = vld [vmem:[%s8030_s30 + $0x710] sm:$0xff] }
 0x26f   : > { %v3358_v37 = vpack.c.bf16 %v2766_v50, %v2762_v28  ;;  %v2894_v56 = vcvt.s32.f32 %v1870_v52  ;;  %v1666_v8 = vunpack.c.0.s8 %v822_v29  ;;  %v3390_v61 = vpack.c.bf16 %v2830_v6, %v2826_v60 }
 0x270   : > { %4140 = vmatpush.bf16.msrb.mxu0 %v3326_v49  ;;  %v8481_v22 = vadd.f32 %v3907_v41, %v3894_v1  ;;  %v1670_v23 = vunpack.c.1.s8 %v822_v29  ;;  %v1730_v53 = vunpack.c.0.s8 %v838_v36  ;;  %v1734_v16 = vunpack.c.1.s8 %v838_v36  ;;  %v866_v49 = vld [vmem:[%s8030_s30 + $0x790] sm:$0xff] }
 0x271   : > { %4154 = vmatpush.bf16.msrb.mxu1 %v3358_v37  ;;  %v3422_v59 = vpack.c.bf16 %v2894_v56, %v2890_v54  ;;  %v2690_v26 = vcvt.s32.f32 %v1666_v8  ;;  %v1794_v25 = vunpack.c.0.s8 %v8475_v44  ;;  %4168 = vmatpush.bf16.msrb.mxu2 %v3390_v61  ;;  %v1798_v2 = vunpack.c.1.s8 %v8475_v44  ;;  %v3895_v37 = vpop.f32.mrf.mxu2 }
 0x272   : > { %v2694_v31 = vcvt.s32.f32 %v1670_v23  ;;  %v2754_v62 = vcvt.s32.f32 %v1730_v53  ;;  %v1858_v17 = vunpack.c.0.s8 %v870_v27  ;;  %v2758_v29 = vcvt.s32.f32 %v1734_v16 }
 0x273   : > { %4182 = vmatpush.bf16.msrb.mxu3 %v3422_v59  ;;  %v2818_v46 = vcvt.s32.f32 %v1794_v25  ;;  %v1862_v0 = vunpack.c.1.s8 %v870_v27  ;;  %v3882_v19 = vadd.f32 %v3881_v4, %v3868_v63  ;;  %v2822_v30 = vcvt.s32.f32 %v1798_v2  ;;  %v3909_v59 = vpop.f32.mrf.mxu3 }
 0x274   : > { %v3322_v3 = vpack.c.bf16 %v2694_v31, %v2690_v26  ;;  %v2882_v36 = vcvt.s32.f32 %v1858_v17  ;;  %v1658_v28 = vunpack.c.2.s8 %v818_v33  ;;  %v3354_v50 = vpack.c.bf16 %v2758_v29, %v2754_v62 }
 0x275   : > { %v2886_v60 = vcvt.s32.f32 %v1862_v0  ;;  %v1662_v52 = vunpack.c.3.s8 %v818_v33  ;;  %v1722_v41 = vunpack.c.2.s8 %v834_v51  ;;  %v3386_v44 = vpack.c.bf16 %v2822_v30, %v2818_v46 }
 0x276   : > { %4141 = vmatpush.bf16.msrb.mxu0 %v3322_v3  ;;  %v2682_v6 = vcvt.s32.f32 %v1658_v28  ;;  %v1726_v54 = vunpack.c.3.s8 %v834_v51  ;;  %v1786_v1 = vunpack.c.2.s8 %v850_v32  ;;  %4155 = vmatpush.bf16.msrb.mxu1 %v3354_v50  ;;  %v1790_v8 = vunpack.c.3.s8 %v850_v32 }
 0x277   : > { %v3418_v56 = vpack.c.bf16 %v2886_v60, %v2882_v36  ;;  %v2686_v27 = vcvt.s32.f32 %v1662_v52  ;;  %v2746_v63 = vcvt.s32.f32 %v1722_v41  ;;  %4169 = vmatpush.bf16.msrb.mxu2 %v3386_v44  ;;  %v1850_v53 = vunpack.c.2.s8 %v866_v49  ;;  %v639_v36 = vld [vmem:[%s8030_s30 + $0x78] sm:$0xff] }
 0x278   : > { %v2750_v61 = vcvt.s32.f32 %v1726_v54  ;;  %v2810_v23 = vcvt.s32.f32 %v1786_v1  ;;  %v1854_v4 = vunpack.c.3.s8 %v866_v49  ;;  %v2814_v16 = vcvt.s32.f32 %v1790_v8 }
 0x279   : > { %4183 = vmatpush.bf16.msrb.mxu3 %v3418_v56  ;;  %v3318_v26 = vpack.c.bf16 %v2686_v27, %v2682_v6  ;;  %v3896_v25 = vadd.f32 %v3895_v37, %v3882_v19  ;;  %v1650_v31 = vunpack.c.0.s8 %v818_v33  ;;  %v2874_v2 = vcvt.s32.f32 %v1850_v53  ;;  %v655_v6 = vld [vmem:[%s8030_s30 + $0xf8] sm:$0xff] }
 0x27a   : > { %v3350_v62 = vpack.c.bf16 %v2750_v61, %v2746_v63  ;;  %v2878_v17 = vcvt.s32.f32 %v1854_v4  ;;  %v1654_v29 = vunpack.c.1.s8 %v818_v33  ;;  %v3382_v46 = vpack.c.bf16 %v2814_v16, %v2810_v23  ;;  %v671_v27 = vld [vmem:[%s8030_s30 + $0x178] sm:$0xff] }
 0x27b   : > { %4142 = vmatpush.bf16.msrb.mxu0 %v3318_v26  ;;  %v8489_v0 = vadd.f32 %v3909_v59, %v3896_v25  ;;  %v2674_v3 = vcvt.s32.f32 %v1650_v31  ;;  %v1714_v30 = vunpack.c.0.s8 %v834_v51  ;;  %v1718_v60 = vunpack.c.1.s8 %v834_v51  ;;  %v687_v53 = vld [vmem:[%s8030_s30 + $0x1f8] sm:$0xff] }
 0x27c   : > { %4156 = vmatpush.bf16.msrb.mxu1 %v3350_v62  ;;  %v3414_v28 = vpack.c.bf16 %v2878_v17, %v2874_v2  ;;  %v2678_v50 = vcvt.s32.f32 %v1654_v29  ;;  %v1778_v52 = vunpack.c.0.s8 %v850_v32  ;;  %4170 = vmatpush.bf16.msrb.mxu2 %v3382_v46  ;;  %v1782_v41 = vunpack.c.1.s8 %v850_v32 }
 0x27d   : > { %v2738_v19 = vcvt.s32.f32 %v1714_v30  ;;  %v1842_v44 = vunpack.c.0.s8 %v866_v49  ;;  %v1846_v33 = vunpack.c.1.s8 %v866_v49  ;;  %v2742_v1 = vcvt.s32.f32 %v1718_v60 }
 0x27e   : > { %4184 = vmatpush.bf16.msrb.mxu3 %v3414_v28  ;;  %v3314_v54 = vpack.c.bf16 %v2678_v50, %v2674_v3  ;;  %v2802_v37 = vcvt.s32.f32 %v1778_v52  ;;  %v939_v56 = vunpack.c.2.s8 %v639_v36  ;;  %v2806_v63 = vcvt.s32.f32 %v1782_v41 }
 0x27f   : > { %v2866_v8 = vcvt.s32.f32 %v1842_v44  ;;  %v2870_v61 = vcvt.s32.f32 %v1846_v33  ;;  %v943_v23 = vunpack.c.3.s8 %v639_v36  ;;  %v3346_v51 = vpack.c.bf16 %v2742_v1, %v2738_v19 }
 0x280   : > { %4143 = vmatpush.bf16.msrb.mxu0 %v3314_v54  ;;  %v1963_v4 = vcvt.s32.f32 %v939_v56  ;;  %v1003_v59 = vunpack.c.2.s8 %v655_v6  ;;  %v1007_v26 = vunpack.c.3.s8 %v655_v6  ;;  %v3378_v32 = vpack.c.bf16 %v2806_v63, %v2802_v37  ;;  %v635_v63 = vld [vmem:[%s8030_s30 + $0x58] sm:$0xff] }
 0x281   : > { %v3410_v16 = vpack.c.bf16 %v2870_v61, %v2866_v8  ;;  %v1967_v49 = vcvt.s32.f32 %v943_v23  ;;  %v1067_v25 = vunpack.c.2.s8 %v671_v27  ;;  %4157 = vmatpush.bf16.msrb.mxu1 %v3346_v51  ;;  %v1071_v2 = vunpack.c.3.s8 %v671_v27  ;;  %v651_v51 = vld [vmem:[%s8030_s30 + $0xd8] sm:$0xff] }
 0x282   : > { %v2027_v31 = vcvt.s32.f32 %v1003_v59  ;;  %v2031_v62 = vcvt.s32.f32 %v1007_v26  ;;  %v1131_v17 = vunpack.c.2.s8 %v687_v53  ;;  %4171 = vmatpush.bf16.msrb.mxu2 %v3378_v32  ;;  %v1135_v3 = vunpack.c.3.s8 %v687_v53  ;;  %v667_v32 = vld [vmem:[%s8030_s30 + $0x158] sm:$0xff] }
 0x283   : > { %4185 = vmatpush.bf16.msrb.mxu3 %v3410_v16  ;;  %v2959_v29 = vpack.c.bf16 %v1967_v49, %v1963_v4  ;;  %v2091_v46 = vcvt.s32.f32 %v1067_v25  ;;  %v931_v30 = vunpack.c.0.s8 %v639_v36  ;;  %v2095_v50 = vcvt.s32.f32 %v1071_v2  ;;  %4144 = vmatmul.bf16.vlgmr.msrb.gmra.mxu0 %v8232_v5 }
 0x284   : > { %v2991_v28 = vpack.c.bf16 %v2031_v62, %v2027_v31  ;;  %v2155_v60 = vcvt.s32.f32 %v1131_v17  ;;  %v935_v52 = vunpack.c.1.s8 %v639_v36  ;;  %v2159_v19 = vcvt.s32.f32 %v1135_v3  ;;  %4158 = vmatmul.bf16.vlgmr.msrb.gmra.mxu1 %v8236_v11  ;;  %v683_v31 = vld [vmem:[%s8030_s30 + $0x1d8] sm:$0xff] }
 0x285   : > { %4192 = vmatpush.bf16.msra.mxu0 %v2959_v29  ;;  %v1955_v41 = vcvt.s32.f32 %v931_v30  ;;  %v995_v44 = vunpack.c.0.s8 %v655_v6  ;;  %v999_v33 = vunpack.c.1.s8 %v655_v6  ;;  %v3023_v54 = vpack.c.bf16 %v2095_v50, %v2091_v46  ;;  %4172 = vmatmul.bf16.vlgmr.msrb.gmra.mxu2 %v8234_v9  ;;  %v3921_v50 = vpop.f32.mrf.mxu0 }
 0x286   : > { %4206 = vmatpush.bf16.msra.mxu1 %v2991_v28  ;;  %v1959_v1 = vcvt.s32.f32 %v935_v52  ;;  %v1059_v37 = vunpack.c.0.s8 %v671_v27  ;;  %v1063_v56 = vunpack.c.1.s8 %v671_v27  ;;  %v3055_v8 = vpack.c.bf16 %v2159_v19, %v2155_v60  ;;  %4186 = vmatmul.bf16.vlgmr.msrb.gmra.mxu3 %v8238_v12 }
 0x287   : > { %v2019_v36 = vcvt.s32.f32 %v995_v44  ;;  %v2023_v61 = vcvt.s32.f32 %v999_v33  ;;  %v1123_v23 = vunpack.c.0.s8 %v687_v53  ;;  %4220 = vmatpush.bf16.msra.mxu2 %v3023_v54  ;;  %v1127_v26 = vunpack.c.1.s8 %v687_v53 }
 0x288   : > { %v2955_v4 = vpack.c.bf16 %v1959_v1, %v1955_v41  ;;  %v2083_v6 = vcvt.s32.f32 %v1059_v37  ;;  %v2087_v59 = vcvt.s32.f32 %v1063_v56  ;;  %4234 = vmatpush.bf16.msra.mxu3 %v3055_v8  ;;  %v923_v25 = vunpack.c.2.s8 %v635_v63 }
 0x289   : > { %v2987_v16 = vpack.c.bf16 %v2023_v61, %v2019_v36  ;;  %v2147_v49 = vcvt.s32.f32 %v1123_v23  ;;  %v927_v27 = vunpack.c.3.s8 %v635_v63  ;;  %v2151_v2 = vcvt.s32.f32 %v1127_v26 }
 0x28a   : > { %4193 = vmatpush.bf16.msra.mxu0 %v2955_v4  ;;  %v3019_v62 = vpack.c.bf16 %v2087_v59, %v2083_v6  ;;  %v987_v17 = vunpack.c.2.s8 %v651_v51  ;;  %v991_v29 = vunpack.c.3.s8 %v651_v51  ;;  %v1947_v46 = vcvt.s32.f32 %v923_v25  ;;  %v8505_v25 = vld [vmem:[%s8030_s30 + $0x38] sm:$0xff] }
 0x28b   : > { %4207 = vmatpush.bf16.msra.mxu1 %v2987_v16  ;;  %v1951_v3 = vcvt.s32.f32 %v927_v27  ;;  %v1051_v30 = vunpack.c.2.s8 %v667_v32  ;;  %v1055_v28 = vunpack.c.3.s8 %v667_v32  ;;  %v3051_v53 = vpack.c.bf16 %v2151_v2, %v2147_v49  ;;  %v3935_v49 = vpop.f32.mrf.mxu1 }
 0x28c   : > { %4221 = vmatpush.bf16.msra.mxu2 %v3019_v62  ;;  %v2011_v60 = vcvt.s32.f32 %v987_v17  ;;  %v2015_v52 = vcvt.s32.f32 %v991_v29  ;;  %v1115_v19 = vunpack.c.2.s8 %v683_v31  ;;  %v1119_v54 = vunpack.c.3.s8 %v683_v31 }
 0x28d   : > { %v2951_v41 = vpack.c.bf16 %v1951_v3, %v1947_v46  ;;  %v2075_v44 = vcvt.s32.f32 %v1051_v30  ;;  %v2079_v33 = vcvt.s32.f32 %v1055_v28  ;;  %4235 = vmatpush.bf16.msra.mxu3 %v3051_v53  ;;  %v3922_v56 = vadd.f32 %v3921_v50, %v8481_v22  ;;  %v647_v3 = vld [vmem:[%s8030_s30 + $0xb8] sm:$0xff] }
 0x28e   : > { %v2983_v1 = vpack.c.bf16 %v2015_v52, %v2011_v60  ;;  %v2139_v37 = vcvt.s32.f32 %v1115_v19  ;;  %v915_v8 = vunpack.c.0.s8 %v635_v63  ;;  %v2143_v61 = vcvt.s32.f32 %v1119_v54  ;;  %v8509_v30 = vld [vmem:[%s8030_s30 + $0x138] sm:$0xff] }
 0x28f   : > { %4194 = vmatpush.bf16.msra.mxu0 %v2951_v41  ;;  %v3015_v36 = vpack.c.bf16 %v2079_v33, %v2075_v44  ;;  %v919_v23 = vunpack.c.1.s8 %v635_v63  ;;  %v979_v4 = vunpack.c.0.s8 %v651_v51  ;;  %v983_v59 = vunpack.c.1.s8 %v651_v51  ;;  %v8513_v53 = vld [vmem:[%s8030_s30 + $0x1b8] sm:$0xff] }
 0x290   : > { %4208 = vmatpush.bf16.msra.mxu1 %v2983_v1  ;;  %v1939_v6 = vcvt.s32.f32 %v915_v8  ;;  %v1043_v26 = vunpack.c.0.s8 %v667_v32  ;;  %v1047_v16 = vunpack.c.1.s8 %v667_v32  ;;  %v3047_v27 = vpack.c.bf16 %v2143_v61, %v2139_v37  ;;  %v3949_v1 = vpop.f32.mrf.mxu2  ;;  %v3923_v61 = vpop.f32.mrf.mxu0 }
 0x291   : > { %4222 = vmatpush.bf16.msra.mxu2 %v3015_v36  ;;  %v1943_v22 = vcvt.s32.f32 %v919_v23  ;;  %v2003_v62 = vcvt.s32.f32 %v979_v4  ;;  %v1107_v2 = vunpack.c.0.s8 %v683_v31  ;;  %v2007_v17 = vcvt.s32.f32 %v983_v59 }
 0x292   : > { %v2067_v29 = vcvt.s32.f32 %v1043_v26  ;;  %v2071_v63 = vcvt.s32.f32 %v1047_v16  ;;  %v1111_v46 = vunpack.c.1.s8 %v683_v31  ;;  %4236 = vmatpush.bf16.msra.mxu3 %v3047_v27  ;;  %v3936_v32 = vadd.f32 %v3935_v49, %v3922_v56  ;;  %v3963_v26 = vpop.f32.mrf.mxu3  ;;  %v8521_v16 = vld [vmem:[%s8036_s18] sm:$0xf] }
 0x293   : > { %v2947_v51 = vpack.c.bf16 %v1943_v22, %v1939_v6  ;;  %v2131_v28 = vcvt.s32.f32 %v1107_v2  ;;  %v907_v50 = vunpack.c.2.s8 %v8505_v25  ;;  %v2979_v60 = vpack.c.bf16 %v2007_v17, %v2003_v62  ;;  %v8524_v2 = vld [vmem:[%s8038_s19] sm:$0xf] }
 0x294   : > { %v3011_v52 = vpack.c.bf16 %v2071_v63, %v2067_v29  ;;  %v2135_v19 = vcvt.s32.f32 %v1111_v46  ;;  %v911_v41 = vunpack.c.3.s8 %v8505_v25  ;;  %v971_v33 = vunpack.c.2.s8 %v647_v3 }
 0x295   : > { %4195 = vmatpush.bf16.msra.mxu0 %v2947_v51  ;;  %v1931_v44 = vcvt.s32.f32 %v907_v50  ;;  %v975_v31 = vunpack.c.3.s8 %v647_v3  ;;  %v1035_v54 = vunpack.c.2.s8 %v8509_v30  ;;  %4209 = vmatpush.bf16.msra.mxu1 %v2979_v60  ;;  %v1039_v8 = vunpack.c.3.s8 %v8509_v30 }
 0x296   : > { %4223 = vmatpush.bf16.msra.mxu2 %v3011_v52  ;;  %v3043_v37 = vpack.c.bf16 %v2135_v19, %v2131_v28  ;;  %v1935_v56 = vcvt.s32.f32 %v911_v41  ;;  %v1099_v36 = vunpack.c.2.s8 %v8513_v53  ;;  %v1995_v23 = vcvt.s32.f32 %v971_v33 }
 0x297   : > { %v1999_v4 = vcvt.s32.f32 %v975_v31  ;;  %v2059_v6 = vcvt.s32.f32 %v1035_v54  ;;  %v1103_v59 = vunpack.c.3.s8 %v8513_v53  ;;  %v2063_v27 = vcvt.s32.f32 %v1039_v8  ;;  %v3937_v54 = vpop.f32.mrf.mxu1 }
 0x298   : > { %4237 = vmatpush.bf16.msra.mxu3 %v3043_v37  ;;  %v2943_v49 = vpack.c.bf16 %v1935_v56, %v1931_v44  ;;  %v2123_v22 = vcvt.s32.f32 %v1099_v36  ;;  %v3950_v62 = vadd.f32 %v3949_v1, %v3936_v32  ;;  %v3924_v63 = vadd.f32 %v3923_v61, %v8489_v0 }
 0x299   : > { %v2975_v17 = vpack.c.bf16 %v1999_v4, %v1995_v23  ;;  %v2127_v29 = vcvt.s32.f32 %v1103_v59  ;;  %v4419_v46 = vperm.slane %v8521_v16, 1  ;;  %v3007_v51 = vpack.c.bf16 %v2063_v27, %v2059_v6  ;;  %v643_v4 = vld [vmem:[%s8030_s30 + $0x98] sm:$0xff] }
 0x29a   : > { %4196 = vmatpush.bf16.msra.mxu0 %v2943_v49  ;;  %v3964_v28 = vadd.f32 %v3963_v26, %v3950_v62  ;;  %v4437_v50 = vperm.slane %v8524_v2, 1  ;;  %v899_v60 = vunpack.c.0.s8 %v8505_v25  ;;  %v903_v32 = vunpack.c.1.s8 %v8505_v25  ;;  %v659_v6 = vld [vmem:[%s8030_s30 + $0x118] sm:$0xff] }
 0x29b   : > { %4210 = vmatpush.bf16.msra.mxu1 %v2975_v17  ;;  %v3039_v52 = vpack.c.bf16 %v2127_v29, %v2123_v22  ;;  %v963_v19 = vunpack.c.0.s8 %v647_v3  ;;  %v967_v41 = vunpack.c.1.s8 %v647_v3  ;;  %4224 = vmatpush.bf16.msra.mxu2 %v3007_v51  ;;  %v1027_v33 = vunpack.c.0.s8 %v8509_v30  ;;  %v627_v3 = vld [vmem:[%s8030_s30 + $0x18] sm:$0xff] }
 0x29c   : > { %v4427_v0 = vmul.f32 %v4419_v46, %v3964_v28  ;;  %v1923_v44 = vcvt.s32.f32 %v899_v60  ;;  %v1031_v31 = vunpack.c.1.s8 %v8509_v30  ;;  %v1927_v1 = vcvt.s32.f32 %v903_v32  ;;  %v8545_v27 = vld [vmem:[%s8030_s30 + $0x198] sm:$0xff] }
 0x29d   : > { %4238 = vmatpush.bf16.msra.mxu3 %v3039_v52  ;;  %v1987_v37 = vcvt.s32.f32 %v963_v19  ;;  %v1991_v56 = vcvt.s32.f32 %v967_v41  ;;  %v1091_v25 = vunpack.c.0.s8 %v8513_v53  ;;  %v2051_v36 = vcvt.s32.f32 %v1027_v33 }
 0x29e   : > { %v8539_v8 = vadd.f32 %v4437_v50, %v4427_v0  ;;  %v2055_v61 = vcvt.s32.f32 %v1031_v31  ;;  %v1095_v23 = vunpack.c.1.s8 %v8513_v53  ;;  %v2939_v30 = vpack.c.bf16 %v1927_v1, %v1923_v44  ;;  %v3951_v53 = vpop.f32.mrf.mxu2 }
 0x29f   : > { %v2971_v59 = vpack.c.bf16 %v1991_v56, %v1987_v37  ;;  %v2115_v26 = vcvt.s32.f32 %v1091_v25  ;;  %v3938_v49 = vadd.f32 %v3937_v54, %v3924_v63  ;;  %v891_v29 = vunpack.c.2.s8 %v627_v3  ;;  %v3965_v54 = vpop.f32.mrf.mxu3 }
 0x2a0   : > { %v4453_v22 = vmax.f32 %v8539_v8, 0.0  ;;  %v3003_v62 = vpack.c.bf16 %v2055_v61, %v2051_v36  ;;  %v2119_v17 = vcvt.s32.f32 %v1095_v23  ;;  %4197 = vmatpush.bf16.msra.mxu0 %v2939_v30  ;;  %v895_v51 = vunpack.c.3.s8 %v627_v3 }
 0x2a1   : > { %4211 = vmatpush.bf16.msra.mxu1 %v2971_v59  ;;  %v955_v28 = vunpack.c.2.s8 %v643_v4  ;;  %v959_v60 = vunpack.c.3.s8 %v643_v4  ;;  %v1019_v52 = vunpack.c.2.s8 %v659_v6  ;;  %v1915_v19 = vcvt.s32.f32 %v891_v29 }
 0x2a2   : > { %4225 = vmatpush.bf16.msra.mxu2 %v3003_v62  ;;  %v3035_v32 = vpack.c.bf16 %v2119_v17, %v2115_v26  ;;  %v1023_v41 = vunpack.c.3.s8 %v659_v6  ;;  %v1083_v63 = vunpack.c.2.s8 %v8545_v27  ;;  %v1919_v0 = vcvt.s32.f32 %v895_v51 }
 0x2a3   : > { %v1979_v44 = vcvt.s32.f32 %v955_v28  ;;  %v1983_v33 = vcvt.s32.f32 %v959_v60  ;;  %v2043_v31 = vcvt.s32.f32 %v1019_v52  ;;  %v1087_v37 = vunpack.c.3.s8 %v8545_v27  ;;  %v703_v52 = vld [vmem:[%s8030_s30 + $0x278] sm:$0xff] }
 0x2a4   : > { %4239 = vmatpush.bf16.msra.mxu3 %v3035_v32  ;;  %v2047_v1 = vcvt.s32.f32 %v1023_v41  ;;  %v2107_v56 = vcvt.s32.f32 %v1083_v63  ;;  %v3952_v25 = vadd.f32 %v3951_v53, %v3938_v49  ;;  %v2935_v36 = vpack.c.bf16 %v1919_v0, %v1915_v19  ;;  %v719_v19 = vld [vmem:[%s8030_s30 + $0x2f8] sm:$0xff] }
 0x2a5   : > { %v2967_v61 = vpack.c.bf16 %v1983_v33, %v1979_v44  ;;  %v883_v23 = vunpack.c.0.s8 %v627_v3  ;;  %v887_v30 = vunpack.c.1.s8 %v627_v3  ;;  %v2111_v26 = vcvt.s32.f32 %v1087_v37 }
 0x2a6   : > { %v2999_v59 = vpack.c.bf16 %v2047_v1, %v2043_v31  ;;  %v3966_v62 = vadd.f32 %v3965_v54, %v3952_v25  ;;  %v947_v17 = vunpack.c.0.s8 %v643_v4  ;;  %4198 = vmatpush.bf16.msra.mxu0 %v2935_v36  ;;  %v951_v28 = vunpack.c.1.s8 %v643_v4  ;;  %v735_v1 = vld [vmem:[%s8030_s30 + $0x378] sm:$0xff] }
 0x2a7   : > { %4212 = vmatpush.bf16.msra.mxu1 %v2967_v61  ;;  %v1907_v29 = vcvt.s32.f32 %v883_v23  ;;  %v1911_v51 = vcvt.s32.f32 %v887_v30  ;;  %v1011_v60 = vunpack.c.0.s8 %v659_v6  ;;  %v3031_v32 = vpack.c.bf16 %v2111_v26, %v2107_v56  ;;  %v751_v56 = vld [vmem:[%s8030_s30 + $0x3f8] sm:$0xff] }
 0x2a8   : > { %4226 = vmatpush.bf16.msra.mxu2 %v2999_v59  ;;  %v4431_v49 = vmul.f32 %v4419_v46, %v3966_v62  ;;  %v1971_v53 = vcvt.s32.f32 %v947_v17  ;;  %v1015_v3 = vunpack.c.1.s8 %v659_v6  ;;  %v1975_v63 = vcvt.s32.f32 %v951_v28 }
 0x2a9   : > { %v2931_v41 = vpack.c.bf16 %v1911_v51, %v1907_v29  ;;  %v2035_v0 = vcvt.s32.f32 %v1011_v60  ;;  %v1075_v44 = vunpack.c.0.s8 %v8545_v27  ;;  %4240 = vmatpush.bf16.msra.mxu3 %v3031_v32  ;;  %v1079_v31 = vunpack.c.1.s8 %v8545_v27 }
 0x2aa   : > { %v4449_v4 = vadd.f32 %v4437_v50, %v4431_v49  ;;  %v2039_v33 = vcvt.s32.f32 %v1015_v3  ;;  %v1195_v54 = vunpack.c.2.s8 %v703_v52  ;;  %v2963_v16 = vpack.c.bf16 %v1975_v63, %v1971_v53 }
 0x2ab   : > { %4199 = vmatpush.bf16.msra.mxu0 %v2931_v41  ;;  %v2099_v46 = vcvt.s32.f32 %v1075_v44  ;;  %v1199_v6 = vunpack.c.3.s8 %v703_v52  ;;  %v1259_v37 = vunpack.c.2.s8 %v719_v19  ;;  %v2103_v61 = vcvt.s32.f32 %v1079_v31 }
 0x2ac   : > { %v4457_v25 = vmax.f32 %v4449_v4, 0.0  ;;  %v2995_v36 = vpack.c.bf16 %v2039_v33, %v2035_v0  ;;  %v2219_v23 = vcvt.s32.f32 %v1195_v54  ;;  %4213 = vmatpush.bf16.msra.mxu1 %v2963_v16  ;;  %v1263_v59 = vunpack.c.3.s8 %v719_v19  ;;  %v699_v33 = vld [vmem:[%s8030_s30 + $0x258] sm:$0xff] }
 0x2ad   : > { %v2223_v30 = vcvt.s32.f32 %v1199_v6  ;;  %v2283_v2 = vcvt.s32.f32 %v1259_v37  ;;  %v1323_v50 = vunpack.c.2.s8 %v735_v1  ;;  %v3027_v26 = vpack.c.bf16 %v2103_v61, %v2099_v46  ;;  %v731_v37 = vld [vmem:[%s8030_s30 + $0x358] sm:$0xff] }
 0x2ae   : > { %v8562_v27 = vpack.c.bf16 %v4457_v25, %v4453_v22  ;;  %4227 = vmatpush.bf16.msra.mxu2 %v2995_v36  ;;  %v1327_v62 = vunpack.c.3.s8 %v735_v1  ;;  %v1387_v17 = vunpack.c.2.s8 %v751_v56  ;;  %4200 = vmatmul.bf16.vlgmr.msra.gmra.mxu0 %v8080_v10  ;;  %v2287_v51 = vcvt.s32.f32 %v1263_v59 }
 0x2af   : > { %v3087_v29 = vpack.c.bf16 %v2223_v30, %v2219_v23  ;;  %v2347_v28 = vcvt.s32.f32 %v1323_v50  ;;  %v1391_v60 = vunpack.c.3.s8 %v751_v56  ;;  %4241 = vmatpush.bf16.msra.mxu3 %v3027_v26  ;;  %v1187_v53 = vunpack.c.0.s8 %v703_v52  ;;  %4214 = vmatmul.bf16.vlgmr.msra.gmra.mxu1 %v8094_v39  ;;  %v715_v39 = vld [vmem:[%s8030_s30 + $0x2d8] sm:$0xff] }
 0x2b0   : > { %v2351_v32 = vcvt.s32.f32 %v1327_v62  ;;  %v2411_v49 = vcvt.s32.f32 %v1387_v17  ;;  %v1191_v3 = vunpack.c.1.s8 %v703_v52  ;;  %v3119_v8 = vpack.c.bf16 %v2287_v51, %v2283_v2  ;;  %v747_v50 = vld [vmem:[%s8030_s30 + $0x3d8] sm:$0xff] }
 0x2b1   : > { %4248 = vmatpush.bf16.msrb.mxu0 %v3087_v29  ;;  %v2415_v22 = vcvt.s32.f32 %v1391_v60  ;;  %v1251_v41 = vunpack.c.0.s8 %v719_v19  ;;  %v1255_v63 = vunpack.c.1.s8 %v719_v19  ;;  %4228 = vmatmul.bf16.vlgmr.msra.gmra.mxu2 %v8083_v15  ;;  %v2211_v0 = vcvt.s32.f32 %v1187_v53 }
 0x2b2   : > { %v3151_v10 = vpack.c.bf16 %v2351_v32, %v2347_v28  ;;  %v2215_v44 = vcvt.s32.f32 %v1191_v3  ;;  %v1315_v4 = vunpack.c.0.s8 %v735_v1  ;;  %4262 = vmatpush.bf16.msrb.mxu1 %v3119_v8  ;;  %v1319_v16 = vunpack.c.1.s8 %v735_v1  ;;  %4242 = vmatmul.bf16.vlgmr.msra.gmra.mxu3 %v8096_v40 }
 0x2b3   : > { %v3183_v31 = vpack.c.bf16 %v2415_v22, %v2411_v49  ;;  %v2275_v54 = vcvt.s32.f32 %v1251_v41  ;;  %v2279_v52 = vcvt.s32.f32 %v1255_v63  ;;  %v1379_v6 = vunpack.c.0.s8 %v751_v56 }
 0x2b4   : > { %4276 = vmatpush.bf16.msrb.mxu2 %v3151_v10  ;;  %v3083_v46 = vpack.c.bf16 %v2215_v44, %v2211_v0  ;;  %v2339_v19 = vcvt.s32.f32 %v1315_v4  ;;  %v1383_v15 = vunpack.c.1.s8 %v751_v56  ;;  %v2343_v36 = vcvt.s32.f32 %v1319_v16  ;;  %v695_v16 = vld [vmem:[%s8030_s30 + $0x238] sm:$0xff] }
 0x2b5   : > { %4290 = vmatpush.bf16.msrb.mxu3 %v3183_v31  ;;  %v3115_v25 = vpack.c.bf16 %v2279_v52, %v2275_v54  ;;  %v1179_v61 = vunpack.c.2.s8 %v699_v33  ;;  %v1183_v23 = vunpack.c.3.s8 %v699_v33  ;;  %v2403_v30 = vcvt.s32.f32 %v1379_v6 }
 0x2b6   : > { %4249 = vmatpush.bf16.msrb.mxu0 %v3083_v46  ;;  %v2407_v59 = vcvt.s32.f32 %v1383_v15  ;;  %v1243_v2 = vunpack.c.2.s8 %v715_v39  ;;  %v1247_v1 = vunpack.c.3.s8 %v715_v39  ;;  %v3147_v40 = vpack.c.bf16 %v2343_v36, %v2339_v19 }
 0x2b7   : > { %4263 = vmatpush.bf16.msrb.mxu1 %v3115_v25  ;;  %v2203_v26 = vcvt.s32.f32 %v1179_v61  ;;  %v2207_v62 = vcvt.s32.f32 %v1183_v23  ;;  %v1307_v17 = vunpack.c.2.s8 %v731_v37  ;;  %v1311_v28 = vunpack.c.3.s8 %v731_v37  ;;  %v711_v25 = vld [vmem:[%s8030_s30 + $0x2b8] sm:$0xff] }
 0x2b8   : > { %v3179_v29 = vpack.c.bf16 %v2407_v59, %v2403_v30  ;;  %v2267_v51 = vcvt.s32.f32 %v1243_v2  ;;  %v2271_v56 = vcvt.s32.f32 %v1247_v1  ;;  %4277 = vmatpush.bf16.msrb.mxu2 %v3147_v40  ;;  %v1371_v49 = vunpack.c.2.s8 %v747_v50  ;;  %v727_v30 = vld [vmem:[%s8030_s30 + $0x338] sm:$0xff] }
 0x2b9   : > { %v3079_v60 = vpack.c.bf16 %v2207_v62, %v2203_v26  ;;  %v2331_v32 = vcvt.s32.f32 %v1307_v17  ;;  %v1375_v53 = vunpack.c.3.s8 %v747_v50  ;;  %v2335_v8 = vcvt.s32.f32 %v1311_v28 }
 0x2ba   : > { %4291 = vmatpush.bf16.msrb.mxu3 %v3179_v29  ;;  %v3111_v3 = vpack.c.bf16 %v2271_v56, %v2267_v51  ;;  %v1171_v22 = vunpack.c.0.s8 %v699_v33  ;;  %v1175_v41 = vunpack.c.1.s8 %v699_v33  ;;  %v2395_v63 = vcvt.s32.f32 %v1371_v49  ;;  %v743_v29 = vld [vmem:[%s8030_s30 + $0x3b8] sm:$0xff] }
 0x2bb   : > { %4250 = vmatpush.bf16.msrb.mxu0 %v3079_v60  ;;  %v2399_v10 = vcvt.s32.f32 %v1375_v53  ;;  %v1235_v0 = vunpack.c.0.s8 %v715_v39  ;;  %v1239_v44 = vunpack.c.1.s8 %v715_v39  ;;  %v3143_v4 = vpack.c.bf16 %v2335_v8, %v2331_v32 }
 0x2bc   : > { %4264 = vmatpush.bf16.msrb.mxu1 %v3111_v3  ;;  %v2195_v31 = vcvt.s32.f32 %v1171_v22  ;;  %v2199_v54 = vcvt.s32.f32 %v1175_v41  ;;  %v1299_v52 = vunpack.c.0.s8 %v731_v37  ;;  %v1303_v15 = vunpack.c.1.s8 %v731_v37 }
 0x2bd   : > { %v3175_v46 = vpack.c.bf16 %v2399_v10, %v2395_v63  ;;  %v2259_v19 = vcvt.s32.f32 %v1235_v0  ;;  %v2263_v6 = vcvt.s32.f32 %v1239_v44  ;;  %4278 = vmatpush.bf16.msrb.mxu2 %v3143_v4  ;;  %v1363_v61 = vunpack.c.0.s8 %v747_v50 }
 0x2be   : > { %v3075_v33 = vpack.c.bf16 %v2199_v54, %v2195_v31  ;;  %v2323_v36 = vcvt.s32.f32 %v1299_v52  ;;  %v1367_v23 = vunpack.c.1.s8 %v747_v50  ;;  %v2327_v59 = vcvt.s32.f32 %v1303_v15  ;;  %v691_v15 = vld [vmem:[%s8030_s30 + $0x218] sm:$0xff] }
 0x2bf   : > { %4292 = vmatpush.bf16.msrb.mxu3 %v3175_v46  ;;  %v3107_v39 = vpack.c.bf16 %v2263_v6, %v2259_v19  ;;  %v1163_v2 = vunpack.c.2.s8 %v695_v16  ;;  %v1167_v1 = vunpack.c.3.s8 %v695_v16  ;;  %v2387_v40 = vcvt.s32.f32 %v1363_v61 }
 0x2c0   : > { %4251 = vmatpush.bf16.msrb.mxu0 %v3075_v33  ;;  %v2391_v26 = vcvt.s32.f32 %v1367_v23  ;;  %v1227_v62 = vunpack.c.2.s8 %v711_v25  ;;  %v1231_v17 = vunpack.c.3.s8 %v711_v25  ;;  %v3139_v37 = vpack.c.bf16 %v2327_v59, %v2323_v36 }
 0x2c1   : > { %4265 = vmatpush.bf16.msrb.mxu1 %v3107_v39  ;;  %v2187_v51 = vcvt.s32.f32 %v1163_v2  ;;  %v2191_v56 = vcvt.s32.f32 %v1167_v1  ;;  %v1291_v28 = vunpack.c.2.s8 %v727_v30  ;;  %v1295_v49 = vunpack.c.3.s8 %v727_v30  ;;  %v707_v39 = vld [vmem:[%s8030_s30 + $0x298] sm:$0xff] }
 0x2c2   : > { %v3171_v60 = vpack.c.bf16 %v2391_v26, %v2387_v40  ;;  %v2251_v32 = vcvt.s32.f32 %v1227_v62  ;;  %v2255_v50 = vcvt.s32.f32 %v1231_v17  ;;  %4279 = vmatpush.bf16.msrb.mxu2 %v3139_v37  ;;  %v1355_v8 = vunpack.c.2.s8 %v743_v29  ;;  %v723_v40 = vld [vmem:[%s8030_s30 + $0x318] sm:$0xff] }
 0x2c3   : > { %v3071_v53 = vpack.c.bf16 %v2191_v56, %v2187_v51  ;;  %v2315_v3 = vcvt.s32.f32 %v1291_v28  ;;  %v1359_v22 = vunpack.c.3.s8 %v743_v29  ;;  %v2319_v63 = vcvt.s32.f32 %v1295_v49 }
 0x2c4   : > { %4293 = vmatpush.bf16.msrb.mxu3 %v3171_v60  ;;  %v3103_v41 = vpack.c.bf16 %v2255_v50, %v2251_v32  ;;  %v1155_v10 = vunpack.c.0.s8 %v695_v16  ;;  %v1159_v0 = vunpack.c.1.s8 %v695_v16  ;;  %v2379_v44 = vcvt.s32.f32 %v1355_v8  ;;  %v739_v60 = vld [vmem:[%s8030_s30 + $0x398] sm:$0xff] }
 0x2c5   : > { %4252 = vmatpush.bf16.msrb.mxu0 %v3071_v53  ;;  %v2383_v4 = vcvt.s32.f32 %v1359_v22  ;;  %v1219_v31 = vunpack.c.0.s8 %v711_v25  ;;  %v1223_v54 = vunpack.c.1.s8 %v711_v25  ;;  %v3135_v52 = vpack.c.bf16 %v2319_v63, %v2315_v3  ;;  %v3977_v22 = vpop.f32.mrf.mxu0 }
 0x2c6   : > { %4266 = vmatpush.bf16.msrb.mxu1 %v3103_v41  ;;  %v2179_v46 = vcvt.s32.f32 %v1155_v10  ;;  %v2183_v19 = vcvt.s32.f32 %v1159_v0  ;;  %v1283_v6 = vunpack.c.0.s8 %v727_v30  ;;  %v1287_v23 = vunpack.c.1.s8 %v727_v30 }
 0x2c7   : > { %v3167_v33 = vpack.c.bf16 %v2383_v4, %v2379_v44  ;;  %v2243_v36 = vcvt.s32.f32 %v1219_v31  ;;  %v2247_v61 = vcvt.s32.f32 %v1223_v54  ;;  %4280 = vmatpush.bf16.msrb.mxu2 %v3135_v52  ;;  %v1347_v2 = vunpack.c.0.s8 %v743_v29  ;;  %v3991_v44 = vpop.f32.mrf.mxu1 }
 0x2c8   : > { %v3067_v16 = vpack.c.bf16 %v2183_v19, %v2179_v46  ;;  %v2307_v59 = vcvt.s32.f32 %v1283_v6  ;;  %v1351_v1 = vunpack.c.1.s8 %v743_v29  ;;  %v2311_v26 = vcvt.s32.f32 %v1287_v23 }
 0x2c9   : > { %4294 = vmatpush.bf16.msrb.mxu3 %v3167_v33  ;;  %v3099_v25 = vpack.c.bf16 %v2247_v61, %v2243_v36  ;;  %v1147_v62 = vunpack.c.2.s8 %v691_v15  ;;  %v1151_v17 = vunpack.c.3.s8 %v691_v15  ;;  %v2371_v37 = vcvt.s32.f32 %v1347_v2 }
 0x2ca   : > { %4253 = vmatpush.bf16.msrb.mxu0 %v3067_v16  ;;  %v2375_v51 = vcvt.s32.f32 %v1351_v1  ;;  %v1211_v56 = vunpack.c.2.s8 %v707_v39  ;;  %v1215_v28 = vunpack.c.3.s8 %v707_v39  ;;  %v3131_v30 = vpack.c.bf16 %v2311_v26, %v2307_v59  ;;  %v767_v59 = vld [vmem:[%s8030_s30 + $0x478] sm:$0xff] }
 0x2cb   : > { %4267 = vmatpush.bf16.msrb.mxu1 %v3099_v25  ;;  %v2171_v32 = vcvt.s32.f32 %v1147_v62  ;;  %v2175_v50 = vcvt.s32.f32 %v1151_v17  ;;  %v1275_v49 = vunpack.c.2.s8 %v723_v40  ;;  %v1279_v8 = vunpack.c.3.s8 %v723_v40  ;;  %v8582_v62 = vld [vmem:[%s8030_s30 + $0x4f8] sm:$0xff] }
 0x2cc   : > { %v3163_v53 = vpack.c.bf16 %v2375_v51, %v2371_v37  ;;  %v2235_v3 = vcvt.s32.f32 %v1211_v56  ;;  %v2239_v29 = vcvt.s32.f32 %v1215_v28  ;;  %4281 = vmatpush.bf16.msrb.mxu2 %v3131_v30  ;;  %v1339_v10 = vunpack.c.2.s8 %v739_v60 }
 0x2cd   : > { %v3063_v41 = vpack.c.bf16 %v2175_v50, %v2171_v32  ;;  %v2299_v63 = vcvt.s32.f32 %v1275_v49  ;;  %v1343_v0 = vunpack.c.3.s8 %v739_v60  ;;  %v2303_v31 = vcvt.s32.f32 %v1279_v8  ;;  %v799_v32 = vld [vmem:[%s8030_s30 + $0x578] sm:$0xff] }
 0x2ce   : > { %4295 = vmatpush.bf16.msrb.mxu3 %v3163_v53  ;;  %v3095_v4 = vpack.c.bf16 %v2239_v29, %v2235_v3  ;;  %v3992_v54 = vadd.f32 %v3991_v44, %v3977_v22  ;;  %v1139_v52 = vunpack.c.0.s8 %v691_v15  ;;  %v2363_v46 = vcvt.s32.f32 %v1339_v10 }
 0x2cf   : > { %4254 = vmatpush.bf16.msrb.mxu0 %v3063_v41  ;;  %v2367_v19 = vcvt.s32.f32 %v1343_v0  ;;  %v1143_v6 = vunpack.c.1.s8 %v691_v15  ;;  %v1203_v33 = vunpack.c.0.s8 %v707_v39  ;;  %v3127_v36 = vpack.c.bf16 %v2303_v31, %v2299_v63 }
 0x2d0   : > { %4268 = vmatpush.bf16.msrb.mxu1 %v3095_v4  ;;  %v2163_v61 = vcvt.s32.f32 %v1139_v52  ;;  %v1207_v23 = vunpack.c.1.s8 %v707_v39  ;;  %v1267_v16 = vunpack.c.0.s8 %v723_v40  ;;  %v1271_v26 = vunpack.c.1.s8 %v723_v40  ;;  %v815_v40 = vld [vmem:[%s8030_s30 + $0x5f8] sm:$0xff] }
 0x2d1   : > { %v3159_v2 = vpack.c.bf16 %v2367_v19, %v2363_v46  ;;  %v2167_v1 = vcvt.s32.f32 %v1143_v6  ;;  %v2227_v25 = vcvt.s32.f32 %v1203_v33  ;;  %4282 = vmatpush.bf16.msrb.mxu2 %v3127_v36  ;;  %v1331_v51 = vunpack.c.0.s8 %v739_v60  ;;  %v4005_v46 = vpop.f32.mrf.mxu2 }
 0x2d2   : > { %v2231_v17 = vcvt.s32.f32 %v1207_v23  ;;  %v2291_v37 = vcvt.s32.f32 %v1267_v16  ;;  %v1335_v15 = vunpack.c.1.s8 %v739_v60  ;;  %v2295_v28 = vcvt.s32.f32 %v1271_v26 }
 0x2d3   : > { %4296 = vmatpush.bf16.msrb.mxu3 %v3159_v2  ;;  %v3059_v56 = vpack.c.bf16 %v2167_v1, %v2163_v61  ;;  %v1451_v30 = vunpack.c.2.s8 %v767_v59  ;;  %v1455_v39 = vunpack.c.3.s8 %v767_v59  ;;  %v2355_v49 = vcvt.s32.f32 %v1331_v51  ;;  %v3979_v2 = vpop.f32.mrf.mxu0  ;;  %v4019_v1 = vpop.f32.mrf.mxu3 }
 0x2d4   : > { %v3091_v50 = vpack.c.bf16 %v2231_v17, %v2227_v25  ;;  %v2359_v53 = vcvt.s32.f32 %v1335_v15  ;;  %v1515_v3 = vunpack.c.2.s8 %v8582_v62  ;;  %v3123_v29 = vpack.c.bf16 %v2295_v28, %v2291_v37  ;;  %v763_v28 = vld [vmem:[%s8030_s30 + $0x458] sm:$0xff] }
 0x2d5   : > { %4255 = vmatpush.bf16.msrb.mxu0 %v3059_v56  ;;  %v2475_v8 = vcvt.s32.f32 %v1451_v30  ;;  %v2479_v22 = vcvt.s32.f32 %v1455_v39  ;;  %v1519_v41 = vunpack.c.3.s8 %v8582_v62  ;;  %v1579_v10 = vunpack.c.2.s8 %v799_v32  ;;  %v3993_v39 = vpop.f32.mrf.mxu1 }
 0x2d6   : > { %4269 = vmatpush.bf16.msrb.mxu1 %v3091_v50  ;;  %v3155_v60 = vpack.c.bf16 %v2359_v53, %v2355_v49  ;;  %v2539_v63 = vcvt.s32.f32 %v1515_v3  ;;  %v1583_v0 = vunpack.c.3.s8 %v799_v32  ;;  %4283 = vmatpush.bf16.msrb.mxu2 %v3123_v29  ;;  %v1643_v31 = vunpack.c.2.s8 %v815_v40  ;;  %v779_v50 = vld [vmem:[%s8030_s30 + $0x4d8] sm:$0xff] }
 0x2d7   : > { %v3215_v44 = vpack.c.bf16 %v2479_v22, %v2475_v8  ;;  %v2543_v4 = vcvt.s32.f32 %v1519_v41  ;;  %v1647_v52 = vunpack.c.3.s8 %v815_v40  ;;  %v2603_v19 = vcvt.s32.f32 %v1579_v10 }
 0x2d8   : > { %4297 = vmatpush.bf16.msrb.mxu3 %v3155_v60  ;;  %v2607_v6 = vcvt.s32.f32 %v1583_v0  ;;  %v4006_v33 = vadd.f32 %v4005_v46, %v3992_v54  ;;  %4256 = vmatmul.bf16.vlgmr.msrb.gmra.mxu0 %v8128_v13  ;;  %v1443_v36 = vunpack.c.0.s8 %v767_v59  ;;  %v2667_v23 = vcvt.s32.f32 %v1643_v31  ;;  %v811_v0 = vld [vmem:[%s8030_s30 + $0x5d8] sm:$0xff] }
 0x2d9   : > { %4304 = vmatpush.bf16.msra.mxu0 %v3215_v44  ;;  %v3247_v61 = vpack.c.bf16 %v2543_v4, %v2539_v63  ;;  %v2671_v16 = vcvt.s32.f32 %v1647_v52  ;;  %4270 = vmatmul.bf16.vlgmr.msrb.gmra.mxu1 %v8132_v20  ;;  %v1447_v25 = vunpack.c.1.s8 %v767_v59  ;;  %v1507_v54 = vunpack.c.0.s8 %v8582_v62 }
 0x2da   : > { %v3279_v26 = vpack.c.bf16 %v2607_v6, %v2603_v19  ;;  %4284 = vmatmul.bf16.vlgmr.msrb.gmra.mxu2 %v8130_v18  ;;  %v4020_v17 = vadd.f32 %v4019_v1, %v4006_v33  ;;  %v2467_v37 = vcvt.s32.f32 %v1443_v36  ;;  %v1511_v15 = vunpack.c.1.s8 %v8582_v62 }
 0x2db   : > { %4318 = vmatpush.bf16.msra.mxu1 %v3247_v61  ;;  %v3311_v13 = vpack.c.bf16 %v2671_v16, %v2667_v23  ;;  %4298 = vmatmul.bf16.vlgmr.msrb.gmra.mxu3 %v8134_v21  ;;  %v2471_v51 = vcvt.s32.f32 %v1447_v25  ;;  %v1571_v56 = vunpack.c.0.s8 %v799_v32  ;;  %v2531_v20 = vcvt.s32.f32 %v1507_v54  ;;  %v795_v21 = vld [vmem:[%s8030_s30 + $0x558] sm:$0xff]  ;;  %v4007_v16 = vpop.f32.mrf.mxu2 }
 0x2dc   : > { %4332 = vmatpush.bf16.msra.mxu2 %v3279_v26  ;;  %v1575_v59 = vunpack.c.1.s8 %v799_v32  ;;  %v1635_v30 = vunpack.c.0.s8 %v815_v40  ;;  %v1639_v18 = vunpack.c.1.s8 %v815_v40  ;;  %v2535_v53 = vcvt.s32.f32 %v1511_v15 }
 0x2dd   : > { %4346 = vmatpush.bf16.msra.mxu3 %v3311_v13  ;;  %v3211_v49 = vpack.c.bf16 %v2471_v51, %v2467_v37  ;;  %v2595_v3 = vcvt.s32.f32 %v1571_v56  ;;  %v3994_v29 = vadd.f32 %v3993_v39, %v3979_v2  ;;  %v1435_v62 = vunpack.c.2.s8 %v763_v28  ;;  %v4033_v37 = vpop.f32.mrf.mxu0 }
 0x2de   : > { %v2599_v8 = vcvt.s32.f32 %v1575_v59  ;;  %v2659_v22 = vcvt.s32.f32 %v1635_v30  ;;  %v2663_v41 = vcvt.s32.f32 %v1639_v18  ;;  %v3243_v60 = vpack.c.bf16 %v2535_v53, %v2531_v20 }
 0x2df   : > { %4305 = vmatpush.bf16.msra.mxu0 %v3211_v49  ;;  %v1439_v63 = vunpack.c.3.s8 %v763_v28  ;;  %v1499_v10 = vunpack.c.2.s8 %v779_v50  ;;  %v1503_v32 = vunpack.c.3.s8 %v779_v50  ;;  %v2459_v4 = vcvt.s32.f32 %v1435_v62  ;;  %v759_v49 = vld [vmem:[%s8030_s30 + $0x438] sm:$0xff] }
 0x2e0   : > { %v3275_v40 = vpack.c.bf16 %v2599_v8, %v2595_v3  ;;  %v3307_v44 = vpack.c.bf16 %v2663_v41, %v2659_v22  ;;  %v1563_v31 = vunpack.c.2.s8 %v795_v21  ;;  %4319 = vmatpush.bf16.msra.mxu1 %v3243_v60  ;;  %v1567_v6 = vunpack.c.3.s8 %v795_v21  ;;  %v4047_v8 = vpop.f32.mrf.mxu1  ;;  %v775_v22 = vld [vmem:[%s8030_s30 + $0x4b8] sm:$0xff] }
 0x2e1   : > { %v2463_v52 = vcvt.s32.f32 %v1439_v63  ;;  %v2523_v46 = vcvt.s32.f32 %v1499_v10  ;;  %v2527_v19 = vcvt.s32.f32 %v1503_v32  ;;  %v8600_v33 = vadd.f32 %v8359_v35, %v8397_v58 }
 0x2e2   : > { %4333 = vmatpush.bf16.msra.mxu2 %v3275_v40  ;;  %4347 = vmatpush.bf16.msra.mxu3 %v3307_v44  ;;  %v2587_v36 = vcvt.s32.f32 %v1563_v31  ;;  %v1627_v61 = vunpack.c.2.s8 %v811_v0  ;;  %v1631_v23 = vunpack.c.3.s8 %v811_v0  ;;  %v2591_v25 = vcvt.s32.f32 %v1567_v6 }
 0x2e3   : > { %v3207_v2 = vpack.c.bf16 %v2463_v52, %v2459_v4  ;;  %v3239_v1 = vpack.c.bf16 %v2527_v19, %v2523_v46  ;;  %v4008_v26 = vadd.f32 %v4007_v16, %v3994_v29  ;;  %v4034_v51 = vadd.f32 %v4033_v37, %v4020_v17 }
 0x2e4   : > { %v2651_v54 = vcvt.s32.f32 %v1627_v61  ;;  %v2655_v13 = vcvt.s32.f32 %v1631_v23  ;;  %v1427_v15 = vunpack.c.0.s8 %v763_v28  ;;  %v3271_v35 = vpack.c.bf16 %v2591_v25, %v2587_v36 }
 0x2e5   : > { %4306 = vmatpush.bf16.msra.mxu0 %v3207_v2  ;;  %4320 = vmatpush.bf16.msra.mxu1 %v3239_v1  ;;  %v1431_v58 = vunpack.c.1.s8 %v763_v28  ;;  %v1491_v56 = vunpack.c.0.s8 %v779_v50  ;;  %v1495_v20 = vunpack.c.1.s8 %v779_v50  ;;  %v1555_v18 = vunpack.c.0.s8 %v795_v21  ;;  %v791_v50 = vld [vmem:[%s8030_s30 + $0x538] sm:$0xff]  ;;  %v4021_v2 = vpop.f32.mrf.mxu3 }
 0x2e6   : > { %v3303_v59 = vpack.c.bf16 %v2655_v13, %v2651_v54  ;;  %v2451_v30 = vcvt.s32.f32 %v1427_v15  ;;  %v1559_v39 = vunpack.c.1.s8 %v795_v21  ;;  %4334 = vmatpush.bf16.msra.mxu2 %v3271_v35  ;;  %v1619_v17 = vunpack.c.0.s8 %v811_v0  ;;  %v807_v21 = vld [vmem:[%s8030_s30 + $0x5b8] sm:$0xff] }
 0x2e7   : > { %v2455_v53 = vcvt.s32.f32 %v1431_v58  ;;  %v2515_v3 = vcvt.s32.f32 %v1491_v56  ;;  %v2519_v29 = vcvt.s32.f32 %v1495_v20  ;;  %v2579_v41 = vcvt.s32.f32 %v1555_v18 }
 0x2e8   : > { %4348 = vmatpush.bf16.msra.mxu3 %v3303_v59  ;;  %v2583_v62 = vcvt.s32.f32 %v1559_v39  ;;  %v1623_v28 = vunpack.c.1.s8 %v811_v0  ;;  %v4048_v60 = vadd.f32 %v4047_v8, %v4034_v51  ;;  %v2643_v32 = vcvt.s32.f32 %v1619_v17  ;;  %v4061_v59 = vpop.f32.mrf.mxu2  ;;  %v4035_v39 = vpop.f32.mrf.mxu0  ;;  %v755_v8 = vld [vmem:[%s8030_s30 + $0x418] sm:$0xff] }
 0x2e9   : > { %v3203_v63 = vpack.c.bf16 %v2455_v53, %v2451_v30  ;;  %v3235_v10 = vpack.c.bf16 %v2519_v29, %v2515_v3  ;;  %v1419_v40 = vunpack.c.2.s8 %v759_v49  ;;  %v1423_v31 = vunpack.c.3.s8 %v759_v49 }
 0x2ea   : > { %v3267_v44 = vpack.c.bf16 %v2583_v62, %v2579_v41  ;;  %v2647_v4 = vcvt.s32.f32 %v1623_v28  ;;  %v1483_v52 = vunpack.c.2.s8 %v775_v22  ;;  %v1487_v19 = vunpack.c.3.s8 %v775_v22 }
 0x2eb   : > { %4307 = vmatpush.bf16.msra.mxu0 %v3203_v63  ;;  %4321 = vmatpush.bf16.msra.mxu1 %v3235_v10  ;;  %v2443_v46 = vcvt.s32.f32 %v1419_v40  ;;  %v1547_v6 = vunpack.c.2.s8 %v791_v50  ;;  %v1551_v36 = vunpack.c.3.s8 %v791_v50  ;;  %v2447_v0 = vcvt.s32.f32 %v1423_v31  ;;  %v771_v10 = vld [vmem:[%s8030_s30 + $0x498] sm:$0xff] }
 0x2ec   : > { %4335 = vmatpush.bf16.msra.mxu2 %v3267_v44  ;;  %v3299_v61 = vpack.c.bf16 %v2647_v4, %v2643_v32  ;;  %v2507_v23 = vcvt.s32.f32 %v1483_v52  ;;  %v1611_v16 = vunpack.c.2.s8 %v807_v21  ;;  %v2511_v1 = vcvt.s32.f32 %v1487_v19 }
 0x2ed   : > { %v2571_v25 = vcvt.s32.f32 %v1547_v6  ;;  %v2575_v37 = vcvt.s32.f32 %v1551_v36  ;;  %v1615_v54 = vunpack.c.3.s8 %v807_v21  ;;  %v8608_v13 = vadd.f32 %v8367_v7, %v8600_v33 }
 0x2ee   : > { %v4022_v51 = vadd.f32 %v4021_v2, %v4008_v26  ;;  %4349 = vmatpush.bf16.msra.mxu3 %v3299_v61  ;;  %v3199_v15 = vpack.c.bf16 %v2447_v0, %v2443_v46  ;;  %v2635_v35 = vcvt.s32.f32 %v1611_v16  ;;  %v3231_v58 = vpack.c.bf16 %v2511_v1, %v2507_v23  ;;  %v803_v46 = vld [vmem:[%s8030_s30 + $0x598] sm:$0xff] }
 0x2ef   : > { %v3263_v56 = vpack.c.bf16 %v2575_v37, %v2571_v25  ;;  %v2639_v20 = vcvt.s32.f32 %v1615_v54  ;;  %v1411_v30 = vunpack.c.0.s8 %v759_v49  ;;  %v4062_v18 = vadd.f32 %v4061_v59, %v4048_v60  ;;  %v4075_v37 = vpop.f32.mrf.mxu3  ;;  %v4049_v54 = vpop.f32.mrf.mxu1 }
 0x2f0   : > { %4308 = vmatpush.bf16.msra.mxu0 %v3199_v15  ;;  %v1415_v53 = vunpack.c.1.s8 %v759_v49  ;;  %v1475_v3 = vunpack.c.0.s8 %v775_v22  ;;  %v1479_v29 = vunpack.c.1.s8 %v775_v22  ;;  %4322 = vmatpush.bf16.msra.mxu1 %v3231_v58  ;;  %v1539_v26 = vunpack.c.0.s8 %v791_v50  ;;  %v787_v22 = vld [vmem:[%s8030_s30 + $0x518] sm:$0xff] }
 0x2f1   : > { %4336 = vmatpush.bf16.msra.mxu2 %v3263_v56  ;;  %v3295_v7 = vpack.c.bf16 %v2639_v20, %v2635_v35  ;;  %v2435_v33 = vcvt.s32.f32 %v1411_v30  ;;  %v1543_v17 = vunpack.c.1.s8 %v791_v50  ;;  %v1603_v63 = vunpack.c.0.s8 %v807_v21 }
 0x2f2   : > { %v2439_v41 = vcvt.s32.f32 %v1415_v53  ;;  %v2499_v62 = vcvt.s32.f32 %v1475_v3  ;;  %v2503_v28 = vcvt.s32.f32 %v1479_v29  ;;  %v4036_v60 = vadd.f32 %v4035_v39, %v4022_v51 }
 0x2f3   : > { %4350 = vmatpush.bf16.msra.mxu3 %v3295_v7  ;;  %v2563_v32 = vcvt.s32.f32 %v1539_v26  ;;  %v2567_v49 = vcvt.s32.f32 %v1543_v17  ;;  %v1607_v40 = vunpack.c.1.s8 %v807_v21  ;;  %v2627_v31 = vcvt.s32.f32 %v1603_v63 }
 0x2f4   : > { %v3195_v44 = vpack.c.bf16 %v2439_v41, %v2435_v33  ;;  %v3227_v4 = vpack.c.bf16 %v2503_v28, %v2499_v62  ;;  %v1403_v52 = vunpack.c.2.s8 %v755_v8  ;;  %v1407_v6 = vunpack.c.3.s8 %v755_v8  ;;  %v831_v41 = vld [vmem:[%s8030_s30 + $0x678] sm:$0xff] }
 0x2f5   : > { %v3259_v19 = vpack.c.bf16 %v2567_v49, %v2563_v32  ;;  %v2631_v50 = vcvt.s32.f32 %v1607_v40  ;;  %v1467_v36 = vunpack.c.2.s8 %v771_v10  ;;  %v1471_v0 = vunpack.c.3.s8 %v771_v10 }
 0x2f6   : > { %4309 = vmatpush.bf16.msra.mxu0 %v3195_v44  ;;  %4323 = vmatpush.bf16.msra.mxu1 %v3227_v4  ;;  %v2427_v61 = vcvt.s32.f32 %v1403_v52  ;;  %v1531_v23 = vunpack.c.2.s8 %v787_v22  ;;  %v1535_v16 = vunpack.c.3.s8 %v787_v22  ;;  %v2431_v1 = vcvt.s32.f32 %v1407_v6 }
 0x2f7   : > { %4337 = vmatpush.bf16.msra.mxu2 %v3259_v19  ;;  %v3291_v2 = vpack.c.bf16 %v2631_v50, %v2627_v31  ;;  %v2491_v21 = vcvt.s32.f32 %v1467_v36  ;;  %v1595_v25 = vunpack.c.2.s8 %v803_v46  ;;  %v2495_v51 = vcvt.s32.f32 %v1471_v0 }
 0x2f8   : > { %v2555_v15 = vcvt.s32.f32 %v1531_v23  ;;  %v2559_v35 = vcvt.s32.f32 %v1535_v16  ;;  %v1599_v58 = vunpack.c.3.s8 %v803_v46  ;;  %v8614_v56 = vadd.f32 %v4075_v37, %v4062_v18 }
 0x2f9   : > { %4351 = vmatpush.bf16.msra.mxu3 %v3291_v2  ;;  %v3191_v20 = vpack.c.bf16 %v2431_v1, %v2427_v61  ;;  %v2619_v59 = vcvt.s32.f32 %v1595_v25  ;;  %v1395_v30 = vunpack.c.0.s8 %v755_v8  ;;  %v3223_v39 = vpack.c.bf16 %v2495_v51, %v2491_v21  ;;  %v879_v61 = vld [vmem:[%s8030_s30 + $0x7f8] sm:$0xff] }
 0x2fa   : > { %v3255_v53 = vpack.c.bf16 %v2559_v35, %v2555_v15  ;;  %v2623_v3 = vcvt.s32.f32 %v1599_v58  ;;  %v1399_v29 = vunpack.c.1.s8 %v755_v8  ;;  %v8616_v7 = vadd.f32 %v4049_v54, %v4036_v60  ;;  %v847_v60 = vld [vmem:[%s8030_s30 + $0x6f8] sm:$0xff] }
 0x2fb   : > { %4310 = vmatpush.bf16.msra.mxu0 %v3191_v20  ;;  %v2419_v33 = vcvt.s32.f32 %v1395_v30  ;;  %v1459_v26 = vunpack.c.0.s8 %v771_v10  ;;  %v1463_v17 = vunpack.c.1.s8 %v771_v10  ;;  %4324 = vmatpush.bf16.msra.mxu1 %v3223_v39  ;;  %v1523_v28 = vunpack.c.0.s8 %v787_v22  ;;  %v863_v10 = vld [vmem:[%s8030_s30 + $0x778] sm:$0xff] }
 0x2fc   : > { %4338 = vmatpush.bf16.msra.mxu2 %v3255_v53  ;;  %v3287_v18 = vpack.c.bf16 %v2623_v3, %v2619_v59  ;;  %v2423_v62 = vcvt.s32.f32 %v1399_v29  ;;  %v1527_v63 = vunpack.c.1.s8 %v787_v22  ;;  %v1587_v40 = vunpack.c.0.s8 %v803_v46 }
 0x2fd   : > { %v2483_v32 = vcvt.s32.f32 %v1459_v26  ;;  %v2487_v49 = vcvt.s32.f32 %v1463_v17  ;;  %v1591_v8 = vunpack.c.1.s8 %v803_v46  ;;  %v2547_v4 = vcvt.s32.f32 %v1523_v28  ;;  %v8626_v17 = vld [vmem:[%s8030_s30 + $0x658] sm:$0xff] }
 0x2fe   : > { %4352 = vmatpush.bf16.msra.mxu3 %v3287_v18  ;;  %v3187_v44 = vpack.c.bf16 %v2423_v62, %v2419_v33  ;;  %v2551_v31 = vcvt.s32.f32 %v1527_v63  ;;  %v1707_v52 = vunpack.c.2.s8 %v831_v41  ;;  %v2611_v50 = vcvt.s32.f32 %v1587_v40 }
 0x2ff   : > { %v3219_v19 = vpack.c.bf16 %v2487_v49, %v2483_v32  ;;  %v2615_v6 = vcvt.s32.f32 %v1591_v8  ;;  %v1711_v36 = vunpack.c.3.s8 %v831_v41  ;;  %v1771_v23 = vunpack.c.2.s8 %v847_v60  ;;  %v843_v32 = vld [vmem:[%s8030_s30 + $0x6d8] sm:$0xff] }
 0x300   : > { %4311 = vmatpush.bf16.msra.mxu0 %v3187_v44  ;;  %v3251_v0 = vpack.c.bf16 %v2551_v31, %v2547_v4  ;;  %v2731_v22 = vcvt.s32.f32 %v1707_v52  ;;  %v1775_v16 = vunpack.c.3.s8 %v847_v60  ;;  %v1835_v1 = vunpack.c.2.s8 %v863_v10  ;;  %v859_v44 = vld [vmem:[%s8030_s30 + $0x758] sm:$0xff] }
 0x301   : > { %4325 = vmatpush.bf16.msra.mxu1 %v3219_v19  ;;  %v3283_v2 = vpack.c.bf16 %v2615_v6, %v2611_v50  ;;  %v2735_v46 = vcvt.s32.f32 %v1711_v36  ;;  %v1839_v21 = vunpack.c.3.s8 %v863_v10  ;;  %v2795_v25 = vcvt.s32.f32 %v1771_v23  ;;  %v4063_v19 = vpop.f32.mrf.mxu2 }
 0x302   : > { %4339 = vmatpush.bf16.msra.mxu2 %v3251_v0  ;;  %v2799_v37 = vcvt.s32.f32 %v1775_v16  ;;  %v1899_v54 = vunpack.c.2.s8 %v879_v61  ;;  %v1903_v51 = vunpack.c.3.s8 %v879_v61  ;;  %v2859_v35 = vcvt.s32.f32 %v1835_v1 }
 0x303   : > { %4353 = vmatpush.bf16.msra.mxu3 %v3283_v2  ;;  %v3343_v15 = vpack.c.bf16 %v2735_v46, %v2731_v22  ;;  %v2863_v58 = vcvt.s32.f32 %v1839_v21  ;;  %4312 = vmatmul.bf16.vlgmr.msra.gmra.mxu0 %v8180_v34  ;;  %v1699_v20 = vunpack.c.0.s8 %v831_v41  ;;  %v1703_v53 = vunpack.c.1.s8 %v831_v41 }
 0x304   : > { %v3375_v59 = vpack.c.bf16 %v2799_v37, %v2795_v25  ;;  %v2923_v30 = vcvt.s32.f32 %v1899_v54  ;;  %v2927_v39 = vcvt.s32.f32 %v1903_v51  ;;  %4326 = vmatmul.bf16.vlgmr.msra.gmra.mxu1 %v8184_v42  ;;  %v1763_v33 = vunpack.c.0.s8 %v847_v60 }
 0x305   : > { %4360 = vmatpush.bf16.msrb.mxu0 %v3343_v15  ;;  %v3407_v3 = vpack.c.bf16 %v2863_v58, %v2859_v35  ;;  %4340 = vmatmul.bf16.vlgmr.msra.gmra.mxu2 %v8182_v38  ;;  %v2723_v29 = vcvt.s32.f32 %v1699_v20  ;;  %v1767_v26 = vunpack.c.1.s8 %v847_v60  ;;  %v2727_v34 = vcvt.s32.f32 %v1703_v53 }
 0x306   : > { %4374 = vmatpush.bf16.msrb.mxu1 %v3375_v59  ;;  %v3439_v18 = vpack.c.bf16 %v2927_v39, %v2923_v30  ;;  %4354 = vmatmul.bf16.vlgmr.msra.gmra.mxu3 %v8186_v43  ;;  %v1827_v62 = vunpack.c.0.s8 %v863_v10  ;;  %v1831_v28 = vunpack.c.1.s8 %v863_v10  ;;  %v2787_v42 = vcvt.s32.f32 %v1763_v33  ;;  %v875_v10 = vld [vmem:[%s8030_s30 + $0x7d8] sm:$0xff]  ;;  %v4089_v30 = vpop.f32.mrf.mxu0 }
 0x307   : > { %4388 = vmatpush.bf16.msrb.mxu2 %v3407_v3  ;;  %v2791_v41 = vcvt.s32.f32 %v1767_v26  ;;  %v1891_v63 = vunpack.c.0.s8 %v879_v61  ;;  %v1895_v38 = vunpack.c.1.s8 %v879_v61  ;;  %v3339_v49 = vpack.c.bf16 %v2727_v34, %v2723_v29  ;;  %v4077_v34 = vpop.f32.mrf.mxu3 }
 0x308   : > { %4402 = vmatpush.bf16.msrb.mxu3 %v3439_v18  ;;  %v2851_v40 = vcvt.s32.f32 %v1827_v62  ;;  %v2855_v8 = vcvt.s32.f32 %v1831_v28  ;;  %v1691_v60 = vunpack.c.2.s8 %v8626_v17  ;;  %v1695_v52 = vunpack.c.3.s8 %v8626_v17  ;;  %v8638_v18 = vld [vmem:[%s8030_s30 + $0x638] sm:$0xff] }
 0x309   : > { %v3371_v4 = vpack.c.bf16 %v2791_v41, %v2787_v42  ;;  %v2915_v31 = vcvt.s32.f32 %v1891_v63  ;;  %v2919_v43 = vcvt.s32.f32 %v1895_v38  ;;  %4361 = vmatpush.bf16.msrb.mxu0 %v3339_v49  ;;  %v1755_v36 = vunpack.c.2.s8 %v843_v32  ;;  %v839_v63 = vld [vmem:[%s8030_s30 + $0x6b8] sm:$0xff] }
 0x30a   : > { %v3403_v50 = vpack.c.bf16 %v2855_v8, %v2851_v40  ;;  %v2715_v6 = vcvt.s32.f32 %v1691_v60  ;;  %v1759_v61 = vunpack.c.3.s8 %v843_v32  ;;  %v2719_v22 = vcvt.s32.f32 %v1695_v52  ;;  %v855_v40 = vld [vmem:[%s8030_s30 + $0x738] sm:$0xff] }
 0x30b   : > { %4375 = vmatpush.bf16.msrb.mxu1 %v3371_v4  ;;  %v3435_v0 = vpack.c.bf16 %v2919_v43, %v2915_v31  ;;  %v1819_v23 = vunpack.c.2.s8 %v859_v44  ;;  %v1823_v16 = vunpack.c.3.s8 %v859_v44  ;;  %v2779_v2 = vcvt.s32.f32 %v1755_v36  ;;  %v4103_v4 = vpop.f32.mrf.mxu1  ;;  %v871_v43 = vld [vmem:[%s8030_s30 + $0x7b8] sm:$0xff] }
 0x30c   : > { %4389 = vmatpush.bf16.msrb.mxu2 %v3403_v50  ;;  %v2783_v46 = vcvt.s32.f32 %v1759_v61  ;;  %v1883_v1 = vunpack.c.2.s8 %v875_v10  ;;  %v1887_v21 = vunpack.c.3.s8 %v875_v10  ;;  %v4064_v25 = vadd.f32 %v4063_v19, %v8616_v7 }
 0x30d   : > { %4403 = vmatpush.bf16.msrb.mxu3 %v3435_v0  ;;  %v3335_v37 = vpack.c.bf16 %v2719_v22, %v2715_v6  ;;  %v2843_v54 = vcvt.s32.f32 %v1819_v23  ;;  %v2847_v51 = vcvt.s32.f32 %v1823_v16  ;;  %v1683_v20 = vunpack.c.0.s8 %v8626_v17 }
 0x30e   : > { %v3367_v15 = vpack.c.bf16 %v2783_v46, %v2779_v2  ;;  %v2907_v35 = vcvt.s32.f32 %v1883_v1  ;;  %v2911_v58 = vcvt.s32.f32 %v1887_v21  ;;  %v1687_v39 = vunpack.c.1.s8 %v8626_v17 }
 0x30f   : > { %4362 = vmatpush.bf16.msrb.mxu0 %v3335_v37  ;;  %v3399_v59 = vpack.c.bf16 %v2847_v51, %v2843_v54  ;;  %v1747_v53 = vunpack.c.0.s8 %v843_v32  ;;  %v1751_v3 = vunpack.c.1.s8 %v843_v32  ;;  %v2707_v29 = vcvt.s32.f32 %v1683_v20 }
 0x310   : > { %4376 = vmatpush.bf16.msrb.mxu1 %v3367_v15  ;;  %v3431_v7 = vpack.c.bf16 %v2911_v58, %v2907_v35  ;;  %v1811_v33 = vunpack.c.0.s8 %v859_v44  ;;  %v1815_v26 = vunpack.c.1.s8 %v859_v44  ;;  %v2711_v62 = vcvt.s32.f32 %v1687_v39 }
 0x311   : > { %4390 = vmatpush.bf16.msrb.mxu2 %v3399_v59  ;;  %v2771_v28 = vcvt.s32.f32 %v1747_v53  ;;  %v2775_v42 = vcvt.s32.f32 %v1751_v3  ;;  %v1875_v41 = vunpack.c.0.s8 %v875_v10  ;;  %v4090_v17 = vadd.f32 %v4089_v30, %v8614_v56  ;;  %v8652_v30 = vpop.f32.mrf.mxu3  ;;  %v4091_v3 = vpop.f32.mrf.mxu0 }
 0x312   : > { %4404 = vmatpush.bf16.msrb.mxu3 %v3431_v7  ;;  %v2835_v38 = vcvt.s32.f32 %v1811_v33  ;;  %v2839_v32 = vcvt.s32.f32 %v1815_v26  ;;  %v1879_v49 = vunpack.c.1.s8 %v875_v10  ;;  %v3331_v8 = vpack.c.bf16 %v2711_v62, %v2707_v29  ;;  %v8646_v10 = vpop.f32.mrf.mxu2 }
 0x313   : > { %v3363_v60 = vpack.c.bf16 %v2775_v42, %v2771_v28  ;;  %v2899_v44 = vcvt.s32.f32 %v1875_v41  ;;  %v1675_v31 = vunpack.c.2.s8 %v8638_v18  ;;  %v1679_v50 = vunpack.c.3.s8 %v8638_v18 }
 0x314   : > { %v3395_v52 = vpack.c.bf16 %v2839_v32, %v2835_v38  ;;  %v2903_v19 = vcvt.s32.f32 %v1879_v49  ;;  %v1739_v6 = vunpack.c.2.s8 %v839_v63  ;;  %4363 = vmatpush.bf16.msrb.mxu0 %v3331_v8  ;;  %v1743_v56 = vunpack.c.3.s8 %v839_v63  ;;  %v8661_v8 = vld [vmem:[%s8030_s30 + $0x718] sm:$0xff] }
 0x315   : > { %4377 = vmatpush.bf16.msrb.mxu1 %v3363_v60  ;;  %v2699_v36 = vcvt.s32.f32 %v1675_v31  ;;  %v1803_v61 = vunpack.c.2.s8 %v855_v40  ;;  %v1807_v0 = vunpack.c.3.s8 %v855_v40  ;;  %v2703_v23 = vcvt.s32.f32 %v1679_v50 }
 0x316   : > { %4391 = vmatpush.bf16.msrb.mxu2 %v3395_v52  ;;  %v3427_v22 = vpack.c.bf16 %v2903_v19, %v2899_v44  ;;  %v2763_v16 = vcvt.s32.f32 %v1739_v6  ;;  %v1867_v2 = vunpack.c.2.s8 %v871_v43  ;;  %v2767_v46 = vcvt.s32.f32 %v1743_v56 }
 0x317   : > { %v2827_v1 = vcvt.s32.f32 %v1803_v61  ;;  %v2831_v21 = vcvt.s32.f32 %v1807_v0  ;;  %v1871_v37 = vunpack.c.3.s8 %v871_v43  ;;  %v8650_v54 = vadd.f32 %v8371_v48, %v8608_v13 }
 0x318   : > { %v4078_v51 = vadd.f32 %v4077_v34, %v4064_v25  ;;  %4405 = vmatpush.bf16.msrb.mxu3 %v3427_v22  ;;  %v3327_v15 = vpack.c.bf16 %v2703_v23, %v2699_v36  ;;  %v2891_v35 = vcvt.s32.f32 %v1867_v2  ;;  %v3359_v58 = vpack.c.bf16 %v2767_v46, %v2763_v16  ;;  %v819_v34 = vld [vmem:[%s8030_s30 + $0x618] sm:$0xff] }
 0x319   : > { %v3391_v20 = vpack.c.bf16 %v2831_v21, %v2827_v1  ;;  %v2895_v59 = vcvt.s32.f32 %v1871_v37  ;;  %v1667_v39 = vunpack.c.0.s8 %v8638_v18  ;;  %v8655_v53 = vadd.f32 %v4103_v4, %v4090_v17  ;;  %v835_v17 = vld [vmem:[%s8030_s30 + $0x698] sm:$0xff] }
 0x31a   : > { %4364 = vmatpush.bf16.msrb.mxu0 %v3327_v15  ;;  %v1671_v48 = vunpack.c.1.s8 %v8638_v18  ;;  %v1731_v13 = vunpack.c.0.s8 %v839_v63  ;;  %v1735_v25 = vunpack.c.1.s8 %v839_v63  ;;  %4378 = vmatpush.bf16.msrb.mxu1 %v3359_v58  ;;  %v1795_v33 = vunpack.c.0.s8 %v855_v40  ;;  %v4105_v63 = vpop.f32.mrf.mxu1  ;;  %v4119_v36 = vpop.f32.mrf.mxu2 }
 0x31b   : > { %4392 = vmatpush.bf16.msrb.mxu2 %v3391_v20  ;;  %v3423_v7 = vpack.c.bf16 %v2895_v59, %v2891_v35  ;;  %v2691_v29 = vcvt.s32.f32 %v1667_v39  ;;  %v1799_v26 = vunpack.c.1.s8 %v855_v40  ;;  %v1859_v41 = vunpack.c.0.s8 %v871_v43  ;;  %v8664_v40 = vld [vmem:[%s8030_s30 + $0x798] sm:$0xff]  ;;  %v4133_v20 = vpop.f32.mrf.mxu3 }
 0x31c   : > { %v2695_v62 = vcvt.s32.f32 %v1671_v48  ;;  %v2755_v28 = vcvt.s32.f32 %v1731_v13  ;;  %v2759_v42 = vcvt.s32.f32 %v1735_v25  ;;  %v4092_v38 = vadd.f32 %v4091_v3, %v4078_v51  ;;  %v8670_v51 = vpop.f32.mrf.mxu0 }
 0x31d   : > { %4406 = vmatpush.bf16.msrb.mxu3 %v3423_v7  ;;  %v2819_v32 = vcvt.s32.f32 %v1795_v33  ;;  %v2823_v18 = vcvt.s32.f32 %v1799_v26  ;;  %v1863_v49 = vunpack.c.1.s8 %v871_v43  ;;  %v2883_v4 = vcvt.s32.f32 %v1859_v41  ;;  %v6430_v26 = vld [vmem:[%s8040_s20 + $0x70] sm:$0xf] }
 0x31e   : > { %v3323_v60 = vpack.c.bf16 %v2695_v62, %v2691_v29  ;;  %v3355_v44 = vpack.c.bf16 %v2759_v42, %v2755_v28  ;;  %v1659_v31 = vunpack.c.2.s8 %v819_v34  ;;  %v1663_v50 = vunpack.c.3.s8 %v819_v34  ;;  %v7100_v62 = vld [vmem:[%s8040_s20 + $0x74] sm:$0xf0] }
 0x31f   : > { %v3387_v52 = vpack.c.bf16 %v2823_v18, %v2819_v32  ;;  %v2887_v19 = vcvt.s32.f32 %v1863_v49  ;;  %v1723_v6 = vunpack.c.2.s8 %v835_v17  ;;  %v1727_v61 = vunpack.c.3.s8 %v835_v17  ;;  %v6494_v32 = vld [vmem:[%s8040_s20 + $0xf0] sm:$0xf]  ;;  %v7116_v18 = vld [vmem:[%s8040_s20 + $0xf4] sm:$0xf0] }
 0x320   : > { %4365 = vmatpush.bf16.msrb.mxu0 %v3323_v60  ;;  %4379 = vmatpush.bf16.msrb.mxu1 %v3355_v44  ;;  %v2683_v56 = vcvt.s32.f32 %v1659_v31  ;;  %v1787_v43 = vunpack.c.2.s8 %v8661_v8  ;;  %v1791_v0 = vunpack.c.3.s8 %v8661_v8  ;;  %v2687_v23 = vcvt.s32.f32 %v1663_v50  ;;  %v6558_v44 = vld [vmem:[%s8040_s20 + $0x170] sm:$0xf] }
 0x321   : > { %4393 = vmatpush.bf16.msrb.mxu2 %v3387_v52  ;;  %v3419_v22 = vpack.c.bf16 %v2887_v19, %v2883_v4  ;;  %v2747_v16 = vcvt.s32.f32 %v1723_v6  ;;  %v1851_v2 = vunpack.c.2.s8 %v8664_v40  ;;  %v2751_v46 = vcvt.s32.f32 %v1727_v61  ;;  %v7132_v4 = vld [vmem:[%s8040_s20 + $0x174] sm:$0xf0]  ;;  %v6422_v6 = vld [vmem:[%s8040_s20 + $0x60] sm:$0xf] }
 0x322   : > { %v2811_v1 = vcvt.s32.f32 %v1787_v43  ;;  %v2815_v21 = vcvt.s32.f32 %v1791_v0  ;;  %v1855_v37 = vunpack.c.3.s8 %v8664_v40  ;;  %v4106_v15 = vadd.f32 %v4105_v63, %v4092_v38  ;;  %v8674_v28 = vpop.f32.mrf.mxu1  ;;  %v8684_v31 = vpop.f32.mrf.mxu2 }
 0x323   : > { %4407 = vmatpush.bf16.msrb.mxu3 %v3419_v22  ;;  %v3319_v35 = vpack.c.bf16 %v2687_v23, %v2683_v56  ;;  %v2875_v58 = vcvt.s32.f32 %v1851_v2  ;;  %v1651_v59 = vunpack.c.0.s8 %v819_v34  ;;  %v3351_v39 = vpack.c.bf16 %v2751_v46, %v2747_v16  ;;  %v6486_v22 = vld [vmem:[%s8040_s20 + $0xe0] sm:$0xf] }
 0x324   : > { %v3383_v3 = vpack.c.bf16 %v2815_v21, %v2811_v1  ;;  %v2879_v48 = vcvt.s32.f32 %v1855_v37  ;;  %v1655_v13 = vunpack.c.1.s8 %v819_v34  ;;  %v4120_v25 = vadd.f32 %v4119_v36, %v4106_v15  ;;  %v7098_v36 = vld [vmem:[%s8040_s20 + $0x64] sm:$0xf0]  ;;  %v6550_v46 = vld [vmem:[%s8040_s20 + $0x160] sm:$0xf]  ;;  %v8694_v15 = vpop.f32.mrf.mxu3 }
 0x325   : > { %4366 = vmatpush.bf16.msrb.mxu0 %v3319_v35  ;;  %v2675_v7 = vcvt.s32.f32 %v1651_v59  ;;  %v1715_v29 = vunpack.c.0.s8 %v835_v17  ;;  %v1719_v33 = vunpack.c.1.s8 %v835_v17  ;;  %4380 = vmatpush.bf16.msrb.mxu1 %v3351_v39  ;;  %v1779_v38 = vunpack.c.0.s8 %v8661_v8  ;;  %v7130_v1 = vld [vmem:[%s8040_s20 + $0x164] sm:$0xf0]  ;;  %v4147_v59 = vpop.f32.mrf.mxu0 }
 0x326   : > { %4394 = vmatpush.bf16.msrb.mxu2 %v3383_v3  ;;  %v3415_v42 = vpack.c.bf16 %v2879_v48, %v2875_v58  ;;  %v2679_v41 = vcvt.s32.f32 %v1655_v13  ;;  %v1783_v34 = vunpack.c.1.s8 %v8661_v8  ;;  %v1843_v63 = vunpack.c.0.s8 %v8664_v40  ;;  %v7096_v58 = vld [vmem:[%s8040_s20 + $0x54] sm:$0xf0]  ;;  %v6478_v48 = vld [vmem:[%s8040_s20 + $0xd0] sm:$0xf] }
 0x327   : > { %v2739_v49 = vcvt.s32.f32 %v1715_v29  ;;  %v2743_v17 = vcvt.s32.f32 %v1719_v33  ;;  %v1847_v60 = vunpack.c.1.s8 %v8664_v40  ;;  %v2803_v19 = vcvt.s32.f32 %v1779_v38  ;;  %v7114_v40 = vld [vmem:[%s8040_s20 + $0xe4] sm:$0xf0]  ;;  %v7112_v13 = vld [vmem:[%s8040_s20 + $0xd4] sm:$0xf0]  ;;  %v6534_v38 = vld [vmem:[%s8040_s20 + $0x140] sm:$0xf] }
 0x328   : > { %4408 = vmatpush.bf16.msrb.mxu3 %v3415_v42  ;;  %v3315_v52 = vpack.c.bf16 %v2679_v41, %v2675_v7  ;;  %v2807_v8 = vcvt.s32.f32 %v1783_v34  ;;  %v6431_v50 = vor.u32 %v7100_v62, %v6430_v26  ;;  %v2867_v61 = vcvt.s32.f32 %v1843_v63  ;;  %v7128_v29 = vld [vmem:[%s8040_s20 + $0x154] sm:$0xf0]  ;;  %v6470_v62 = vld [vmem:[%s8040_s20 + $0xc0] sm:$0xf]  ;;  %v7126_v34 = vld [vmem:[%s8040_s20 + $0x144] sm:$0xf0] }
 0x329   : > { %v3347_v56 = vpack.c.bf16 %v2743_v17, %v2739_v49  ;;  %v2871_v43 = vcvt.s32.f32 %v1847_v60  ;;  %v6495_v0 = vor.u32 %v7116_v18, %v6494_v32  ;;  %v4118_v23 = vadd.f32 %v8646_v10, %v8655_v53  ;;  %v6414_v53 = vld [vmem:[%s8040_s20 + $0x50] sm:$0xf]  ;;  %v7092_v63 = vld [vmem:[%s8040_s20 + $0x34] sm:$0xf0] }
 0x32a   : > { %4367 = vmatpush.bf16.msrb.mxu0 %v3315_v52  ;;  %v3379_v16 = vpack.c.bf16 %v2807_v8, %v2803_v19  ;;  %v6559_v2 = vor.u32 %v7132_v4, %v6558_v44  ;;  %v6423_v37 = vor.u32 %v7098_v36, %v6422_v6  ;;  %v3686_v35 = vadd.f32 %v8374_v14, %v8650_v54  ;;  %v6542_v54 = vld [vmem:[%s8040_s20 + $0x150] sm:$0xf]  ;;  %v4161_v33 = vpop.f32.mrf.mxu1  ;;  %v4175_v42 = vpop.f32.mrf.mxu2  ;;  %v7108_v4 = vld [vmem:[%s8040_s20 + $0xb4] sm:$0xf0]  ;;  %v6390_v36 = vld [vmem:[%s8040_s20 + $0x20] sm:$0xf] }
 0x32b   : > { %4381 = vmatpush.bf16.msrb.mxu1 %v3347_v56  ;;  %v3411_v21 = vpack.c.bf16 %v2871_v43, %v2867_v61  ;;  %v6487_v10 = vor.u32 %v7114_v40, %v6486_v22  ;;  %v4134_v39 = vadd.f32 %v4133_v20, %v4120_v25  ;;  %v6551_v3 = vor.u32 %v7130_v1, %v6550_v46  ;;  %v6398_v17 = vld [vmem:[%s8040_s20 + $0x30] sm:$0xf]  ;;  %v7124_v8 = vld [vmem:[%s8040_s20 + $0x134] sm:$0xf0]  ;;  %v7090_v56 = vld [vmem:[%s8040_s20 + $0x24] sm:$0xf0] }
 0x32c   : > { %4395 = vmatpush.bf16.msrb.mxu2 %v3379_v16  ;;  %v3700_v7 = vadd.f32 %v8411_v45, %v3686_v35  ;;  %v4132_v14 = vadd.f32 %v8652_v30, %v4118_v23  ;;  %v6415_v20 = vor.u32 %v7096_v58, %v6414_v53  ;;  %v6479_v45 = vor.u32 %v7112_v13, %v6478_v48  ;;  %v6406_v30 = vld [vmem:[%s8040_s20 + $0x40] sm:$0xf]  ;;  %v6462_v44 = vld [vmem:[%s8040_s20 + $0xb0] sm:$0xf]  ;;  %v4189_v52 = vpop.f32.mrf.mxu3  ;;  %v7106_v22 = vld [vmem:[%s8040_s20 + $0xa4] sm:$0xf0] }
 0x32d   : > { %4409 = vmatpush.bf16.msrb.mxu3 %v3411_v21  ;;  %4368 = vmatmul.bf16.vlgmr.msrb.gmra.mxu0 %v8232_v5  ;;  %v4148_v25 = vadd.f32 %v4147_v59, %v4134_v39  ;;  %v6543_v26 = vor.u32 %v7128_v29, %v6542_v54  ;;  %v6526_v19 = vld [vmem:[%s8040_s20 + $0x130] sm:$0xf]  ;;  %v6463_v6 = vor.u32 %v7108_v4, %v6462_v44  ;;  %v6518_v16 = vld [vmem:[%s8040_s20 + $0x120] sm:$0xf]  ;;  %v7088_v35 = vld [vmem:[%s8040_s20 + $0x14] sm:$0xf0] }
 0x32e   : > { %4854 = vmatpush.bf16.msra.mxu0 %v6431_v50  ;;  %4382 = vmatmul.bf16.vlgmr.msrb.gmra.mxu1 %v8236_v11  ;;  %v4146_v5 = vadd.f32 %v8670_v51, %v4132_v14  ;;  %v7094_v11 = vld [vmem:[%s8040_s20 + $0x44] sm:$0xf0]  ;;  %v3714_v41 = vadd.f32 %v8413_v55, %v3700_v7  ;;  %v6535_v55 = vor.u32 %v7126_v34, %v6534_v38  ;;  %v8733_v40 = vld [vmem:[%s8036_s18] sm:$0xf]  ;;  %v8746_v39 = vld [vmem:[%s8038_s19] sm:$0xf] }
 0x32f   : > { %4868 = vmatpush.bf16.msra.mxu1 %v6495_v0  ;;  %4396 = vmatmul.bf16.vlgmr.msrb.gmra.mxu2 %v8234_v9  ;;  %v7110_v9 = vld [vmem:[%s8040_s20 + $0xc4] sm:$0xf0]  ;;  %v6407_v51 = vor.u32 %v7094_v11, %v6406_v30  ;;  %v6527_v43 = vor.u32 %v7124_v8, %v6526_v19  ;;  %v6454_v0 = vld [vmem:[%s8040_s20 + $0xa0] sm:$0xf]  ;;  %v6391_v46 = vor.u32 %v7090_v56, %v6390_v36  ;;  %v6446_v58 = vld [vmem:[%s8040_s20 + $0x90] sm:$0xf] }
 0x330   : > { %4882 = vmatpush.bf16.msra.mxu2 %v6559_v2  ;;  %4410 = vmatmul.bf16.vlgmr.msrb.gmra.mxu3 %v8238_v12  ;;  %v4162_v12 = vadd.f32 %v4161_v33, %v4148_v25  ;;  %v3728_v32 = vadd.f32 %v8419_v47, %v3714_v41  ;;  %v6471_v18 = vor.u32 %v7110_v9, %v6470_v62  ;;  %v7122_v2 = vld [vmem:[%s8040_s20 + $0x124] sm:$0xf0]  ;;  %v4438_v13 = vperm.slane %v8746_v39, 2  ;;  %v6510_v7 = vld [vmem:[%s8040_s20 + $0x110] sm:$0xf] }
 0x331   : > { %v4160_v49 = vadd.f32 %v8674_v28, %v4146_v5  ;;  %v6399_v28 = vor.u32 %v7092_v63, %v6398_v17  ;;  %v6455_v21 = vor.u32 %v7106_v22, %v6454_v0  ;;  %v6519_v53 = vor.u32 %v7122_v2, %v6518_v16  ;;  %v7120_v14 = vld [vmem:[%s8040_s20 + $0x114] sm:$0xf0]  ;;  %v6374_v29 = vld [vmem:[%s8040_s20] sm:$0xf]  ;;  %v7086_v33 = vld [vmem:[%s8040_s20 + $0x4] sm:$0xf0] }
 0x332   : > { %4855 = vmatpush.bf16.msra.mxu0 %v6423_v37  ;;  %v4176_v60 = vadd.f32 %v4175_v42, %v4162_v12  ;;  %v3742_v50 = vadd.f32 %v8424_v24, %v3728_v32  ;;  %v4420_v24 = vperm.slane %v8733_v40, 2  ;;  %v6382_v37 = vld [vmem:[%s8040_s20 + $0x10] sm:$0xf]  ;;  %v7102_v5 = vld [vmem:[%s8040_s20 + $0x84] sm:$0xf0]  ;;  %v6511_v30 = vor.u32 %v7120_v14, %v6510_v7 }
 0x333   : > { %4869 = vmatpush.bf16.msra.mxu1 %v6487_v10  ;;  %v4174_v47 = vadd.f32 %v8684_v31, %v4160_v49  ;;  %v4418_v31 = vperm.slane %v8733_v40, 0  ;;  %v6383_v54 = vor.u32 %v7088_v35, %v6382_v37  ;;  %v6502_v11 = vld [vmem:[%s8040_s20 + $0x100] sm:$0xf]  ;;  %v6432_v62 = vld [vmem:[%s8040_s20 + $0x78] sm:$0xf0]  ;;  %v6375_v12 = vor.u32 %v7086_v33, %v6374_v29 }
 0x334   : > { %4883 = vmatpush.bf16.msra.mxu2 %v6551_v3  ;;  %v4190_v61 = vadd.f32 %v4189_v52, %v4176_v60  ;;  %v4436_v3 = vperm.slane %v8746_v39, 0  ;;  %v7118_v41 = vld [vmem:[%s8040_s20 + $0x104] sm:$0xf0]  ;;  %v7115_v38 = vld [vmem:[%s8040_s20 + $0xf4] sm:$0xf] }
 0x335   : > { %v4188_v23 = vadd.f32 %v8694_v15, %v4174_v47  ;;  %v4430_v1 = vmul.f32 %v4418_v31, %v3742_v50  ;;  %v7104_v15 = vld [vmem:[%s8040_s20 + $0x94] sm:$0xf0]  ;;  %v4426_v59 = vmul.f32 %v4418_v31, %v8380_v57  ;;  %v6496_v34 = vld [vmem:[%s8040_s20 + $0xf8] sm:$0xf0]  ;;  %v6503_v60 = vor.u32 %v7118_v41, %v6502_v11  ;;  %v7097_v44 = vld [vmem:[%s8040_s20 + $0x64] sm:$0xf] }
 0x336   : > { %4856 = vmatpush.bf16.msra.mxu0 %v6415_v20  ;;  %v4432_v10 = vmul.f32 %v4420_v24, %v4190_v61  ;;  %v6447_v57 = vor.u32 %v7104_v15, %v6446_v58  ;;  %v6560_v32 = vld [vmem:[%s8040_s20 + $0x178] sm:$0xf0]  ;;  %v6424_v4 = vld [vmem:[%s8040_s20 + $0x68] sm:$0xf0]  ;;  %v7113_v47 = vld [vmem:[%s8040_s20 + $0xe4] sm:$0xf] }
 0x337   : > { %4870 = vmatpush.bf16.msra.mxu1 %v6479_v45  ;;  %v4428_v48 = vmul.f32 %v4420_v24, %v4188_v23  ;;  %v4448_v20 = vadd.f32 %v4436_v3, %v4430_v1  ;;  %v6438_v45 = vld [vmem:[%s8040_s20 + $0x80] sm:$0xf]  ;;  %v4444_v9 = vadd.f32 %v4436_v3, %v4426_v59  ;;  %v7129_v50 = vld [vmem:[%s8040_s20 + $0x164] sm:$0xf]  ;;  %v6427_v61 = vor.u32 %v7097_v44, %v6424_v4  ;;  %v7095_v0 = vld [vmem:[%s8040_s20 + $0x54] sm:$0xf] }
 0x338   : > { %4884 = vmatpush.bf16.msra.mxu2 %v6543_v26  ;;  %v4450_v25 = vadd.f32 %v4438_v13, %v4432_v10  ;;  %v7099_v26 = vld [vmem:[%s8040_s20 + $0x74] sm:$0xf]  ;;  %v6439_v17 = vor.u32 %v7102_v5, %v6438_v45  ;;  %v6416_v22 = vld [vmem:[%s8040_s20 + $0x58] sm:$0xf0]  ;;  %v6408_v37 = vld [vmem:[%s8040_s20 + $0x48] sm:$0xf0] }
 0x339   : > { %v4446_v42 = vadd.f32 %v4438_v13, %v4428_v48  ;;  %v6435_v63 = vor.u32 %v7099_v26, %v6432_v62  ;;  %v4452_v52 = vmax.f32 %v4444_v9, 0.0  ;;  %v7111_v23 = vld [vmem:[%s8040_s20 + $0xd4] sm:$0xf]  ;;  %v6480_v24 = vld [vmem:[%s8040_s20 + $0xd8] sm:$0xf0] }
 0x33a   : > { %4857 = vmatpush.bf16.msra.mxu0 %v6407_v51  ;;  %v7131_v51 = vld [vmem:[%s8040_s20 + $0x174] sm:$0xf]  ;;  %v4458_v49 = vmax.f32 %v4450_v25, 0.0  ;;  %v6544_v2 = vld [vmem:[%s8040_s20 + $0x158] sm:$0xf0]  ;;  %v6483_v1 = vor.u32 %v7111_v23, %v6480_v24 }
 0x33b   : > { %4871 = vmatpush.bf16.msra.mxu1 %v6471_v18  ;;  %v4456_v18 = vmax.f32 %v4448_v20, 0.0  ;;  %v4454_v19 = vmax.f32 %v4446_v42, 0.0  ;;  %v6563_v8 = vor.u32 %v7131_v51, %v6560_v32  ;;  %v7127_v16 = vld [vmem:[%s8040_s20 + $0x154] sm:$0xf]  ;;  %v7109_v10 = vld [vmem:[%s8040_s20 + $0xc4] sm:$0xf] }
 0x33c   : > { %4885 = vmatpush.bf16.msra.mxu2 %v6535_v55  ;;  %v6499_v55 = vor.u32 %v7115_v38, %v6496_v34  ;;  %v6547_v35 = vor.u32 %v7127_v16, %v6544_v2  ;;  %v7125_v58 = vld [vmem:[%s8040_s20 + $0x144] sm:$0xf]  ;;  %v6536_v15 = vld [vmem:[%s8040_s20 + $0x148] sm:$0xf0]  ;;  %v7091_v48 = vld [vmem:[%s8040_s20 + $0x34] sm:$0xf]  ;;  %v4215_v16 = vpop.f32.mrf.mxu1 }
 0x33d   : > { %v8770_v36 = vpack.c.bf16 %v4456_v18, %v4452_v52  ;;  %v8772_v56 = vpack.c.bf16 %v4458_v49, %v4454_v19  ;;  %v6400_v13 = vld [vmem:[%s8040_s20 + $0x38] sm:$0xf0]  ;;  %v6539_v7 = vor.u32 %v7125_v58, %v6536_v15  ;;  %v7107_v14 = vld [vmem:[%s8040_s20 + $0xb4] sm:$0xf]  ;;  %v7089_v33 = vld [vmem:[%s8040_s20 + $0x24] sm:$0xf] }
 0x33e   : > { %4858 = vmatpush.bf16.msra.mxu0 %v6399_v28  ;;  %v6488_v28 = vld [vmem:[%s8040_s20 + $0xe8] sm:$0xf0]  ;;  %v7123_v29 = vld [vmem:[%s8040_s20 + $0x134] sm:$0xf]  ;;  %v6528_v20 = vld [vmem:[%s8040_s20 + $0x138] sm:$0xf0] }
 0x33f   : > { %4872 = vmatpush.bf16.msra.mxu1 %v6463_v6  ;;  %v6552_v6 = vld [vmem:[%s8040_s20 + $0x168] sm:$0xf0]  ;;  %v6531_v5 = vor.u32 %v7123_v29, %v6528_v20  ;;  %v7121_v26 = vld [vmem:[%s8040_s20 + $0x124] sm:$0xf]  ;;  %v7087_v41 = vld [vmem:[%s8040_s20 + $0x14] sm:$0xf] }
 0x340   : > { %4886 = vmatpush.bf16.msra.mxu2 %v6527_v43  ;;  %v6491_v43 = vor.u32 %v7113_v47, %v6488_v28  ;;  %v6555_v31 = vor.u32 %v7129_v50, %v6552_v6  ;;  %v6392_v45 = vld [vmem:[%s8040_s20 + $0x28] sm:$0xf0]  ;;  %v6384_v38 = vld [vmem:[%s8040_s20 + $0x18] sm:$0xf0]  ;;  %v7119_v32 = vld [vmem:[%s8040_s20 + $0x114] sm:$0xf] }
 0x341   : > { %v6456_v11 = vld [vmem:[%s8040_s20 + $0xa8] sm:$0xf0]  ;;  %v6395_v9 = vor.u32 %v7089_v33, %v6392_v45  ;;  %v6448_v51 = vld [vmem:[%s8040_s20 + $0x98] sm:$0xf0]  ;;  %v6387_v49 = vor.u32 %v7087_v41, %v6384_v38  ;;  %v7101_v44 = vld [vmem:[%s8040_s20 + $0x84] sm:$0xf] }
 0x342   : > { %4859 = vmatpush.bf16.msra.mxu0 %v6391_v46  ;;  %v6419_v46 = vor.u32 %v7095_v0, %v6416_v22  ;;  %v6520_v62 = vld [vmem:[%s8040_s20 + $0x128] sm:$0xf0]  ;;  %v6512_v18 = vld [vmem:[%s8040_s20 + $0x118] sm:$0xf0]  ;;  %v7117_v52 = vld [vmem:[%s8040_s20 + $0x104] sm:$0xf] }
 0x343   : > { %4873 = vmatpush.bf16.msra.mxu1 %v6455_v21  ;;  %v7093_v21 = vld [vmem:[%s8040_s20 + $0x44] sm:$0xf]  ;;  %v6523_v34 = vor.u32 %v7121_v26, %v6520_v62  ;;  %v6440_v4 = vld [vmem:[%s8040_s20 + $0x88] sm:$0xf0]  ;;  %v6622_v50 = vld [vmem:[%s8040_s20 + $0x1f0] sm:$0xf] }
 0x344   : > { %4887 = vmatpush.bf16.msra.mxu2 %v6519_v53  ;;  %v6472_v53 = vld [vmem:[%s8040_s20 + $0xc8] sm:$0xf0]  ;;  %v6411_v59 = vor.u32 %v7093_v21, %v6408_v37  ;;  %v6443_v47 = vor.u32 %v7101_v44, %v6440_v4  ;;  %v7148_v6 = vld [vmem:[%s8040_s20 + $0x1f4] sm:$0xf0]  ;;  %v6614_v0 = vld [vmem:[%s8040_s20 + $0x1e0] sm:$0xf] }
 0x345   : > { %v6475_v3 = vor.u32 %v7109_v10, %v6472_v53  ;;  %v6504_v19 = vld [vmem:[%s8040_s20 + $0x108] sm:$0xf0]  ;;  %v7146_v22 = vld [vmem:[%s8040_s20 + $0x1e4] sm:$0xf0]  ;;  %v7144_v24 = vld [vmem:[%s8040_s20 + $0x1d4] sm:$0xf0]  ;;  %v4217_v53 = vpop.f32.mrf.mxu1 }
 0x346   : > { %4860 = vmatpush.bf16.msra.mxu0 %v6383_v54  ;;  %v6464_v54 = vld [vmem:[%s8040_s20 + $0xb8] sm:$0xf0]  ;;  %v6507_v28 = vor.u32 %v7117_v52, %v6504_v19  ;;  %v6615_v23 = vor.u32 %v7146_v22, %v6614_v0  ;;  %v6598_v2 = vld [vmem:[%s8040_s20 + $0x1c0] sm:$0xf]  ;;  %v6590_v21 = vld [vmem:[%s8040_s20 + $0x1b0] sm:$0xf] }
 0x347   : > { %4874 = vmatpush.bf16.msra.mxu1 %v6447_v57  ;;  %v6403_v57 = vor.u32 %v7091_v48, %v6400_v13  ;;  %v6467_v25 = vor.u32 %v7107_v14, %v6464_v54  ;;  %v7140_v37 = vld [vmem:[%s8040_s20 + $0x1b4] sm:$0xf0]  ;;  %v7138_v14 = vld [vmem:[%s8040_s20 + $0x1a4] sm:$0xf0]  ;;  %v6574_v33 = vld [vmem:[%s8040_s20 + $0x190] sm:$0xf] }
 0x348   : > { %4888 = vmatpush.bf16.msra.mxu2 %v6511_v30  ;;  %v7105_v30 = vld [vmem:[%s8040_s20 + $0xa4] sm:$0xf]  ;;  %v6591_v10 = vor.u32 %v7140_v37, %v6590_v21  ;;  %v7136_v45 = vld [vmem:[%s8040_s20 + $0x194] sm:$0xf0]  ;;  %v6566_v62 = vld [vmem:[%s8040_s20 + $0x180] sm:$0xf] }
 0x349   : > { %v6459_v42 = vor.u32 %v7105_v30, %v6456_v11  ;;  %v7147_v41 = vld [vmem:[%s8040_s20 + $0x1f4] sm:$0xf]  ;;  %v6624_v38 = vld [vmem:[%s8040_s20 + $0x1f8] sm:$0xf0]  ;;  %v7141_v0 = vld [vmem:[%s8040_s20 + $0x1c4] sm:$0xf] }
 0x34a   : > { %4861 = vmatpush.bf16.msra.mxu0 %v6375_v12  ;;  %v7103_v12 = vld [vmem:[%s8040_s20 + $0x94] sm:$0xf]  ;;  %v6600_v22 = vld [vmem:[%s8040_s20 + $0x1c8] sm:$0xf0] }
 0x34b   : > { %4875 = vmatpush.bf16.msra.mxu1 %v6439_v17  ;;  %v6451_v17 = vor.u32 %v7103_v12, %v6448_v51  ;;  %v6627_v51 = vor.u32 %v7147_v41, %v6624_v38  ;;  %v7143_v19 = vld [vmem:[%s8040_s20 + $0x1d4] sm:$0xf] }
 0x34c   : > { %4889 = vmatpush.bf16.msra.mxu2 %v6503_v60  ;;  %v6376_v60 = vld [vmem:[%s8040_s20 + $0x8] sm:$0xf0] }
 0x34d   : > { %4862 = vmatmul.bf16.vlgmr.msra.gmra.mxu0 %v8770_v36 }
 0x34e   : > { %4910 = vmatpush.bf16.msrb.mxu0 %v6435_v63  ;;  %4876 = vmatmul.bf16.vlgmr.msra.gmra.mxu1 %v8562_v27  ;;  %v7085_v63 = vld [vmem:[%s8040_s20 + $0x4] sm:$0xf] }
 0x34f   : > { %4924 = vmatpush.bf16.msrb.mxu1 %v6499_v55  ;;  %4890 = vmatmul.bf16.vlgmr.msra.gmra.mxu2 %v8772_v56  ;;  %v6515_v55 = vor.u32 %v7119_v32, %v6512_v18 }
 0x350   : > { %4938 = vmatpush.bf16.msrb.mxu2 %v6563_v8  ;;  %v6379_v8 = vor.u32 %v7085_v63, %v6376_v60  ;;  %v6616_v63 = vld [vmem:[%s8040_s20 + $0x1e8] sm:$0xf0] }
 0x352   : > { %4911 = vmatpush.bf16.msrb.mxu0 %v6427_v61  ;;  %v6623_v61 = vor.u32 %v7148_v6, %v6622_v50 }
 0x353   : > { %4925 = vmatpush.bf16.msrb.mxu1 %v6491_v43  ;;  %v4201_v43 = vpop.f32.mrf.mxu0 }
 0x354   : > { %4939 = vmatpush.bf16.msrb.mxu2 %v6555_v31  ;;  %4896 = vmatpush.bf16.msra.mxu3 %v6623_v61  ;;  %v6606_v31 = vld [vmem:[%s8040_s20 + $0x1d0] sm:$0xf] }
 0x356   : > { %4912 = vmatpush.bf16.msrb.mxu0 %v6419_v46  ;;  %v4229_v46 = vpop.f32.mrf.mxu2  ;;  %v4271_v48 = vpop.f32.mrf.mxu1 }
 0x357   : > { %4926 = vmatpush.bf16.msrb.mxu1 %v6483_v1  ;;  %v4243_v1 = vpop.f32.mrf.mxu3 }
 0x358   : > { %4940 = vmatpush.bf16.msrb.mxu2 %v6547_v35  ;;  %4897 = vmatpush.bf16.msra.mxu3 %v6615_v23 }
 0x35a   : > { %4913 = vmatpush.bf16.msrb.mxu0 %v6411_v59  ;;  %v4216_v59 = vadd.f32 %v4215_v16, %v4201_v43 }
 0x35b   : > { %4927 = vmatpush.bf16.msrb.mxu1 %v6475_v3  ;;  %v4203_v35 = vpop.f32.mrf.mxu0 }
 0x35c   : > { %4941 = vmatpush.bf16.msrb.mxu2 %v6539_v7  ;;  %v4230_v13 = vadd.f32 %v4229_v46, %v4216_v59  ;;  %v6582_v7 = vld [vmem:[%s8040_s20 + $0x1a0] sm:$0xf]  ;;  %v4218_v30 = vadd.f32 %v4217_v53, %v4203_v35  ;;  %v7137_v35 = vld [vmem:[%s8040_s20 + $0x1a4] sm:$0xf]  ;;  %v7135_v53 = vld [vmem:[%s8040_s20 + $0x194] sm:$0xf] }
 0x35d   : > { %v6583_v29 = vor.u32 %v7138_v14, %v6582_v7 }
 0x35e   : > { %4914 = vmatpush.bf16.msrb.mxu0 %v6403_v57  ;;  %v4231_v58 = vpop.f32.mrf.mxu2  ;;  %v4244_v20 = vadd.f32 %v4243_v1, %v4230_v13  ;;  %v4273_v26 = vpop.f32.mrf.mxu1 }
 0x35f   : > { %4928 = vmatpush.bf16.msrb.mxu1 %v6467_v25  ;;  %v4245_v15 = vpop.f32.mrf.mxu3 }
 0x360   : > { %4942 = vmatpush.bf16.msrb.mxu2 %v6531_v5  ;;  %v6575_v5 = vor.u32 %v7136_v45, %v6574_v33  ;;  %v6568_v33 = vld [vmem:[%s8040_s20 + $0x188] sm:$0xf0] }
 0x362   : > { %4915 = vmatpush.bf16.msrb.mxu0 %v6395_v9  ;;  %v7134_v9 = vld [vmem:[%s8040_s20 + $0x184] sm:$0xf0] }
 0x363   : > { %4929 = vmatpush.bf16.msrb.mxu1 %v6459_v42  ;;  %v4257_v3 = vpop.f32.mrf.mxu0  ;;  %v6567_v42 = vor.u32 %v7134_v9, %v6566_v62 }
 0x364   : > { %4943 = vmatpush.bf16.msrb.mxu2 %v6523_v34  ;;  %v4258_v11 = vadd.f32 %v4257_v3, %v4244_v20  ;;  %v4232_v34 = vadd.f32 %v4231_v58, %v4218_v30 }
 0x366   : > { %4916 = vmatpush.bf16.msrb.mxu0 %v6387_v49  ;;  %v4285_v54 = vpop.f32.mrf.mxu2  ;;  %v4272_v12 = vadd.f32 %v4271_v48, %v4258_v11  ;;  %v4246_v60 = vadd.f32 %v4245_v15, %v4232_v34  ;;  %v6576_v48 = vld [vmem:[%s8040_s20 + $0x198] sm:$0xf0] }
 0x367   : > { %4930 = vmatpush.bf16.msrb.mxu1 %v6451_v17  ;;  %v4299_v57 = vpop.f32.mrf.mxu3  ;;  %v7145_v17 = vld [vmem:[%s8040_s20 + $0x1e4] sm:$0xf]  ;;  %v6579_v14 = vor.u32 %v7135_v53, %v6576_v48 }
 0x368   : > { %4944 = vmatpush.bf16.msrb.mxu2 %v6515_v55  ;;  %v4286_v55 = vadd.f32 %v4285_v54, %v4272_v12  ;;  %v6619_v44 = vor.u32 %v7145_v17, %v6616_v63 }
 0x36a   : > { %4917 = vmatpush.bf16.msrb.mxu0 %v6379_v8  ;;  %v6608_v8 = vld [vmem:[%s8040_s20 + $0x1d8] sm:$0xf0] }
 0x36b   : > { %4931 = vmatpush.bf16.msrb.mxu1 %v6443_v47  ;;  %v4259_v25 = vpop.f32.mrf.mxu0  ;;  %v4300_v47 = vadd.f32 %v4299_v57, %v4286_v55 }
 0x36c   : > { %4945 = vmatpush.bf16.msrb.mxu2 %v6507_v28  ;;  %v4260_v52 = vadd.f32 %v4259_v25, %v4246_v60  ;;  %v6611_v28 = vor.u32 %v7143_v19, %v6608_v8  ;;  %v7133_v25 = vld [vmem:[%s8040_s20 + $0x184] sm:$0xf] }
 0x36d   : > { %4918 = vmatmul.bf16.vlgmr.msrb.gmra.mxu0 %v8770_v36  ;;  %v6607_v36 = vor.u32 %v7144_v24, %v6606_v31  ;;  %v6603_v24 = vor.u32 %v7141_v0, %v6600_v22 }
 0x36e   : > { %4932 = vmatmul.bf16.vlgmr.msrb.gmra.mxu1 %v8562_v27  ;;  %v7142_v27 = vld [vmem:[%s8040_s20 + $0x1c4] sm:$0xf0]  ;;  %v4287_v32 = vpop.f32.mrf.mxu2  ;;  %v4274_v6 = vadd.f32 %v4273_v26, %v4260_v52  ;;  %v6571_v26 = vor.u32 %v7133_v25, %v6568_v33 }
 0x36f   : > { %4946 = vmatmul.bf16.vlgmr.msrb.gmra.mxu2 %v8772_v56  ;;  %4898 = vmatpush.bf16.msra.mxu3 %v6607_v36  ;;  %v6599_v56 = vor.u32 %v7142_v27, %v6598_v2  ;;  %v4301_v18 = vpop.f32.mrf.mxu3  ;;  %v7139_v2 = vld [vmem:[%s8040_s20 + $0x1b4] sm:$0xf]  ;;  %v6592_v27 = vld [vmem:[%s8040_s20 + $0x1b8] sm:$0xf0] }
 0x370   : > { %v4288_v31 = vadd.f32 %v4287_v32, %v4274_v6  ;;  %v6595_v1 = vor.u32 %v7139_v2, %v6592_v27 }
 0x372   : > { %v4302_v46 = vadd.f32 %v4301_v18, %v4288_v31 }
 0x373   : > { %4899 = vmatpush.bf16.msra.mxu3 %v6599_v56 }
 0x377   : > { %4900 = vmatpush.bf16.msra.mxu3 %v6591_v10  ;;  %v6584_v10 = vld [vmem:[%s8040_s20 + $0x1a8] sm:$0xf0] }
 0x378   : > { %v6587_v3 = vor.u32 %v7137_v35, %v6584_v10 }
 0x37b   : > { %4901 = vmatpush.bf16.msra.mxu3 %v6583_v29 }
 0x37f   : > { %4902 = vmatpush.bf16.msra.mxu3 %v6575_v5 }
 0x380   : > { %v4313_v49 = vpop.f32.mrf.mxu0 }
 0x381   : > { %v4327_v4 = vpop.f32.mrf.mxu1  ;;  %v4314_v61 = vadd.f32 %v4313_v49, %v4300_v47  ;;  %v4528_v47 = vld [vmem:[%s8042_s2] sm:$0x3] }
 0x382   : > { %v4530_v6 = vperm.slane %v4528_v47, 0 }
 0x383   : > { %4903 = vmatpush.bf16.msra.mxu3 %v6567_v42  ;;  %v4328_v16 = vadd.f32 %v4327_v4, %v4314_v61  ;;  %v4421_v42 = vperm.slane %v8733_v40, 3 }
 0x387   : > { %4952 = vmatpush.bf16.msrb.mxu3 %v6627_v51  ;;  %v4439_v51 = vperm.slane %v8746_v39, 3 }
 0x388   : > { %v4341_v50 = vpop.f32.mrf.mxu2  ;;  %v4315_v23 = vpop.f32.mrf.mxu0 }
 0x389   : > { %v4355_v43 = vpop.f32.mrf.mxu3  ;;  %v4329_v36 = vpop.f32.mrf.mxu1  ;;  %v4342_v56 = vadd.f32 %v4341_v50, %v4328_v16  ;;  %v4316_v21 = vadd.f32 %v4315_v23, %v4302_v46 }
 0x38b   : > { %4953 = vmatpush.bf16.msrb.mxu3 %v6619_v44  ;;  %v4356_v58 = vadd.f32 %v4355_v43, %v4342_v56  ;;  %v4330_v13 = vadd.f32 %v4329_v36, %v4316_v21  ;;  %v4531_v43 = vperm.slane %v4528_v47, 1 }
 0x38f   : > { %4954 = vmatpush.bf16.msrb.mxu3 %v6611_v28 }
 0x390   : > { %v4343_v37 = vpop.f32.mrf.mxu2 }
 0x391   : > { %v4357_v15 = vpop.f32.mrf.mxu3  ;;  %v4344_v29 = vadd.f32 %v4343_v37, %v4330_v13 }
 0x393   : > { %4955 = vmatpush.bf16.msrb.mxu3 %v6603_v24  ;;  %v4358_v45 = vadd.f32 %v4357_v15, %v4344_v29 }
 0x397   : > { %4956 = vmatpush.bf16.msrb.mxu3 %v6595_v1 }
 0x39b   : > { %4957 = vmatpush.bf16.msrb.mxu3 %v6587_v3 }
 0x39f   : > { %4958 = vmatpush.bf16.msrb.mxu3 %v6579_v14 }
 0x3a3   : > { %4959 = vmatpush.bf16.msrb.mxu3 %v6571_v26 }
 0x3aa   : > { %v4369_v59 = vpop.f32.mrf.mxu0 }
 0x3ab   : > { %v4370_v7 = vadd.f32 %v4369_v59, %v4356_v58  ;;  %v4383_v54 = vpop.f32.mrf.mxu1 }
 0x3ad   : > { %v4384_v20 = vadd.f32 %v4383_v54, %v4370_v7 }
 0x3b2   : > { %v4397_v57 = vpop.f32.mrf.mxu2  ;;  %v4371_v11 = vpop.f32.mrf.mxu0 }
 0x3b3   : > { %v4398_v5 = vadd.f32 %v4397_v57, %v4384_v20  ;;  %v4411_v30 = vpop.f32.mrf.mxu3  ;;  %v4372_v62 = vadd.f32 %v4371_v11, %v4358_v45  ;;  %v4385_v41 = vpop.f32.mrf.mxu1 }
 0x3b5   : > { %v4412_v9 = vadd.f32 %v4411_v30, %v4398_v5  ;;  %v4386_v38 = vadd.f32 %v4385_v41, %v4372_v62 }
 0x3b7   : > { %v4429_v12 = vmul.f32 %v4421_v42, %v4412_v9 }
 0x3b9   : > { %v4447_v17 = vadd.f32 %v4439_v51, %v4429_v12 }
 0x3ba   : > { %v4399_v34 = vpop.f32.mrf.mxu2 }
 0x3bb   : > { %v4400_v32 = vadd.f32 %v4399_v34, %v4386_v38  ;;  %v4413_v18 = vpop.f32.mrf.mxu3  ;;  %v4455_v55 = vmax.f32 %v4447_v17, 0.0 }
 0x3bd   : > { %v4414_v49 = vadd.f32 %v4413_v18, %v4400_v32 }
 0x3bf   : > { %v4433_v63 = vmul.f32 %v4421_v42, %v4414_v49 }
 0x3c1   : > { %v4451_v60 = vadd.f32 %v4439_v51, %v4433_v63 }
 0x3c3   : > { %v4459_v44 = vmax.f32 %v4451_v60, 0.0 }
 0x3c5   : > { %v4463_v4 = vpack.c.bf16 %v4459_v44, %v4455_v55 }
 0x3c7   : > { %4904 = vmatmul.bf16.vlgmr.msra.gmra.mxu3 %v4463_v4 }
 0x3ca   : > { %v4863_v52 = vpop.f32.mrf.mxu0 }
 0x3cb   : > { %v4877_v40 = vpop.f32.mrf.mxu1  ;;  %v4864_v0 = vadd.f32 %v4863_v52, %v4530_v6 }
 0x3cd   : > { %v4878_v16 = vadd.f32 %v4877_v40, %v4864_v0 }
 0x3d2   : > { %v4891_v19 = vpop.f32.mrf.mxu2  ;;  %v4865_v8 = vpop.f32.mrf.mxu0 }
 0x3d3   : > { %v4879_v50 = vpop.f32.mrf.mxu1  ;;  %v4892_v36 = vadd.f32 %v4891_v19, %v4878_v16  ;;  %v4866_v46 = vadd.f32 %v4865_v8, %v4530_v6 }
 0x3d5   : > { %v4880_v10 = vadd.f32 %v4879_v50, %v4866_v46 }
 0x3d7   : > { %4960 = vmatmul.bf16.vlgmr.msrb.gmra.mxu3 %v4463_v4 }
 0x3da   : > { %v4893_v39 = vpop.f32.mrf.mxu2 }
 0x3db   : > { %v4894_v3 = vadd.f32 %v4893_v39, %v4880_v10 }
 0x3ea   : > { %v4919_v61 = vpop.f32.mrf.mxu0 }
 0x3eb   : > { %v4920_v31 = vadd.f32 %v4919_v61, %v4531_v43  ;;  %v4933_v23 = vpop.f32.mrf.mxu1 }
 0x3ed   : > { %v4934_v2 = vadd.f32 %v4933_v23, %v4920_v31 }
 0x3f2   : > { %v4947_v24 = vpop.f32.mrf.mxu2  ;;  %v4921_v27 = vpop.f32.mrf.mxu0 }
 0x3f3   : > { %v4948_v56 = vadd.f32 %v4947_v24, %v4934_v2  ;;  %v4922_v37 = vadd.f32 %v4921_v27, %v4531_v43  ;;  %v4935_v15 = vpop.f32.mrf.mxu1 }
 0x3f5   : > { %v4936_v48 = vadd.f32 %v4935_v15, %v4922_v37 }
 0x3fa   : > { %v4949_v59 = vpop.f32.mrf.mxu2 }
 0x3fb   : > { %v4950_v7 = vadd.f32 %v4949_v59, %v4936_v48 }
 0x44a   : > { %v4905_v28 = vpop.f32.mrf.mxu3 }
 0x44b   : > { %v4906_v1 = vadd.f32 %v4905_v28, %v4892_v36 }
 0x44d   : > { %v4966_v53 = vmax.f32 %v4906_v1, 0.0 }
 0x452   : > { %v4907_v22 = vpop.f32.mrf.mxu3 }
 0x453   : > { %v4908_v14 = vadd.f32 %v4907_v22, %v4894_v3 }
 0x455   : > { %v4968_v20 = vmax.f32 %v4908_v14, 0.0 }
 0x45a   : > { %v4961_v21 = vpop.f32.mrf.mxu3 }
 0x45b   : > { %v4962_v35 = vadd.f32 %v4961_v21, %v4948_v56 }
 0x45d   : > { %v4967_v58 = vmax.f32 %v4962_v35, 0.0 }
 0x45f   : > { %v4970_v13 = vpack.c.bf16 %v4967_v58, %v4966_v53 }
 0x461   : > { %4975 = vst [vmem:[%s4974_s23] sm:$0xff] %v4970_v13 }
 0x462   : > { %v4963_v54 = vpop.f32.mrf.mxu3 }
 0x463   : > { %v4964_v29 = vadd.f32 %v4963_v54, %v4950_v7 }
 0x465   : > { %v4969_v57 = vmax.f32 %v4964_v29, 0.0  ;;  %4980 = sbr.rel (%p6630_p5) target bundleno = 1523 (0x5f3), region = 104 }
 0x467   : > { %v4971_v25 = vpack.c.bf16 %v4969_v57, %v4968_v20 }
 0x469   : > { %4976 = vst [vmem:[%s4974_s23 + $0x8] sm:$0xff] %v4971_v25 }
 0x46a   : > { %v7161_v33 = vld [vmem:[#allocation14 + $0x38] sm:$0xff]  ;;  %v7160_v11 = vld [vmem:[#allocation14 + $0x30] sm:$0xff]  ;;  %v7159_v42 = vld [vmem:[#allocation14 + $0x28] sm:$0xff] }
 0x46b   : > { %v7169_v45 = vld [vmem:[#allocation14 + $0x78] sm:$0xff]  ;;  %5266 = vmatpush.bf16.msra.mxu0 %v7161_v33  ;;  %v7168_v26 = vld [vmem:[#allocation14 + $0x70] sm:$0xff]  ;;  %v7167_v41 = vld [vmem:[#allocation14 + $0x68] sm:$0xff] }
 0x46c   : > { %v7177_v5 = vld [vmem:[#allocation14 + $0xb8] sm:$0xff]  ;;  %5280 = vmatpush.bf16.msra.mxu1 %v7169_v45  ;;  %v7176_v62 = vld [vmem:[#allocation14 + $0xb0] sm:$0xff]  ;;  %v7175_v38 = vld [vmem:[#allocation14 + $0xa8] sm:$0xff] }
 0x46d   : > { %v7185_v30 = vld [vmem:[#allocation14 + $0xf8] sm:$0xff]  ;;  %5294 = vmatpush.bf16.msra.mxu2 %v7177_v5  ;;  %v7184_v9 = vld [vmem:[#allocation14 + $0xf0] sm:$0xff]  ;;  %v7183_v34 = vld [vmem:[#allocation14 + $0xe8] sm:$0xff] }
 0x46e   : > { %5308 = vmatpush.bf16.msra.mxu3 %v7185_v30  ;;  %v7158_v12 = vld [vmem:[#allocation14 + $0x20] sm:$0xff]  ;;  %v7157_v49 = vld [vmem:[#allocation14 + $0x18] sm:$0xff]  ;;  %v7156_v55 = vld [vmem:[#allocation14 + $0x10] sm:$0xff] }
 0x46f   : > { %5267 = vmatpush.bf16.msra.mxu0 %v7160_v11  ;;  %v7166_v51 = vld [vmem:[#allocation14 + $0x60] sm:$0xff]  ;;  %v7165_v17 = vld [vmem:[#allocation14 + $0x58] sm:$0xff]  ;;  %v7164_v44 = vld [vmem:[#allocation14 + $0x50] sm:$0xff] }
 0x470   : > { %5281 = vmatpush.bf16.msra.mxu1 %v7168_v26  ;;  %v7174_v32 = vld [vmem:[#allocation14 + $0xa0] sm:$0xff]  ;;  %v7173_v63 = vld [vmem:[#allocation14 + $0x98] sm:$0xff]  ;;  %v7172_v4 = vld [vmem:[#allocation14 + $0x90] sm:$0xff] }
 0x471   : > { %5295 = vmatpush.bf16.msra.mxu2 %v7176_v62  ;;  %v7182_v18 = vld [vmem:[#allocation14 + $0xe0] sm:$0xff]  ;;  %v7181_v60 = vld [vmem:[#allocation14 + $0xd8] sm:$0xff]  ;;  %v7180_v52 = vld [vmem:[#allocation14 + $0xd0] sm:$0xff] }
 0x472   : > { %5309 = vmatpush.bf16.msra.mxu3 %v7184_v9  ;;  %v7155_v40 = vld [vmem:[#allocation14 + $0x8] sm:$0xff]  ;;  %v7154_v28 = vld [vmem:[#allocation14] sm:$0xff]  ;;  %v6641_v0 = vld [vmem:[#allocation2 + $0x10] sm:$0xf] }
 0x473   : > { %5268 = vmatpush.bf16.msra.mxu0 %v7159_v42  ;;  %v7163_v19 = vld [vmem:[#allocation14 + $0x48] sm:$0xff]  ;;  %v7162_v50 = vld [vmem:[#allocation14 + $0x40] sm:$0xff]  ;;  %v7151_v23 = vld [vmem:[#allocation2 + $0x4] sm:$0xf0] }
 0x474   : > { %5282 = vmatpush.bf16.msra.mxu1 %v7167_v41  ;;  %v7171_v8 = vld [vmem:[#allocation14 + $0x88] sm:$0xff]  ;;  %v7170_v39 = vld [vmem:[#allocation14 + $0x80] sm:$0xff]  ;;  %v6635_v2 = vld [vmem:[#allocation2 + $0x8] sm:$0xf0] }
 0x475   : > { %5296 = vmatpush.bf16.msra.mxu2 %v7175_v38  ;;  %v7179_v47 = vld [vmem:[#allocation14 + $0xc8] sm:$0xff]  ;;  %v7178_v6 = vld [vmem:[#allocation14 + $0xc0] sm:$0xff]  ;;  %v7199_v15 = vld [vmem:[%s9137_s9 + $0x28] sm:$0xff] }
 0x476   : > { %5310 = vmatpush.bf16.msra.mxu3 %v7183_v34  ;;  %v7201_v61 = vld [vmem:[%s9137_s9 + $0x38] sm:$0xff]  ;;  %v6633_v31 = vld [vmem:[#allocation2] sm:$0xf]  ;;  %v7152_v24 = vld [vmem:[#allocation2 + $0x14] sm:$0xf] }
 0x477   : > { %5269 = vmatpush.bf16.msra.mxu0 %v7158_v12  ;;  %v7209_v43 = vld [vmem:[%s9137_s9 + $0x78] sm:$0xff]  ;;  %v7150_v36 = vld [vmem:[#allocation2 + $0x4] sm:$0xf]  ;;  %v6634_v1 = vor.u32 %v7151_v23, %v6633_v31  ;;  %v7200_v35 = vld [vmem:[%s9137_s9 + $0x30] sm:$0xff] }
 0x478   : > { %5283 = vmatpush.bf16.msra.mxu1 %v7166_v51  ;;  %v7153_v22 = vld [vmem:[#allocation2 + $0x14] sm:$0xf0]  ;;  %v6643_v16 = vld [vmem:[#allocation2 + $0x18] sm:$0xf0]  ;;  %v6638_v37 = vor.u32 %v7150_v36, %v6635_v2  ;;  %v7208_v10 = vld [vmem:[%s9137_s9 + $0x70] sm:$0xff] }
 0x479   : > { %5297 = vmatpush.bf16.msra.mxu2 %v7174_v32  ;;  %v7217_v27 = vld [vmem:[%s9137_s9 + $0xb8] sm:$0xff]  ;;  %v6642_v56 = vor.u32 %v7153_v22, %v6641_v0  ;;  %v6646_v21 = vor.u32 %v7152_v24, %v6643_v16  ;;  %v7216_v53 = vld [vmem:[%s9137_s9 + $0xb0] sm:$0xff]  ;;  %v7207_v59 = vld [vmem:[%s9137_s9 + $0x68] sm:$0xff] }
 0x47a   : > { %5311 = vmatpush.bf16.msra.mxu3 %v7182_v18  ;;  %v7225_v46 = vld [vmem:[%s9137_s9 + $0xf8] sm:$0xff]  ;;  %v7224_v58 = vld [vmem:[%s9137_s9 + $0xf0] sm:$0xff]  ;;  %v7215_v3 = vld [vmem:[%s9137_s9 + $0xa8] sm:$0xff] }
 0x47b   : > { %5270 = vmatpush.bf16.msra.mxu0 %v7157_v49  ;;  %v7223_v48 = vld [vmem:[%s9137_s9 + $0xe8] sm:$0xff]  ;;  %v7198_v13 = vld [vmem:[%s9137_s9 + $0x20] sm:$0xff]  ;;  %v7197_v29 = vld [vmem:[%s9137_s9 + $0x18] sm:$0xff] }
 0x47c   : > { %5284 = vmatpush.bf16.msra.mxu1 %v7165_v17  ;;  %v7206_v7 = vld [vmem:[%s9137_s9 + $0x60] sm:$0xff]  ;;  %v7205_v20 = vld [vmem:[%s9137_s9 + $0x58] sm:$0xff]  ;;  %v7196_v33 = vld [vmem:[%s9137_s9 + $0x10] sm:$0xff] }
 0x47d   : > { %5298 = vmatpush.bf16.msra.mxu2 %v7173_v63  ;;  %v7214_v14 = vld [vmem:[%s9137_s9 + $0xa0] sm:$0xff]  ;;  %v7213_v57 = vld [vmem:[%s9137_s9 + $0x98] sm:$0xff]  ;;  %v7204_v45 = vld [vmem:[%s9137_s9 + $0x50] sm:$0xff] }
 0x47e   : > { %5312 = vmatpush.bf16.msra.mxu3 %v7181_v60  ;;  %v7222_v54 = vld [vmem:[%s9137_s9 + $0xe0] sm:$0xff]  ;;  %v7221_v25 = vld [vmem:[%s9137_s9 + $0xd8] sm:$0xff]  ;;  %v7212_v5 = vld [vmem:[%s9137_s9 + $0x90] sm:$0xff] }
 0x47f   : > { %5271 = vmatpush.bf16.msra.mxu0 %v7156_v55  ;;  %v7220_v30 = vld [vmem:[%s9137_s9 + $0xd0] sm:$0xff]  ;;  %v7195_v11 = vld [vmem:[%s9137_s9 + $0x8] sm:$0xff]  ;;  %v7194_v42 = vld [vmem:[%s9137_s9] sm:$0xff] }
 0x480   : > { %5285 = vmatpush.bf16.msra.mxu1 %v7164_v44  ;;  %v7203_v26 = vld [vmem:[%s9137_s9 + $0x48] sm:$0xff]  ;;  %v7202_v41 = vld [vmem:[%s9137_s9 + $0x40] sm:$0xff]  ;;  %v7233_v12 = vld [vmem:[%s9137_s9 + $0x138] sm:$0xff] }
 0x481   : > { %5299 = vmatpush.bf16.msra.mxu2 %v7172_v4  ;;  %v7211_v62 = vld [vmem:[%s9137_s9 + $0x88] sm:$0xff]  ;;  %v7210_v38 = vld [vmem:[%s9137_s9 + $0x80] sm:$0xff]  ;;  %v7241_v51 = vld [vmem:[%s9137_s9 + $0x178] sm:$0xff] }
 0x482   : > { %5313 = vmatpush.bf16.msra.mxu3 %v7180_v52  ;;  %v7219_v9 = vld [vmem:[%s9137_s9 + $0xc8] sm:$0xff]  ;;  %v7218_v34 = vld [vmem:[%s9137_s9 + $0xc0] sm:$0xff]  ;;  %v7249_v4 = vld [vmem:[%s9137_s9 + $0x1b8] sm:$0xff] }
 0x483   : > { %5272 = vmatpush.bf16.msra.mxu0 %v7155_v40  ;;  %v6785_v32 = vld [vmem:[#allocation7 + $0x8] sm:$0xf]  ;;  %v6777_v49 = vld [vmem:[#allocation7] sm:$0xf]  ;;  %v7187_v63 = vld [vmem:[#allocation7 + $0xc] sm:$0xf] }
 0x484   : > { %5286 = vmatpush.bf16.msra.mxu1 %v7163_v19  ;;  %v7191_v18 = vld [vmem:[#allocation7 + $0x24] sm:$0xf0]  ;;  %v7190_v17 = vld [vmem:[#allocation7 + $0x1c] sm:$0xf0]  ;;  %v6787_v60 = vld [vmem:[#allocation7 + $0x28] sm:$0xf0] }
 0x485   : > { %5300 = vmatpush.bf16.msra.mxu2 %v7171_v8  ;;  %v7186_v55 = vld [vmem:[#allocation7 + $0x4] sm:$0xf]  ;;  %v7257_v52 = vld [vmem:[%s9137_s9 + $0x1f8] sm:$0xff]  ;;  %v6786_v40 = vor.u32 %v7191_v18, %v6785_v32  ;;  %v6778_v19 = vor.u32 %v7190_v17, %v6777_v49  ;;  %v6790_v8 = vor.u32 %v7187_v63, %v6787_v60 }
 0x486   : > { %5314 = vmatpush.bf16.msra.mxu3 %v7179_v47  ;;  %v6779_v44 = vld [vmem:[#allocation7 + $0x20] sm:$0xf0]  ;;  %v7229_v36 = vld [vmem:[%s9137_s9 + $0x118] sm:$0xff] }
 0x487   : > { %5273 = vmatpush.bf16.msra.mxu0 %v7154_v28  ;;  %v6782_v47 = vor.u32 %v7186_v55, %v6779_v44  ;;  %v7232_v28 = vld [vmem:[%s9137_s9 + $0x130] sm:$0xff]  ;;  %v7247_v0 = vld [vmem:[%s9137_s9 + $0x1a8] sm:$0xff]  ;;  %v7230_v31 = vld [vmem:[%s9137_s9 + $0x120] sm:$0xff] }
 0x488   : > { %5287 = vmatpush.bf16.msra.mxu1 %v7162_v50  ;;  %v7240_v50 = vld [vmem:[%s9137_s9 + $0x170] sm:$0xff]  ;;  %v7255_v22 = vld [vmem:[%s9137_s9 + $0x1e8] sm:$0xff]  ;;  %v7238_v23 = vld [vmem:[%s9137_s9 + $0x160] sm:$0xff] }
 0x489   : > { %5301 = vmatpush.bf16.msra.mxu2 %v7170_v39  ;;  %v7248_v39 = vld [vmem:[%s9137_s9 + $0x1b0] sm:$0xff]  ;;  %v7246_v24 = vld [vmem:[%s9137_s9 + $0x1a0] sm:$0xff]  ;;  %v7237_v2 = vld [vmem:[%s9137_s9 + $0x158] sm:$0xff] }
 0x48a   : > { %5315 = vmatpush.bf16.msra.mxu3 %v7178_v6  ;;  %5274 = vmatmul.bf16.vlgmr.msra.gmra.mxu0 %v6634_v1  ;;  %v7256_v6 = vld [vmem:[%s9137_s9 + $0x1f0] sm:$0xff]  ;;  %v7254_v16 = vld [vmem:[%s9137_s9 + $0x1e0] sm:$0xff] }
 0x48b   : > { %5886 = vmatpush.bf16.msrb.mxu0 %v7201_v61  ;;  %5288 = vmatmul.bf16.vlgmr.msra.gmra.mxu1 %v6638_v37  ;;  %v7231_v61 = vld [vmem:[%s9137_s9 + $0x128] sm:$0xff]  ;;  %v7236_v1 = vld [vmem:[%s9137_s9 + $0x150] sm:$0xff] }
 0x48c   : > { %5900 = vmatpush.bf16.msrb.mxu1 %v7209_v43  ;;  %5302 = vmatmul.bf16.vlgmr.msra.gmra.mxu2 %v6642_v56  ;;  %v7239_v43 = vld [vmem:[%s9137_s9 + $0x168] sm:$0xff]  ;;  %v7228_v56 = vld [vmem:[%s9137_s9 + $0x110] sm:$0xff] }
 0x48d   : > { %5914 = vmatpush.bf16.msrb.mxu2 %v7217_v27  ;;  %5316 = vmatmul.bf16.vlgmr.msra.gmra.mxu3 %v6646_v21  ;;  %v7245_v27 = vld [vmem:[%s9137_s9 + $0x198] sm:$0xff]  ;;  %v7244_v21 = vld [vmem:[%s9137_s9 + $0x190] sm:$0xff] }
 0x48e   : > { %5928 = vmatpush.bf16.msrb.mxu3 %v7225_v46  ;;  %v7253_v46 = vld [vmem:[%s9137_s9 + $0x1d8] sm:$0xff]  ;;  %v7252_v37 = vld [vmem:[%s9137_s9 + $0x1d0] sm:$0xff] }
 0x48f   : > { %5887 = vmatpush.bf16.msrb.mxu0 %v7200_v35  ;;  %v7227_v35 = vld [vmem:[%s9137_s9 + $0x108] sm:$0xff] }
 0x490   : > { %5901 = vmatpush.bf16.msrb.mxu1 %v7208_v10  ;;  %v7235_v10 = vld [vmem:[%s9137_s9 + $0x148] sm:$0xff] }
 0x491   : > { %5915 = vmatpush.bf16.msrb.mxu2 %v7216_v53  ;;  %v7243_v53 = vld [vmem:[%s9137_s9 + $0x188] sm:$0xff] }
 0x492   : > { %5929 = vmatpush.bf16.msrb.mxu3 %v7224_v58  ;;  %v7251_v58 = vld [vmem:[%s9137_s9 + $0x1c8] sm:$0xff] }
 0x493   : > { %5888 = vmatpush.bf16.msrb.mxu0 %v7199_v15  ;;  %v7226_v15 = vld [vmem:[%s9137_s9 + $0x100] sm:$0xff] }
 0x494   : > { %5902 = vmatpush.bf16.msrb.mxu1 %v7207_v59  ;;  %v7234_v59 = vld [vmem:[%s9137_s9 + $0x140] sm:$0xff] }
 0x495   : > { %5916 = vmatpush.bf16.msrb.mxu2 %v7215_v3  ;;  %v7242_v3 = vld [vmem:[%s9137_s9 + $0x180] sm:$0xff] }
 0x496   : > { %5930 = vmatpush.bf16.msrb.mxu3 %v7223_v48  ;;  %v7250_v48 = vld [vmem:[%s9137_s9 + $0x1c0] sm:$0xff] }
 0x497   : > { %5889 = vmatpush.bf16.msrb.mxu0 %v7198_v13  ;;  %v6793_v13 = vld [vmem:[#allocation7 + $0x10] sm:$0xf] }
 0x498   : > { %5903 = vmatpush.bf16.msrb.mxu1 %v7206_v7  ;;  %v7192_v7 = vld [vmem:[#allocation7 + $0x2c] sm:$0xf0] }
 0x499   : > { %5917 = vmatpush.bf16.msrb.mxu2 %v7214_v14  ;;  %v7188_v14 = vld [vmem:[#allocation7 + $0x14] sm:$0xf] }
 0x49a   : > { %5931 = vmatpush.bf16.msrb.mxu3 %v7222_v54  ;;  %v6795_v54 = vld [vmem:[#allocation7 + $0x30] sm:$0xf0] }
 0x49b   : > { %5890 = vmatpush.bf16.msrb.mxu0 %v7197_v29  ;;  %v6801_v29 = vld [vmem:[#allocation7 + $0x18] sm:$0xf] }
 0x49c   : > { %5904 = vmatpush.bf16.msrb.mxu1 %v7205_v20  ;;  %v7193_v20 = vld [vmem:[#allocation7 + $0x34] sm:$0xf0] }
 0x49d   : > { %5918 = vmatpush.bf16.msrb.mxu2 %v7213_v57  ;;  %v7189_v57 = vld [vmem:[#allocation7 + $0x1c] sm:$0xf] }
 0x49e   : > { %5932 = vmatpush.bf16.msrb.mxu3 %v7221_v25  ;;  %v6803_v25 = vld [vmem:[#allocation7 + $0x38] sm:$0xf0] }
 0x49f   : > { %5891 = vmatpush.bf16.msrb.mxu0 %v7196_v33  ;;  %v6794_v33 = vor.u32 %v7192_v7, %v6793_v13 }
 0x4a0   : > { %5905 = vmatpush.bf16.msrb.mxu1 %v7204_v45  ;;  %v6798_v45 = vor.u32 %v7188_v14, %v6795_v54 }
 0x4a1   : > { %5919 = vmatpush.bf16.msrb.mxu2 %v7212_v5  ;;  %v6802_v5 = vor.u32 %v7193_v20, %v6801_v29 }
 0x4a2   : > { %5933 = vmatpush.bf16.msrb.mxu3 %v7220_v30  ;;  %v6806_v30 = vor.u32 %v7189_v57, %v6803_v25 }
 0x4a3   : > { %5892 = vmatpush.bf16.msrb.mxu0 %v7195_v11  ;;  %v7379_v11 = vld [vmem:[#allocation15] ss:$0 sm:$0xff] }
 0x4a4   : > { %5906 = vmatpush.bf16.msrb.mxu1 %v7203_v26  ;;  %v6044_v26 = vlaneseq }
 0x4a5   : > { %5920 = vmatpush.bf16.msrb.mxu2 %v7211_v62 }
 0x4a6   : > { %5934 = vmatpush.bf16.msrb.mxu3 %v7219_v9 }
 0x4a7   : > { %5893 = vmatpush.bf16.msrb.mxu0 %v7194_v42 }
 0x4a8   : > { %5907 = vmatpush.bf16.msrb.mxu1 %v7202_v41  ;;  %v9045_v41 = vand.u32 127, %v6044_v26 }
 0x4a9   : > { %5921 = vmatpush.bf16.msrb.mxu2 %v7210_v38 }
 0x4aa   : > { %5935 = vmatpush.bf16.msrb.mxu3 %v7218_v34  ;;  %5894 = vmatmul.bf16.vlgmr.msrb.gmra.mxu0 %v6778_v19  ;;  %vm6046_vm0 = vcmp.ge.s32.totalorder %v9045_v41, 3  ;;  %vm6047_vm1 = vcmp.lt.s32.totalorder %v9045_v41, 7 }
 0x4ab   : > { %5942 = vmatpush.bf16.msra.mxu0 %v7233_v12  ;;  %5908 = vmatmul.bf16.vlgmr.msrb.gmra.mxu1 %v6782_v47  ;;  %vm9049_vm2 = vmand %vm6046_vm0, %vm6047_vm1 }
 0x4ac   : > { %5956 = vmatpush.bf16.msra.mxu1 %v7241_v51  ;;  %5922 = vmatmul.bf16.vlgmr.msrb.gmra.mxu2 %v6786_v40 }
 0x4ad   : > { %5970 = vmatpush.bf16.msra.mxu2 %v7249_v4  ;;  %5936 = vmatmul.bf16.vlgmr.msrb.gmra.mxu3 %v6790_v8 }
 0x4ae   : > { %5984 = vmatpush.bf16.msra.mxu3 %v7257_v52 }
 0x4af   : > { %5943 = vmatpush.bf16.msra.mxu0 %v7232_v28 }
 0x4b0   : > { %5957 = vmatpush.bf16.msra.mxu1 %v7240_v50  ;;  %v7380_v50 = vld [vmem:[#allocation3] ss:$0 sm:$0xff] }
 0x4b1   : > { %5971 = vmatpush.bf16.msra.mxu2 %v7248_v39 }
 0x4b2   : > { %5985 = vmatpush.bf16.msra.mxu3 %v7256_v6 }
 0x4b3   : > { %5944 = vmatpush.bf16.msra.mxu0 %v7231_v61 }
 0x4b4   : > { %5958 = vmatpush.bf16.msra.mxu1 %v7239_v43 }
 0x4b5   : > { %5972 = vmatpush.bf16.msra.mxu2 %v7247_v0  ;;  %v7758_v0 = vmov 0  }
 0x4b6   : > { %5986 = vmatpush.bf16.msra.mxu3 %v7255_v22  ;;  %7377 = vset.pattern.permute.xlu1 %v7758_v0 }
 0x4b7   : > { %5945 = vmatpush.bf16.msra.mxu0 %v7230_v31  ;;  %7378 = vset.pattern.permute.xlu0 %v7758_v0 }
 0x4b8   : > { %5959 = vmatpush.bf16.msra.mxu1 %v7238_v23 }
 0x4b9   : > { %5973 = vmatpush.bf16.msra.mxu2 %v7246_v24 }
 0x4ba   : > { %5987 = vmatpush.bf16.msra.mxu3 %v7254_v16 }
 0x4bb   : > { %5946 = vmatpush.bf16.msra.mxu0 %v7229_v36 }
 0x4bc   : > { %5960 = vmatpush.bf16.msra.mxu1 %v7237_v2 }
 0x4bd   : > { %5974 = vmatpush.bf16.msra.mxu2 %v7245_v27 }
 0x4be   : > { %5988 = vmatpush.bf16.msra.mxu3 %v7253_v46 }
 0x4bf   : > { %5947 = vmatpush.bf16.msra.mxu0 %v7228_v56 }
 0x4c0   : > { %5961 = vmatpush.bf16.msra.mxu1 %v7236_v1 }
 0x4c1   : > { %5975 = vmatpush.bf16.msra.mxu2 %v7244_v21 }
 0x4c2   : > { %5989 = vmatpush.bf16.msra.mxu3 %v7252_v37 }
 0x4c3   : > { %5948 = vmatpush.bf16.msra.mxu0 %v7227_v35 }
 0x4c4   : > { %5962 = vmatpush.bf16.msra.mxu1 %v7235_v10 }
 0x4c5   : > { %5976 = vmatpush.bf16.msra.mxu2 %v7243_v53 }
 0x4c6   : > { %5990 = vmatpush.bf16.msra.mxu3 %v7251_v58 }
 0x4c7   : > { %5949 = vmatpush.bf16.msra.mxu0 %v7226_v15 }
 0x4c8   : > { %5963 = vmatpush.bf16.msra.mxu1 %v7234_v59 }
 0x4c9   : > { %5977 = vmatpush.bf16.msra.mxu2 %v7242_v3 }
 0x4ca   : > { %5991 = vmatpush.bf16.msra.mxu3 %v7250_v48  ;;  %5950 = vmatmul.bf16.vlgmr.msra.gmra.mxu0 %v6794_v33 }
 0x4cb   : > { %5964 = vmatmul.bf16.vlgmr.msra.gmra.mxu1 %v6798_v45 }
 0x4cc   : > { %5978 = vmatmul.bf16.vlgmr.msra.gmra.mxu2 %v6802_v5 }
 0x4cd   : > { %5992 = vmatmul.bf16.vlgmr.msra.gmra.mxu3 %v6806_v30 }
 0x507   : > { %v5275_v62 = vpop.f32.mrf.mxu0 }
 0x508   : > { %v5276_v9 = vadd.f32 %v7379_v11, %v5275_v62  ;;  %v5289_v42 = vpop.f32.mrf.mxu1 }
 0x50a   : > { %v5290_v38 = vadd.f32 %v5289_v42, %v5276_v9 }
 0x50f   : > { %v5303_v34 = vpop.f32.mrf.mxu2  ;;  %v5277_v32 = vpop.f32.mrf.mxu0 }
 0x510   : > { %v5304_v12 = vadd.f32 %v5303_v34, %v5290_v38  ;;  %v5317_v51 = vpop.f32.mrf.mxu3  ;;  %v5278_v17 = vadd.f32 %v7379_v11, %v5277_v32  ;;  %v5291_v63 = vpop.f32.mrf.mxu1 }
 0x512   : > { %v9053_v49 = vadd.f32 %v5317_v51, %v5304_v12  ;;  %v5292_v60 = vadd.f32 %v5291_v63, %v5278_v17 }
 0x514   : > { %v6049_v55 = vsel %vm9049_vm2, %v9053_v49, 0.0 }
 0x515   : > { %v6051_v44 = vmul.f32 %v6049_v55, %v6049_v55 }
 0x517   : > { %v5305_v4 = vpop.f32.mrf.mxu2  ;;  %6053 = vadd.xlane.f32.xlu0 %v6051_v44 }
 0x518   : > { %v5306_v52 = vadd.f32 %v5305_v4, %v5292_v60  ;;  %v5319_v40 = vpop.f32.mrf.mxu3 }
 0x51a   : > { %v9058_v19 = vadd.f32 %v5319_v40, %v5306_v52 }
 0x51c   : > { %v6050_v8 = vsel %vm9049_vm2, %v9058_v19, 0.0 }
 0x51d   : > { %v6052_v47 = vmul.f32 %v6050_v8, %v6050_v8 }
 0x51f   : > { %6055 = vadd.xlane.f32.xlu0 %v6052_v47 }
 0x527   : > { %v5895_v28 = vpop.f32.mrf.mxu0 }
 0x528   : > { %v5909_v39 = vpop.f32.mrf.mxu1  ;;  %v5896_v6 = vadd.f32 %v7380_v50, %v5895_v28 }
 0x52a   : > { %v5910_v22 = vadd.f32 %v5909_v39, %v5896_v6 }
 0x52f   : > { %v5923_v61 = vpop.f32.mrf.mxu2  ;;  %v5897_v31 = vpop.f32.mrf.mxu0 }
 0x530   : > { %v5937_v43 = vpop.f32.mrf.mxu3  ;;  %v5911_v23 = vpop.f32.mrf.mxu1  ;;  %v5924_v24 = vadd.f32 %v5923_v61, %v5910_v22  ;;  %v5898_v16 = vadd.f32 %v7380_v50, %v5897_v31 }
 0x532   : > { %v5938_v27 = vadd.f32 %v5937_v43, %v5924_v24  ;;  %v5912_v46 = vadd.f32 %v5911_v23, %v5898_v16 }
 0x537   : > { %v5925_v36 = vpop.f32.mrf.mxu2 }
 0x538   : > { %v5939_v2 = vpop.f32.mrf.mxu3  ;;  %v5926_v37 = vadd.f32 %v5925_v36, %v5912_v46 }
 0x53a   : > { %v5940_v58 = vadd.f32 %v5939_v2, %v5926_v37 }
 0x547   : > { %v5951_v56 = vpop.f32.mrf.mxu0 }
 0x548   : > { %v5952_v1 = vadd.f32 %v5951_v56, %v5938_v27  ;;  %v5965_v21 = vpop.f32.mrf.mxu1 }
 0x54a   : > { %v5966_v35 = vadd.f32 %v5965_v21, %v5952_v1 }
 0x54f   : > { %v5979_v10 = vpop.f32.mrf.mxu2  ;;  %v5953_v59 = vpop.f32.mrf.mxu0 }
 0x550   : > { %v5993_v53 = vpop.f32.mrf.mxu3  ;;  %v5980_v15 = vadd.f32 %v5979_v10, %v5966_v35  ;;  %v5954_v48 = vadd.f32 %v5953_v59, %v5940_v58  ;;  %v5967_v7 = vpop.f32.mrf.mxu1 }
 0x552   : > { %v5994_v3 = vadd.f32 %v5993_v53, %v5980_v15  ;;  %v5968_v14 = vadd.f32 %v5967_v7, %v5954_v48 }
 0x554   : > { %v6000_v13 = vsub.f32 0.0, %v5994_v3  ;;  %vm5998_vm3 = vcmp.ge.f32.partialorder %v5994_v3, 0.0 }
 0x556   : > { %v6002_v54 = vsel %vm5998_vm3, %v6000_v13, %v5994_v3 }
 0x557   : > { %v5981_v29 = vpop.f32.mrf.mxu2  ;;  %v6004_v20 = vmul.f32 1.442695, %v6002_v54 }
 0x558   : > { %v5982_v57 = vadd.f32 %v5981_v29, %v5968_v14  ;;  %v5995_v25 = vpop.f32.mrf.mxu3 }
 0x559   : > { %7381 = vpow2.f32 %v6004_v20 }
 0x55a   : > { %v5996_v33 = vadd.f32 %v5995_v25, %v5982_v57 }
 0x55c   : > { %v6001_v45 = vsub.f32 0.0, %v5996_v33  ;;  %vm5999_vm4 = vcmp.ge.f32.partialorder %v5996_v33, 0.0 }
 0x55e   : > { %v6003_v5 = vsel %vm5999_vm4, %v6001_v45, %v5996_v33 }
 0x55f   : > { %v7382_v30 = vpop.eup %7381  ;;  %v6006_v11 = vmul.f32 1.442695, %v6003_v5 }
 0x560   : > { %v6008_v26 = vadd.f32 1.0, %v7382_v30 }
 0x561   : > { %7383 = vpow2.f32 %v6006_v11 }
 0x562   : > { %7385 = vrcp.f32 %v6008_v26  ;;  %v6021_v12 = vand.u32 2147483648, %v6008_v26  ;;  %v6019_v32 = vand.u32 2147483647, %v6008_v26  ;;  %vm6015_vm6 = vweird.f32 %v6008_v26 }
 0x564   : > { %v6022_v60 = vor.u32 1.1754944e-38, %v6021_v12  ;;  %vm6020_vm8 = vcmp.eq.f32.partialorder %v6019_v32, 8.507059e+37 }
 0x567   : > { %v7384_v62 = vpop.eup %7383 }
 0x568   : > { %v7386_v9 = vpop.eup %7385  ;;  %v6009_v42 = vadd.f32 1.0, %v7384_v62 }
 0x569   : > { %v6011_v38 = vmul.f32 %v7386_v9, %v6008_v26  ;;  %vm6016_vm5 = vweird.f32 %v7386_v9 }
 0x56a   : > { %7387 = vrcp.f32 %v6009_v42  ;;  %vm6017_vm7 = vmor %vm6015_vm6, %vm6016_vm5  ;;  %v6036_v8 = vand.u32 2147483648, %v6009_v42  ;;  %v6034_v50 = vand.u32 2147483647, %v6009_v42  ;;  %vm6030_vm10 = vweird.f32 %v6009_v42 }
 0x56b   : > { %v6012_v34 = vsub.f32 1.0, %v6011_v38 }
 0x56c   : > { %v6037_v6 = vor.u32 1.1754944e-38, %v6036_v8  ;;  %vm6035_vm12 = vcmp.eq.f32.partialorder %v6034_v50, 8.507059e+37 }
 0x56d   : > { %v6013_v51 = vmul.f32 %v7386_v9, %v6012_v34 }
 0x56f   : > { %v6014_v17 = vadd.f32 %v7386_v9, %v6013_v51 }
 0x570   : > { %v7388_v63 = vpop.eup %7387 }
 0x571   : > { %v6018_v55 = vsel %vm6017_vm7, %v7386_v9, %v6014_v17  ;;  %v6026_v44 = vmul.f32 %v7388_v63, %v6009_v42  ;;  %vm6031_vm9 = vweird.f32 %v7388_v63 }
 0x572   : > { %v6023_v4 = vsel %vm6020_vm8, %v6022_v60, %v6018_v55  ;;  %vm6032_vm11 = vmor %vm6030_vm10, %vm6031_vm9 }
 0x573   : > { %v6040_v52 = vmul.f32 %v7382_v30, %v6023_v4  ;;  %v6027_v40 = vsub.f32 1.0, %v6026_v44 }
 0x575   : > { %v6042_v47 = vsel %vm5998_vm3, %v6023_v4, %v6040_v52  ;;  %v6028_v28 = vmul.f32 %v7388_v63, %v6027_v40 }
 0x576   : > { %6086 = vperm.xlu1 %7377, %v6042_v47  }
 0x577   : > { %v6029_v39 = vadd.f32 %v7388_v63, %v6028_v28 }
 0x579   : > { %v6033_v61 = vsel %vm6032_vm11, %v7388_v63, %v6029_v39 }
 0x57a   : > { %v6038_v43 = vsel %vm6035_vm12, %v6037_v6, %v6033_v61 }
 0x57b   : > { %v6041_v0 = vmul.f32 %v7384_v62, %v6038_v43 }
 0x57d   : > { %v6043_v22 = vsel %vm5999_vm4, %v6038_v43, %v6041_v0  ;;  %vm6083_vm4 = vcmp.eq.s32.totalorder %v9045_v41, 7 }
 0x57e   : > { %6091 = vperm.xlu1 %7377, %v6043_v22  }
 0x58a   : > { %v6054_v31 = vpop.xlane.xlu0 %6053 }
 0x58b   : > { %v6057_v23 = vadd.f32 1e-12, %v6054_v31 }
 0x58d   : > { %7389 = vrsqrt.f32 %v6057_v23  ;;  %vm6065_vm13 = vweird.f32 %v6057_v23 }
 0x592   : > { %v6056_v24 = vpop.xlane.xlu0 %6055 }
 0x593   : > { %v6058_v16 = vadd.f32 1e-12, %v6056_v24  ;;  %v7390_v36 = vpop.eup %7389 }
 0x594   : > { %v6060_v2 = vmul.f32 %v7390_v36, %v6057_v23  ;;  %vm6066_vm14 = vweird.f32 %v7390_v36 }
 0x595   : > { %7391 = vrsqrt.f32 %v6058_v16  ;;  %vm6067_vm15 = vmor %vm6065_vm13, %vm6066_vm14  ;;  %vm6075_vm0 = vweird.f32 %v6058_v16 }
 0x596   : > { %v6061_v27 = vmul.f32 %v7390_v36, %v6060_v2 }
 0x598   : > { %v6062_v56 = vmul.f32 0.5, %v6061_v27 }
 0x59a   : > { %v6063_v21 = vsub.f32 1.5, %v6062_v56 }
 0x59b   : > { %v7392_v46 = vpop.eup %7391 }
 0x59c   : > { %v6070_v1 = vmul.f32 %v7392_v46, %v6058_v16  ;;  %v6064_v35 = vmul.f32 %v7390_v36, %v6063_v21  ;;  %vm6076_vm1 = vweird.f32 %v7392_v46 }
 0x59d   : > { %vm6077_vm3 = vmor %vm6075_vm0, %vm6076_vm1 }
 0x59e   : > { %v6071_v37 = vmul.f32 %v7392_v46, %v6070_v1  ;;  %v6068_v53 = vsel %vm6067_vm15, %v7390_v36, %v6064_v35 }
 0x59f   : > { %v6079_v15 = vmul.f32 %v6068_v53, %v9053_v49 }
 0x5a0   : > { %v6072_v10 = vmul.f32 0.5, %v6071_v37 }
 0x5a1   : > { %v6081_v48 = vsel %vm9049_vm2, %v6079_v15, %v9053_v49 }
 0x5a2   : > { %v6073_v58 = vsub.f32 1.5, %v6072_v10 }
 0x5a4   : > { %v6074_v59 = vmul.f32 %v7392_v46, %v6073_v58 }
 0x5a6   : > { %v6078_v13 = vsel %vm6077_vm3, %v7392_v46, %v6074_v59 }
 0x5a7   : > { %v6080_v14 = vmul.f32 %v6078_v13, %v9058_v19 }
 0x5a9   : > { %v6082_v29 = vsel %vm9049_vm2, %v6080_v14, %v9058_v19 }
 0x5e8   : > { %v6087_v3 = vpop.permute.xlu1 %6086 }
 0x5e9   : > { %v6094_v7 = vsel %vm6083_vm4, %v6087_v3, %v6081_v48 }
 0x5ea   : > { %6096 = vst [vmem:[#allocation17] sm:$0xff] %v6094_v7 }
 0x5f0   : > { %v6092_v54 = vpop.permute.xlu1 %6091 }
 0x5f1   : > { %v6095_v20 = vsel %vm6083_vm4, %v6092_v54, %v6082_v29 }
 0x5f2   : > { %6097 = vst [vmem:[#allocation17 + $0x8] sm:$0xff] %v6095_v20 }
 0x5f3 PF: > { %p7326_p8 = scmp.eq.s32.totalorder %s7844_s10, 1  ;;  %s7759_s30 = smov [#allocation17]  }
 0x5f4   : > { %s6103_s17 = sshll.u32 %s7759_s30, 4  ;;  %s9140_s18 = sld [smem:[#allocation33_spill]]  ;;  %s6104_s17 = int_to_ptr.vmem [resolvable:$true] %s6103_s17 }
 0x5f5   : > { %s7760_s20 = smov 128   ;;  %s7761_s2 = smov 8  }
 0x5fa   : > { %s6105_s19 = sshll.u32 %s9140_s18, 4  ;;  %s6106_s19 = int_to_ptr.hbm [resolvable:$true] %s6105_s19 }
 0x5fb   : > { %7285 = dma.vmem_to_hbm [thread:$0]  (%p7326_p8), %s6104_s17, 256, %s6106_s19, [#allocation6], %s7760_s20, %s7760_s20, %s7761_s2  }
 0x5fc   : > { %7728 = dma.done.wait (%p7326_p8), [#allocation6], 256  }
 0x5fd   : > { %7730 = vsyncadd (%p7326_p8), [#allocation6], 4294967040 }
 0x5fe PF: > { %s9141_s22 = sld [smem:[#allocation26_spill]] }
 0x5ff   : > { %s9142_s19 = sld [smem:[#allocation24_spill]] }
 0x600   : > { %s9143_s20 = sld [smem:[#allocation25_spill]] }
 0x601   : > { %s9144_s21 = sld [smem:[#allocation27_spill]] }
 0x604   : > { %p24_p9 = scmp.ge.s32.totalorder %s9141_s22, 4  }
 0x606   :  { %26 = sbr.rel (!%p24_p9) target bundleno = 11 (0xb), region = 166 }
 0x60b   :  { %6122 = vsyncpa [#allocation5], 1 }
 0x60c   :  { %6124 = vsyncpa [#allocation5 + $0x1], 1 }
 0x60d   :  { %6125 = vsyncpa [#allocation8], 1 }
 0x60e   :  { %6126 = vsyncpa [#allocation16], 1 }
 0x60f   :  { %6127 = vsyncpa [#allocation6], 1 }
 0x610   :  { %6129 = vsyncpa [#allocation6 + $0x1], 1 }

</bundles_post_ra>
